<compile_context>
chip_gen: v7x
topology: tpu7x:2x2x1
jax: 0.10.0
libtpu: 0.0.40
codegen_flags: <defaults>
</compile_context>

<pallas_src>
import functools

import jax
import jax.numpy as jnp
from jax.experimental import pallas as pl
from jax.experimental.pallas import tpu as pltpu


# ----------------------------------------------------------------------------
# Pallas kernels
# ----------------------------------------------------------------------------
def _conv_tower_kernel(x_ref, w1e_ref, w1o_ref, bst1_ref, sel1_ref,
                       w2e_ref, w2o_ref, bst2_ref, sel2_ref,
                       w3_ref, bst3_ref, o_ref,
                       y1_ref, a1_ref, y2_ref, a2_ref):
    """conv1+bn1+pool -> conv2+bn2+pool(+conv3 halo) -> conv3+bn3 for one block
    of images.  Activations are [B*H, W*C] (images stacked along sublanes), so
    each conv is KH banded matmuls with MXU M-dim ~ B*H.  The few rows that
    straddle image boundaries carry finite garbage and are never selected /
    always hit zero weight rows downstream."""

    def banded(src_ref, w_ref):
        # valid conv along rows: acc[r] = sum_kh src[r+kh] @ w[kh]   (f32 acc)
        kh_n = w_ref.shape[0]
        m = src_ref.shape[0] - kh_n + 1
        acc = jnp.zeros((m, w_ref.shape[-1]), jnp.float32)
        for kh in range(kh_n):
            acc = acc + jnp.dot(src_ref[kh:kh + m, :], w_ref[kh],
                                preferred_element_type=jnp.float32)
        return acc

    def epilogue(acc, bst_ref):
        # bn(relu(conv + bias)); BN folded to per-lane scale/shift, all in f32.
        return (jnp.maximum(acc + bst_ref[0:1, :], 0.0) * bst_ref[1:2, :]
                + bst_ref[2:3, :])

    def pool_rows_and_store(y, y_ref, sel_ref, dst_ref):
        # Vertical 2-max via shifted reads of a VMEM scratch, then a single 0/1
        # row-selector matmul that picks every other conv row per image and
        # inserts the zero padding / halo rows of the next layer's layout.
        rows = y_ref.shape[0]
        m = y.shape[0]
        y_ref[0:m, :] = y.astype(y_ref.dtype)
        y_ref[m:rows, :] = jnp.zeros((rows - m, y_ref.shape[1]), y_ref.dtype)
        vmax = jnp.maximum(y_ref[0:rows - 1, :], y_ref[1:rows, :])
        dst_ref[...] = jnp.dot(sel_ref[...], vmax,
                               preferred_element_type=jnp.float32
                               ).astype(dst_ref.dtype)

    # conv1: [B*32,128] -> pooled 15x15x16, stored as 16x16x16 -> a1 [B*16,256]
    y = jnp.maximum(epilogue(banded(x_ref, w1e_ref), bst1_ref),
                    epilogue(banded(x_ref, w1o_ref), bst1_ref))
    pool_rows_and_store(y, y1_ref, sel1_ref, a1_ref)

    # conv2: [B*16,256] -> pooled 6x6x32 placed inside an 8x8x32 zero halo
    # (this realizes conv3's padding=1) -> a2 [B*8,256]
    y = jnp.maximum(epilogue(banded(a1_ref, w2e_ref), bst2_ref),
                    epilogue(banded(a1_ref, w2o_ref), bst2_ref))
    pool_rows_and_store(y, y2_ref, sel2_ref, a2_ref)

    # conv3: [B*8,256] -> 6x6x32 (rows 0..5, lanes 0..191) -> o [B*8,256]
    y = epilogue(banded(a2_ref, w3_ref), bst3_ref)
    m = y.shape[0]
    o_ref[0:m, :] = y.astype(o_ref.dtype)
    o_ref[m:o_ref.shape[0], :] = jnp.zeros(
        (o_ref.shape[0] - m, o_ref.shape[1]), o_ref.dtype)


def _fc_chain_kernel(x_ref, w1_ref, b1_ref, w2_ref, b2_ref, w3_ref, b3_ref,
                     o_ref):
    """fc1+ReLU -> fc2+ReLU -> fc3; bf16 matmul inputs, f32 accumulation."""
    h = jnp.dot(x_ref[...], w1_ref[...], preferred_element_type=jnp.float32)
    h = jnp.maximum(h + b1_ref[...], 0.0)
    h = jnp.dot(h.astype(w2_ref.dtype), w2_ref[...],
                preferred_element_type=jnp.float32)
    h = jnp.maximum(h + b2_ref[...], 0.0)
    h = jnp.dot(h.astype(w3_ref.dtype), w3_ref[...],
                preferred_element_type=jnp.float32) + b3_ref[...]
    o_ref[...] = h.astype(o_ref.dtype)


# ----------------------------------------------------------------------------
# pallas_call wrappers
# ----------------------------------------------------------------------------
def conv_tower(x_flat, prep, *, block):
    """x_flat: [Npad*32, 128] bf16 -> [Npad*8, 256] bf16 (flatten-ready conv3 out)."""
    rows = x_flat.shape[0]
    n_img = rows // 32
    bh1, bh2, bh3 = 32 * block, 16 * block, 8 * block
    assert rows % bh1 == 0

    def full(a):
        return pl.BlockSpec(a.shape, lambda i: (0,) * a.ndim)

    return pl.pallas_call(
        _conv_tower_kernel,
        grid=(rows // bh1,),
        in_specs=[
            pl.BlockSpec((bh1, 128), lambda i: (i, 0)),       # block of images
            full(prep["w1e"]), full(prep["w1o"]), full(prep["bst1"]), full(prep["sel1"]),
            full(prep["w2e"]), full(prep["w2o"]), full(prep["bst2"]), full(prep["sel2"]),
            full(prep["w3"]), full(prep["bst3"]),
        ],
        out_specs=pl.BlockSpec((bh3, 256), lambda i: (i, 0)),
        out_shape=jax.ShapeDtypeStruct((n_img * 8, 256), jnp.bfloat16),
        scratch_shapes=[
            pltpu.VMEM((bh1, 256), jnp.bfloat16),   # conv1 pre-pool rows
            pltpu.VMEM((bh2, 256), jnp.bfloat16),   # conv1 pooled out (conv2 input)
            pltpu.VMEM((bh2, 256), jnp.bfloat16),   # conv2 pre-pool rows
            pltpu.VMEM((bh3, 256), jnp.bfloat16),   # conv2 pooled out (conv3 input)
        ],
        compiler_params=pltpu.CompilerParams(dimension_semantics=("parallel",)),
    )(x_flat, prep["w1e"], prep["w1o"], prep["bst1"], prep["sel1"],
      prep["w2e"], prep["w2o"], prep["bst2"], prep["sel2"],
      prep["w3"], prep["bst3"])


def fc_chain(x, prep):
    """x: [Npad, 2048] bf16 -> [Npad, 10] f32; N tiled over a parallel grid."""
    rows = x.shape[0]
    blk = rows
    for cand in (256, 128, 64, 32, 16, 8):
        if rows % cand == 0:
            blk = cand
            break

    def full(a):
        return pl.BlockSpec(a.shape, lambda i: (0, 0))

    return pl.pallas_call(
        _fc_chain_kernel,
        grid=(rows // blk,),
        in_specs=[
            pl.BlockSpec((blk, x.shape[1]), lambda i: (i, 0)),
            full(prep["fc1_w"]), full(prep["fc1_b"]),
            full(prep["fc2_w"]), full(prep["fc2_b"]),
            full(prep["fc3_w"]), full(prep["fc3_b"]),
        ],
        out_specs=pl.BlockSpec((blk, 10), lambda i: (i, 0)),
        out_shape=jax.ShapeDtypeStruct((rows, 10), jnp.float32),
        compiler_params=pltpu.CompilerParams(dimension_semantics=("parallel",)),
    )(x, prep["fc1_w"], prep["fc1_b"], prep["fc2_w"], prep["fc2_b"],
      prep["fc3_w"], prep["fc3_b"])


# ----------------------------------------------------------------------------
# One-time parameter preparation (banded conv weights, folded BN, selectors,
# fc permutation / padding).  `block` = images per conv grid step.
# ----------------------------------------------------------------------------
def prepare_params(p, *, block=8, eps=1e-5):
    f32 = jnp.float32

    def fold_bn(g, b, m, v):
        s = g / jnp.sqrt(v + eps)
        return s, b - m * s

    def banded(w, w_in, ow_list, out_w, out_col0):
        """w: [KH,KW,Cin,Cout] -> [KH, w_in*Cin, out_w*Cout] banded matrix with the
        conv output for spatial col ow_list[j] placed at lane block out_col0+j."""
        kh, kw, cin, cout = w.shape
        w2 = w.reshape(kh, kw * cin, cout)
        big = jnp.zeros((kh, w_in * cin, out_w * cout), f32)
        for j, ow in enumerate(ow_list):
            col = (out_col0 + j) * cout
            big = big.at[:, ow * cin:(ow + kw) * cin, col:col + cout].set(w2)
        return big.astype(jnp.bfloat16)

    def lane_vec(v, reps, lane0, width=256):
        out = jnp.zeros((width,), f32)
        return out.at[lane0:lane0 + v.shape[0] * reps].set(jnp.tile(v, reps))

    def selector(bb, h_in, h_out, n_valid, row_off):
        """[bb*h_out, bb*h_in - 1] 0/1 matrix: output row b*h_out+row_off+j picks
        vmax row b*h_in + 2j; all other rows are zero (padding / halo rows)."""
        s = jnp.zeros((bb * h_out, bb * h_in - 1), f32)
        b_idx = jnp.repeat(jnp.arange(bb), n_valid)
        j_idx = jnp.tile(jnp.arange(n_valid), bb)
        rows = b_idx * h_out + row_off + j_idx
        cols = b_idx * h_in + 2 * j_idx
        return s.at[rows, cols].set(1.0).astype(jnp.bfloat16)

    s1, t1 = fold_bn(p["bn1_gamma"], p["bn1_beta"], p["bn1_mean"], p["bn1_var"])
    s2, t2 = fold_bn(p["bn2_gamma"], p["bn2_beta"], p["bn2_mean"], p["bn2_var"])
    s3, t3 = fold_bn(p["bn3_gamma"], p["bn3_beta"], p["bn3_mean"], p["bn3_var"])

    prep = {}
    # conv1: 32x32x3 -> 30x30x16 -> relu/bn1/pool -> 15x15x16, stored as 16x16x16.
    w1e = banded(p["conv1_w"], 32, range(0, 30, 2), 16, 0)
    w1o = banded(p["conv1_w"], 32, range(1, 30, 2), 16, 0)
    prep["w1e"] = jnp.pad(w1e, ((0, 0), (0, 32), (0, 0)))     # K: 96 -> 128
    prep["w1o"] = jnp.pad(w1o, ((0, 0), (0, 32), (0, 0)))
    prep["bst1"] = jnp.stack([lane_vec(p["conv1_b"], 16, 0),
                              lane_vec(s1, 16, 0),
                              lane_vec(t1, 16, 0)])
    prep["sel1"] = selector(block, 32, 16, 15, 0)
    # conv2: 16x16x16(padded) -> 13x13x32 -> relu/bn2/pool -> 6x6x32, placed with a
    # +1 zero halo (rows 1..6, lanes 32..223 of 8x8x32) = conv3's padding=1.
    prep["w2e"] = banded(p["conv2_w"], 16, range(0, 12, 2), 8, 1)
    prep["w2o"] = banded(p["conv2_w"], 16, range(1, 12, 2), 8, 1)
    prep["bst2"] = jnp.stack([lane_vec(p["conv2_b"], 6, 32),
                              lane_vec(s2, 6, 32),
                              lane_vec(t2, 6, 32)])
    prep["sel2"] = selector(block, 16, 8, 6, 1)
    # conv3: padded 8x8x32 -> 6x6x32 (rows 0..5, lanes 0..191 of an 8x256 slab).
    prep["w3"] = banded(p["conv3_w"], 8, range(6), 8, 0)
    prep["bst3"] = jnp.stack([lane_vec(p["conv3_b"], 6, 0),
                              lane_vec(s3, 6, 0),
                              lane_vec(t3, 6, 0)])
    # fc1: permute rows from PyTorch NCHW-flat (c,h,w) order to the padded
    # (h-row, w*32+c lane) layout of the conv3 output slab -> [2048, 128].
    w1 = p["fc1_w"].reshape(32, 6, 6, 128).transpose(1, 2, 0, 3)   # [h, w, c, out]
    w1p = jnp.zeros((8, 8, 32, 128), f32).at[:6, :6].set(w1)
    prep["fc1_w"] = w1p.reshape(8 * 8 * 32, 128).astype(jnp.bfloat16)
    prep["fc1_b"] = p["fc1_b"][None, :].astype(f32)
    # fc2 / fc3 padded to 128 wide so every MXU pass is full width.
    prep["fc2_w"] = (jnp.zeros((128, 128), f32).at[:, :64].set(p["fc2_w"])
                     .astype(jnp.bfloat16))
    prep["fc2_b"] = jnp.zeros((1, 128), f32).at[0, :64].set(p["fc2_b"])
    prep["fc3_w"] = (jnp.zeros((128, 10), f32).at[:64].set(p["fc3_w"])
                     .astype(jnp.bfloat16))
    prep["fc3_b"] = p["fc3_b"][None, :].astype(f32)
    return prep


# ----------------------------------------------------------------------------
# Deterministic parameter init (shapes from NetCustom.__init__)
# ----------------------------------------------------------------------------
def init_params(key):
    ks = jax.random.split(key, 12)

    def w_init(k, shape, fan_in):
        return jax.random.normal(k, shape, jnp.float32) / jnp.sqrt(float(fan_in))

    p = {}
    p["conv1_w"] = w_init(ks[0], (3, 3, 3, 16), 27)            # [KH, KW, Cin, Cout]
    p["conv1_b"] = 0.01 * jax.random.normal(ks[1], (16,), jnp.float32)
    p["conv2_w"] = w_init(ks[2], (3, 3, 16, 32), 144)
    p["conv2_b"] = 0.01 * jax.random.normal(ks[3], (32,), jnp.float32)
    p["conv3_w"] = w_init(ks[4], (3, 3, 32, 32), 288)
    p["conv3_b"] = 0.01 * jax.random.normal(ks[5], (32,), jnp.float32)
    p["fc1_w"] = w_init(ks[6], (32 * 6 * 6, 128), 32 * 6 * 6)  # rows in NCHW-flat order
    p["fc1_b"] = 0.01 * jax.random.normal(ks[7], (128,), jnp.float32)
    p["fc2_w"] = w_init(ks[8], (128, 64), 128)
    p["fc2_b"] = 0.01 * jax.random.normal(ks[9], (64,), jnp.float32)
    p["fc3_w"] = w_init(ks[10], (64, 10), 64)
    p["fc3_b"] = 0.01 * jax.random.normal(ks[11], (10,), jnp.float32)

    # BatchNorm parameters (eval mode: gamma/beta + running mean/var)
    for i, c in zip((1, 2, 3), (16, 32, 32)):
        k0, k1, k2, k3 = jax.random.split(
            jax.random.fold_in(jax.random.PRNGKey(1), i), 4)
        p[f"bn{i}_gamma"] = 1.0 + 0.1 * jax.random.normal(k0, (c,), jnp.float32)
        p[f"bn{i}_beta"] = 0.1 * jax.random.normal(k1, (c,), jnp.float32)
        p[f"bn{i}_mean"] = 0.1 * jax.random.normal(k2, (c,), jnp.float32)
        p[f"bn{i}_var"] = 1.0 + 0.1 * jnp.abs(jax.random.normal(k3, (c,), jnp.float32))
    return p


# ----------------------------------------------------------------------------
# Full forward pass (mirrors NetCustom.forward)
# ----------------------------------------------------------------------------
def net_forward(prep, x_nchw, *, block=8):
    n = x_nchw.shape[0]
    assert x_nchw.shape[1:] == (3, 32, 32), "NetCustom requires 3x32x32 inputs"
    n_pad = pl.cdiv(n, block) * block
    # NCHW -> NHWC -> [N, 32, 96]; zero-pad the batch to the block size and the
    # lane dim 96 -> 128 (lane-dense DMA, K=128 first matmul); stack images.
    x = jnp.transpose(x_nchw, (0, 2, 3, 1)).reshape(n, 32, 96)
    x = jnp.pad(x, ((0, n_pad - n), (0, 0), (0, 32)))
    x = x.reshape(n_pad * 32, 128).astype(jnp.bfloat16)

    feats = conv_tower(x, prep, block=block)          # [n_pad*8, 256] bf16
    feats = feats.reshape(n_pad, 8 * 256)             # contiguous (free) reshape
    logits = fc_chain(feats, prep)                    # [n_pad, 10] f32
    return logits[:n]


# ----------------------------------------------------------------------------
# Pure-JAX reference (f32) for correctness checking
# ----------------------------------------------------------------------------
def reference_forward(p, x, eps=1e-5):
    def conv(h, w, b, pad):
        out = jax.lax.conv_general_dilated(
            h, w, (1, 1), [(pad, pad), (pad, pad)],
            dimension_numbers=("NCHW", "HWIO", "NCHW"))
        return out + b[None, :, None, None]

    def bn(h, g, be, m, v):
        inv = g / jnp.sqrt(v + eps)
        return (h - m[None, :, None, None]) * inv[None, :, None, None] \
            + be[None, :, None, None]

    def pool(h):
        return jax.lax.reduce_window(h, -jnp.inf, jax.lax.max,
                                     (1, 1, 2, 2), (1, 1, 2, 2), "VALID")

    h = pool(bn(jax.nn.relu(conv(x, p["conv1_w"], p["conv1_b"], 0)),
                p["bn1_gamma"], p["bn1_beta"], p["bn1_mean"], p["bn1_var"]))
    h = pool(bn(jax.nn.relu(conv(h, p["conv2_w"], p["conv2_b"], 0)),
                p["bn2_gamma"], p["bn2_beta"], p["bn2_mean"], p["bn2_var"]))
    h = bn(jax.nn.relu(conv(h, p["conv3_w"], p["conv3_b"], 1)),
           p["bn3_gamma"], p["bn3_beta"], p["bn3_mean"], p["bn3_var"])
    h = h.reshape(h.shape[0], -1)
    h = jax.nn.relu(h @ p["fc1_w"] + p["fc1_b"])
    h = jax.nn.relu(h @ p["fc2_w"] + p["fc2_b"])
    return h @ p["fc3_w"] + p["fc3_b"]


if __name__ == "__main__":
    key = jax.random.PRNGKey(0)
    kx, kp = jax.random.split(key)
    # CIFAR-10 sized input (NCHW like PyTorch); 32x32 is required by fc_in=32*6*6.
    # batch=16 with block=8 -> conv grid length 2, so both v7x TensorCores get work.
    batch, block = 16, 8
    x = jax.random.normal(kx, (batch, 3, 32, 32), jnp.float32)
    params = init_params(kp)

    prep = prepare_params(params, block=block)        # one-time weight preprocessing
    fwd = jax.jit(functools.partial(net_forward, block=block))
    out = jax.block_until_ready(fwd(prep, x))
    assert out.shape == (batch, 10) and out.dtype == jnp.float32

    # Correctness check against a pure-JAX f32 reference (tolerance covers the
    # bf16 matmul inputs; structural/layout bugs would be O(|logit|) off).
    ref = jax.block_until_ready(jax.jit(reference_forward)(params, x))
    err = float(jnp.max(jnp.abs(out - ref)))
    scale = float(jnp.max(jnp.abs(ref)))
    assert err <= 0.1 + 0.08 * scale, (
        f"mismatch vs reference: max|err|={err:.4f}, max|ref|={scale:.4f}")
    print("KERNEL_OK")
</pallas_src>

<mosaic_0001>
module attributes {stable_mosaic.version = 11 : i64} {
  func.func @_fc_chain_kernel(%arg0: i32, %arg1: memref<16x2048xbf16, #tpu.memory_space<vmem>>, %arg2: memref<2048x128xbf16, #tpu.memory_space<vmem>>, %arg3: memref<1x128xf32, #tpu.memory_space<vmem>>, %arg4: memref<128x128xbf16, #tpu.memory_space<vmem>>, %arg5: memref<1x128xf32, #tpu.memory_space<vmem>>, %arg6: memref<128x10xbf16, #tpu.memory_space<vmem>>, %arg7: memref<1x10xf32, #tpu.memory_space<vmem>>, %arg8: memref<16x10xf32, #tpu.memory_space<vmem>>) attributes {dimension_semantics = [#tpu.dimension_semantics<parallel>], iteration_bounds = array<i64: 1>, scalar_prefetch = 0 : i64, scratch_operands = 0 : i64, tpu.core_type = #tpu.core_type<tc>, window_params = [{transform_indices = @transform_0, window_bounds = array<i64: 16, 2048>}, {pipeline_mode = #tpu.pipeline_mode<synchronous>, transform_indices = @transform_1, window_bounds = array<i64: 2048, 128>}, {pipeline_mode = #tpu.pipeline_mode<synchronous>, transform_indices = @transform_2, window_bounds = array<i64: 1, 128>}, {pipeline_mode = #tpu.pipeline_mode<synchronous>, transform_indices = @transform_3, window_bounds = array<i64: 128, 128>}, {pipeline_mode = #tpu.pipeline_mode<synchronous>, transform_indices = @transform_4, window_bounds = array<i64: 1, 128>}, {pipeline_mode = #tpu.pipeline_mode<synchronous>, transform_indices = @transform_5, window_bounds = array<i64: 128, 10>}, {pipeline_mode = #tpu.pipeline_mode<synchronous>, transform_indices = @transform_6, window_bounds = array<i64: 1, 10>}, {transform_indices = @transform_7, window_bounds = array<i64: 16, 10>}]} {
    %c0 = arith.constant 0 : index
    %c0_0 = arith.constant 0 : index
    %0 = vector.load %arg1[%c0, %c0_0] : memref<16x2048xbf16, #tpu.memory_space<vmem>>, vector<16x2048xbf16>
    %c0_1 = arith.constant 0 : index
    %c0_2 = arith.constant 0 : index
    %1 = vector.load %arg2[%c0_1, %c0_2] : memref<2048x128xbf16, #tpu.memory_space<vmem>>, vector<2048x128xbf16>
    %cst = arith.constant dense<0.000000e+00> : vector<16x128xf32>
    %2 = tpu.matmul %0, %1, %cst {dimension_numbers = #tpu.dot_dimension_numbers<[1], [0], [0], [1], [0, 0, 1, 1], [], []>} : vector<16x2048xbf16>, vector<2048x128xbf16>, vector<16x128xf32> -> vector<16x128xf32>
    %c0_3 = arith.constant 0 : index
    %c0_4 = arith.constant 0 : index
    %3 = vector.load %arg3[%c0_3, %c0_4] : memref<1x128xf32, #tpu.memory_space<vmem>>, vector<1x128xf32>
    %4 = vector.broadcast %3 : vector<1x128xf32> to vector<16x128xf32>
    %5 = arith.addf %2, %4 : vector<16x128xf32>
    %cst_5 = arith.constant 0.000000e+00 : f32
    %6 = vector.broadcast %cst_5 : f32 to vector<16x128xf32>
    %7 = arith.maximumf %5, %6 : vector<16x128xf32>
    %8 = arith.truncf %7 : vector<16x128xf32> to vector<16x128xbf16>
    %c0_6 = arith.constant 0 : index
    %c0_7 = arith.constant 0 : index
    %9 = vector.load %arg4[%c0_6, %c0_7] : memref<128x128xbf16, #tpu.memory_space<vmem>>, vector<128x128xbf16>
    %cst_8 = arith.constant dense<0.000000e+00> : vector<16x128xf32>
    %10 = tpu.matmul %8, %9, %cst_8 {dimension_numbers = #tpu.dot_dimension_numbers<[1], [0], [0], [1], [0, 0, 1, 1], [], []>} : vector<16x128xbf16>, vector<128x128xbf16>, vector<16x128xf32> -> vector<16x128xf32>
    %c0_9 = arith.constant 0 : index
    %c0_10 = arith.constant 0 : index
    %11 = vector.load %arg5[%c0_9, %c0_10] : memref<1x128xf32, #tpu.memory_space<vmem>>, vector<1x128xf32>
    %12 = vector.broadcast %11 : vector<1x128xf32> to vector<16x128xf32>
    %13 = arith.addf %10, %12 : vector<16x128xf32>
    %cst_11 = arith.constant 0.000000e+00 : f32
    %14 = vector.broadcast %cst_11 : f32 to vector<16x128xf32>
    %15 = arith.maximumf %13, %14 : vector<16x128xf32>
    %16 = arith.truncf %15 : vector<16x128xf32> to vector<16x128xbf16>
    %c0_12 = arith.constant 0 : index
    %c0_13 = arith.constant 0 : index
    %17 = vector.load %arg6[%c0_12, %c0_13] : memref<128x10xbf16, #tpu.memory_space<vmem>>, vector<128x10xbf16>
    %cst_14 = arith.constant dense<0.000000e+00> : vector<16x10xf32>
    %18 = tpu.matmul %16, %17, %cst_14 {dimension_numbers = #tpu.dot_dimension_numbers<[1], [0], [0], [1], [0, 0, 1, 1], [], []>} : vector<16x128xbf16>, vector<128x10xbf16>, vector<16x10xf32> -> vector<16x10xf32>
    %c0_15 = arith.constant 0 : index
    %c0_16 = arith.constant 0 : index
    %19 = vector.load %arg7[%c0_15, %c0_16] : memref<1x10xf32, #tpu.memory_space<vmem>>, vector<1x10xf32>
    %20 = vector.broadcast %19 : vector<1x10xf32> to vector<16x10xf32>
    %21 = arith.addf %18, %20 : vector<16x10xf32>
    %c0_17 = arith.constant 0 : index
    %c0_18 = arith.constant 0 : index
    %22 = vector.load %arg8[%c0_17, %c0_18] : memref<16x10xf32, #tpu.memory_space<vmem>>, vector<16x10xf32>
    tpu.vector_store %arg8[%c0_17, %c0_18], %21 {strides = array<i32>} : memref<16x10xf32, #tpu.memory_space<vmem>>, vector<16x10xf32>,
    return
  }
  func.func @transform_0(%arg0: i32) -> (i32, i32) {
    %c0_i32 = arith.constant 0 : i32
    %c0_i32_0 = arith.constant 0 : i32
    return %arg0, %c0_i32 : i32, i32
  }
  func.func @transform_1(%arg0: i32) -> (i32, i32) {
    %c0_i32 = arith.constant 0 : i32
    %c0_i32_0 = arith.constant 0 : i32
    %c0_i32_1 = arith.constant 0 : i32
    return %c0_i32, %c0_i32_0 : i32, i32
  }
  func.func @transform_2(%arg0: i32) -> (i32, i32) {
    %c0_i32 = arith.constant 0 : i32
    %c0_i32_0 = arith.constant 0 : i32
    %c0_i32_1 = arith.constant 0 : i32
    return %c0_i32, %c0_i32_0 : i32, i32
  }
  func.func @transform_3(%arg0: i32) -> (i32, i32) {
    %c0_i32 = arith.constant 0 : i32
    %c0_i32_0 = arith.constant 0 : i32
    %c0_i32_1 = arith.constant 0 : i32
    return %c0_i32, %c0_i32_0 : i32, i32
  }
  func.func @transform_4(%arg0: i32) -> (i32, i32) {
    %c0_i32 = arith.constant 0 : i32
    %c0_i32_0 = arith.constant 0 : i32
    %c0_i32_1 = arith.constant 0 : i32
    return %c0_i32, %c0_i32_0 : i32, i32
  }
  func.func @transform_5(%arg0: i32) -> (i32, i32) {
    %c0_i32 = arith.constant 0 : i32
    %c0_i32_0 = arith.constant 0 : i32
    %c0_i32_1 = arith.constant 0 : i32
    return %c0_i32, %c0_i32_0 : i32, i32
  }
  func.func @transform_6(%arg0: i32) -> (i32, i32) {
    %c0_i32 = arith.constant 0 : i32
    %c0_i32_0 = arith.constant 0 : i32
    %c0_i32_1 = arith.constant 0 : i32
    return %c0_i32, %c0_i32_0 : i32, i32
  }
  func.func @transform_7(%arg0: i32) -> (i32, i32) {
    %c0_i32 = arith.constant 0 : i32
    %c0_i32_0 = arith.constant 0 : i32
    return %arg0, %c0_i32 : i32, i32
  }
}

module attributes {stable_mosaic.version = 11 : i64} {
  func.func @_conv_tower_kernel(%arg0: i32, %arg1: memref<256x128xbf16, #tpu.memory_space<vmem>>, %arg2: memref<3x128x256xbf16, #tpu.memory_space<vmem>>, %arg3: memref<3x128x256xbf16, #tpu.memory_space<vmem>>, %arg4: memref<3x256xf32, #tpu.memory_space<vmem>>, %arg5: memref<128x255xbf16, #tpu.memory_space<vmem>>, %arg6: memref<3x256x256xbf16, #tpu.memory_space<vmem>>, %arg7: memref<3x256x256xbf16, #tpu.memory_space<vmem>>, %arg8: memref<3x256xf32, #tpu.memory_space<vmem>>, %arg9: memref<64x127xbf16, #tpu.memory_space<vmem>>, %arg10: memref<3x256x256xbf16, #tpu.memory_space<vmem>>, %arg11: memref<3x256xf32, #tpu.memory_space<vmem>>, %arg12: memref<64x256xbf16, #tpu.memory_space<vmem>>, %arg13: memref<256x256xbf16, #tpu.memory_space<vmem>>, %arg14: memref<128x256xbf16, #tpu.memory_space<vmem>>, %arg15: memref<128x256xbf16, #tpu.memory_space<vmem>>, %arg16: memref<64x256xbf16, #tpu.memory_space<vmem>>) attributes {dimension_semantics = [#tpu.dimension_semantics<parallel>], iteration_bounds = array<i64: 2>, scalar_prefetch = 0 : i64, scratch_operands = 4 : i64, tpu.core_type = #tpu.core_type<tc>, window_params = [{transform_indices = @transform_0, window_bounds = array<i64: 256, 128>}, {pipeline_mode = #tpu.pipeline_mode<synchronous>, transform_indices = @transform_1, window_bounds = array<i64: 3, 128, 256>}, {pipeline_mode = #tpu.pipeline_mode<synchronous>, transform_indices = @transform_2, window_bounds = array<i64: 3, 128, 256>}, {pipeline_mode = #tpu.pipeline_mode<synchronous>, transform_indices = @transform_3, window_bounds = array<i64: 3, 256>}, {pipeline_mode = #tpu.pipeline_mode<synchronous>, transform_indices = @transform_4, window_bounds = array<i64: 128, 255>}, {pipeline_mode = #tpu.pipeline_mode<synchronous>, transform_indices = @transform_5, window_bounds = array<i64: 3, 256, 256>}, {pipeline_mode = #tpu.pipeline_mode<synchronous>, transform_indices = @transform_6, window_bounds = array<i64: 3, 256, 256>}, {pipeline_mode = #tpu.pipeline_mode<synchronous>, transform_indices = @transform_7, window_bounds = array<i64: 3, 256>}, {pipeline_mode = #tpu.pipeline_mode<synchronous>, transform_indices = @transform_8, window_bounds = array<i64: 64, 127>}, {pipeline_mode = #tpu.pipeline_mode<synchronous>, transform_indices = @transform_9, window_bounds = array<i64: 3, 256, 256>}, {pipeline_mode = #tpu.pipeline_mode<synchronous>, transform_indices = @transform_10, window_bounds = array<i64: 3, 256>}, {transform_indices = @transform_11, window_bounds = array<i64: 64, 256>}]} {
    %cst = arith.constant 0.000000e+00 : f32
    %0 = vector.broadcast %cst : f32 to vector<254x256xf32>
    %c0 = arith.constant 0 : index
    %c0_0 = arith.constant 0 : index
    %1 = vector.load %arg1[%c0, %c0_0] : memref<256x128xbf16, #tpu.memory_space<vmem>>, vector<254x128xbf16>
    %c0_1 = arith.constant 0 : index
    %c0_2 = arith.constant 0 : index
    %c0_3 = arith.constant 0 : index
    %2 = vector.load %arg2[%c0_1, %c0_2, %c0_3] : memref<3x128x256xbf16, #tpu.memory_space<vmem>>, vector<1x128x256xbf16>
    %3 = vector.shape_cast %2 : vector<1x128x256xbf16> to vector<128x256xbf16>
    %cst_4 = arith.constant dense<0.000000e+00> : vector<254x256xf32>
    %4 = tpu.matmul %1, %3, %cst_4 {dimension_numbers = #tpu.dot_dimension_numbers<[1], [0], [0], [1], [0, 0, 1, 1], [], []>} : vector<254x128xbf16>, vector<128x256xbf16>, vector<254x256xf32> -> vector<254x256xf32>
    %5 = arith.addf %0, %4 : vector<254x256xf32>
    %c1 = arith.constant 1 : index
    %c0_5 = arith.constant 0 : index
    %6 = vector.load %arg1[%c1, %c0_5] : memref<256x128xbf16, #tpu.memory_space<vmem>>, vector<254x128xbf16>
    %c1_6 = arith.constant 1 : index
    %c0_7 = arith.constant 0 : index
    %c0_8 = arith.constant 0 : index
    %7 = vector.load %arg2[%c1_6, %c0_7, %c0_8] : memref<3x128x256xbf16, #tpu.memory_space<vmem>>, vector<1x128x256xbf16>
    %8 = vector.shape_cast %7 : vector<1x128x256xbf16> to vector<128x256xbf16>
    %cst_9 = arith.constant dense<0.000000e+00> : vector<254x256xf32>
    %9 = tpu.matmul %6, %8, %cst_9 {dimension_numbers = #tpu.dot_dimension_numbers<[1], [0], [0], [1], [0, 0, 1, 1], [], []>} : vector<254x128xbf16>, vector<128x256xbf16>, vector<254x256xf32> -> vector<254x256xf32>
    %10 = arith.addf %5, %9 : vector<254x256xf32>
    %c2 = arith.constant 2 : index
    %c0_10 = arith.constant 0 : index
    %11 = vector.load %arg1[%c2, %c0_10] : memref<256x128xbf16, #tpu.memory_space<vmem>>, vector<254x128xbf16>
    %c2_11 = arith.constant 2 : index
    %c0_12 = arith.constant 0 : index
    %c0_13 = arith.constant 0 : index
    %12 = vector.load %arg2[%c2_11, %c0_12, %c0_13] : memref<3x128x256xbf16, #tpu.memory_space<vmem>>, vector<1x128x256xbf16>
    %13 = vector.shape_cast %12 : vector<1x128x256xbf16> to vector<128x256xbf16>
    %cst_14 = arith.constant dense<0.000000e+00> : vector<254x256xf32>
    %14 = tpu.matmul %11, %13, %cst_14 {dimension_numbers = #tpu.dot_dimension_numbers<[1], [0], [0], [1], [0, 0, 1, 1], [], []>} : vector<254x128xbf16>, vector<128x256xbf16>, vector<254x256xf32> -> vector<254x256xf32>
    %15 = arith.addf %10, %14 : vector<254x256xf32>
    %c0_15 = arith.constant 0 : index
    %c0_16 = arith.constant 0 : index
    %16 = vector.load %arg4[%c0_15, %c0_16] : memref<3x256xf32, #tpu.memory_space<vmem>>, vector<1x256xf32>
    %17 = vector.broadcast %16 : vector<1x256xf32> to vector<254x256xf32>
    %18 = arith.addf %15, %17 : vector<254x256xf32>
    %cst_17 = arith.constant 0.000000e+00 : f32
    %19 = vector.broadcast %cst_17 : f32 to vector<254x256xf32>
    %20 = arith.maximumf %18, %19 : vector<254x256xf32>
    %c1_18 = arith.constant 1 : index
    %c0_19 = arith.constant 0 : index
    %21 = vector.load %arg4[%c1_18, %c0_19] : memref<3x256xf32, #tpu.memory_space<vmem>>, vector<1x256xf32>
    %22 = vector.broadcast %21 : vector<1x256xf32> to vector<254x256xf32>
    %23 = arith.mulf %20, %22 : vector<254x256xf32>
    %c2_20 = arith.constant 2 : index
    %c0_21 = arith.constant 0 : index
    %24 = vector.load %arg4[%c2_20, %c0_21] : memref<3x256xf32, #tpu.memory_space<vmem>>, vector<1x256xf32>
    %25 = vector.broadcast %24 : vector<1x256xf32> to vector<254x256xf32>
    %26 = arith.addf %23, %25 : vector<254x256xf32>
    %cst_22 = arith.constant 0.000000e+00 : f32
    %27 = vector.broadcast %cst_22 : f32 to vector<254x256xf32>
    %c0_23 = arith.constant 0 : index
    %c0_24 = arith.constant 0 : index
    %28 = vector.load %arg1[%c0_23, %c0_24] : memref<256x128xbf16, #tpu.memory_space<vmem>>, vector<254x128xbf16>
    %c0_25 = arith.constant 0 : index
    %c0_26 = arith.constant 0 : index
    %c0_27 = arith.constant 0 : index
    %29 = vector.load %arg3[%c0_25, %c0_26, %c0_27] : memref<3x128x256xbf16, #tpu.memory_space<vmem>>, vector<1x128x256xbf16>
    %30 = vector.shape_cast %29 : vector<1x128x256xbf16> to vector<128x256xbf16>
    %cst_28 = arith.constant dense<0.000000e+00> : vector<254x256xf32>
    %31 = tpu.matmul %28, %30, %cst_28 {dimension_numbers = #tpu.dot_dimension_numbers<[1], [0], [0], [1], [0, 0, 1, 1], [], []>} : vector<254x128xbf16>, vector<128x256xbf16>, vector<254x256xf32> -> vector<254x256xf32>
    %32 = arith.addf %27, %31 : vector<254x256xf32>
    %c1_29 = arith.constant 1 : index
    %c0_30 = arith.constant 0 : index
    %33 = vector.load %arg1[%c1_29, %c0_30] : memref<256x128xbf16, #tpu.memory_space<vmem>>, vector<254x128xbf16>
    %c1_31 = arith.constant 1 : index
    %c0_32 = arith.constant 0 : index
    %c0_33 = arith.constant 0 : index
    %34 = vector.load %arg3[%c1_31, %c0_32, %c0_33] : memref<3x128x256xbf16, #tpu.memory_space<vmem>>, vector<1x128x256xbf16>
    %35 = vector.shape_cast %34 : vector<1x128x256xbf16> to vector<128x256xbf16>
    %cst_34 = arith.constant dense<0.000000e+00> : vector<254x256xf32>
    %36 = tpu.matmul %33, %35, %cst_34 {dimension_numbers = #tpu.dot_dimension_numbers<[1], [0], [0], [1], [0, 0, 1, 1], [], []>} : vector<254x128xbf16>, vector<128x256xbf16>, vector<254x256xf32> -> vector<254x256xf32>
    %37 = arith.addf %32, %36 : vector<254x256xf32>
    %c2_35 = arith.constant 2 : index
    %c0_36 = arith.constant 0 : index
    %38 = vector.load %arg1[%c2_35, %c0_36] : memref<256x128xbf16, #tpu.memory_space<vmem>>, vector<254x128xbf16>
    %c2_37 = arith.constant 2 : index
    %c0_38 = arith.constant 0 : index
    %c0_39 = arith.constant 0 : index
    %39 = vector.load %arg3[%c2_37, %c0_38, %c0_39] : memref<3x128x256xbf16, #tpu.memory_space<vmem>>, vector<1x128x256xbf16>
    %40 = vector.shape_cast %39 : vector<1x128x256xbf16> to vector<128x256xbf16>
    %cst_40 = arith.constant dense<0.000000e+00> : vector<254x256xf32>
    %41 = tpu.matmul %38, %40, %cst_40 {dimension_numbers = #tpu.dot_dimension_numbers<[1], [0], [0], [1], [0, 0, 1, 1], [], []>} : vector<254x128xbf16>, vector<128x256xbf16>, vector<254x256xf32> -> vector<254x256xf32>
    %42 = arith.addf %37, %41 : vector<254x256xf32>
    %c0_41 = arith.constant 0 : index
    %c0_42 = arith.constant 0 : index
    %43 = vector.load %arg4[%c0_41, %c0_42] : memref<3x256xf32, #tpu.memory_space<vmem>>, vector<1x256xf32>
    %44 = vector.broadcast %43 : vector<1x256xf32> to vector<254x256xf32>
    %45 = arith.addf %42, %44 : vector<254x256xf32>
    %cst_43 = arith.constant 0.000000e+00 : f32
    %46 = vector.broadcast %cst_43 : f32 to vector<254x256xf32>
    %47 = arith.maximumf %45, %46 : vector<254x256xf32>
    %c1_44 = arith.constant 1 : index
    %c0_45 = arith.constant 0 : index
    %48 = vector.load %arg4[%c1_44, %c0_45] : memref<3x256xf32, #tpu.memory_space<vmem>>, vector<1x256xf32>
    %49 = vector.broadcast %48 : vector<1x256xf32> to vector<254x256xf32>
    %50 = arith.mulf %47, %49 : vector<254x256xf32>
    %c2_46 = arith.constant 2 : index
    %c0_47 = arith.constant 0 : index
    %51 = vector.load %arg4[%c2_46, %c0_47] : memref<3x256xf32, #tpu.memory_space<vmem>>, vector<1x256xf32>
    %52 = vector.broadcast %51 : vector<1x256xf32> to vector<254x256xf32>
    %53 = arith.addf %50, %52 : vector<254x256xf32>
    %54 = arith.maximumf %26, %53 : vector<254x256xf32>
    %55 = arith.truncf %54 : vector<254x256xf32> to vector<254x256xbf16>
    %c0_48 = arith.constant 0 : index
    %c0_49 = arith.constant 0 : index
    %56 = vector.load %arg13[%c0_48, %c0_49] : memref<256x256xbf16, #tpu.memory_space<vmem>>, vector<254x256xbf16>
    tpu.vector_store %arg13[%c0_48, %c0_49], %55 {strides = array<i32>} : memref<256x256xbf16, #tpu.memory_space<vmem>>, vector<254x256xbf16>,
    %cst_50 = arith.constant 0.000000e+00 : bf16
    %57 = vector.broadcast %cst_50 : bf16 to vector<2x256xbf16>
    %c254 = arith.constant 254 : index
    %c0_51 = arith.constant 0 : index
    %58 = vector.load %arg13[%c254, %c0_51] : memref<256x256xbf16, #tpu.memory_space<vmem>>, vector<2x256xbf16>
    tpu.vector_store %arg13[%c254, %c0_51], %57 {strides = array<i32>} : memref<256x256xbf16, #tpu.memory_space<vmem>>, vector<2x256xbf16>,
    %c0_52 = arith.constant 0 : index
    %c0_53 = arith.constant 0 : index
    %59 = vector.load %arg13[%c0_52, %c0_53] : memref<256x256xbf16, #tpu.memory_space<vmem>>, vector<255x256xbf16>
    %c1_54 = arith.constant 1 : index
    %c0_55 = arith.constant 0 : index
    %60 = vector.load %arg13[%c1_54, %c0_55] : memref<256x256xbf16, #tpu.memory_space<vmem>>, vector<255x256xbf16>
    %61 = arith.maximumf %59, %60 : vector<255x256xbf16>
    %c0_56 = arith.constant 0 : index
    %c0_57 = arith.constant 0 : index
    %62 = vector.load %arg5[%c0_56, %c0_57] : memref<128x255xbf16, #tpu.memory_space<vmem>>, vector<128x255xbf16>
    %cst_58 = arith.constant dense<0.000000e+00> : vector<128x256xf32>
    %63 = tpu.matmul %62, %61, %cst_58 {dimension_numbers = #tpu.dot_dimension_numbers<[1], [0], [0], [1], [0, 0, 1, 1], [], []>} : vector<128x255xbf16>, vector<255x256xbf16>, vector<128x256xf32> -> vector<128x256xf32>
    %64 = arith.truncf %63 : vector<128x256xf32> to vector<128x256xbf16>
    %c0_59 = arith.constant 0 : index
    %c0_60 = arith.constant 0 : index
    %65 = vector.load %arg14[%c0_59, %c0_60] : memref<128x256xbf16, #tpu.memory_space<vmem>>, vector<128x256xbf16>
    tpu.vector_store %arg14[%c0_59, %c0_60], %64 {strides = array<i32>} : memref<128x256xbf16, #tpu.memory_space<vmem>>, vector<128x256xbf16>,
    %cst_61 = arith.constant 0.000000e+00 : f32
    %66 = vector.broadcast %cst_61 : f32 to vector<126x256xf32>
    %c0_62 = arith.constant 0 : index
    %c0_63 = arith.constant 0 : index
    %67 = vector.load %arg14[%c0_62, %c0_63] : memref<128x256xbf16, #tpu.memory_space<vmem>>, vector<126x256xbf16>
    %c0_64 = arith.constant 0 : index
    %c0_65 = arith.constant 0 : index
    %c0_66 = arith.constant 0 : index
    %68 = vector.load %arg6[%c0_64, %c0_65, %c0_66] : memref<3x256x256xbf16, #tpu.memory_space<vmem>>, vector<1x256x256xbf16>
    %69 = vector.shape_cast %68 : vector<1x256x256xbf16> to vector<256x256xbf16>
    %cst_67 = arith.constant dense<0.000000e+00> : vector<126x256xf32>
    %70 = tpu.matmul %67, %69, %cst_67 {dimension_numbers = #tpu.dot_dimension_numbers<[1], [0], [0], [1], [0, 0, 1, 1], [], []>} : vector<126x256xbf16>, vector<256x256xbf16>, vector<126x256xf32> -> vector<126x256xf32>
    %71 = arith.addf %66, %70 : vector<126x256xf32>
    %c1_68 = arith.constant 1 : index
    %c0_69 = arith.constant 0 : index
    %72 = vector.load %arg14[%c1_68, %c0_69] : memref<128x256xbf16, #tpu.memory_space<vmem>>, vector<126x256xbf16>
    %c1_70 = arith.constant 1 : index
    %c0_71 = arith.constant 0 : index
    %c0_72 = arith.constant 0 : index
    %73 = vector.load %arg6[%c1_70, %c0_71, %c0_72] : memref<3x256x256xbf16, #tpu.memory_space<vmem>>, vector<1x256x256xbf16>
    %74 = vector.shape_cast %73 : vector<1x256x256xbf16> to vector<256x256xbf16>
    %cst_73 = arith.constant dense<0.000000e+00> : vector<126x256xf32>
    %75 = tpu.matmul %72, %74, %cst_73 {dimension_numbers = #tpu.dot_dimension_numbers<[1], [0], [0], [1], [0, 0, 1, 1], [], []>} : vector<126x256xbf16>, vector<256x256xbf16>, vector<126x256xf32> -> vector<126x256xf32>
    %76 = arith.addf %71, %75 : vector<126x256xf32>
    %c2_74 = arith.constant 2 : index
    %c0_75 = arith.constant 0 : index
    %77 = vector.load %arg14[%c2_74, %c0_75] : memref<128x256xbf16, #tpu.memory_space<vmem>>, vector<126x256xbf16>
    %c2_76 = arith.constant 2 : index
    %c0_77 = arith.constant 0 : index
    %c0_78 = arith.constant 0 : index
    %78 = vector.load %arg6[%c2_76, %c0_77, %c0_78] : memref<3x256x256xbf16, #tpu.memory_space<vmem>>, vector<1x256x256xbf16>
    %79 = vector.shape_cast %78 : vector<1x256x256xbf16> to vector<256x256xbf16>
    %cst_79 = arith.constant dense<0.000000e+00> : vector<126x256xf32>
    %80 = tpu.matmul %77, %79, %cst_79 {dimension_numbers = #tpu.dot_dimension_numbers<[1], [0], [0], [1], [0, 0, 1, 1], [], []>} : vector<126x256xbf16>, vector<256x256xbf16>, vector<126x256xf32> -> vector<126x256xf32>
    %81 = arith.addf %76, %80 : vector<126x256xf32>
    %c0_80 = arith.constant 0 : index
    %c0_81 = arith.constant 0 : index
    %82 = vector.load %arg8[%c0_80, %c0_81] : memref<3x256xf32, #tpu.memory_space<vmem>>, vector<1x256xf32>
    %83 = vector.broadcast %82 : vector<1x256xf32> to vector<126x256xf32>
    %84 = arith.addf %81, %83 : vector<126x256xf32>
    %cst_82 = arith.constant 0.000000e+00 : f32
    %85 = vector.broadcast %cst_82 : f32 to vector<126x256xf32>
    %86 = arith.maximumf %84, %85 : vector<126x256xf32>
    %c1_83 = arith.constant 1 : index
    %c0_84 = arith.constant 0 : index
    %87 = vector.load %arg8[%c1_83, %c0_84] : memref<3x256xf32, #tpu.memory_space<vmem>>, vector<1x256xf32>
    %88 = vector.broadcast %87 : vector<1x256xf32> to vector<126x256xf32>
    %89 = arith.mulf %86, %88 : vector<126x256xf32>
    %c2_85 = arith.constant 2 : index
    %c0_86 = arith.constant 0 : index
    %90 = vector.load %arg8[%c2_85, %c0_86] : memref<3x256xf32, #tpu.memory_space<vmem>>, vector<1x256xf32>
    %91 = vector.broadcast %90 : vector<1x256xf32> to vector<126x256xf32>
    %92 = arith.addf %89, %91 : vector<126x256xf32>
    %cst_87 = arith.constant 0.000000e+00 : f32
    %93 = vector.broadcast %cst_87 : f32 to vector<126x256xf32>
    %c0_88 = arith.constant 0 : index
    %c0_89 = arith.constant 0 : index
    %94 = vector.load %arg14[%c0_88, %c0_89] : memref<128x256xbf16, #tpu.memory_space<vmem>>, vector<126x256xbf16>
    %c0_90 = arith.constant 0 : index
    %c0_91 = arith.constant 0 : index
    %c0_92 = arith.constant 0 : index
    %95 = vector.load %arg7[%c0_90, %c0_91, %c0_92] : memref<3x256x256xbf16, #tpu.memory_space<vmem>>, vector<1x256x256xbf16>
    %96 = vector.shape_cast %95 : vector<1x256x256xbf16> to vector<256x256xbf16>
    %cst_93 = arith.constant dense<0.000000e+00> : vector<126x256xf32>
    %97 = tpu.matmul %94, %96, %cst_93 {dimension_numbers = #tpu.dot_dimension_numbers<[1], [0], [0], [1], [0, 0, 1, 1], [], []>} : vector<126x256xbf16>, vector<256x256xbf16>, vector<126x256xf32> -> vector<126x256xf32>
    %98 = arith.addf %93, %97 : vector<126x256xf32>
    %c1_94 = arith.constant 1 : index
    %c0_95 = arith.constant 0 : index
    %99 = vector.load %arg14[%c1_94, %c0_95] : memref<128x256xbf16, #tpu.memory_space<vmem>>, vector<126x256xbf16>
    %c1_96 = arith.constant 1 : index
    %c0_97 = arith.constant 0 : index
    %c0_98 = arith.constant 0 : index
    %100 = vector.load %arg7[%c1_96, %c0_97, %c0_98] : memref<3x256x256xbf16, #tpu.memory_space<vmem>>, vector<1x256x256xbf16>
    %101 = vector.shape_cast %100 : vector<1x256x256xbf16> to vector<256x256xbf16>
    %cst_99 = arith.constant dense<0.000000e+00> : vector<126x256xf32>
    %102 = tpu.matmul %99, %101, %cst_99 {dimension_numbers = #tpu.dot_dimension_numbers<[1], [0], [0], [1], [0, 0, 1, 1], [], []>} : vector<126x256xbf16>, vector<256x256xbf16>, vector<126x256xf32> -> vector<126x256xf32>
    %103 = arith.addf %98, %102 : vector<126x256xf32>
    %c2_100 = arith.constant 2 : index
    %c0_101 = arith.constant 0 : index
    %104 = vector.load %arg14[%c2_100, %c0_101] : memref<128x256xbf16, #tpu.memory_space<vmem>>, vector<126x256xbf16>
    %c2_102 = arith.constant 2 : index
    %c0_103 = arith.constant 0 : index
    %c0_104 = arith.constant 0 : index
    %105 = vector.load %arg7[%c2_102, %c0_103, %c0_104] : memref<3x256x256xbf16, #tpu.memory_space<vmem>>, vector<1x256x256xbf16>
    %106 = vector.shape_cast %105 : vector<1x256x256xbf16> to vector<256x256xbf16>
    %cst_105 = arith.constant dense<0.000000e+00> : vector<126x256xf32>
    %107 = tpu.matmul %104, %106, %cst_105 {dimension_numbers = #tpu.dot_dimension_numbers<[1], [0], [0], [1], [0, 0, 1, 1], [], []>} : vector<126x256xbf16>, vector<256x256xbf16>, vector<126x256xf32> -> vector<126x256xf32>
    %108 = arith.addf %103, %107 : vector<126x256xf32>
    %c0_106 = arith.constant 0 : index
    %c0_107 = arith.constant 0 : index
    %109 = vector.load %arg8[%c0_106, %c0_107] : memref<3x256xf32, #tpu.memory_space<vmem>>, vector<1x256xf32>
    %110 = vector.broadcast %109 : vector<1x256xf32> to vector<126x256xf32>
    %111 = arith.addf %108, %110 : vector<126x256xf32>
    %cst_108 = arith.constant 0.000000e+00 : f32
    %112 = vector.broadcast %cst_108 : f32 to vector<126x256xf32>
    %113 = arith.maximumf %111, %112 : vector<126x256xf32>
    %c1_109 = arith.constant 1 : index
    %c0_110 = arith.constant 0 : index
    %114 = vector.load %arg8[%c1_109, %c0_110] : memref<3x256xf32, #tpu.memory_space<vmem>>, vector<1x256xf32>
    %115 = vector.broadcast %114 : vector<1x256xf32> to vector<126x256xf32>
    %116 = arith.mulf %113, %115 : vector<126x256xf32>
    %c2_111 = arith.constant 2 : index
    %c0_112 = arith.constant 0 : index
    %117 = vector.load %arg8[%c2_111, %c0_112] : memref<3x256xf32, #tpu.memory_space<vmem>>, vector<1x256xf32>
    %118 = vector.broadcast %117 : vector<1x256xf32> to vector<126x256xf32>
    %119 = arith.addf %116, %118 : vector<126x256xf32>
    %120 = arith.maximumf %92, %119 : vector<126x256xf32>
    %121 = arith.truncf %120 : vector<126x256xf32> to vector<126x256xbf16>
    %c0_113 = arith.constant 0 : index
    %c0_114 = arith.constant 0 : index
    %122 = vector.load %arg15[%c0_113, %c0_114] : memref<128x256xbf16, #tpu.memory_space<vmem>>, vector<126x256xbf16>
    tpu.vector_store %arg15[%c0_113, %c0_114], %121 {strides = array<i32>} : memref<128x256xbf16, #tpu.memory_space<vmem>>, vector<126x256xbf16>,
    %cst_115 = arith.constant 0.000000e+00 : bf16
    %123 = vector.broadcast %cst_115 : bf16 to vector<2x256xbf16>
    %c126 = arith.constant 126 : index
    %c0_116 = arith.constant 0 : index
    %124 = vector.load %arg15[%c126, %c0_116] : memref<128x256xbf16, #tpu.memory_space<vmem>>, vector<2x256xbf16>
    tpu.vector_store %arg15[%c126, %c0_116], %123 {strides = array<i32>} : memref<128x256xbf16, #tpu.memory_space<vmem>>, vector<2x256xbf16>,
    %c0_117 = arith.constant 0 : index
    %c0_118 = arith.constant 0 : index
    %125 = vector.load %arg15[%c0_117, %c0_118] : memref<128x256xbf16, #tpu.memory_space<vmem>>, vector<127x256xbf16>
    %c1_119 = arith.constant 1 : index
    %c0_120 = arith.constant 0 : index
    %126 = vector.load %arg15[%c1_119, %c0_120] : memref<128x256xbf16, #tpu.memory_space<vmem>>, vector<127x256xbf16>
    %127 = arith.maximumf %125, %126 : vector<127x256xbf16>
    %c0_121 = arith.constant 0 : index
    %c0_122 = arith.constant 0 : index
    %128 = vector.load %arg9[%c0_121, %c0_122] : memref<64x127xbf16, #tpu.memory_space<vmem>>, vector<64x127xbf16>
    %cst_123 = arith.constant dense<0.000000e+00> : vector<64x256xf32>
    %129 = tpu.matmul %128, %127, %cst_123 {dimension_numbers = #tpu.dot_dimension_numbers<[1], [0], [0], [1], [0, 0, 1, 1], [], []>} : vector<64x127xbf16>, vector<127x256xbf16>, vector<64x256xf32> -> vector<64x256xf32>
    %130 = arith.truncf %129 : vector<64x256xf32> to vector<64x256xbf16>
    %c0_124 = arith.constant 0 : index
    %c0_125 = arith.constant 0 : index
    %131 = vector.load %arg16[%c0_124, %c0_125] : memref<64x256xbf16, #tpu.memory_space<vmem>>, vector<64x256xbf16>
    tpu.vector_store %arg16[%c0_124, %c0_125], %130 {strides = array<i32>} : memref<64x256xbf16, #tpu.memory_space<vmem>>, vector<64x256xbf16>,
    %cst_126 = arith.constant 0.000000e+00 : f32
    %132 = vector.broadcast %cst_126 : f32 to vector<62x256xf32>
    %c0_127 = arith.constant 0 : index
    %c0_128 = arith.constant 0 : index
    %133 = vector.load %arg16[%c0_127, %c0_128] : memref<64x256xbf16, #tpu.memory_space<vmem>>, vector<62x256xbf16>
    %c0_129 = arith.constant 0 : index
    %c0_130 = arith.constant 0 : index
    %c0_131 = arith.constant 0 : index
    %134 = vector.load %arg10[%c0_129, %c0_130, %c0_131] : memref<3x256x256xbf16, #tpu.memory_space<vmem>>, vector<1x256x256xbf16>
    %135 = vector.shape_cast %134 : vector<1x256x256xbf16> to vector<256x256xbf16>
    %cst_132 = arith.constant dense<0.000000e+00> : vector<62x256xf32>
    %136 = tpu.matmul %133, %135, %cst_132 {dimension_numbers = #tpu.dot_dimension_numbers<[1], [0], [0], [1], [0, 0, 1, 1], [], []>} : vector<62x256xbf16>, vector<256x256xbf16>, vector<62x256xf32> -> vector<62x256xf32>
    %137 = arith.addf %132, %136 : vector<62x256xf32>
    %c1_133 = arith.constant 1 : index
    %c0_134 = arith.constant 0 : index
    %138 = vector.load %arg16[%c1_133, %c0_134] : memref<64x256xbf16, #tpu.memory_space<vmem>>, vector<62x256xbf16>
    %c1_135 = arith.constant 1 : index
    %c0_136 = arith.constant 0 : index
    %c0_137 = arith.constant 0 : index
    %139 = vector.load %arg10[%c1_135, %c0_136, %c0_137] : memref<3x256x256xbf16, #tpu.memory_space<vmem>>, vector<1x256x256xbf16>
    %140 = vector.shape_cast %139 : vector<1x256x256xbf16> to vector<256x256xbf16>
    %cst_138 = arith.constant dense<0.000000e+00> : vector<62x256xf32>
    %141 = tpu.matmul %138, %140, %cst_138 {dimension_numbers = #tpu.dot_dimension_numbers<[1], [0], [0], [1], [0, 0, 1, 1], [], []>} : vector<62x256xbf16>, vector<256x256xbf16>, vector<62x256xf32> -> vector<62x256xf32>
    %142 = arith.addf %137, %141 : vector<62x256xf32>
    %c2_139 = arith.constant 2 : index
    %c0_140 = arith.constant 0 : index
    %143 = vector.load %arg16[%c2_139, %c0_140] : memref<64x256xbf16, #tpu.memory_space<vmem>>, vector<62x256xbf16>
    %c2_141 = arith.constant 2 : index
    %c0_142 = arith.constant 0 : index
    %c0_143 = arith.constant 0 : index
    %144 = vector.load %arg10[%c2_141, %c0_142, %c0_143] : memref<3x256x256xbf16, #tpu.memory_space<vmem>>, vector<1x256x256xbf16>
    %145 = vector.shape_cast %144 : vector<1x256x256xbf16> to vector<256x256xbf16>
    %cst_144 = arith.constant dense<0.000000e+00> : vector<62x256xf32>
    %146 = tpu.matmul %143, %145, %cst_144 {dimension_numbers = #tpu.dot_dimension_numbers<[1], [0], [0], [1], [0, 0, 1, 1], [], []>} : vector<62x256xbf16>, vector<256x256xbf16>, vector<62x256xf32> -> vector<62x256xf32>
    %147 = arith.addf %142, %146 : vector<62x256xf32>
    %c0_145 = arith.constant 0 : index
    %c0_146 = arith.constant 0 : index
    %148 = vector.load %arg11[%c0_145, %c0_146] : memref<3x256xf32, #tpu.memory_space<vmem>>, vector<1x256xf32>
    %149 = vector.broadcast %148 : vector<1x256xf32> to vector<62x256xf32>
    %150 = arith.addf %147, %149 : vector<62x256xf32>
    %cst_147 = arith.constant 0.000000e+00 : f32
    %151 = vector.broadcast %cst_147 : f32 to vector<62x256xf32>
    %152 = arith.maximumf %150, %151 : vector<62x256xf32>
    %c1_148 = arith.constant 1 : index
    %c0_149 = arith.constant 0 : index
    %153 = vector.load %arg11[%c1_148, %c0_149] : memref<3x256xf32, #tpu.memory_space<vmem>>, vector<1x256xf32>
    %154 = vector.broadcast %153 : vector<1x256xf32> to vector<62x256xf32>
    %155 = arith.mulf %152, %154 : vector<62x256xf32>
    %c2_150 = arith.constant 2 : index
    %c0_151 = arith.constant 0 : index
    %156 = vector.load %arg11[%c2_150, %c0_151] : memref<3x256xf32, #tpu.memory_space<vmem>>, vector<1x256xf32>
    %157 = vector.broadcast %156 : vector<1x256xf32> to vector<62x256xf32>
    %158 = arith.addf %155, %157 : vector<62x256xf32>
    %159 = arith.truncf %158 : vector<62x256xf32> to vector<62x256xbf16>
    %c0_152 = arith.constant 0 : index
    %c0_153 = arith.constant 0 : index
    %160 = vector.load %arg12[%c0_152, %c0_153] : memref<64x256xbf16, #tpu.memory_space<vmem>>, vector<62x256xbf16>
    tpu.vector_store %arg12[%c0_152, %c0_153], %159 {strides = array<i32>} : memref<64x256xbf16, #tpu.memory_space<vmem>>, vector<62x256xbf16>,
    %cst_154 = arith.constant 0.000000e+00 : bf16
    %161 = vector.broadcast %cst_154 : bf16 to vector<2x256xbf16>
    %c62 = arith.constant 62 : index
    %c0_155 = arith.constant 0 : index
    %162 = vector.load %arg12[%c62, %c0_155] : memref<64x256xbf16, #tpu.memory_space<vmem>>, vector<2x256xbf16>
    tpu.vector_store %arg12[%c62, %c0_155], %161 {strides = array<i32>} : memref<64x256xbf16, #tpu.memory_space<vmem>>, vector<2x256xbf16>,
    return
  }
  func.func @transform_0(%arg0: i32) -> (i32, i32) {
    %c0_i32 = arith.constant 0 : i32
    %c0_i32_0 = arith.constant 0 : i32
    return %arg0, %c0_i32 : i32, i32
  }
  func.func @transform_1(%arg0: i32) -> (i32, i32, i32) {
    %c0_i32 = arith.constant 0 : i32
    %c0_i32_0 = arith.constant 0 : i32
    %c0_i32_1 = arith.constant 0 : i32
    %c0_i32_2 = arith.constant 0 : i32
    return %c0_i32, %c0_i32_0, %c0_i32_1 : i32, i32, i32
  }
  func.func @transform_2(%arg0: i32) -> (i32, i32, i32) {
    %c0_i32 = arith.constant 0 : i32
    %c0_i32_0 = arith.constant 0 : i32
    %c0_i32_1 = arith.constant 0 : i32
    %c0_i32_2 = arith.constant 0 : i32
    return %c0_i32, %c0_i32_0, %c0_i32_1 : i32, i32, i32
  }
  func.func @transform_3(%arg0: i32) -> (i32, i32) {
    %c0_i32 = arith.constant 0 : i32
    %c0_i32_0 = arith.constant 0 : i32
    %c0_i32_1 = arith.constant 0 : i32
    return %c0_i32, %c0_i32_0 : i32, i32
  }
  func.func @transform_4(%arg0: i32) -> (i32, i32) {
    %c0_i32 = arith.constant 0 : i32
    %c0_i32_0 = arith.constant 0 : i32
    %c0_i32_1 = arith.constant 0 : i32
    return %c0_i32, %c0_i32_0 : i32, i32
  }
  func.func @transform_5(%arg0: i32) -> (i32, i32, i32) {
    %c0_i32 = arith.constant 0 : i32
    %c0_i32_0 = arith.constant 0 : i32
    %c0_i32_1 = arith.constant 0 : i32
    %c0_i32_2 = arith.constant 0 : i32
    return %c0_i32, %c0_i32_0, %c0_i32_1 : i32, i32, i32
  }
  func.func @transform_6(%arg0: i32) -> (i32, i32, i32) {
    %c0_i32 = arith.constant 0 : i32
    %c0_i32_0 = arith.constant 0 : i32
    %c0_i32_1 = arith.constant 0 : i32
    %c0_i32_2 = arith.constant 0 : i32
    return %c0_i32, %c0_i32_0, %c0_i32_1 : i32, i32, i32
  }
  func.func @transform_7(%arg0: i32) -> (i32, i32) {
    %c0_i32 = arith.constant 0 : i32
    %c0_i32_0 = arith.constant 0 : i32
    %c0_i32_1 = arith.constant 0 : i32
    return %c0_i32, %c0_i32_0 : i32, i32
  }
  func.func @transform_8(%arg0: i32) -> (i32, i32) {
    %c0_i32 = arith.constant 0 : i32
    %c0_i32_0 = arith.constant 0 : i32
    %c0_i32_1 = arith.constant 0 : i32
    return %c0_i32, %c0_i32_0 : i32, i32
  }
  func.func @transform_9(%arg0: i32) -> (i32, i32, i32) {
    %c0_i32 = arith.constant 0 : i32
    %c0_i32_0 = arith.constant 0 : i32
    %c0_i32_1 = arith.constant 0 : i32
    %c0_i32_2 = arith.constant 0 : i32
    return %c0_i32, %c0_i32_0, %c0_i32_1 : i32, i32, i32
  }
  func.func @transform_10(%arg0: i32) -> (i32, i32) {
    %c0_i32 = arith.constant 0 : i32
    %c0_i32_0 = arith.constant 0 : i32
    %c0_i32_1 = arith.constant 0 : i32
    return %c0_i32, %c0_i32_0 : i32, i32
  }
  func.func @transform_11(%arg0: i32) -> (i32, i32) {
    %c0_i32 = arith.constant 0 : i32
    %c0_i32_0 = arith.constant 0 : i32
    return %arg0, %c0_i32 : i32, i32
  }
}

</mosaic_0001>

<bundles_post_ra>
// kernel: net_forward.3
= control target key start
LH: loop header
LB: loop body
LE: loop exit
PB: predicated region body
PF: predicated region fallthrough
CT: control target
= control target key end

     0   :  { %s2866_s0 = inlined_call_operand.vmem [shape: bf16[16,2048], index: 0, kind: input, shape index: {}]   ;;  %s2867_s1 = inlined_call_operand.vmem [shape: bf16[2048,128], index: 1, kind: input, shape index: {}]   ;;  %s2868_s2 = inlined_call_operand.vmem [shape: f32[1,128], index: 2, kind: input, shape index: {}]   ;;  %s2869_s3 = inlined_call_operand.vmem [shape: bf16[128,128], index: 3, kind: input, shape index: {}]   ;;  %s2870_s4 = inlined_call_operand.vmem [shape: f32[1,128], index: 4, kind: input, shape index: {}]   ;;  %s2871_s5 = inlined_call_operand.vmem [shape: bf16[128,10], index: 5, kind: input, shape index: {}]   ;;  %s2872_s6 = inlined_call_operand.vmem [shape: f32[1,10], index: 6, kind: input, shape index: {}]   ;;  %s2873_s7 = inlined_call_operand.hbm [shape: f32[16,10], index: 7, kind: output, shape index: {}]  }
   0x1   :  { %v2134_v0 = vld [vmem:[%s2867_s1 + $0x40] sm:$0xff]   ;;  %v2138_v4 = vld [vmem:[%s2867_s1 + $0x48] sm:$0xff]   ;;  %v2142_v8 = vld [vmem:[%s2867_s1 + $0x50] sm:$0xff]  }
   0x2   :  { %v2135_v1 = vld [vmem:[%s2867_s1 + $0xc0] sm:$0xff]   ;;  %1895 = vmatprep.subr.bf16.mxu0 %v2134_v0  ;;  %v2139_v5 = vld [vmem:[%s2867_s1 + $0xc8] sm:$0xff]   ;;  %v2143_v9 = vld [vmem:[%s2867_s1 + $0xd0] sm:$0xff]  }
   0x3   :  { %v2136_v2 = vld [vmem:[%s2867_s1] sm:$0xff]   ;;  %1917 = vmatprep.subr.bf16.mxu1 %v2135_v1  ;;  %v2140_v6 = vld [vmem:[%s2867_s1 + $0x8] sm:$0xff]   ;;  %v2144_v10 = vld [vmem:[%s2867_s1 + $0x10] sm:$0xff]  }
   0x4   :  { %v2137_v3 = vld [vmem:[%s2867_s1 + $0x80] sm:$0xff]   ;;  %1896 = vmatpush3.bf16.msra.mxu0 %v2136_v2  ;;  %v2141_v7 = vld [vmem:[%s2867_s1 + $0x88] sm:$0xff]   ;;  %v2145_v11 = vld [vmem:[%s2867_s1 + $0x90] sm:$0xff]  }
   0x5   :  { %1918 = vmatpush3.bf16.msra.mxu1 %v2137_v3  ;;  %1897 = vmatprep.subr.bf16.mxu0 %v2138_v4  ;;  %v2146_v12 = vld [vmem:[%s2867_s1 + $0x58] sm:$0xff]   ;;  %v2150_v16 = vld [vmem:[%s2867_s1 + $0x60] sm:$0xff]   ;;  %v2154_v20 = vld [vmem:[%s2867_s1 + $0x68] sm:$0xff]  }
   0x6   :  { %1919 = vmatprep.subr.bf16.mxu1 %v2139_v5  ;;  %v2147_v13 = vld [vmem:[%s2867_s1 + $0xd8] sm:$0xff]   ;;  %v2151_v17 = vld [vmem:[%s2867_s1 + $0xe0] sm:$0xff]   ;;  %v2155_v21 = vld [vmem:[%s2867_s1 + $0xe8] sm:$0xff]  }
   0x7   :  { %v2148_v14 = vld [vmem:[%s2867_s1 + $0x18] sm:$0xff]   ;;  %v2152_v18 = vld [vmem:[%s2867_s1 + $0x20] sm:$0xff]   ;;  %v2156_v22 = vld [vmem:[%s2867_s1 + $0x28] sm:$0xff]  }
   0x8   :  { %1898 = vmatpush3.bf16.msra.mxu0 %v2140_v6  ;;  %v2149_v15 = vld [vmem:[%s2867_s1 + $0x98] sm:$0xff]   ;;  %v2153_v19 = vld [vmem:[%s2867_s1 + $0xa0] sm:$0xff]   ;;  %v2157_v23 = vld [vmem:[%s2867_s1 + $0xa8] sm:$0xff]  }
   0x9   :  { %1920 = vmatpush3.bf16.msra.mxu1 %v2141_v7  ;;  %1899 = vmatprep.subr.bf16.mxu0 %v2142_v8  ;;  %v2158_v24 = vld [vmem:[%s2867_s1 + $0x70] sm:$0xff]   ;;  %v2162_v28 = vld [vmem:[%s2867_s1 + $0x78] sm:$0xff]   ;;  %v28_v32 = vld [vmem:[%s2866_s0] sm:$0xff] }
   0xa   :  { %1921 = vmatprep.subr.bf16.mxu1 %v2143_v9  ;;  %v2159_v25 = vld [vmem:[%s2867_s1 + $0xf0] sm:$0xff]   ;;  %v2163_v29 = vld [vmem:[%s2867_s1 + $0xf8] sm:$0xff]   ;;  %v36_v33 = vld [vmem:[%s2866_s0 + $0x40] sm:$0xff] }
   0xb   :  { %v2160_v26 = vld [vmem:[%s2867_s1 + $0x30] sm:$0xff]   ;;  %v2164_v30 = vld [vmem:[%s2867_s1 + $0x38] sm:$0xff]   ;;  %v29_v34 = vld [vmem:[%s2866_s0 + $0x8] sm:$0xff]  ;;  %v1733_v35 = vcombine.low %v28_v32, %v36_v33  ;;  %v1734_v36 = vcombine.high %v28_v32, %v36_v33 }
   0xc   :  { %1900 = vmatpush3.bf16.msra.mxu0 %v2144_v10  ;;  %v2161_v27 = vld [vmem:[%s2867_s1 + $0xb0] sm:$0xff]   ;;  %v2165_v31 = vld [vmem:[%s2867_s1 + $0xb8] sm:$0xff]   ;;  %v37_v37 = vld [vmem:[%s2866_s0 + $0x48] sm:$0xff] }
   0xd   :  { %1922 = vmatpush3.bf16.msra.mxu1 %v2145_v11  ;;  %1901 = vmatprep.subr.bf16.mxu0 %v2146_v12  ;;  %v1735_v38 = vcombine.low %v29_v34, %v37_v37  ;;  %v1736_v39 = vcombine.high %v29_v34, %v37_v37  ;;  %v2166_v40 = vld [vmem:[%s2867_s1 + $0x140] sm:$0xff]   ;;  %v2170_v44 = vld [vmem:[%s2867_s1 + $0x148] sm:$0xff]   ;;  %v2174_v48 = vld [vmem:[%s2867_s1 + $0x150] sm:$0xff]  }
   0xe   :  { %1923 = vmatprep.subr.bf16.mxu1 %v2147_v13  ;;  %1187 = vmatprep.mubr.bf16.mxu0 %v1734_v36  ;;  %v2167_v41 = vld [vmem:[%s2867_s1 + $0x1c0] sm:$0xff]   ;;  %v2171_v45 = vld [vmem:[%s2867_s1 + $0x1c8] sm:$0xff]   ;;  %v2175_v49 = vld [vmem:[%s2867_s1 + $0x1d0] sm:$0xff]  }
   0xf   :  { %1228 = vmatprep.mubr.bf16.mxu1 %v1736_v39  ;;  %v2168_v42 = vld [vmem:[%s2867_s1 + $0x100] sm:$0xff]   ;;  %v2172_v46 = vld [vmem:[%s2867_s1 + $0x108] sm:$0xff]   ;;  %v2176_v50 = vld [vmem:[%s2867_s1 + $0x110] sm:$0xff]  }
  0x10   :  { %1902 = vmatpush3.bf16.msra.mxu0 %v2148_v14  ;;  %v2169_v43 = vld [vmem:[%s2867_s1 + $0x180] sm:$0xff]   ;;  %v2173_v47 = vld [vmem:[%s2867_s1 + $0x188] sm:$0xff]   ;;  %v2177_v51 = vld [vmem:[%s2867_s1 + $0x190] sm:$0xff]  }
  0x11   :  { %1924 = vmatpush3.bf16.msra.mxu1 %v2149_v15  ;;  %1903 = vmatprep.subr.bf16.mxu0 %v2150_v16  ;;  %v2178_v52 = vld [vmem:[%s2867_s1 + $0x158] sm:$0xff]   ;;  %v2182_v56 = vld [vmem:[%s2867_s1 + $0x160] sm:$0xff]   ;;  %v2186_v60 = vld [vmem:[%s2867_s1 + $0x168] sm:$0xff]  }
  0x12   :  { %1925 = vmatprep.subr.bf16.mxu1 %v2151_v17  ;;  %v2179_v53 = vld [vmem:[%s2867_s1 + $0x1d8] sm:$0xff]   ;;  %v2183_v57 = vld [vmem:[%s2867_s1 + $0x1e0] sm:$0xff]   ;;  %v2187_v61 = vld [vmem:[%s2867_s1 + $0x1e8] sm:$0xff]  }
  0x13   :  { %v2180_v54 = vld [vmem:[%s2867_s1 + $0x118] sm:$0xff]   ;;  %v2184_v58 = vld [vmem:[%s2867_s1 + $0x120] sm:$0xff]   ;;  %v2188_v62 = vld [vmem:[%s2867_s1 + $0x128] sm:$0xff]  }
  0x14   :  { %1904 = vmatpush3.bf16.msra.mxu0 %v2152_v18  ;;  %v2181_v55 = vld [vmem:[%s2867_s1 + $0x198] sm:$0xff]   ;;  %v2185_v59 = vld [vmem:[%s2867_s1 + $0x1a0] sm:$0xff]   ;;  %v2189_v63 = vld [vmem:[%s2867_s1 + $0x1a8] sm:$0xff]  }
  0x15   :  { %1926 = vmatpush3.bf16.msra.mxu1 %v2153_v19  ;;  %1905 = vmatprep.subr.bf16.mxu0 %v2154_v20  ;;  %v2190_v0 = vld [vmem:[%s2867_s1 + $0x170] sm:$0xff]   ;;  %v2194_v4 = vld [vmem:[%s2867_s1 + $0x178] sm:$0xff]   ;;  %v2198_v16 = vld [vmem:[%s2867_s1 + $0x240] sm:$0xff]  }
  0x16   :  { %1927 = vmatprep.subr.bf16.mxu1 %v2155_v21  ;;  %v2191_v1 = vld [vmem:[%s2867_s1 + $0x1f0] sm:$0xff]   ;;  %v2195_v5 = vld [vmem:[%s2867_s1 + $0x1f8] sm:$0xff]   ;;  %v2199_v17 = vld [vmem:[%s2867_s1 + $0x2c0] sm:$0xff]  }
  0x17   :  { %v2192_v2 = vld [vmem:[%s2867_s1 + $0x130] sm:$0xff]   ;;  %v2196_v6 = vld [vmem:[%s2867_s1 + $0x138] sm:$0xff]   ;;  %v2200_v18 = vld [vmem:[%s2867_s1 + $0x200] sm:$0xff]  }
  0x18   :  { %1906 = vmatpush3.bf16.msra.mxu0 %v2156_v22  ;;  %v2193_v3 = vld [vmem:[%s2867_s1 + $0x1b0] sm:$0xff]   ;;  %v2197_v7 = vld [vmem:[%s2867_s1 + $0x1b8] sm:$0xff]   ;;  %v2201_v19 = vld [vmem:[%s2867_s1 + $0x280] sm:$0xff]  }
  0x19   :  { %1928 = vmatpush3.bf16.msra.mxu1 %v2157_v23  ;;  %1907 = vmatprep.subr.bf16.mxu0 %v2158_v24  ;;  %v30_v8 = vld [vmem:[%s2866_s0 + $0x10] sm:$0xff]  ;;  %v31_v12 = vld [vmem:[%s2866_s0 + $0x18] sm:$0xff]  ;;  %v2202_v20 = vld [vmem:[%s2867_s1 + $0x248] sm:$0xff]  }
  0x1a   :  { %1929 = vmatprep.subr.bf16.mxu1 %v2159_v25  ;;  %v38_v9 = vld [vmem:[%s2866_s0 + $0x50] sm:$0xff]  ;;  %v39_v13 = vld [vmem:[%s2866_s0 + $0x58] sm:$0xff]  ;;  %v2203_v21 = vld [vmem:[%s2867_s1 + $0x2c8] sm:$0xff]  }
  0x1b   :  { %v1737_v10 = vcombine.low %v30_v8, %v38_v9  ;;  %v1738_v11 = vcombine.high %v30_v8, %v38_v9  ;;  %v1739_v14 = vcombine.low %v31_v12, %v39_v13  ;;  %v1740_v15 = vcombine.high %v31_v12, %v39_v13  ;;  %v2204_v22 = vld [vmem:[%s2867_s1 + $0x208] sm:$0xff]   ;;  %v2206_v24 = vld [vmem:[%s2867_s1 + $0x250] sm:$0xff]   ;;  %v2214_v32 = vld [vmem:[%s2867_s1 + $0x260] sm:$0xff]  }
  0x1c   :  { %1908 = vmatpush3.bf16.msra.mxu0 %v2160_v26  ;;  %v2205_v23 = vld [vmem:[%s2867_s1 + $0x288] sm:$0xff]   ;;  %v2207_v25 = vld [vmem:[%s2867_s1 + $0x2d0] sm:$0xff]   ;;  %v2215_v33 = vld [vmem:[%s2867_s1 + $0x2e0] sm:$0xff]  }
  0x1d   :  { %1930 = vmatpush3.bf16.msra.mxu1 %v2161_v27  ;;  %1909 = vmatprep.subr.bf16.mxu0 %v2162_v28  ;;  %v2208_v26 = vld [vmem:[%s2867_s1 + $0x210] sm:$0xff]   ;;  %v2210_v28 = vld [vmem:[%s2867_s1 + $0x258] sm:$0xff]   ;;  %v2216_v34 = vld [vmem:[%s2867_s1 + $0x220] sm:$0xff]  }
  0x1e   :  { %1931 = vmatprep.subr.bf16.mxu1 %v2163_v29  ;;  %v2209_v27 = vld [vmem:[%s2867_s1 + $0x290] sm:$0xff]   ;;  %v2211_v29 = vld [vmem:[%s2867_s1 + $0x2d8] sm:$0xff]   ;;  %v2218_v36 = vld [vmem:[%s2867_s1 + $0x268] sm:$0xff]  }
  0x1f   :  { %v2219_v37 = vld [vmem:[%s2867_s1 + $0x2e8] sm:$0xff]   ;;  %v2246_v8 = vld [vmem:[%s2867_s1 + $0x360] sm:$0xff]  }
  0x20   :  { %1910 = vmatpush3.bf16.msra.mxu0 %v2164_v30  ;;  %v2212_v30 = vld [vmem:[%s2867_s1 + $0x218] sm:$0xff]   ;;  %v2221_v39 = vld [vmem:[%s2867_s1 + $0x2a8] sm:$0xff]   ;;  %v2247_v9 = vld [vmem:[%s2867_s1 + $0x3e0] sm:$0xff]  }
  0x21   :  { %1932 = vmatpush3.bf16.msra.mxu1 %v2165_v31  ;;  %1939 = vmatprep.subr.bf16.mxu0 %v2166_v40  ;;  %v2213_v31 = vld [vmem:[%s2867_s1 + $0x298] sm:$0xff]   ;;  %v2222_v40 = vld [vmem:[%s2867_s1 + $0x270] sm:$0xff]   ;;  %v2250_v12 = vld [vmem:[%s2867_s1 + $0x368] sm:$0xff]  }
  0x22   :  { %1961 = vmatprep.subr.bf16.mxu1 %v2167_v41  ;;  %v2223_v41 = vld [vmem:[%s2867_s1 + $0x2f0] sm:$0xff]   ;;  %v2251_v13 = vld [vmem:[%s2867_s1 + $0x3e8] sm:$0xff]  }
  0x23   :  { %1188 = vmatmul.mubr.bf16.vlgmr.msra.gmra.mrb[0].mxu0 %v1733_v35  ;;  %v2217_v35 = vld [vmem:[%s2867_s1 + $0x2a0] sm:$0xff]  }
  0x24   :  { %1229 = vmatmul.mubr.bf16.vlgmr.msra.gmra.mrb[0].mxu1 %v1735_v38  ;;  %1940 = vmatpush3.bf16.msra.mxu0 %v2168_v42  ;;  %v2220_v38 = vld [vmem:[%s2867_s1 + $0x228] sm:$0xff]   ;;  %v2224_v42 = vld [vmem:[%s2867_s1 + $0x230] sm:$0xff]  }
  0x25   :  { %1962 = vmatpush3.bf16.msra.mxu1 %v2169_v43  ;;  %1941 = vmatprep.subr.bf16.mxu0 %v2170_v44  ;;  %v2225_v43 = vld [vmem:[%s2867_s1 + $0x2b0] sm:$0xff]   ;;  %v2226_v44 = vld [vmem:[%s2867_s1 + $0x278] sm:$0xff]  }
  0x26   :  { %1963 = vmatprep.subr.bf16.mxu1 %v2171_v45  ;;  %1269 = vmatprep.mubr.bf16.mxu0 %v1738_v11  ;;  %v2227_v45 = vld [vmem:[%s2867_s1 + $0x2f8] sm:$0xff]   ;;  %v2249_v11 = vld [vmem:[%s2867_s1 + $0x3a0] sm:$0xff]  }
  0x27   :  { %1310 = vmatprep.mubr.bf16.mxu1 %v1740_v15  ;;  %v2253_v15 = vld [vmem:[%s2867_s1 + $0x3a8] sm:$0xff]  }
  0x28   :  { %1942 = vmatpush3.bf16.msra.mxu0 %v2172_v46  ;;  %v2228_v46 = vld [vmem:[%s2867_s1 + $0x238] sm:$0xff]  }
  0x29   :  { %1964 = vmatpush3.bf16.msra.mxu1 %v2173_v47  ;;  %1943 = vmatprep.subr.bf16.mxu0 %v2174_v48  ;;  %v2229_v47 = vld [vmem:[%s2867_s1 + $0x2b8] sm:$0xff]   ;;  %v32_v48 = vld [vmem:[%s2866_s0 + $0x20] sm:$0xff] }
  0x2a   :  { %1965 = vmatprep.subr.bf16.mxu1 %v2175_v49  ;;  %v40_v49 = vld [vmem:[%s2866_s0 + $0x60] sm:$0xff] }
  0x2c   :  { %1944 = vmatpush3.bf16.msra.mxu0 %v2176_v50  ;;  %v33_v50 = vld [vmem:[%s2866_s0 + $0x28] sm:$0xff] }
  0x2d   :  { %1966 = vmatpush3.bf16.msra.mxu1 %v2177_v51  ;;  %1945 = vmatprep.subr.bf16.mxu0 %v2178_v52  ;;  %v41_v51 = vld [vmem:[%s2866_s0 + $0x68] sm:$0xff]  ;;  %v1741_v52 = vcombine.low %v32_v48, %v40_v49 }
  0x2e   :  { %1967 = vmatprep.subr.bf16.mxu1 %v2179_v53  ;;  %v1742_v53 = vcombine.high %v32_v48, %v40_v49 }
  0x30   :  { %1946 = vmatpush3.bf16.msra.mxu0 %v2180_v54  ;;  %v1743_v54 = vcombine.low %v33_v50, %v41_v51 }
  0x31   :  { %1968 = vmatpush3.bf16.msra.mxu1 %v2181_v55  ;;  %1947 = vmatprep.subr.bf16.mxu0 %v2182_v56  ;;  %v1744_v55 = vcombine.high %v33_v50, %v41_v51  ;;  %v2230_v56 = vld [vmem:[%s2867_s1 + $0x340] sm:$0xff]  }
  0x32   :  { %1969 = vmatprep.subr.bf16.mxu1 %v2183_v57  ;;  %v2231_v57 = vld [vmem:[%s2867_s1 + $0x3c0] sm:$0xff]  }
  0x34   :  { %1948 = vmatpush3.bf16.msra.mxu0 %v2184_v58  ;;  %v2232_v58 = vld [vmem:[%s2867_s1 + $0x300] sm:$0xff]  }
  0x35   :  { %1970 = vmatpush3.bf16.msra.mxu1 %v2185_v59  ;;  %1949 = vmatprep.subr.bf16.mxu0 %v2186_v60  ;;  %v2233_v59 = vld [vmem:[%s2867_s1 + $0x380] sm:$0xff]   ;;  %v2234_v60 = vld [vmem:[%s2867_s1 + $0x348] sm:$0xff]  }
  0x36   :  { %1971 = vmatprep.subr.bf16.mxu1 %v2187_v61  ;;  %v2235_v61 = vld [vmem:[%s2867_s1 + $0x3c8] sm:$0xff]  }
  0x38   :  { %1950 = vmatpush3.bf16.msra.mxu0 %v2188_v62  ;;  %v2236_v62 = vld [vmem:[%s2867_s1 + $0x308] sm:$0xff]  }
  0x39   :  { %1972 = vmatpush3.bf16.msra.mxu1 %v2189_v63  ;;  %1951 = vmatprep.subr.bf16.mxu0 %v2190_v0  ;;  %v2237_v63 = vld [vmem:[%s2867_s1 + $0x388] sm:$0xff]   ;;  %v2238_v0 = vld [vmem:[%s2867_s1 + $0x350] sm:$0xff]  }
  0x3a   :  { %1973 = vmatprep.subr.bf16.mxu1 %v2191_v1  ;;  %v2239_v1 = vld [vmem:[%s2867_s1 + $0x3d0] sm:$0xff]  }
  0x3c   :  { %1952 = vmatpush3.bf16.msra.mxu0 %v2192_v2  ;;  %v2240_v2 = vld [vmem:[%s2867_s1 + $0x310] sm:$0xff]  }
  0x3d   :  { %1974 = vmatpush3.bf16.msra.mxu1 %v2193_v3  ;;  %1953 = vmatprep.subr.bf16.mxu0 %v2194_v4  ;;  %v2241_v3 = vld [vmem:[%s2867_s1 + $0x390] sm:$0xff]   ;;  %v2242_v4 = vld [vmem:[%s2867_s1 + $0x358] sm:$0xff]  }
  0x3e   :  { %1975 = vmatprep.subr.bf16.mxu1 %v2195_v5  ;;  %v2243_v5 = vld [vmem:[%s2867_s1 + $0x3d8] sm:$0xff]  }
  0x40   :  { %1954 = vmatpush3.bf16.msra.mxu0 %v2196_v6  ;;  %v2244_v6 = vld [vmem:[%s2867_s1 + $0x318] sm:$0xff]  }
  0x41   :  { %1976 = vmatpush3.bf16.msra.mxu1 %v2197_v7  ;;  %1983 = vmatprep.subr.bf16.mxu0 %v2198_v16  ;;  %v2245_v7 = vld [vmem:[%s2867_s1 + $0x398] sm:$0xff]   ;;  %v2254_v16 = vld [vmem:[%s2867_s1 + $0x370] sm:$0xff]  }
  0x42   :  { %2005 = vmatprep.subr.bf16.mxu1 %v2199_v17  ;;  %v2255_v17 = vld [vmem:[%s2867_s1 + $0x3f0] sm:$0xff]  }
  0x43   :  { %1270 = vmatmul.mubr.bf16.vlgmr.msra.gmra.mrb[4].mxu0 %v1737_v10  ;;  %v2248_v10 = vld [vmem:[%s2867_s1 + $0x320] sm:$0xff]  }
  0x44   :  { %1311 = vmatmul.mubr.bf16.vlgmr.msra.gmra.mrb[4].mxu1 %v1739_v14  ;;  %1984 = vmatpush3.bf16.msra.mxu0 %v2200_v18  ;;  %v2252_v14 = vld [vmem:[%s2867_s1 + $0x328] sm:$0xff]   ;;  %v2256_v18 = vld [vmem:[%s2867_s1 + $0x330] sm:$0xff]  }
  0x45   :  { %2006 = vmatpush3.bf16.msra.mxu1 %v2201_v19  ;;  %1985 = vmatprep.subr.bf16.mxu0 %v2202_v20  ;;  %v2257_v19 = vld [vmem:[%s2867_s1 + $0x3b0] sm:$0xff]   ;;  %v2258_v20 = vld [vmem:[%s2867_s1 + $0x378] sm:$0xff]  }
  0x46   :  { %2007 = vmatprep.subr.bf16.mxu1 %v2203_v21  ;;  %1351 = vmatprep.mubr.bf16.mxu0 %v1742_v53  ;;  %v2259_v21 = vld [vmem:[%s2867_s1 + $0x3f8] sm:$0xff]  }
  0x47   :  { %1392 = vmatprep.mubr.bf16.mxu1 %v1744_v55 }
  0x48   :  { %1986 = vmatpush3.bf16.msra.mxu0 %v2204_v22  ;;  %v2260_v22 = vld [vmem:[%s2867_s1 + $0x338] sm:$0xff]  }
  0x49   :  { %2008 = vmatpush3.bf16.msra.mxu1 %v2205_v23  ;;  %1987 = vmatprep.subr.bf16.mxu0 %v2206_v24  ;;  %v2261_v23 = vld [vmem:[%s2867_s1 + $0x3b8] sm:$0xff]   ;;  %v34_v24 = vld [vmem:[%s2866_s0 + $0x30] sm:$0xff] }
  0x4a   :  { %2009 = vmatprep.subr.bf16.mxu1 %v2207_v25  ;;  %v42_v25 = vld [vmem:[%s2866_s0 + $0x70] sm:$0xff] }
  0x4c   :  { %1988 = vmatpush3.bf16.msra.mxu0 %v2208_v26  ;;  %v35_v26 = vld [vmem:[%s2866_s0 + $0x38] sm:$0xff] }
  0x4d   :  { %2010 = vmatpush3.bf16.msra.mxu1 %v2209_v27  ;;  %1989 = vmatprep.subr.bf16.mxu0 %v2210_v28  ;;  %v1745_v27 = vcombine.low %v34_v24, %v42_v25  ;;  %v1746_v28 = vcombine.high %v34_v24, %v42_v25 }
  0x4e   :  { %2011 = vmatprep.subr.bf16.mxu1 %v2211_v29  ;;  %v43_v29 = vld [vmem:[%s2866_s0 + $0x78] sm:$0xff] }
  0x50   :  { %1990 = vmatpush3.bf16.msra.mxu0 %v2212_v30  ;;  %v1747_v30 = vcombine.low %v35_v26, %v43_v29 }
  0x51   :  { %2012 = vmatpush3.bf16.msra.mxu1 %v2213_v31  ;;  %1991 = vmatprep.subr.bf16.mxu0 %v2214_v32  ;;  %v1748_v31 = vcombine.high %v35_v26, %v43_v29 }
  0x52   :  { %2013 = vmatprep.subr.bf16.mxu1 %v2215_v33 }
  0x54   :  { %1992 = vmatpush3.bf16.msra.mxu0 %v2216_v34 }
  0x55   :  { %2014 = vmatpush3.bf16.msra.mxu1 %v2217_v35  ;;  %1993 = vmatprep.subr.bf16.mxu0 %v2218_v36 }
  0x56   :  { %2015 = vmatprep.subr.bf16.mxu1 %v2219_v37 }
  0x58   :  { %1994 = vmatpush3.bf16.msra.mxu0 %v2220_v38 }
  0x59   :  { %2016 = vmatpush3.bf16.msra.mxu1 %v2221_v39  ;;  %1995 = vmatprep.subr.bf16.mxu0 %v2222_v40 }
  0x5a   :  { %2017 = vmatprep.subr.bf16.mxu1 %v2223_v41 }
  0x5c   :  { %1996 = vmatpush3.bf16.msra.mxu0 %v2224_v42 }
  0x5d   :  { %2018 = vmatpush3.bf16.msra.mxu1 %v2225_v43  ;;  %1997 = vmatprep.subr.bf16.mxu0 %v2226_v44 }
  0x5e   :  { %2019 = vmatprep.subr.bf16.mxu1 %v2227_v45 }
  0x60   :  { %1998 = vmatpush3.bf16.msra.mxu0 %v2228_v46 }
  0x61   :  { %2020 = vmatpush3.bf16.msra.mxu1 %v2229_v47  ;;  %2027 = vmatprep.subr.bf16.mxu0 %v2230_v56 }
  0x62   :  { %2049 = vmatprep.subr.bf16.mxu1 %v2231_v57 }
  0x63   :  { %1352 = vmatmul.mubr.bf16.vlgmr.msra.gmra.mrb[8].mxu0 %v1741_v52 }
  0x64   :  { %1393 = vmatmul.mubr.bf16.vlgmr.msra.gmra.mrb[8].mxu1 %v1743_v54  ;;  %2028 = vmatpush3.bf16.msra.mxu0 %v2232_v58 }
  0x65   :  { %2050 = vmatpush3.bf16.msra.mxu1 %v2233_v59  ;;  %2029 = vmatprep.subr.bf16.mxu0 %v2234_v60 }
  0x66   :  { %2051 = vmatprep.subr.bf16.mxu1 %v2235_v61  ;;  %1433 = vmatprep.mubr.bf16.mxu0 %v1746_v28 }
  0x67   :  { %1474 = vmatprep.mubr.bf16.mxu1 %v1748_v31 }
  0x68   :  { %2030 = vmatpush3.bf16.msra.mxu0 %v2236_v62 }
  0x69   :  { %2052 = vmatpush3.bf16.msra.mxu1 %v2237_v63  ;;  %2031 = vmatprep.subr.bf16.mxu0 %v2238_v0 }
  0x6a   :  { %2053 = vmatprep.subr.bf16.mxu1 %v2239_v1 }
  0x6c   :  { %2032 = vmatpush3.bf16.msra.mxu0 %v2240_v2 }
  0x6d   :  { %2054 = vmatpush3.bf16.msra.mxu1 %v2241_v3  ;;  %2033 = vmatprep.subr.bf16.mxu0 %v2242_v4 }
  0x6e   :  { %2055 = vmatprep.subr.bf16.mxu1 %v2243_v5 }
  0x70   :  { %2034 = vmatpush3.bf16.msra.mxu0 %v2244_v6 }
  0x71   :  { %2056 = vmatpush3.bf16.msra.mxu1 %v2245_v7  ;;  %2035 = vmatprep.subr.bf16.mxu0 %v2246_v8 }
  0x72   :  { %2057 = vmatprep.subr.bf16.mxu1 %v2247_v9 }
  0x74   :  { %2036 = vmatpush3.bf16.msra.mxu0 %v2248_v10 }
  0x75   :  { %2058 = vmatpush3.bf16.msra.mxu1 %v2249_v11  ;;  %2037 = vmatprep.subr.bf16.mxu0 %v2250_v12 }
  0x76   :  { %2059 = vmatprep.subr.bf16.mxu1 %v2251_v13 }
  0x78   :  { %2038 = vmatpush3.bf16.msra.mxu0 %v2252_v14 }
  0x79   :  { %2060 = vmatpush3.bf16.msra.mxu1 %v2253_v15  ;;  %2039 = vmatprep.subr.bf16.mxu0 %v2254_v16 }
  0x7a   :  { %2061 = vmatprep.subr.bf16.mxu1 %v2255_v17 }
  0x7c   :  { %2040 = vmatpush3.bf16.msra.mxu0 %v2256_v18 }
  0x7d   :  { %2062 = vmatpush3.bf16.msra.mxu1 %v2257_v19  ;;  %2041 = vmatprep.subr.bf16.mxu0 %v2258_v20 }
  0x7e   :  { %2063 = vmatprep.subr.bf16.mxu1 %v2259_v21 }
  0x80   :  { %2042 = vmatpush3.bf16.msra.mxu0 %v2260_v22 }
  0x81   :  { %2064 = vmatpush3.bf16.msra.mxu1 %v2261_v23 }
  0x83   :  { %1434 = vmatmul.mubr.bf16.vlgmr.msra.gmra.mrb[12].mxu0 %v1745_v27 }
  0x84   :  { %1475 = vmatmul.mubr.bf16.vlgmr.msra.gmra.mrb[12].mxu1 %v1747_v30 }
  0x85   :  { %12 = vsyncpa [#allocation3], 0  ;;  %v2262_v32 = vld [vmem:[%s2869_s3] sm:$0xff]   ;;  %v2302_v33 = vmov 0.0   ;;  %v2263_v34 = vld [vmem:[%s2869_s3 + $0x8] sm:$0xff]   ;;  %vm2303_vm0 = vmmov 0  }
  0x86   :  { %2089 = vmatprep.subr.bf16.mxu0 %v2302_v33  ;;  %2109 = vmatprep.subr.bf16.mxu1 %v2302_v33  ;;  %v2264_v35 = vld [vmem:[%s2869_s3 + $0x10] sm:$0xff]   ;;  %v2265_v36 = vld [vmem:[%s2869_s3 + $0x18] sm:$0xff]   ;;  %v2266_v37 = vld [vmem:[%s2869_s3 + $0x20] sm:$0xff]   ;;  %vm1713_vm1 = vcmask 80896  }
  0x87   :  { %2090 = vmatpush3.bf16.msra.mxu0 %v2262_v32  ;;  %v2267_v38 = vld [vmem:[%s2869_s3 + $0x28] sm:$0xff]   ;;  %v2268_v39 = vld [vmem:[%s2869_s3 + $0x30] sm:$0xff]   ;;  %v2269_v40 = vld [vmem:[%s2869_s3 + $0x38] sm:$0xff]   ;;  %2105 = vmatprep.mubr.msk.bf16.mxu0 %vm2303_vm0, %v2302_v33 }
  0x88   :  { %2091 = vmatprep.subr.bf16.mxu0 %v2302_v33  ;;  %2125 = vmatprep.mubr.msk.bf16.mxu1 %vm2303_vm0, %v2302_v33  ;;  %v2270_v41 = vld [vmem:[%s2871_s5] sm:$0xff]   ;;  %v2271_v42 = vld [vmem:[%s2871_s5 + $0x8] sm:$0xff]   ;;  %v2272_v43 = vld [vmem:[%s2871_s5 + $0x10] sm:$0xff]  }
  0x89   :  { %2110 = vmatpush3.bf16.msra.mxu1 %v2270_v41  ;;  %v2273_v44 = vld [vmem:[%s2871_s5 + $0x18] sm:$0xff]   ;;  %v2274_v46 = vld [vmem:[%s2871_s5 + $0x20] sm:$0xff]   ;;  %v2275_v59 = vld [vmem:[%s2871_s5 + $0x28] sm:$0xff]  }
  0x8a   :  { %2111 = vmatprep.subr.bf16.mxu1 %v2302_v33  ;;  %v1732_v48 = vld [vmem:[%s2868_s2] ss:$0 sm:$0xff] }
  0x8b   :  { %2092 = vmatpush3.bf16.msra.mxu0 %v2263_v34 }
  0x8c   :  { %2093 = vmatprep.subr.bf16.mxu0 %v2302_v33 }
  0x8d   :  { %2112 = vmatpush3.bf16.msra.mxu1 %v2271_v42 }
  0x8e   :  { %2113 = vmatprep.subr.bf16.mxu1 %v2302_v33 }
  0x8f   :  { %2094 = vmatpush3.bf16.msra.mxu0 %v2264_v35 }
  0x90   :  { %2095 = vmatprep.subr.bf16.mxu0 %v2302_v33 }
  0x91   :  { %2114 = vmatpush3.bf16.msra.mxu1 %v2272_v43 }
  0x92   :  { %2115 = vmatprep.subr.bf16.mxu1 %v2302_v33 }
  0x93   :  { %2096 = vmatpush3.bf16.msra.mxu0 %v2265_v36 }
  0x94   :  { %2097 = vmatprep.subr.bf16.mxu0 %v2302_v33 }
  0x95   :  { %2116 = vmatpush3.bf16.msra.mxu1 %v2273_v44 }
  0x96   :  { %2117 = vmatprep.subr.bf16.mxu1 %v2302_v33 }
  0x97   :  { %2098 = vmatpush3.bf16.msra.mxu0 %v2266_v37 }
  0x98   :  { %2099 = vmatprep.subr.bf16.mxu0 %v2302_v33 }
  0x99   :  { %2118 = vmatpush3.bf16.msra.mxu1 %v2274_v46 }
  0x9a   :  { %2119 = vmatprep.subr.bf16.mxu1 %v2302_v33 }
  0x9b   :  { %2100 = vmatpush3.bf16.msra.mxu0 %v2267_v38 }
  0x9c   :  { %2101 = vmatprep.subr.bf16.mxu0 %v2302_v33 }
  0x9d   :  { %2120 = vmatpush3.bf16.msra.mxu1 %v2275_v59 }
  0x9e   :  { %2121 = vmatprep.subr.bf16.mxu1 %v2302_v33 }
  0x9f   :  { %2102 = vmatpush3.bf16.msra.mxu0 %v2268_v39 }
  0xa0   :  { %2103 = vmatprep.subr.bf16.mxu0 %v2302_v33 }
  0xa3   :  { %2104 = vmatpush3.bf16.msra.mxu0 %v2269_v40 }
  0xf6   :  { %v1911_v45 = vpop.f32.mrb[0].mxu0 }
  0xf7   :  { %v1933_v47 = vpop.f32.mrb[0].mxu1  ;;  %v1912_v49 = vpop.f32.mrb[1].mxu0 }
  0xf8   :  { %v1913_v50 = vadd.f32 %v1912_v49, %v1911_v45  ;;  %v1934_v51 = vpop.f32.mrb[1].mxu1  ;;  %v1914_v52 = vpop.f32.mrb[2].mxu0 }
  0xf9   :  { %v1935_v53 = vadd.f32 %v1934_v51, %v1933_v47  ;;  %v1936_v54 = vpop.f32.mrb[2].mxu1  ;;  %v1915_v55 = vpop.f32.mrb[3].mxu0 }
  0xfa   :  { %v1190_v56 = vadd.f32 %v1913_v50, %v1732_v48  ;;  %v1916_v57 = vadd.f32 %v1915_v55, %v1914_v52  ;;  %v1937_v58 = vpop.f32.mrb[3].mxu1  ;;  %v2276_v52 = vld [vmem:[%s2871_s5 + $0x30] sm:$0xff]  }
  0xfb   :  { %v1938_v60 = vadd.f32 %v1937_v58, %v1936_v54  ;;  %2122 = vmatpush3.bf16.msra.mxu1 %v2276_v52  ;;  %v1877_v54 = vld [vmem:[%s2870_s4] ss:$0 sm:$0xff] }
  0xfc   :  { %v1231_v61 = vadd.f32 %v1935_v53, %v1190_v56  ;;  %v1193_v62 = vadd.f32 %v1916_v57, %v1732_v48  ;;  %2123 = vmatprep.subr.bf16.mxu1 %v2302_v33  ;;  %v2277_v53 = vld [vmem:[%s2871_s5 + $0x38] sm:$0xff]   ;;  %v1886_v33 = vld [vmem:[%s2872_s6] ss:$0 sm:$0xff]  ;;  %s2304_s5 = smov [#allocation2]  }
  0xfd   :  { %s1721_s22 = sshll.u32 %s2304_s5, 4  ;;  %s1722_s22 = int_to_ptr.vmem [resolvable:$true] %s1721_s22 }
  0xfe   :  { %v1234_v63 = vadd.f32 %v1938_v60, %v1193_v62  ;;  %s2278_s4 = scalar_lea.vmem %s1722_s22, 256  ;;  %p2283_p1 = scmp.lt.s32.totalorder %s1722_s22, %s1722_s22 }
  0xff   :  { %2124 = vmatpush3.bf16.msra.mxu1 %v2277_v53  ;;  %p2279_p0 = scmp.ne.s32.totalorder %s1722_s22, %s2278_s4  ;;  %p2284_p2 = scmp.lt.s32.totalorder %s2278_s4, %s2278_s4 }
 0x101   :  { %p2285_p3 = por %p2284_p2, %p2283_p1 }
 0x103   :  { %p2286_p4 = pnand %p2285_p3, %p2279_p0 }
 0x116   :  { %v1955_v0 = vpop.f32.mrb[4].mxu0 }
 0x117   :  { %v1977_v1 = vpop.f32.mrb[4].mxu1  ;;  %v1956_v2 = vpop.f32.mrb[5].mxu0 }
 0x118   :  { %v1957_v3 = vadd.f32 %v1956_v2, %v1955_v0  ;;  %v1978_v4 = vpop.f32.mrb[5].mxu1  ;;  %v1958_v5 = vpop.f32.mrb[6].mxu0 }
 0x119   :  { %v1979_v6 = vadd.f32 %v1978_v4, %v1977_v1  ;;  %v1980_v7 = vpop.f32.mrb[6].mxu1  ;;  %v1959_v8 = vpop.f32.mrb[7].mxu0 }
 0x11a   :  { %v1272_v9 = vadd.f32 %v1957_v3, %v1231_v61  ;;  %v1960_v10 = vadd.f32 %v1959_v8, %v1958_v5  ;;  %v1981_v11 = vpop.f32.mrb[7].mxu1 }
 0x11b   :  { %v1982_v12 = vadd.f32 %v1981_v11, %v1980_v7 }
 0x11c   :  { %v1313_v13 = vadd.f32 %v1979_v6, %v1272_v9  ;;  %v1275_v14 = vadd.f32 %v1960_v10, %v1234_v63 }
 0x11e   :  { %v1316_v15 = vadd.f32 %v1982_v12, %v1275_v14 }
 0x136   :  { %v1999_v16 = vpop.f32.mrb[8].mxu0 }
 0x137   :  { %v2021_v17 = vpop.f32.mrb[8].mxu1  ;;  %v2000_v18 = vpop.f32.mrb[9].mxu0 }
 0x138   :  { %v2022_v19 = vpop.f32.mrb[9].mxu1  ;;  %v2001_v20 = vadd.f32 %v2000_v18, %v1999_v16  ;;  %v2002_v22 = vpop.f32.mrb[10].mxu0 }
 0x139   :  { %v2023_v21 = vadd.f32 %v2022_v19, %v2021_v17  ;;  %v2024_v23 = vpop.f32.mrb[10].mxu1  ;;  %v2003_v24 = vpop.f32.mrb[11].mxu0 }
 0x13a   :  { %v2025_v25 = vpop.f32.mrb[11].mxu1  ;;  %v1354_v26 = vadd.f32 %v2001_v20, %v1313_v13  ;;  %v2004_v27 = vadd.f32 %v2003_v24, %v2002_v22 }
 0x13b   :  { %v2026_v28 = vadd.f32 %v2025_v25, %v2024_v23 }
 0x13c   :  { %v1395_v29 = vadd.f32 %v2023_v21, %v1354_v26  ;;  %v1357_v30 = vadd.f32 %v2004_v27, %v1316_v15 }
 0x13e   :  { %v1398_v31 = vadd.f32 %v2026_v28, %v1357_v30 }
 0x156   :  { %v2043_v32 = vpop.f32.mrb[12].mxu0 }
 0x157   :  { %v2065_v34 = vpop.f32.mrb[12].mxu1  ;;  %v2044_v35 = vpop.f32.mrb[13].mxu0 }
 0x158   :  { %v2045_v36 = vadd.f32 %v2044_v35, %v2043_v32  ;;  %v2066_v37 = vpop.f32.mrb[13].mxu1  ;;  %v2046_v38 = vpop.f32.mrb[14].mxu0 }
 0x159   :  { %v2067_v39 = vadd.f32 %v2066_v37, %v2065_v34  ;;  %v2068_v40 = vpop.f32.mrb[14].mxu1  ;;  %v2047_v41 = vpop.f32.mrb[15].mxu0 }
 0x15a   :  { %v1436_v42 = vadd.f32 %v2045_v36, %v1395_v29  ;;  %v2048_v43 = vadd.f32 %v2047_v41, %v2046_v38  ;;  %v2069_v44 = vpop.f32.mrb[15].mxu1 }
 0x15b   :  { %v2070_v45 = vadd.f32 %v2069_v44, %v2068_v40 }
 0x15c   :  { %v1477_v46 = vadd.f32 %v2067_v39, %v1436_v42  ;;  %v1439_v47 = vadd.f32 %v2048_v43, %v1398_v31 }
 0x15e   :  { %v1480_v48 = vadd.f32 %v2070_v45, %v1439_v47  ;;  %v1483_v49 = vmax.f32 %v1477_v46, 0.0 }
 0x160   :  { %v1484_v50 = vmax.f32 %v1480_v48, 0.0 }
 0x162   :  { %v1485_v51 = vpack.c.bf16 %v1484_v50, %v1483_v49 }
 0x164   :  { %2106 = vmatmul.mubr.bf16.vlgmr.msra.gmra.mrb[16].mxu0 %v1485_v51 }
 0x237   :  { %v1591_v55 = vpop.f32.mrb[16].mxu0 }
 0x238   :  { %v1592_v56 = vadd.f32 %v1877_v54, %v1591_v55  ;;  %v2107_v57 = vpop.f32.mrb[17].mxu0 }
 0x239   :  { %v1594_v58 = vpop.f32.mrb[18].mxu0 }
 0x23a   :  { %v1595_v59 = vadd.f32 %v1877_v54, %v1594_v58  ;;  %v2108_v60 = vpop.f32.mrb[19].mxu0  ;;  %v1598_v61 = vmax.f32 %v1592_v56, 0.0 }
 0x23c   :  { %v1599_v62 = vmax.f32 %v1595_v59, 0.0 }
 0x23e   :  { %v1600_v63 = vpack.c.bf16 %v1599_v62, %v1598_v61 }
 0x240   :  { %2126 = vmatmul.mubr.bf16.vlgmr.msra.gmra.mrb[16].mxu1 %v1600_v63 }
 0x313   :  { %v1706_v0 = vpop.f32.mrb[16].mxu1 }
 0x314   :  { %v1707_v1 = vadd.f32 %v1886_v33, %v1706_v0  ;;  %v2127_v2 = vpop.f32.mrb[17].mxu1 }
 0x315   :  { %v1709_v3 = vpop.f32.mrb[18].mxu1 }
 0x316   :  { %1714 = vst.msk [vmem:[#allocation2] sm:$0xff] %vm1713_vm1, %v1707_v1  ;;  %v1710_v4 = vadd.f32 %v1886_v33, %v1709_v3  ;;  %v2128_v5 = vpop.f32.mrb[19].mxu1 }
 0x318   :  { %1715 = vst.msk [vmem:[#allocation2 + $0x8] sm:$0xff] %vm1713_vm1, %v1710_v4 }
 0x319   :  { %2289 = shalt.err (!%p2286_p4)
}
 0x31a   :  { %s2290_s24 = scalar_lea.hbm %s2873_s7, 256 }
 0x31b   :  { %p2291_p5 = scmp.ne.s32.totalorder %s2873_s7, %s2290_s24  ;;  %p2294_p6 = scmp.lt.u32.totalorder %s2290_s24, %s2873_s7 }
 0x31d   :  { %p2296_p7 = pnand %p2294_p6, %p2291_p5 }
 0x31f   :  { %2299 = shalt.err (!%p2296_p7)
}
 0x320   :  { %s2305_s29 = smov 128   ;;  %s2306_s30 = smov 8  }
 0x321   :  { %1727 = dma.vmem_to_hbm [thread:$0]  %s1722_s22, 256, %s2873_s7, [#allocation3], %s2305_s29, %s2305_s29, %s2306_s30  }
 0x322   :  { %2300 = dma.done.wait [#allocation3], 256  }
 0x323   :  { %2301 = vsyncadd [#allocation3], 4294967040 }
 0x324   :  { %1731 = vsyncpa [#allocation3], 1 }

// kernel: net_forward.2
= control target key start
LH: loop header
LB: loop body
LE: loop exit
PB: predicated region body
PF: predicated region fallthrough
CT: control target
= control target key end

     0   :  { %s9691_s17 = smov 0   ;;  %s13197_s0 = inlined_call_operand.vmem [shape: bf16[512,128], index: 0, kind: input, shape index: {}]   ;;  %s13198_s1 = inlined_call_operand.vmem [shape: bf16[3,128,256], index: 1, kind: input, shape index: {}]   ;;  %s13199_s2 = inlined_call_operand.vmem [shape: bf16[3,128,256], index: 2, kind: input, shape index: {}]   ;;  %s13200_s3 = inlined_call_operand.vmem [shape: f32[3,256], index: 3, kind: input, shape index: {}]   ;;  %s13201_s4 = inlined_call_operand.vmem [shape: bf16[128,255], index: 4, kind: input, shape index: {}]   ;;  %s13202_s5 = inlined_call_operand.vmem [shape: bf16[3,256,256], index: 5, kind: input, shape index: {}]   ;;  %s13203_s6 = inlined_call_operand.vmem [shape: bf16[3,256,256], index: 6, kind: input, shape index: {}]   ;;  %s13204_s7 = inlined_call_operand.vmem [shape: f32[3,256], index: 7, kind: input, shape index: {}]   ;;  %s13205_s8 = inlined_call_operand.vmem [shape: bf16[64,127], index: 8, kind: input, shape index: {}]   ;;  %s13206_s9 = inlined_call_operand.vmem [shape: bf16[3,256,256], index: 9, kind: input, shape index: {}]   ;;  %s13207_s10 = inlined_call_operand.vmem [shape: f32[3,256], index: 10, kind: input, shape index: {}]   ;;  %s13208_s11 = inlined_call_operand.vmem [shape: bf16[128,256], index: 11, kind: output, shape index: {}]  }
   0x1 LB: > { %s7818_s18 = sadd.s32 4294967295, %s9627_s17   ;;  %p7822_p0 = scmp.ge.s32.totalorder %s9627_s17, 1  ;;  %s9627_s17 = sphi %s9691_s17, %s21_s17  }
   0x2   : > { %p338_p1 = scmp.lt.s32.totalorder %s9627_s17, 3 }
   0x4   : > { %p339_p2 = pnand %p7822_p0, %p338_p1 }
   0x6   : > { %342 = sbr.rel (%p339_p2) target bundleno = 2067 (0x813), region = 64 }
   0xd   : > { %v8985_v0 = vld [vmem:[%s13198_s1 + $0x84] ss:$8 sps:$4 sm:$0xff]   ;;  %s7823_s21 = sshll.u32 %s7818_s18, 5  ;;  %v8987_v1 = vld [vmem:[%s13198_s1 + $0x80] ss:$8 sps:$4 sm:$0xff]   ;;  %v13211_v2 = vmov 0  }
   0xe   : > { %795 = vmatprep.mubr.bf16.mxu0 %v13211_v2  ;;  %3265 = vst [vmem:[#allocation2 + $0xf0] sm:$0x80] %v13211_v2  ;;  %3266 = vst [vmem:[#allocation2 + $0xf8] sm:$0x80] %v13211_v2  ;;  %835 = vmatprep.mubr.bf16.mxu1 %v13211_v2  ;;  %p380_p3 = scmp.lt.s32.totalorder %s7823_s21, 63  ;;  %vm1269_vm1 = vcmask 1046528  }
   0xf   : > { %6365 = vst [vmem:[#allocation4 + $0x70] sm:$0x80] %v13211_v2  ;;  %6366 = vst [vmem:[#allocation4 + $0x78] sm:$0x80] %v13211_v2  ;;  %763 = vmatprep.subr.bf16.mxu0 %v8985_v0  ;;  %8543 = vmatprep.subr.bf16.mxu1 %v8985_v0  ;;  %v8988_v3 = vld [vmem:[%s13198_s1 + $0x94] ss:$8 sps:$4 sm:$0xff]  }
  0x10   : > { %764 = vmatpush1.bf16.msra.mxu0 %v8987_v1  ;;  %8551 = vmatpush1.bf16.msra.mxu1 %v8987_v1  ;;  %v8990_v4 = vld [vmem:[%s13198_s1 + $0x90] ss:$8 sps:$4 sm:$0xff]   ;;  %s13349_s21 = smov (!%p380_p3, %s7823_s21), 63  ;;  %v8991_v5 = vld [vmem:[%s13198_s1 + $0xa4] ss:$8 sps:$4 sm:$0xff]   ;;  %vm3705_vm2 = vcmask 1039360  }
  0x11   : > { %765 = vmatprep.subr.bf16.mxu0 %v8988_v3  ;;  %8544 = vmatprep.subr.bf16.mxu1 %v8988_v3  ;;  %s7824_s30 = sshll.u32 %s13349_s21, 2  ;;  %v8993_v6 = vld [vmem:[%s13198_s1 + $0xa0] ss:$8 sps:$4 sm:$0xff]   ;;  %v8994_v7 = vld [vmem:[%s13198_s1 + $0xb4] ss:$8 sps:$4 sm:$0xff]   ;;  %vm3731_vm3 = vcmask 1047552  }
  0x12   : > { %s9728_s16 = scalar_lea.vmem %s13197_s0, %s7824_s30  ;;  %v8996_v8 = vld [vmem:[%s13198_s1 + $0xb0] ss:$8 sps:$4 sm:$0xff]   ;;  %v8997_v11 = vld [vmem:[%s13198_s1 + $0xc4] ss:$8 sps:$4 sm:$0xff]   ;;  %v8999_v13 = vld [vmem:[%s13198_s1 + $0xc0] ss:$8 sps:$4 sm:$0xff]  }
  0x13   : > { %v393_v9 = vld [vmem:[%s9728_s16] sm:$0xf]  ;;  %v9738_v10 = vld [vmem:[%s9728_s16 + $0x4] sm:$0xf]  ;;  %v9000_v15 = vld [vmem:[%s13198_s1 + $0xd4] ss:$8 sps:$4 sm:$0xff]  }
  0x14   : > { %766 = vmatpush1.bf16.msra.mxu0 %v8990_v4  ;;  %8552 = vmatpush1.bf16.msra.mxu1 %v8990_v4  ;;  %v9744_v12 = vcombine.low %v393_v9, %v9738_v10  ;;  %v9750_v14 = vld [vmem:[%s9728_s16 + $0x20] sm:$0xff]   ;;  %v9002_v16 = vld [vmem:[%s13198_s1 + $0xd0] ss:$8 sps:$4 sm:$0xff]   ;;  %v9759_v17 = vld [vmem:[%s9728_s16 + $0x8] sm:$0xff]   ;;  %vm539_vm0 = vsmask.f32 7424 }
  0x15   : > { %767 = vmatprep.subr.bf16.mxu0 %v8991_v5  ;;  %8545 = vmatprep.subr.bf16.mxu1 %v8991_v5  ;;  %v9763_v19 = vld [vmem:[%s9728_s16 + $0x28] sm:$0xff]   ;;  %v572_v20 = vshll.u32 %v9750_v14, 16  ;;  %v548_v24 = vshll.u32 %v9759_v17, 16  ;;  %v576_v27 = vshrl.u32 %v9750_v14, 16  ;;  %v9006_v29 = vld [vmem:[%s13198_s1 + $0xf4] ss:$8 sps:$4 sm:$0xff]  }
  0x16   : > { %v543_v18 = vshll.u32 %v9744_v12, 16  ;;  %v9003_v21 = vld [vmem:[%s13198_s1 + $0xe4] ss:$8 sps:$4 sm:$0xff]   ;;  %v9005_v22 = vld [vmem:[%s13198_s1 + $0xe0] ss:$8 sps:$4 sm:$0xff]   ;;  %v541_v23 = vshrl.u32 %v9744_v12, 16 }
  0x17   : > { %v9774_v26 = vrot.slane %v572_v20, 1  ;;  %v580_v28 = vshll.u32 %v9763_v19, 16  ;;  %v9008_v30 = vld [vmem:[%s13198_s1 + $0xf0] ss:$8 sps:$4 sm:$0xff]   ;;  %v550_v33 = vrot.slane %v548_v24, 1  ;;  %v552_v39 = vshrl.u32 %v9759_v17, 16 }
  0x18   : > { %768 = vmatpush1.bf16.msra.mxu0 %v8993_v6  ;;  %8553 = vmatpush1.bf16.msra.mxu1 %v8993_v6  ;;  %v545_v25 = vrot.slane %v543_v18, 1  ;;  %v9785_v31 = vld [vmem:[%s9728_s16 + $0x10] sm:$0xff]   ;;  %v9015_v37 = vld [vmem:[%s13198_s1 + $0x4] ss:$8 sps:$4 sm:$0xff]   ;;  %v9013_v43 = vld [vmem:[%s13198_s1] ss:$8 sps:$4 sm:$0xff]  }
  0x19   : > { %769 = vmatprep.subr.bf16.mxu0 %v8994_v7  ;;  %8546 = vmatprep.subr.bf16.mxu1 %v8994_v7  ;;  %v578_v34 = vor.u32 %v576_v27, %v9774_v26  ;;  %v582_v35 = vrot.slane %v580_v28, 1  ;;  %v9789_v36 = vld [vmem:[%s9728_s16 + $0x30] sm:$0xff]   ;;  %v9026_v38 = vld [vmem:[%s13199_s2 + $0x84] ss:$8 sps:$4 sm:$0xff]   ;;  %v556_v40 = vshll.u32 %v9785_v31, 16  ;;  %v584_v44 = vshrl.u32 %v9763_v19, 16 }
  0x1a   : > { %v546_v32 = vor.u32 %v545_v25, %v541_v23  ;;  %v588_v45 = vshll.u32 %v9789_v36, 16  ;;  %v9018_v46 = vld [vmem:[%s13198_s1 + $0x14] ss:$8 sps:$4 sm:$0xff]   ;;  %v9016_v47 = vld [vmem:[%s13198_s1 + $0x10] ss:$8 sps:$4 sm:$0xff]   ;;  %v554_v50 = vor.u32 %v552_v39, %v550_v33  ;;  %v560_v59 = vshrl.u32 %v9785_v31, 16 }
  0x1b   : > { %v9803_v42 = vsel %vm539_vm0, %v578_v34, %v582_v35  ;;  %v9024_v48 = vld [vmem:[%s13199_s2 + $0x80] ss:$8 sps:$4 sm:$0xff]   ;;  %v9040_v49 = vld [vmem:[%s13199_s2 + $0x94] ss:$8 sps:$4 sm:$0xff]   ;;  %v558_v51 = vrot.slane %v556_v40, 1  ;;  %v586_v52 = vor.u32 %v584_v44, %v582_v35  ;;  %v592_v60 = vshrl.u32 %v9789_v36, 16 }
  0x1c   : > { %770 = vmatpush1.bf16.msra.mxu0 %v8996_v8  ;;  %8554 = vmatpush1.bf16.msra.mxu1 %v8996_v8  ;;  %v9800_v41 = vsel %vm539_vm0, %v546_v32, %v550_v33  ;;  %v590_v53 = vrot.slane %v588_v45, 1  ;;  %v9826_v54 = vld [vmem:[%s9728_s16 + $0x18] sm:$0xff]   ;;  %v9023_v56 = vld [vmem:[%s13198_s1 + $0x24] ss:$8 sps:$4 sm:$0xff]   ;;  %v9021_v58 = vld [vmem:[%s13198_s1 + $0x20] ss:$8 sps:$4 sm:$0xff]  }
  0x1d   : > { %771 = vmatprep.subr.bf16.mxu0 %v8997_v11  ;;  %8547 = vmatprep.subr.bf16.mxu1 %v8997_v11  ;;  %v9829_v55 = vld [vmem:[%s9728_s16 + $0x38] sm:$0xff]   ;;  %v9844_v61 = vsel %vm539_vm0, %v554_v50, %v558_v51  ;;  %v564_v63 = vshll.u32 %v9826_v54, 16  ;;  %v9858_v4 = vld [vmem:[%s9728_s16 + $0x40] sm:$0xff]   ;;  %v562_v8 = vor.u32 %v560_v59, %v558_v51  ;;  %v9904_v33 = vld [vmem:[%s9728_s16 + $0x48] sm:$0xff]   ;;  %s7825_s22 = sshll.u32 %s7818_s18, 3 }
  0x1e   : > { %v9038_v57 = vld [vmem:[%s13199_s2 + $0x90] ss:$8 sps:$4 sm:$0xff]   ;;  %v9847_v62 = vsel %vm539_vm0, %v586_v52, %v590_v53  ;;  %v596_v0 = vshll.u32 %v9829_v55, 16  ;;  %v9029_v1 = vld [vmem:[%s13198_s1 + $0x34] ss:$8 sps:$4 sm:$0xff]   ;;  %v594_v11 = vor.u32 %v592_v60, %v590_v53  ;;  %v604_v23 = vshll.u32 %v9858_v4, 16 }
  0x1f   : > { %v9027_v3 = vld [vmem:[%s13198_s1 + $0x30] ss:$8 sps:$4 sm:$0xff]   ;;  %v9051_v5 = vld [vmem:[%s13199_s2 + $0xa4] ss:$8 sps:$4 sm:$0xff]   ;;  %v9049_v6 = vld [vmem:[%s13199_s2 + $0xa0] ss:$8 sps:$4 sm:$0xff]  }
  0x20   : > { %772 = vmatpush1.bf16.msra.mxu0 %v8999_v13  ;;  %8555 = vmatpush1.bf16.msra.mxu1 %v8999_v13  ;;  %v9055_v7 = vld [vmem:[%s13199_s2 + $0xb4] ss:$8 sps:$4 sm:$0xff]   ;;  %v566_v9 = vrot.slane %v564_v63, 1  ;;  %v598_v13 = vrot.slane %v596_v0, 1  ;;  %v9035_v25 = vld [vmem:[%s13198_s1 + $0x50] ss:$8 sps:$4 sm:$0xff]  }
  0x21   : > { %773 = vmatprep.subr.bf16.mxu0 %v9000_v15  ;;  %8548 = vmatprep.subr.bf16.mxu1 %v9000_v15  ;;  %v9034_v15 = vld [vmem:[%s13198_s1 + $0x44] ss:$8 sps:$4 sm:$0xff]   ;;  %v9037_v24 = vld [vmem:[%s13198_s1 + $0x54] ss:$8 sps:$4 sm:$0xff]   ;;  %v9053_v27 = vld [vmem:[%s13199_s2 + $0xb0] ss:$8 sps:$4 sm:$0xff]  }
  0x22   : > { %v9878_v18 = vsel %vm539_vm0, %v562_v8, %v566_v9  ;;  %v9881_v20 = vsel %vm539_vm0, %v594_v11, %v598_v13  ;;  %v9060_v28 = vld [vmem:[%s13199_s2 + $0xc4] ss:$8 sps:$4 sm:$0xff]   ;;  %v606_v32 = vrot.slane %v604_v23, 1  ;;  %v9058_v35 = vld [vmem:[%s13199_s2 + $0xc0] ss:$8 sps:$4 sm:$0xff]   ;;  %v608_v40 = vshrl.u32 %v9858_v4, 16 }
  0x23   : > { %v9044_v34 = vld [vmem:[%s13198_s1 + $0x64] ss:$8 sps:$4 sm:$0xff]   ;;  %v9042_v39 = vld [vmem:[%s13198_s1 + $0x60] ss:$8 sps:$4 sm:$0xff]   ;;  %v9047_v44 = vld [vmem:[%s13198_s1 + $0x74] ss:$8 sps:$4 sm:$0xff]  }
  0x24   : > { %774 = vmatpush1.bf16.msra.mxu0 %v9002_v16  ;;  %8556 = vmatpush1.bf16.msra.mxu1 %v9002_v16  ;;  %v568_v16 = vshrl.u32 %v9826_v54, 16  ;;  %v9932_v45 = vld [vmem:[%s9728_s16 + $0x50] sm:$0xff]   ;;  %v9069_v50 = vld [vmem:[%s13199_s2 + $0xe4] ss:$8 sps:$4 sm:$0xff]   ;;  %v9951_v52 = vld [vmem:[%s9728_s16 + $0x78] sm:$0xf] }
  0x25   : > { %775 = vmatprep.subr.bf16.mxu0 %v9003_v21  ;;  %8549 = vmatprep.subr.bf16.mxu1 %v9003_v21  ;;  %v9032_v21 = vld [vmem:[%s13198_s1 + $0x40] ss:$8 sps:$4 sm:$0xff]   ;;  %v9081_v51 = vld [vmem:[%s13198_s1 + $0x104] ss:$8 sps:$4 sm:$0xff]   ;;  %v424_v53 = vld [vmem:[%s9728_s16 + $0x7c] sm:$0x7] }
  0x26   : > { %v9067_v59 = vld [vmem:[%s13199_s2 + $0xe0] ss:$8 sps:$4 sm:$0xff]   ;;  %v9963_v60 = vcombine.low %v9951_v52, %v424_v53  ;;  %v9072_v63 = vld [vmem:[%s13199_s2 + $0xf4] ss:$8 sps:$4 sm:$0xff]   ;;  %v9075_v11 = vld [vmem:[%s13199_s2 + $0x4] ss:$8 sps:$4 sm:$0xff]  }
  0x27   : > { %v9079_v0 = vld [vmem:[%s13198_s1 + $0x100] ss:$8 sps:$4 sm:$0xff]   ;;  %v9107_v53 = vld [vmem:[%s13198_s1 + $0x170] ss:$8 sps:$4 sm:$0xff]   ;;  %p386_p4 = scmp.lt.s32.totalorder %s7825_s22, 15 }
  0x28   : > { %776 = vmatpush1.bf16.msra.mxu0 %v9005_v22  ;;  %8557 = vmatpush1.bf16.msra.mxu1 %v9005_v22  ;;  %v600_v22 = vshrl.u32 %v9829_v55, 16 }
  0x29   : > { %777 = vmatprep.subr.bf16.mxu0 %v9006_v29  ;;  %8550 = vmatprep.subr.bf16.mxu1 %v9006_v29  ;;  %v570_v29 = vor.u32 %v568_v16, %v566_v9  ;;  %v9085_v16 = vld [vmem:[%s13198_s1 + $0x120] ss:$8 sps:$4 sm:$0xff]   ;;  %s13351_s22 = smov (!%p386_p4, %s7825_s22), 15 }
  0x2c   : > { %778 = vmatpush1.bf16.msra.mxu0 %v9008_v30  ;;  %8558 = vmatpush1.bf16.msra.mxu1 %v9008_v30  ;;  %v602_v30 = vor.u32 %v600_v22, %v598_v13  ;;  %v9087_v13 = vld [vmem:[%s13198_s1 + $0x124] ss:$8 sps:$4 sm:$0xff]   ;;  %v624_v22 = vshrl.u32 %v9932_v45, 16 }
  0x2d   : > { %1055 = vmatprep.subr.bf16.mxu0 %v9015_v37  ;;  %2061 = vmatprep.subr.bf16.mxu1 %v9026_v38  ;;  %v9915_v37 = vsel %vm539_vm0, %v570_v29, %v9774_v26  ;;  %v9045_v26 = vld [vmem:[%s13198_s1 + $0x70] ss:$8 sps:$4 sm:$0xff]  }
  0x2e   : > { %v9918_v38 = vsel %vm539_vm0, %v602_v30, %v606_v32  ;;  %v9096_v30 = vld [vmem:[%s13198_s1 + $0x144] ss:$8 sps:$4 sm:$0xff]  }
  0x2f   : > { %796 = vmatmul.mubr.bf16.vlgmr.msra.gmra.mrb[0].mxu0 %v9800_v41  ;;  %836 = vmatmul.mubr.bf16.vlgmr.msra.gmra.mrb[0].mxu1 %v9803_v42 }
  0x30   : > { %1056 = vmatpush1.bf16.msra.mxu0 %v9013_v43  ;;  %805 = vmatprep.mubr.bf16.mxu0 %v13211_v2  ;;  %v612_v43 = vshll.u32 %v9904_v33, 16 }
  0x31   : > { %1057 = vmatprep.subr.bf16.mxu0 %v9018_v46  ;;  %845 = vmatprep.mubr.bf16.mxu1 %v13211_v2  ;;  %v9064_v46 = vld [vmem:[%s13199_s2 + $0xd4] ss:$8 sps:$4 sm:$0xff]  }
  0x32   : > { %2062 = vmatpush1.bf16.msra.mxu1 %v9024_v48  ;;  %v610_v48 = vor.u32 %v608_v40, %v606_v32  ;;  %v10034_v40 = vld [vmem:[%s9728_s16 + $0x68] sm:$0xff]  }
  0x33   : > { %2063 = vmatprep.subr.bf16.mxu1 %v9040_v49  ;;  %v614_v49 = vrot.slane %v612_v43, 1  ;;  %v9097_v43 = vld [vmem:[%s13198_s1 + $0x150] ss:$8 sps:$4 sm:$0xff]  }
  0x34   : > { %1058 = vmatpush1.bf16.msra.mxu0 %v9016_v47  ;;  %v9062_v47 = vld [vmem:[%s13199_s2 + $0xd0] ss:$8 sps:$4 sm:$0xff]  }
  0x35   : > { %1059 = vmatprep.subr.bf16.mxu0 %v9023_v56  ;;  %v9955_v56 = vsel %vm539_vm0, %v610_v48, %v614_v49 }
  0x36   : > { %2064 = vmatpush1.bf16.msra.mxu1 %v9038_v57  ;;  %v616_v57 = vshrl.u32 %v9904_v33, 16 }
  0x37   : > { %806 = vmatmul.mubr.bf16.gmra.mrb[4].mxu0 %v9844_v61  ;;  %846 = vmatmul.mubr.bf16.gmra.mrb[4].mxu1 %v9847_v62 }
  0x38   : > { %1060 = vmatpush1.bf16.msra.mxu0 %v9021_v58  ;;  %815 = vmatprep.mubr.bf16.mxu0 %v13211_v2  ;;  %v620_v58 = vshll.u32 %v9932_v45, 16  ;;  %v618_v8 = vor.u32 %v616_v57, %v614_v49  ;;  %v644_v49 = vshll.u32 %v10034_v40, 16 }
  0x39   : > { %1061 = vmatprep.subr.bf16.mxu0 %v9029_v1  ;;  %855 = vmatprep.mubr.bf16.mxu1 %v13211_v2  ;;  %v9972_v1 = vld [vmem:[%s9728_s16 + $0x58] sm:$0xff]  }
  0x3a   : > { %2065 = vmatprep.subr.bf16.mxu1 %v9051_v5  ;;  %v9070_v5 = vld [vmem:[%s13199_s2 + $0xf0] ss:$8 sps:$4 sm:$0xff]   ;;  %v622_v9 = vrot.slane %v620_v58, 1  ;;  %v628_v23 = vshll.u32 %v9972_v1, 16  ;;  %v646_v58 = vrot.slane %v644_v49, 1 }
  0x3b   : > { %2066 = vmatpush1.bf16.msra.mxu1 %v9049_v6  ;;  %v9082_v6 = vld [vmem:[%s13198_s1 + $0x110] ss:$8 sps:$4 sm:$0xff]  }
  0x3c   : > { %1062 = vmatpush1.bf16.msra.mxu0 %v9027_v3  ;;  %2067 = vmatprep.subr.bf16.mxu1 %v9055_v7  ;;  %v9084_v3 = vld [vmem:[%s13198_s1 + $0x114] ss:$8 sps:$4 sm:$0xff]   ;;  %v9986_v7 = vld [vmem:[%s9728_s16] sm:$0xe]  ;;  %v630_v29 = vrot.slane %v628_v23, 1 }
  0x3d   : > { %1063 = vmatprep.subr.bf16.mxu0 %v9034_v15  ;;  %v7909_v15 = vcombine.low %v9986_v7, %v9738_v10  ;;  %v9090_v23 = vld [vmem:[%s13199_s2 + $0x24] ss:$8 sps:$4 sm:$0xff]   ;;  %v10198_v10 = vld [vmem:[%s9728_s16 + $0x10] sm:$0xff]  }
  0x3f   : > { %816 = vmatmul.mubr.bf16.gmra.mrb[8].mxu0 %v9878_v18  ;;  %856 = vmatmul.mubr.bf16.gmra.mrb[8].mxu1 %v9881_v20 }
  0x40   : > { %1064 = vmatpush1.bf16.msra.mxu0 %v9032_v21  ;;  %825 = vmatprep.mubr.bf16.mxu0 %v13211_v2  ;;  %v10002_v21 = vsel %vm539_vm0, %v618_v8, %v622_v9 }
  0x41   : > { %1065 = vmatprep.subr.bf16.mxu0 %v9037_v24  ;;  %865 = vmatprep.mubr.bf16.mxu1 %v13211_v2  ;;  %v9093_v24 = vld [vmem:[%s13198_s1 + $0x134] ss:$8 sps:$4 sm:$0xff]  }
  0x42   : > { %2068 = vmatpush1.bf16.msra.mxu1 %v9053_v27  ;;  %v9091_v27 = vld [vmem:[%s13198_s1 + $0x130] ss:$8 sps:$4 sm:$0xff]  }
  0x43   : > { %2069 = vmatprep.subr.bf16.mxu1 %v9060_v28  ;;  %v626_v28 = vor.u32 %v624_v22, %v622_v9  ;;  %v9078_v22 = vld [vmem:[%s13199_s2 + $0x14] ss:$8 sps:$4 sm:$0xff]  }
  0x44   : > { %1066 = vmatpush1.bf16.msra.mxu0 %v9035_v25  ;;  %v10012_v25 = vld [vmem:[%s9728_s16 + $0x60] sm:$0xff]  }
  0x45   : > { %1067 = vmatprep.subr.bf16.mxu0 %v9044_v34  ;;  %v10026_v32 = vsel %vm539_vm0, %v626_v28, %v630_v29  ;;  %v632_v34 = vshrl.u32 %v9972_v1, 16  ;;  %v640_v48 = vshrl.u32 %v10012_v25, 16  ;;  %v9114_v28 = vld [vmem:[%s13199_s2 + $0x50] ss:$8 sps:$4 sm:$0xff]  }
  0x46   : > { %2070 = vmatpush1.bf16.msra.mxu1 %v9058_v35  ;;  %v636_v35 = vshll.u32 %v10012_v25, 16 }
  0x47   : > { %826 = vmatmul.mubr.bf16.gmra.mrb[12].mxu0 %v9915_v37  ;;  %866 = vmatmul.mubr.bf16.gmra.mrb[12].mxu1 %v9918_v38 }
  0x48   : > { %1068 = vmatpush1.bf16.msra.mxu0 %v9042_v39  ;;  %875 = vmatprep.mubr.bf16.mxu1 %v13211_v2  ;;  %v9099_v39 = vld [vmem:[%s13198_s1 + $0x154] ss:$8 sps:$4 sm:$0xff]  }
  0x49   : > { %1069 = vmatprep.subr.bf16.mxu0 %v9047_v44  ;;  %1087 = vmatprep.mubr.bf16.mxu0 %v13211_v2  ;;  %v634_v44 = vor.u32 %v632_v34, %v630_v29  ;;  %v9119_v29 = vld [vmem:[%s13199_s2 + $0x64] ss:$8 sps:$4 sm:$0xff]  }
  0x4a   : > { %2071 = vmatprep.subr.bf16.mxu1 %v9064_v46  ;;  %v9103_v46 = vld [vmem:[%s13198_s1 + $0x164] ss:$8 sps:$4 sm:$0xff]  }
  0x4b   : > { %2072 = vmatpush1.bf16.msra.mxu1 %v9062_v47 }
  0x4c   : > { %1070 = vmatpush1.bf16.msra.mxu0 %v9045_v26  ;;  %2073 = vmatprep.subr.bf16.mxu1 %v9069_v50  ;;  %v638_v26 = vrot.slane %v636_v35, 1  ;;  %v9109_v50 = vld [vmem:[%s13198_s1 + $0x174] ss:$8 sps:$4 sm:$0xff]  }
  0x4d   : > { %1397 = vmatprep.subr.bf16.mxu0 %v9081_v51  ;;  %v10060_v51 = vld [vmem:[%s9728_s16 + $0x70] sm:$0xff]  }
  0x4e   : > { %v10050_v47 = vsel %vm539_vm0, %v634_v44, %v638_v26  ;;  %v642_v57 = vor.u32 %v640_v48, %v638_v26  ;;  %v656_v9 = vshrl.u32 %v10060_v51, 16  ;;  %v10253_v26 = vld [vmem:[%s9728_s16 + $0x38] sm:$0xff]  }
  0x4f   : > { %876 = vmatmul.mubr.bf16.gmra.mrb[16].mxu1 %v9955_v56  ;;  %1088 = vmatmul.mubr.bf16.vlgmr.msra.gmra.mrb[0].mxu0 %v9744_v12 }
  0x50   : > { %885 = vmatprep.mubr.bf16.mxu1 %v13211_v2  ;;  %1097 = vmatprep.mubr.bf16.mxu0 %v13211_v2 }
  0x51   : > { %2074 = vmatpush1.bf16.msra.mxu1 %v9067_v59  ;;  %1398 = vmatpush1.bf16.msra.mxu0 %v9079_v0  ;;  %v441_v59 = vld [vmem:[%s9728_s16 + $0x7c] sm:$0xf]  ;;  %v652_v0 = vshll.u32 %v10060_v51, 16 }
  0x52   : > { %2075 = vmatprep.subr.bf16.mxu1 %v9072_v63  ;;  %1399 = vmatprep.subr.bf16.mxu0 %v9084_v3  ;;  %v10069_v63 = vsel %vm539_vm0, %v642_v57, %v646_v58 }
  0x55   : > { %2076 = vmatpush1.bf16.msra.mxu1 %v9070_v5  ;;  %1400 = vmatpush1.bf16.msra.mxu0 %v9082_v6  ;;  %v654_v5 = vrot.slane %v652_v0, 1  ;;  %v10078_v6 = vcombine.low %v9951_v52, %v441_v59  ;;  %v10283_v59 = vld [vmem:[%s9728_s16 + $0x48] sm:$0xff]  }
  0x56   : > { %2334 = vmatprep.subr.bf16.mxu1 %v9075_v11  ;;  %1401 = vmatprep.subr.bf16.mxu0 %v9087_v13 }
  0x57   : > { %886 = vmatmul.mubr.bf16.gmra.mrb[20].mxu1 %v10002_v21  ;;  %1098 = vmatmul.mubr.bf16.gmra.mrb[4].mxu0 %v9759_v17  ;;  %v9094_v17 = vld [vmem:[%s13198_s1 + $0x140] ss:$8 sps:$4 sm:$0xff]   ;;  %v660_v11 = vshll.u32 %v10078_v6, 16 }
  0x58   : > { %895 = vmatprep.mubr.bf16.mxu1 %v13211_v2  ;;  %1107 = vmatprep.mubr.bf16.mxu0 %v13211_v2 }
  0x59   : > { %1402 = vmatpush1.bf16.msra.mxu0 %v9085_v16  ;;  %v662_v13 = vrot.slane %v660_v11, 1  ;;  %v664_v16 = vshrl.u32 %v10078_v6, 16  ;;  %v9128_v11 = vld [vmem:[%s13199_s2 + $0x114] ss:$8 sps:$4 sm:$0xff]  }
  0x5a   : > { %1403 = vmatprep.subr.bf16.mxu0 %v9093_v24  ;;  %v9104_v24 = vld [vmem:[%s13199_s2 + $0x30] ss:$8 sps:$4 sm:$0xff]  }
  0x5d   : > { %1404 = vmatpush1.bf16.msra.mxu0 %v9091_v27  ;;  %v9113_v27 = vld [vmem:[%s13199_s2 + $0x44] ss:$8 sps:$4 sm:$0xff]  }
  0x5e   : > { %1405 = vmatprep.subr.bf16.mxu0 %v9096_v30  ;;  %v9120_v30 = vld [vmem:[%s13199_s2 + $0x70] ss:$8 sps:$4 sm:$0xff]  }
  0x5f   : > { %896 = vmatmul.mubr.bf16.gmra.mrb[24].mxu1 %v10026_v32  ;;  %1108 = vmatmul.mubr.bf16.gmra.mrb[8].mxu0 %v9785_v31  ;;  %v9101_v31 = vld [vmem:[%s13198_s1 + $0x160] ss:$8 sps:$4 sm:$0xff]  }
  0x60   : > { %905 = vmatprep.mubr.bf16.mxu1 %v13211_v2  ;;  %1117 = vmatprep.mubr.bf16.mxu0 %v13211_v2 }
  0x61   : > { %1406 = vmatpush1.bf16.msra.mxu0 %v9094_v17  ;;  %v9125_v17 = vld [vmem:[%s13199_s2 + $0x104] ss:$8 sps:$4 sm:$0xff]  }
  0x62   : > { %1407 = vmatprep.subr.bf16.mxu0 %v9099_v39 }
  0x65   : > { %1408 = vmatpush1.bf16.msra.mxu0 %v9097_v43 }
  0x66   : > { %1409 = vmatprep.subr.bf16.mxu0 %v9103_v46  ;;  %v1283_v46 = vrot.slane %v10253_v26, 1 }
  0x67   : > { %906 = vmatmul.mubr.bf16.gmra.mrb[28].mxu1 %v10050_v47  ;;  %1118 = vmatmul.mubr.bf16.gmra.mrb[12].mxu0 %v9826_v54  ;;  %v648_v54 = vshrl.u32 %v10034_v40, 16 }
  0x68   : > { %915 = vmatprep.mubr.bf16.mxu1 %v13211_v2  ;;  %1127 = vmatprep.mubr.bf16.mxu0 %v13211_v2 }
  0x69   : > { %1410 = vmatpush1.bf16.msra.mxu0 %v9101_v31  ;;  %v650_v3 = vor.u32 %v648_v54, %v646_v58 }
  0x6a   : > { %1411 = vmatprep.subr.bf16.mxu0 %v9109_v50 }
  0x6b   : > { %v10081_v8 = vsel %vm539_vm0, %v650_v3, %v654_v5 }
  0x6d   : > { %1412 = vmatpush1.bf16.msra.mxu0 %v9107_v53 }
  0x6f   : > { %916 = vmatmul.mubr.bf16.gmra.mrb[32].mxu1 %v10069_v63  ;;  %1128 = vmatmul.mubr.bf16.gmra.mrb[16].mxu0 %v9750_v14  ;;  %v658_v14 = vor.u32 %v656_v9, %v654_v5  ;;  %v9123_v9 = vld [vmem:[%s13199_s2 + $0x100] ss:$8 sps:$4 sm:$0xff]  }
  0x70   : > { %925 = vmatprep.mubr.bf16.mxu1 %v13211_v2  ;;  %1137 = vmatprep.mubr.bf16.mxu0 %v13211_v2 }
  0x71   : > { %v10090_v52 = vsel %vm539_vm0, %v658_v14, %v662_v13  ;;  %v10308_v14 = vld [vmem:[%s9728_s16 + $0x50] sm:$0xff]  }
  0x77   : > { %926 = vmatmul.mubr.bf16.gmra.mrb[36].mxu1 %v10081_v8  ;;  %1138 = vmatmul.mubr.bf16.gmra.mrb[20].mxu0 %v9763_v19  ;;  %v10097_v19 = vor.u32 %v664_v16, %v662_v13  ;;  %v1289_v13 = vrot.slane %v10308_v14, 1 }
  0x78   : > { %935 = vmatprep.mubr.bf16.mxu1 %v13211_v2  ;;  %1147 = vmatprep.mubr.bf16.mxu0 %v13211_v2 }
  0x7f   : > { %936 = vmatmul.mubr.bf16.gmra.mrb[40].mxu1 %v10090_v52  ;;  %1148 = vmatmul.mubr.bf16.gmra.mrb[24].mxu0 %v9789_v36  ;;  %v9073_v36 = vld [vmem:[%s13199_s2] ss:$8 sps:$4 sm:$0xff]  }
  0x80   : > { %945 = vmatprep.mubr.bf16.mxu1 %v13211_v2  ;;  %1157 = vmatprep.mubr.bf16.mxu0 %v13211_v2 }
  0x87   : > { %946 = vmatmul.mubr.bf16.gmra.mrb[44].mxu1 %v10097_v19  ;;  %1158 = vmatmul.mubr.bf16.gmra.mrb[28].mxu0 %v9829_v55  ;;  %v9076_v55 = vld [vmem:[%s13199_s2 + $0x10] ss:$8 sps:$4 sm:$0xff]  }
  0x88   : > { %1167 = vmatprep.mubr.bf16.mxu0 %v13211_v2  ;;  %2093 = vmatprep.mubr.bf16.mxu1 %v13211_v2 }
  0x8f   : > { %1168 = vmatmul.mubr.bf16.gmra.mrb[32].mxu0 %v9858_v4  ;;  %2094 = vmatmul.mubr.bf16.vlgmr.msra.gmra.mrb[48].mxu1 %v9800_v41  ;;  %v9088_v4 = vld [vmem:[%s13199_s2 + $0x20] ss:$8 sps:$4 sm:$0xff]   ;;  %v9106_v41 = vld [vmem:[%s13199_s2 + $0x34] ss:$8 sps:$4 sm:$0xff]  }
  0x90   : > { %1177 = vmatprep.mubr.bf16.mxu0 %v13211_v2  ;;  %2103 = vmatprep.mubr.bf16.mxu1 %v13211_v2 }
  0x91   : > { %2335 = vmatpush1.bf16.msra.mxu1 %v9073_v36 }
  0x92   : > { %2336 = vmatprep.subr.bf16.mxu1 %v9078_v22 }
  0x95   : > { %2337 = vmatpush1.bf16.msra.mxu1 %v9076_v55 }
  0x96   : > { %2338 = vmatprep.subr.bf16.mxu1 %v9090_v23  ;;  %v9129_v23 = vld [vmem:[%s13199_s2 + $0x120] ss:$8 sps:$4 sm:$0xff]  }
  0x97   : > { %1178 = vmatmul.mubr.bf16.gmra.mrb[36].mxu0 %v9904_v33  ;;  %2104 = vmatmul.mubr.bf16.gmra.mrb[52].mxu1 %v9844_v61  ;;  %v9111_v33 = vld [vmem:[%s13199_s2 + $0x40] ss:$8 sps:$4 sm:$0xff]   ;;  %v9116_v61 = vld [vmem:[%s13199_s2 + $0x54] ss:$8 sps:$4 sm:$0xff]  }
  0x98   : > { %1187 = vmatprep.mubr.bf16.mxu0 %v13211_v2  ;;  %2113 = vmatprep.mubr.bf16.mxu1 %v13211_v2 }
  0x99   : > { %2339 = vmatpush1.bf16.msra.mxu1 %v9088_v4  ;;  %v9134_v4 = vld [vmem:[%s13199_s2 + $0x134] ss:$8 sps:$4 sm:$0xff]  }
  0x9a   : > { %2340 = vmatprep.subr.bf16.mxu1 %v9106_v41  ;;  %v10339_v41 = vld [vmem:[%s9728_s16 + $0x58] sm:$0xff]  }
  0x9d   : > { %2341 = vmatpush1.bf16.msra.mxu1 %v9104_v24  ;;  %v1291_v24 = vrot.slane %v10339_v41, 1 }
  0x9e   : > { %2342 = vmatprep.subr.bf16.mxu1 %v9113_v27  ;;  %v9132_v27 = vld [vmem:[%s13199_s2 + $0x130] ss:$8 sps:$4 sm:$0xff]  }
  0x9f   : > { %1188 = vmatmul.mubr.bf16.gmra.mrb[40].mxu0 %v9932_v45  ;;  %2114 = vmatmul.mubr.bf16.gmra.mrb[56].mxu1 %v9878_v18  ;;  %v9117_v45 = vld [vmem:[%s13199_s2 + $0x60] ss:$8 sps:$4 sm:$0xff]   ;;  %v9122_v18 = vld [vmem:[%s13199_s2 + $0x74] ss:$8 sps:$4 sm:$0xff]  }
  0xa0   : > { %1197 = vmatprep.mubr.bf16.mxu0 %v13211_v2  ;;  %2123 = vmatprep.mubr.bf16.mxu1 %v13211_v2 }
  0xa1   : > { %2343 = vmatpush1.bf16.msra.mxu1 %v9111_v33 }
  0xa2   : > { %2344 = vmatprep.subr.bf16.mxu1 %v9116_v61  ;;  %v9137_v61 = vld [vmem:[%s13199_s2 + $0x144] ss:$8 sps:$4 sm:$0xff]  }
  0xa5   : > { %2345 = vmatpush1.bf16.msra.mxu1 %v9114_v28 }
  0xa6   : > { %2346 = vmatprep.subr.bf16.mxu1 %v9119_v29 }
  0xa7   : > { %1198 = vmatmul.mubr.bf16.gmra.mrb[44].mxu0 %v9972_v1  ;;  %2124 = vmatmul.mubr.bf16.gmra.mrb[60].mxu1 %v9915_v37 }
  0xa8   : > { %1207 = vmatprep.mubr.bf16.mxu0 %v13211_v2  ;;  %2133 = vmatprep.mubr.bf16.mxu1 %v13211_v2 }
  0xa9   : > { %2347 = vmatpush1.bf16.msra.mxu1 %v9117_v45  ;;  %v10355_v45 = vsel %vm1269_vm1, %v1289_v13, %v1291_v24 }
  0xaa   : > { %2348 = vmatprep.subr.bf16.mxu1 %v9122_v18 }
  0xad   : > { %2349 = vmatpush1.bf16.msra.mxu1 %v9120_v30  ;;  %v9135_v30 = vld [vmem:[%s13199_s2 + $0x140] ss:$8 sps:$4 sm:$0xff]  }
  0xae   : > { %2624 = vmatprep.subr.bf16.mxu1 %v9125_v17  ;;  %v9140_v17 = vld [vmem:[%s13199_s2 + $0x154] ss:$8 sps:$4 sm:$0xff]  }
  0xaf   : > { %1208 = vmatmul.mubr.bf16.gmra.mrb[48].mxu0 %v10012_v25  ;;  %2134 = vmatmul.mubr.bf16.gmra.mrb[64].mxu1 %v9803_v42  ;;  %v1270_v42 = vrot.slane %v7909_v15, 1 }
  0xb0   : > { %1217 = vmatprep.mubr.bf16.mxu0 %v13211_v2  ;;  %2143 = vmatprep.mubr.bf16.mxu1 %v13211_v2 }
  0xb7   : > { %1218 = vmatmul.mubr.bf16.gmra.mrb[52].mxu0 %v10034_v40  ;;  %2144 = vmatmul.mubr.bf16.gmra.mrb[68].mxu1 %v9847_v62  ;;  %v10187_v62 = vld [vmem:[%s9728_s16 + $0x8] sm:$0xff]   ;;  %v10242_v40 = vld [vmem:[%s9728_s16 + $0x30] sm:$0xff]  }
  0xb8   : > { %1227 = vmatprep.mubr.bf16.mxu0 %v13211_v2  ;;  %2153 = vmatprep.mubr.bf16.mxu1 %v13211_v2  ;;  %v1281_v43 = vrot.slane %v10242_v40, 1 }
  0xba   : > { %v10257_v31 = vsel %vm1269_vm1, %v1281_v43, %v1283_v46 }
  0xbf   : > { %1228 = vmatmul.mubr.bf16.gmra.mrb[56].mxu0 %v10060_v51  ;;  %2154 = vmatmul.mubr.bf16.gmra.mrb[72].mxu1 %v9881_v20  ;;  %v1271_v20 = vrot.slane %v10187_v62, 1 }
  0xc0   : > { %1237 = vmatprep.mubr.bf16.mxu0 %v13211_v2  ;;  %2163 = vmatprep.mubr.bf16.mxu1 %v13211_v2 }
  0xc1   : > { %v10191_v37 = vsel %vm1269_vm1, %v1270_v42, %v1271_v20  ;;  %v10370_v42 = vld [vmem:[%s9728_s16 + $0x60] sm:$0xff]  }
  0xc7   : > { %1238 = vmatmul.mubr.bf16.gmra.mrb[60].mxu0 %v9963_v60  ;;  %2164 = vmatmul.mubr.bf16.gmra.mrb[76].mxu1 %v9918_v38  ;;  %v1273_v38 = vrot.slane %v10198_v10, 1 }
  0xc8   : > { %1429 = vmatprep.mubr.bf16.mxu0 %v13211_v2  ;;  %2173 = vmatprep.mubr.bf16.mxu1 %v13211_v2 }
  0xc9   : > { %v10202_v1 = vsel %vm1269_vm1, %v1271_v20, %v1273_v38  ;;  %v9138_v20 = vld [vmem:[%s13199_s2 + $0x150] ss:$8 sps:$4 sm:$0xff]  }
  0xcf   : > { %1430 = vmatmul.mubr.bf16.vlgmr.msra.gmra.mrb[0].mxu0 %v10191_v37  ;;  %2174 = vmatmul.mubr.bf16.gmra.mrb[80].mxu1 %v9955_v56  ;;  %v10209_v56 = vld [vmem:[%s9728_s16 + $0x18] sm:$0xff]  }
  0xd0   : > { %1439 = vmatprep.mubr.bf16.mxu0 %v13211_v2  ;;  %2183 = vmatprep.mubr.bf16.mxu1 %v13211_v2  ;;  %v1275_v7 = vrot.slane %v10209_v56, 1 }
  0xd2   : > { %v10213_v15 = vsel %vm1269_vm1, %v1273_v38, %v1275_v7 }
  0xd7   : > { %1440 = vmatmul.mubr.bf16.gmra.mrb[4].mxu0 %v10202_v1  ;;  %2184 = vmatmul.mubr.bf16.gmra.mrb[84].mxu1 %v10002_v21  ;;  %v10220_v21 = vld [vmem:[%s9728_s16 + $0x20] sm:$0xff]  }
  0xd8   : > { %1449 = vmatprep.mubr.bf16.mxu0 %v13211_v2  ;;  %2193 = vmatprep.mubr.bf16.mxu1 %v13211_v2  ;;  %v1277_v25 = vrot.slane %v10220_v21, 1 }
  0xda   : > { %v10224_v34 = vsel %vm1269_vm1, %v1275_v7, %v1277_v25 }
  0xdf   : > { %1450 = vmatmul.mubr.bf16.gmra.mrb[8].mxu0 %v10213_v15  ;;  %2194 = vmatmul.mubr.bf16.gmra.mrb[88].mxu1 %v10026_v32  ;;  %v10231_v32 = vld [vmem:[%s9728_s16 + $0x28] sm:$0xff]  }
  0xe0   : > { %1459 = vmatprep.mubr.bf16.mxu0 %v13211_v2  ;;  %2203 = vmatprep.mubr.bf16.mxu1 %v13211_v2  ;;  %v1279_v35 = vrot.slane %v10231_v32, 1 }
  0xe2   : > { %v10235_v39 = vsel %vm1269_vm1, %v1277_v25, %v1279_v35  ;;  %v10246_v44 = vsel %vm1269_vm1, %v1279_v35, %v1281_v43 }
  0xe7   : > { %1460 = vmatmul.mubr.bf16.gmra.mrb[12].mxu0 %v10224_v34  ;;  %2204 = vmatmul.mubr.bf16.gmra.mrb[92].mxu1 %v10050_v47  ;;  %v10264_v47 = vld [vmem:[%s9728_s16 + $0x40] sm:$0xff]  }
  0xe8   : > { %1469 = vmatprep.mubr.bf16.mxu0 %v13211_v2  ;;  %2213 = vmatprep.mubr.bf16.mxu1 %v13211_v2  ;;  %v1285_v48 = vrot.slane %v10264_v47, 1 }
  0xea   : > { %v10274_v57 = vsel %vm1269_vm1, %v1283_v46, %v1285_v48  ;;  %v9141_v46 = vld [vmem:[%s13199_s2 + $0x160] ss:$8 sps:$4 sm:$0xff]  }
  0xef   : > { %1470 = vmatmul.mubr.bf16.gmra.mrb[16].mxu0 %v10235_v39  ;;  %2214 = vmatmul.mubr.bf16.gmra.mrb[96].mxu1 %v10069_v63  ;;  %v1287_v63 = vrot.slane %v10283_v59, 1 }
  0xf0   : > { %1479 = vmatprep.mubr.bf16.mxu0 %v13211_v2  ;;  %2223 = vmatprep.mubr.bf16.mxu1 %v13211_v2 }
  0xf1   : > { %v10293_v5 = vsel %vm1269_vm1, %v1285_v48, %v1287_v63  ;;  %v10324_v22 = vsel %vm1269_vm1, %v1287_v63, %v1289_v13  ;;  %v9146_v48 = vld [vmem:[%s13199_s2 + $0x174] ss:$8 sps:$4 sm:$0xff]   ;;  %v10401_v63 = vld [vmem:[%s9728_s16 + $0x68] sm:$0xff]  }
  0xf7   : > { %1480 = vmatmul.mubr.bf16.gmra.mrb[20].mxu0 %v10246_v44  ;;  %2224 = vmatmul.mubr.bf16.gmra.mrb[100].mxu1 %v10081_v8 }
  0xf8   : > { %1489 = vmatprep.mubr.bf16.mxu0 %v13211_v2  ;;  %2233 = vmatprep.mubr.bf16.mxu1 %v13211_v2 }
  0xff   : > { %1490 = vmatmul.mubr.bf16.gmra.mrb[24].mxu0 %v10257_v31  ;;  %2234 = vmatmul.mubr.bf16.gmra.mrb[104].mxu1 %v10090_v52  ;;  %v9126_v52 = vld [vmem:[%s13199_s2 + $0x110] ss:$8 sps:$4 sm:$0xff]  }
 0x100   : > { %1499 = vmatprep.mubr.bf16.mxu0 %v13211_v2  ;;  %2243 = vmatprep.mubr.bf16.mxu1 %v13211_v2 }
 0x102   : > { %v10267_v49 = vpop.f32.mrb[0].mxu1 }
 0x103   : > { %v10269_v50 = vpop.f32.mrb[1].mxu1 }
 0x104   : > { %v10271_v53 = vpop.f32.mrb[2].mxu1 }
 0x105   : > { %v10276_v58 = vpop.f32.mrb[3].mxu1 }
 0x107   : > { %1500 = vmatmul.mubr.bf16.gmra.mrb[28].mxu0 %v10274_v57  ;;  %2244 = vmatmul.mubr.bf16.gmra.mrb[108].mxu1 %v10097_v19 }
 0x108   : > { %1509 = vmatprep.mubr.bf16.mxu0 %v13211_v2  ;;  %2366 = vmatprep.mubr.bf16.mxu1 %v13211_v2 }
 0x10a   : > { %v10286_v54 = vpop.f32.mrb[4].mxu1 }
 0x10b   : > { %v10288_v0 = vpop.f32.mrb[5].mxu1 }
 0x10c   : > { %v10290_v3 = vpop.f32.mrb[6].mxu1 }
 0x10d   : > { %v10295_v8 = vpop.f32.mrb[7].mxu1 }
 0x10f   : > { %1510 = vmatmul.mubr.bf16.gmra.mrb[32].mxu0 %v10293_v5  ;;  %2367 = vmatmul.mubr.bf16.vlgmr.msra.gmra.mrb[48].mxu1 %v9744_v12  ;;  %v9131_v12 = vld [vmem:[%s13199_s2 + $0x124] ss:$8 sps:$4 sm:$0xff]  }
 0x110   : > { %1519 = vmatprep.mubr.bf16.mxu0 %v13211_v2  ;;  %2376 = vmatprep.mubr.bf16.mxu1 %v13211_v2 }
 0x111   : > { %2625 = vmatpush1.bf16.msra.mxu1 %v9123_v9  ;;  %v1295_v9 = vrot.slane %v10401_v63, 1 }
 0x112   : > { %v10314_v16 = vpop.f32.mrb[8].mxu1  ;;  %2626 = vmatprep.subr.bf16.mxu1 %v9128_v11  ;;  %v9144_v11 = vld [vmem:[%s13199_s2 + $0x170] ss:$8 sps:$4 sm:$0xff]  }
 0x113   : > { %v10319_v19 = vpop.f32.mrb[9].mxu1 }
 0x114   : > { %v10321_v36 = vpop.f32.mrb[10].mxu1 }
 0x115   : > { %v10326_v55 = vpop.f32.mrb[11].mxu1  ;;  %2627 = vmatpush1.bf16.msra.mxu1 %v9126_v52 }
 0x116   : > { %2628 = vmatprep.subr.bf16.mxu1 %v9131_v12 }
 0x117   : > { %1520 = vmatmul.mubr.bf16.gmra.mrb[36].mxu0 %v10324_v22  ;;  %2377 = vmatmul.mubr.bf16.gmra.mrb[52].mxu1 %v10187_v62  ;;  %v1293_v62 = vrot.slane %v10370_v42, 1 }
 0x118   : > { %1529 = vmatprep.mubr.bf16.mxu0 %v13211_v2  ;;  %2386 = vmatprep.mubr.bf16.mxu1 %v13211_v2 }
 0x119   : > { %2629 = vmatpush1.bf16.msra.mxu1 %v9129_v23  ;;  %v10386_v35 = vsel %vm1269_vm1, %v1291_v24, %v1293_v62 }
 0x11a   : > { %v10345_v33 = vpop.f32.mrb[12].mxu1  ;;  %2630 = vmatprep.subr.bf16.mxu1 %v9134_v4  ;;  %v1297_v4 = vrot.slane %v10060_v51, 1  ;;  %v10439_v51 = vrot.slane %v10078_v6, 1 }
 0x11b   : > { %v10350_v28 = vpop.f32.mrb[13].mxu1 }
 0x11c   : > { %v10352_v29 = vpop.f32.mrb[14].mxu1  ;;  %13217 = vst [vmem:[#allocation6_spill] sm:$0xff] %v10439_v51 }
 0x11d   : > { %v10357_v18 = vpop.f32.mrb[15].mxu1  ;;  %2631 = vmatpush1.bf16.msra.mxu1 %v9132_v27 }
 0x11e   : > { %2632 = vmatprep.subr.bf16.mxu1 %v9137_v61 }
 0x11f   : > { %1530 = vmatmul.mubr.bf16.gmra.mrb[40].mxu0 %v10355_v45  ;;  %2387 = vmatmul.mubr.bf16.gmra.mrb[56].mxu1 %v10198_v10  ;;  %v9143_v10 = vld [vmem:[%s13199_s2 + $0x164] ss:$8 sps:$4 sm:$0xff]  }
 0x120   : > { %1539 = vmatprep.mubr.bf16.mxu0 %v13211_v2  ;;  %2396 = vmatprep.mubr.bf16.mxu1 %v13211_v2 }
 0x121   : > { %2633 = vmatpush1.bf16.msra.mxu1 %v9135_v30  ;;  %v10430_v30 = vsel %vm1269_vm1, %v1295_v9, %v1297_v4 }
 0x122   : > { %v10376_v38 = vpop.f32.mrb[16].mxu1  ;;  %2634 = vmatprep.subr.bf16.mxu1 %v9140_v17 }
 0x123   : > { %v10381_v7 = vpop.f32.mrb[17].mxu1 }
 0x124   : > { %v10383_v25 = vpop.f32.mrb[18].mxu1 }
 0x125   : > { %v10388_v43 = vpop.f32.mrb[19].mxu1  ;;  %2635 = vmatpush1.bf16.msra.mxu1 %v9138_v20 }
 0x126   : > { %2636 = vmatprep.subr.bf16.mxu1 %v9143_v10  ;;  %v10449_v10 = vsel %vm1269_vm1, %v1297_v4, %v10439_v51 }
 0x127   : > { %1540 = vmatmul.mubr.bf16.gmra.mrb[44].mxu0 %v10386_v35  ;;  %2397 = vmatmul.mubr.bf16.gmra.mrb[60].mxu1 %v10209_v56  ;;  %v10414_v56 = vsel %vm1269_vm1, %v1293_v62, %v1295_v9  ;;  %13218 = vst [vmem:[#allocation7_spill] sm:$0xff] %v10449_v10 }
 0x128   : > { %1549 = vmatprep.mubr.bf16.mxu0 %v13211_v2  ;;  %2406 = vmatprep.mubr.bf16.mxu1 %v13211_v2 }
 0x129   : > { %2637 = vmatpush1.bf16.msra.mxu1 %v9141_v46 }
 0x12a   : > { %v10407_v13 = vpop.f32.mrb[20].mxu1  ;;  %2638 = vmatprep.subr.bf16.mxu1 %v9146_v48 }
 0x12b   : > { %v10409_v52 = vpop.f32.mrb[21].mxu1 }
 0x12c   : > { %v10411_v12 = vpop.f32.mrb[22].mxu1 }
 0x12d   : > { %v10416_v23 = vpop.f32.mrb[23].mxu1  ;;  %2639 = vmatpush1.bf16.msra.mxu1 %v9144_v11 }
 0x12f   : > { %1550 = vmatmul.mubr.bf16.gmra.mrb[48].mxu0 %v10414_v56  ;;  %2407 = vmatmul.mubr.bf16.gmra.mrb[64].mxu1 %v10220_v21 }
 0x130   : > { %1559 = vmatprep.mubr.bf16.mxu0 %v13211_v2  ;;  %2416 = vmatprep.mubr.bf16.mxu1 %v13211_v2 }
 0x132   : > { %v10423_v24 = vpop.f32.mrb[24].mxu1 }
 0x133   : > { %v10425_v27 = vpop.f32.mrb[25].mxu1 }
 0x134   : > { %v10427_v61 = vpop.f32.mrb[26].mxu1 }
 0x135   : > { %v10432_v17 = vpop.f32.mrb[27].mxu1 }
 0x137   : > { %1560 = vmatmul.mubr.bf16.gmra.mrb[52].mxu0 %v10430_v30  ;;  %2417 = vmatmul.mubr.bf16.gmra.mrb[68].mxu1 %v10231_v32 }
 0x138   : > { %1569 = vmatprep.mubr.bf16.mxu0 %v13211_v2  ;;  %2426 = vmatprep.mubr.bf16.mxu1 %v13211_v2 }
 0x13a   : > { %v10441_v21 = vpop.f32.mrb[28].mxu1 }
 0x13b   : > { %v10443_v62 = vpop.f32.mrb[29].mxu1 }
 0x13c   : > { %v10445_v20 = vpop.f32.mrb[30].mxu1 }
 0x13d   : > { %v10451_v46 = vpop.f32.mrb[31].mxu1 }
 0x13f   : > { %1570 = vmatmul.mubr.bf16.gmra.mrb[56].mxu0 %v10449_v10  ;;  %2427 = vmatmul.mubr.bf16.gmra.mrb[72].mxu1 %v10242_v40 }
 0x140   : > { %1579 = vmatprep.mubr.bf16.mxu0 %v13211_v2  ;;  %2436 = vmatprep.mubr.bf16.mxu1 %v13211_v2 }
 0x142   : > { %v10457_v6 = vpop.f32.mrb[32].mxu1 }
 0x143   : > { %v10459_v32 = vpop.f32.mrb[33].mxu1 }
 0x144   : > { %v10461_v48 = vpop.f32.mrb[34].mxu1 }
 0x145   : > { %13219 = vst [vmem:[#allocation8_spill] sm:$0xff] %v10461_v48  ;;  %v10463_v9 = vpop.f32.mrb[35].mxu1 }
 0x146   : > { %13220 = vst [vmem:[#allocation9_spill] sm:$0xff] %v10463_v9 }
 0x147   : > { %1580 = vmatmul.mubr.bf16.gmra.mrb[60].mxu0 %v10439_v51  ;;  %2437 = vmatmul.mubr.bf16.gmra.mrb[76].mxu1 %v10253_v26 }
 0x148   : > { %2446 = vmatprep.mubr.bf16.mxu1 %v13211_v2 }
 0x14a   : > { %v10468_v11 = vpop.f32.mrb[36].mxu1 }
 0x14b   : > { %v10470_v40 = vpop.f32.mrb[37].mxu1 }
 0x14c   : > { %13221 = vst [vmem:[#allocation10_spill] sm:$0xff] %v10470_v40  ;;  %v10472_v4 = vpop.f32.mrb[38].mxu1 }
 0x14d   : > { %13222 = vst [vmem:[#allocation11_spill] sm:$0xff] %v10472_v4  ;;  %v10474_v10 = vpop.f32.mrb[39].mxu1 }
 0x14e   : > { %13223 = vst [vmem:[#allocation12_spill] sm:$0xff] %v10474_v10 }
 0x14f   : > { %2447 = vmatmul.mubr.bf16.gmra.mrb[80].mxu1 %v10264_v47 }
 0x150   : > { %2456 = vmatprep.mubr.bf16.mxu1 %v13211_v2 }
 0x152   : > { %v10478_v48 = vpop.f32.mrb[40].mxu1 }
 0x153   : > { %v10480_v9 = vpop.f32.mrb[41].mxu1 }
 0x154   : > { %v10482_v51 = vpop.f32.mrb[42].mxu1 }
 0x155   : > { %v10484_v26 = vpop.f32.mrb[43].mxu1 }
 0x157   : > { %2457 = vmatmul.mubr.bf16.gmra.mrb[84].mxu1 %v10283_v59  ;;  %v9620_v59 = vld [vmem:[%s9728_s16 + $0x70] sm:$0xff]   ;;  %s8534_s16 = sshll.u32 %s13351_s22, 3 }
 0x158   : > { %2466 = vmatprep.mubr.bf16.mxu1 %v13211_v2  ;;  %s13107_s25 = scalar_lea.vmem %s13208_s11, %s8534_s16 }
 0x15a   : > { %v10488_v4 = vpop.f32.mrb[44].mxu1 }
 0x15b   : > { %v10490_v10 = vpop.f32.mrb[45].mxu1 }
 0x15c   : > { %v10492_v47 = vpop.f32.mrb[46].mxu1 }
 0x15d   : > { %v10494_v40 = vpop.f32.mrb[47].mxu1 }
 0x15f   : > { %2467 = vmatmul.mubr.bf16.gmra.mrb[88].mxu1 %v10308_v14 }
 0x160   : > { %2476 = vmatprep.mubr.bf16.mxu1 %v13211_v2 }
 0x167   : > { %2477 = vmatmul.mubr.bf16.gmra.mrb[92].mxu1 %v10339_v41 }
 0x168   : > { %2486 = vmatprep.mubr.bf16.mxu1 %v13211_v2 }
 0x16f   : > { %2487 = vmatmul.mubr.bf16.gmra.mrb[96].mxu1 %v10370_v42 }
 0x170   : > { %2496 = vmatprep.mubr.bf16.mxu1 %v13211_v2 }
 0x177   : > { %2497 = vmatmul.mubr.bf16.gmra.mrb[100].mxu1 %v10401_v63 }
 0x178   : > { %2506 = vmatprep.mubr.bf16.mxu1 %v13211_v2 }
 0x17f   : > { %2507 = vmatmul.mubr.bf16.gmra.mrb[104].mxu1 %v9620_v59 }
 0x180   : > { %2516 = vmatprep.mubr.bf16.mxu1 %v13211_v2 }
 0x187   : > { %2517 = vmatmul.mubr.bf16.gmra.mrb[108].mxu1 %v9963_v60 }
 0x188   : > { %2656 = vmatprep.mubr.bf16.mxu1 %v13211_v2 }
 0x18f   : > { %2657 = vmatmul.mubr.bf16.vlgmr.msra.gmra.mrb[48].mxu1 %v10191_v37 }
 0x190   : > { %2666 = vmatprep.mubr.bf16.mxu1 %v13211_v2 }
 0x197   : > { %2667 = vmatmul.mubr.bf16.gmra.mrb[52].mxu1 %v10202_v1 }
 0x198   : > { %2676 = vmatprep.mubr.bf16.mxu1 %v13211_v2 }
 0x19f   : > { %2677 = vmatmul.mubr.bf16.gmra.mrb[56].mxu1 %v10213_v15 }
 0x1a0   : > { %2686 = vmatprep.mubr.bf16.mxu1 %v13211_v2 }
 0x1a2   : > { %v10514_v14 = vpop.f32.mrb[0].mxu0 }
 0x1a3   : > { %v10516_v41 = vpop.f32.mrb[1].mxu0 }
 0x1a4   : > { %v10518_v42 = vpop.f32.mrb[2].mxu0 }
 0x1a5   : > { %13224 = vst [vmem:[#allocation13_spill] sm:$0xff] %v10518_v42  ;;  %v10520_v60 = vpop.f32.mrb[3].mxu0 }
 0x1a6   : > { %13225 = vst [vmem:[#allocation14_spill] sm:$0xff] %v10520_v60 }
 0x1a7   : > { %2687 = vmatmul.mubr.bf16.gmra.mrb[60].mxu1 %v10224_v34 }
 0x1a8   : > { %2696 = vmatprep.mubr.bf16.mxu1 %v13211_v2 }
 0x1aa   : > { %v10524_v37 = vpop.f32.mrb[4].mxu0 }
 0x1ab   : > { %v10526_v1 = vpop.f32.mrb[5].mxu0 }
 0x1ac   : > { %13226 = vst [vmem:[#allocation15_spill] sm:$0xff] %v10526_v1  ;;  %v10528_v63 = vpop.f32.mrb[6].mxu0 }
 0x1ad   : > { %13227 = vst [vmem:[#allocation16_spill] sm:$0xff] %v10528_v63  ;;  %v10530_v15 = vpop.f32.mrb[7].mxu0 }
 0x1ae   : > { %13228 = vst [vmem:[#allocation17_spill] sm:$0xff] %v10530_v15 }
 0x1af   : > { %2697 = vmatmul.mubr.bf16.gmra.mrb[64].mxu1 %v10235_v39 }
 0x1b0   : > { %2706 = vmatprep.mubr.bf16.mxu1 %v13211_v2 }
 0x1b2   : > { %v10534_v59 = vpop.f32.mrb[8].mxu0 }
 0x1b3   : > { %13229 = vst [vmem:[#allocation18_spill] sm:$0xff] %v10534_v59  ;;  %v10536_v42 = vpop.f32.mrb[9].mxu0 }
 0x1b4   : > { %13230 = vst [vmem:[#allocation19_spill] sm:$0xff] %v10536_v42  ;;  %v10538_v60 = vpop.f32.mrb[10].mxu0 }
 0x1b5   : > { %13231 = vst [vmem:[#allocation20_spill] sm:$0xff] %v10538_v60  ;;  %v10540_v34 = vpop.f32.mrb[11].mxu0 }
 0x1b6   : > { %13232 = vst [vmem:[#allocation21_spill] sm:$0xff] %v10540_v34 }
 0x1b7   : > { %2707 = vmatmul.mubr.bf16.gmra.mrb[68].mxu1 %v10246_v44 }
 0x1b8   : > { %2716 = vmatprep.mubr.bf16.mxu1 %v13211_v2 }
 0x1ba   : > { %v10544_v1 = vpop.f32.mrb[12].mxu0 }
 0x1bb   : > { %13233 = vst [vmem:[#allocation22_spill] sm:$0xff] %v10544_v1  ;;  %v10546_v63 = vpop.f32.mrb[13].mxu0 }
 0x1bc   : > { %13234 = vst [vmem:[#allocation23_spill] sm:$0xff] %v10546_v63  ;;  %v10548_v15 = vpop.f32.mrb[14].mxu0 }
 0x1bd   : > { %13235 = vst [vmem:[#allocation24_spill] sm:$0xff] %v10548_v15  ;;  %v10550_v39 = vpop.f32.mrb[15].mxu0 }
 0x1bf   : > { %2717 = vmatmul.mubr.bf16.gmra.mrb[72].mxu1 %v10257_v31 }
 0x1c0   : > { %2726 = vmatprep.mubr.bf16.mxu1 %v13211_v2 }
 0x1c2   : > { %v1471_v42 = vpop.f32.mrb[16].mxu0 }
 0x1c3   : > { %v10555_v60 = vadd.f32 %v1471_v42, %v10267_v49  ;;  %v1473_v34 = vpop.f32.mrb[17].mxu0 }
 0x1c4   : > { %v10558_v44 = vadd.f32 %v1473_v34, %v10269_v50  ;;  %v1475_v59 = vpop.f32.mrb[18].mxu0 }
 0x1c5   : > { %v10561_v1 = vadd.f32 %v1475_v59, %v10271_v53  ;;  %v1477_v63 = vpop.f32.mrb[19].mxu0 }
 0x1c6   : > { %v10564_v15 = vadd.f32 %v1477_v63, %v10276_v58 }
 0x1c7   : > { %2727 = vmatmul.mubr.bf16.gmra.mrb[76].mxu1 %v10274_v57 }
 0x1c8   : > { %2736 = vmatprep.mubr.bf16.mxu1 %v13211_v2 }
 0x1ca   : > { %v1481_v31 = vpop.f32.mrb[20].mxu0 }
 0x1cb   : > { %v10569_v49 = vadd.f32 %v1481_v31, %v10286_v54  ;;  %v1483_v42 = vpop.f32.mrb[21].mxu0 }
 0x1cc   : > { %v10572_v50 = vadd.f32 %v1483_v42, %v10288_v0  ;;  %v1485_v34 = vpop.f32.mrb[22].mxu0 }
 0x1cd   : > { %v10575_v53 = vadd.f32 %v1485_v34, %v10290_v3  ;;  %v1487_v59 = vpop.f32.mrb[23].mxu0 }
 0x1ce   : > { %v10578_v58 = vadd.f32 %v1487_v59, %v10295_v8 }
 0x1cf   : > { %2737 = vmatmul.mubr.bf16.gmra.mrb[80].mxu1 %v10293_v5 }
 0x1d0   : > { %2746 = vmatprep.mubr.bf16.mxu1 %v13211_v2 }
 0x1d2   : > { %v1491_v57 = vpop.f32.mrb[24].mxu0 }
 0x1d3   : > { %v10583_v54 = vadd.f32 %v1491_v57, %v10314_v16  ;;  %v1493_v63 = vpop.f32.mrb[25].mxu0 }
 0x1d4   : > { %v10586_v0 = vadd.f32 %v1493_v63, %v10319_v19  ;;  %v1495_v31 = vpop.f32.mrb[26].mxu0 }
 0x1d5   : > { %v10589_v3 = vadd.f32 %v1495_v31, %v10321_v36  ;;  %v1497_v42 = vpop.f32.mrb[27].mxu0 }
 0x1d6   : > { %v10592_v8 = vadd.f32 %v1497_v42, %v10326_v55 }
 0x1d7   : > { %2747 = vmatmul.mubr.bf16.gmra.mrb[84].mxu1 %v10324_v22 }
 0x1d8   : > { %2756 = vmatprep.mubr.bf16.mxu1 %v13211_v2 }
 0x1da   : > { %v1501_v5 = vpop.f32.mrb[28].mxu0 }
 0x1db   : > { %v10597_v16 = vadd.f32 %v1501_v5, %v10345_v33  ;;  %v1503_v34 = vpop.f32.mrb[29].mxu0 }
 0x1dc   : > { %v10600_v19 = vadd.f32 %v1503_v34, %v10350_v28  ;;  %v1505_v59 = vpop.f32.mrb[30].mxu0 }
 0x1dd   : > { %v10603_v36 = vadd.f32 %v1505_v59, %v10352_v29  ;;  %v1507_v57 = vpop.f32.mrb[31].mxu0 }
 0x1de   : > { %v10606_v55 = vadd.f32 %v1507_v57, %v10357_v18 }
 0x1df   : > { %2757 = vmatmul.mubr.bf16.gmra.mrb[88].mxu1 %v10355_v45 }
 0x1e0   : > { %2766 = vmatprep.mubr.bf16.mxu1 %v13211_v2 }
 0x1e2   : > { %v1511_v22 = vpop.f32.mrb[32].mxu0 }
 0x1e3   : > { %v10611_v33 = vadd.f32 %v1511_v22, %v10376_v38  ;;  %v1513_v63 = vpop.f32.mrb[33].mxu0 }
 0x1e4   : > { %v10614_v28 = vadd.f32 %v1513_v63, %v10381_v7  ;;  %v1515_v31 = vpop.f32.mrb[34].mxu0 }
 0x1e5   : > { %v10617_v29 = vadd.f32 %v1515_v31, %v10383_v25  ;;  %v1517_v42 = vpop.f32.mrb[35].mxu0 }
 0x1e6   : > { %v10620_v18 = vadd.f32 %v1517_v42, %v10388_v43 }
 0x1e7   : > { %2767 = vmatmul.mubr.bf16.gmra.mrb[92].mxu1 %v10386_v35 }
 0x1e8   : > { %2776 = vmatprep.mubr.bf16.mxu1 %v13211_v2 }
 0x1ea   : > { %v1521_v45 = vpop.f32.mrb[36].mxu0 }
 0x1eb   : > { %v10625_v38 = vadd.f32 %v1521_v45, %v10407_v13  ;;  %v1523_v5 = vpop.f32.mrb[37].mxu0 }
 0x1ec   : > { %v10628_v7 = vadd.f32 %v1523_v5, %v10409_v52  ;;  %v1525_v34 = vpop.f32.mrb[38].mxu0  ;;  %v13236_v5 = vld [vmem:[#allocation7_spill] sm:$0xff] }
 0x1ed   : > { %v10631_v25 = vadd.f32 %v1525_v34, %v10411_v12  ;;  %v1527_v59 = vpop.f32.mrb[39].mxu0 }
 0x1ee   : > { %v10634_v43 = vadd.f32 %v1527_v59, %v10416_v23 }
 0x1ef   : > { %2777 = vmatmul.mubr.bf16.gmra.mrb[96].mxu1 %v10414_v56 }
 0x1f0   : > { %2786 = vmatprep.mubr.bf16.mxu1 %v13211_v2 }
 0x1f2   : > { %v1531_v35 = vpop.f32.mrb[40].mxu0 }
 0x1f3   : > { %v10639_v13 = vadd.f32 %v1531_v35, %v10423_v24  ;;  %v1533_v57 = vpop.f32.mrb[41].mxu0  ;;  %v13237_v35 = vld [vmem:[#allocation8_spill] sm:$0xff] }
 0x1f4   : > { %v10642_v52 = vadd.f32 %v1533_v57, %v10425_v27  ;;  %v1535_v22 = vpop.f32.mrb[42].mxu0 }
 0x1f5   : > { %v10645_v12 = vadd.f32 %v1535_v22, %v10427_v61  ;;  %v1537_v63 = vpop.f32.mrb[43].mxu0  ;;  %v13238_v22 = vld [vmem:[#allocation9_spill] sm:$0xff] }
 0x1f6   : > { %v10648_v23 = vadd.f32 %v1537_v63, %v10432_v17  ;;  %v13240_v63 = vld [vmem:[#allocation6_spill] sm:$0xff] }
 0x1f7   : > { %2787 = vmatmul.mubr.bf16.gmra.mrb[100].mxu1 %v10430_v30 }
 0x1f8   : > { %2796 = vmatprep.mubr.bf16.mxu1 %v13211_v2 }
 0x1fa   : > { %v1541_v56 = vpop.f32.mrb[44].mxu0 }
 0x1fb   : > { %v10653_v24 = vadd.f32 %v1541_v56, %v10441_v21  ;;  %v1543_v31 = vpop.f32.mrb[45].mxu0 }
 0x1fc   : > { %v10656_v27 = vadd.f32 %v1543_v31, %v10443_v62  ;;  %v1545_v42 = vpop.f32.mrb[46].mxu0 }
 0x1fd   : > { %v10659_v61 = vadd.f32 %v1545_v42, %v10445_v20  ;;  %v1547_v45 = vpop.f32.mrb[47].mxu0  ;;  %v13242_v42 = vld [vmem:[#allocation10_spill] sm:$0xff] }
 0x1fe   : > { %v10662_v17 = vadd.f32 %v1547_v45, %v10451_v46 }
 0x1ff   : > { %2797 = vmatmul.mubr.bf16.gmra.mrb[104].mxu1 %v13236_v5  ;;  %v13244_v5 = vld [vmem:[#allocation11_spill] sm:$0xff] }
 0x200   : > { %2806 = vmatprep.mubr.bf16.mxu1 %v13211_v2  ;;  %v1656_v2 = vlaneseq }
 0x202   : > { %v1551_v30 = vpop.f32.mrb[48].mxu0 }
 0x203   : > { %v10667_v21 = vadd.f32 %v1551_v30, %v10457_v6  ;;  %v1553_v34 = vpop.f32.mrb[49].mxu0 }
 0x204   : > { %v10670_v62 = vadd.f32 %v1553_v34, %v10459_v32  ;;  %v1555_v59 = vpop.f32.mrb[50].mxu0 }
 0x205   : > { %v10673_v20 = vadd.f32 %v1555_v59, %v13237_v35  ;;  %v1557_v57 = vpop.f32.mrb[51].mxu0  ;;  %v13246_v59 = vld [vmem:[#allocation12_spill] sm:$0xff] }
 0x206   : > { %v10676_v46 = vadd.f32 %v1557_v57, %v13238_v22 }
 0x207   : > { %2807 = vmatmul.mubr.bf16.gmra.mrb[108].mxu1 %v13240_v63 }
 0x208   : > { %13239 = vst [vmem:[#allocation7_spill] sm:$0xff] %v10676_v46  ;;  %v13264_v46 = vld [vmem:[#allocation19_spill] sm:$0xff] }
 0x20a   : > { %v1561_v56 = vpop.f32.mrb[52].mxu0 }
 0x20b   : > { %v10680_v31 = vadd.f32 %v1561_v56, %v10468_v11  ;;  %v1563_v6 = vpop.f32.mrb[53].mxu0 }
 0x20c   : > { %v10683_v45 = vadd.f32 %v1563_v6, %v13242_v42  ;;  %v1565_v32 = vpop.f32.mrb[54].mxu0 }
 0x20d   : > { %13241 = vst [vmem:[#allocation8_spill] sm:$0xff] %v10680_v31  ;;  %v10686_v30 = vadd.f32 %v1565_v32, %v13244_v5  ;;  %v1567_v34 = vpop.f32.mrb[55].mxu0  ;;  %v1657_v5 = vshrl.u32 %v1656_v2, 7  ;;  %v1654_v2 = vld [vmem:[%s13200_s3] ss:$4 sm:$0x3] }
 0x20e   : > { %13243 = vst [vmem:[#allocation9_spill] sm:$0xff] %v10683_v45  ;;  %v10689_v35 = vadd.f32 %v1567_v34, %v13246_v59 }
 0x20f   : > { %13245 = vst [vmem:[#allocation6_spill] sm:$0xff] %v10686_v30  ;;  %v13263_v30 = vld [vmem:[#allocation18_spill] sm:$0xff] }
 0x210   : > { %13247 = vst [vmem:[#allocation10_spill] sm:$0xff] %v10689_v35 }
 0x212   : > { %v1571_v57 = vpop.f32.mrb[56].mxu0 }
 0x213   : > { %v10692_v22 = vadd.f32 %v1571_v57, %v10478_v48  ;;  %v1573_v63 = vpop.f32.mrb[57].mxu0 }
 0x214   : > { %v10695_v11 = vadd.f32 %v1573_v63, %v10480_v9  ;;  %v1575_v56 = vpop.f32.mrb[58].mxu0  ;;  %v10709_v63 = vsub.s32 0, %v1657_v5 }
 0x215   : > { %13248 = vst [vmem:[#allocation11_spill] sm:$0xff] %v10692_v22  ;;  %v10698_v6 = vadd.f32 %v1575_v56, %v10482_v51  ;;  %v1577_v42 = vpop.f32.mrb[59].mxu0 }
 0x216   : > { %13249 = vst [vmem:[#allocation12_spill] sm:$0xff] %v10695_v11  ;;  %v10701_v32 = vadd.f32 %v1577_v42, %v10484_v26  ;;  %13254 = vst [vmem:[#allocation29_spill] sm:$0xff] %v10709_v63  ;;  %v10711_v11 = vsub.s32 1, %v1657_v5  ;;  %v10723_v26 = vrot.slane %v1654_v2, %v10709_v63 }
 0x217   : > { %13250 = vst [vmem:[#allocation25_spill] sm:$0xff] %v10698_v6 }
 0x218   : > { %13251 = vst [vmem:[#allocation26_spill] sm:$0xff] %v10701_v32  ;;  %13255 = vst [vmem:[#allocation30_spill] sm:$0xff] %v10711_v11  ;;  %v1666_v42 = vadd.f32 %v10723_v26, %v10514_v14  ;;  %v13261_v14 = vld [vmem:[#allocation16_spill] sm:$0xff]  ;;  %v1674_v45 = vadd.f32 %v10723_v26, %v13263_v30 }
 0x21a   : > { %v1581_v34 = vpop.f32.mrb[60].mxu0  ;;  %v1730_v32 = vmax.f32 %v1666_v42, 0.0 }
 0x21b   : > { %v10704_v59 = vadd.f32 %v1581_v34, %v10488_v4  ;;  %v1583_v48 = vpop.f32.mrb[61].mxu0  ;;  %v13258_v34 = vld [vmem:[#allocation13_spill] sm:$0xff] }
 0x21c   : > { %v10707_v57 = vadd.f32 %v1583_v48, %v10490_v10  ;;  %v1585_v9 = vpop.f32.mrb[62].mxu0  ;;  %v10726_v10 = vrot.slane %v1654_v2, %v10711_v11  ;;  %v13259_v48 = vld [vmem:[#allocation14_spill] sm:$0xff]  ;;  %v13260_v2 = vld [vmem:[#allocation15_spill] sm:$0xff] }
 0x21d   : > { %13252 = vst [vmem:[#allocation27_spill] sm:$0xff] %v10704_v59  ;;  %v10714_v51 = vadd.f32 %v1585_v9, %v10492_v47  ;;  %v1587_v56 = vpop.f32.mrb[63].mxu0  ;;  %v7926_v47 = vld [vmem:[%s13200_s3 + $0x1] ss:$4 sm:$0x3]  ;;  %v13262_v59 = vld [vmem:[#allocation17_spill] sm:$0xff] }
 0x21e   : > { %13253 = vst [vmem:[#allocation28_spill] sm:$0xff] %v10707_v57  ;;  %v10720_v4 = vadd.f32 %v1587_v56, %v10494_v40  ;;  %v1667_v5 = vadd.f32 %v10726_v10, %v10516_v41  ;;  %v1668_v40 = vadd.f32 %v10723_v26, %v13258_v34  ;;  %v1669_v9 = vadd.f32 %v10726_v10, %v13259_v48  ;;  %v7927_v34 = vld [vmem:[%s13200_s3 + $0x2] ss:$4 sm:$0x3] }
 0x21f   : > { %13256 = vst [vmem:[#allocation31_spill] sm:$0xff] %v10714_v51  ;;  %v1670_v56 = vadd.f32 %v10723_v26, %v10524_v37  ;;  %v1672_v51 = vadd.f32 %v10723_v26, %v13261_v14  ;;  %v10746_v57 = vrot.slane %v7926_v47, %v10709_v63  ;;  %v1673_v41 = vadd.f32 %v10726_v10, %v13262_v59 }
 0x220   : > { %13257 = vst [vmem:[#allocation32_spill] sm:$0xff] %v10720_v4  ;;  %v1671_v4 = vadd.f32 %v10726_v10, %v13260_v2  ;;  %v1731_v48 = vmax.f32 %v1667_v5, 0.0  ;;  %v10754_v37 = vrot.slane %v7926_v47, %v10711_v11  ;;  %v1732_v6 = vmax.f32 %v1668_v40, 0.0 }
 0x221   : > { %v1733_v2 = vmax.f32 %v1669_v9, 0.0  ;;  %v1734_v22 = vmax.f32 %v1670_v56, 0.0  ;;  %v1736_v14 = vmax.f32 %v1672_v51, 0.0  ;;  %v10759_v31 = vrot.slane %v7927_v34, %v10709_v63  ;;  %v13265_v51 = vld [vmem:[#allocation20_spill] sm:$0xff] }
 0x222   : > { %v1735_v35 = vmax.f32 %v1671_v4, 0.0  ;;  %v10762_v59 = vrot.slane %v7927_v34, %v10711_v11  ;;  %v1737_v42 = vmax.f32 %v1673_v41, 0.0  ;;  %v1675_v5 = vadd.f32 %v10726_v10, %v13264_v46  ;;  %v13266_v11 = vld [vmem:[#allocation21_spill] sm:$0xff] }
 0x223   : > { %v1807_v47 = vmul.f32 %v10746_v57, %v1730_v32  ;;  %v1808_v40 = vmul.f32 %v10754_v37, %v1731_v48  ;;  %v1809_v4 = vmul.f32 %v10746_v57, %v1732_v6  ;;  %v1676_v9 = vadd.f32 %v10723_v26, %v13265_v51 }
 0x224   : > { %v1810_v30 = vmul.f32 %v10754_v37, %v1733_v2  ;;  %v1811_v56 = vmul.f32 %v10746_v57, %v1734_v22  ;;  %v1812_v34 = vmul.f32 %v10754_v37, %v1735_v35  ;;  %v1677_v41 = vadd.f32 %v10726_v10, %v13266_v11 }
 0x225   : > { %v1813_v46 = vmul.f32 %v10746_v57, %v1736_v14  ;;  %v1738_v63 = vmax.f32 %v1674_v45, 0.0  ;;  %v1814_v32 = vmul.f32 %v10754_v37, %v1737_v42  ;;  %v1739_v48 = vmax.f32 %v1675_v5, 0.0 }
 0x226   : > { %v10779_v6 = vadd.f32 %v10759_v31, %v1807_v47  ;;  %v10782_v51 = vadd.f32 %v10762_v59, %v1808_v40  ;;  %v10785_v2 = vadd.f32 %v10759_v31, %v1809_v4  ;;  %v1740_v22 = vmax.f32 %v1676_v9, 0.0  ;;  %v13270_v47 = vld [vmem:[#allocation22_spill] sm:$0xff]  ;;  %v13271_v4 = vld [vmem:[#allocation23_spill] sm:$0xff] }
 0x227   : > { %v10788_v35 = vadd.f32 %v10762_v59, %v1810_v30  ;;  %v10791_v11 = vadd.f32 %v10759_v31, %v1811_v56  ;;  %v10794_v45 = vadd.f32 %v10762_v59, %v1812_v34  ;;  %v1741_v14 = vmax.f32 %v1677_v41, 0.0 }
 0x228   : > { %v10797_v42 = vadd.f32 %v10759_v31, %v1813_v46  ;;  %v1815_v5 = vmul.f32 %v10746_v57, %v1738_v63  ;;  %v1678_v40 = vadd.f32 %v10723_v26, %v13270_v47  ;;  %v1679_v9 = vadd.f32 %v10726_v10, %v13271_v4 }
 0x229   : > { %13267 = vst [vmem:[#allocation13_spill] sm:$0xff] %v10791_v11  ;;  %13268 = vst [vmem:[#allocation14_spill] sm:$0xff] %v10794_v45  ;;  %v10805_v30 = vadd.f32 %v10762_v59, %v1814_v32  ;;  %v1816_v56 = vmul.f32 %v10754_v37, %v1739_v48  ;;  %v13273_v11 = vld [vmem:[#allocation24_spill] sm:$0xff]  ;;  %v1681_v41 = vadd.f32 %v10726_v10, %v10550_v39 }
 0x22a   : > { %13269 = vst [vmem:[#allocation15_spill] sm:$0xff] %v10797_v42  ;;  %v1680_v34 = vadd.f32 %v10723_v26, %v13273_v11  ;;  %v1817_v46 = vmul.f32 %v10746_v57, %v1740_v22  ;;  %v1682_v63 = vadd.f32 %v10555_v60, %v10723_v26  ;;  %v1683_v47 = vadd.f32 %v10558_v44, %v10726_v10 }
 0x22b   : > { %13272 = vst [vmem:[#allocation16_spill] sm:$0xff] %v10805_v30  ;;  %v1684_v32 = vadd.f32 %v10561_v1, %v10723_v26  ;;  %v1818_v4 = vmul.f32 %v10754_v37, %v1741_v14  ;;  %v1685_v48 = vadd.f32 %v10564_v15, %v10726_v10  ;;  %v1686_v11 = vadd.f32 %v10569_v49, %v10723_v26 }
 0x22c   : > { %v1687_v39 = vadd.f32 %v10572_v50, %v10726_v10  ;;  %v10827_v22 = vadd.f32 %v10759_v31, %v1815_v5  ;;  %v1742_v60 = vmax.f32 %v1678_v40, 0.0  ;;  %v1743_v30 = vmax.f32 %v1679_v9, 0.0 }
 0x22d   : > { %v1688_v44 = vadd.f32 %v10575_v53, %v10723_v26  ;;  %v10832_v1 = vadd.f32 %v10762_v59, %v1816_v56  ;;  %v1744_v14 = vmax.f32 %v1680_v34, 0.0  ;;  %v1745_v42 = vmax.f32 %v1681_v41, 0.0 }
 0x22e   : > { %13274 = vst [vmem:[#allocation17_spill] sm:$0xff] %v10827_v22  ;;  %v1689_v15 = vadd.f32 %v10578_v58, %v10726_v10  ;;  %v10837_v49 = vadd.f32 %v10759_v31, %v1817_v46  ;;  %v1746_v50 = vmax.f32 %v1682_v63, 0.0  ;;  %v1747_v45 = vmax.f32 %v1683_v47, 0.0 }
 0x22f   : > { %v1748_v5 = vmax.f32 %v1684_v32, 0.0  ;;  %v10840_v40 = vadd.f32 %v10762_v59, %v1818_v4  ;;  %v1749_v9 = vmax.f32 %v1685_v48, 0.0  ;;  %v1750_v22 = vmax.f32 %v1686_v11, 0.0 }
 0x230   : > { %v1751_v53 = vmax.f32 %v1687_v39, 0.0  ;;  %v1819_v56 = vmul.f32 %v10746_v57, %v1742_v60  ;;  %v1820_v34 = vmul.f32 %v10754_v37, %v1743_v30  ;;  %v1752_v41 = vmax.f32 %v1688_v44, 0.0 }
 0x231   : > { %v1690_v58 = vadd.f32 %v10583_v54, %v10723_v26  ;;  %v1821_v46 = vmul.f32 %v10746_v57, %v1744_v14  ;;  %v1822_v63 = vmul.f32 %v10754_v37, %v1745_v42  ;;  %v1753_v47 = vmax.f32 %v1689_v15, 0.0 }
 0x232   : > { %v1691_v32 = vadd.f32 %v10586_v0, %v10726_v10  ;;  %v1823_v4 = vmul.f32 %v10746_v57, %v1746_v50  ;;  %v1824_v48 = vmul.f32 %v10754_v37, %v1747_v45  ;;  %v1825_v11 = vmul.f32 %v10746_v57, %v1748_v5 }
 0x233   : > { %v1692_v30 = vadd.f32 %v10589_v3, %v10723_v26  ;;  %v1826_v39 = vmul.f32 %v10754_v37, %v1749_v9  ;;  %v1827_v54 = vmul.f32 %v10746_v57, %v1750_v22  ;;  %v1828_v60 = vmul.f32 %v10754_v37, %v1751_v53 }
 0x234   : > { %v1693_v42 = vadd.f32 %v10592_v8, %v10726_v10  ;;  %v10861_v0 = vadd.f32 %v10759_v31, %v1819_v56  ;;  %v10864_v44 = vadd.f32 %v10762_v59, %v1820_v34  ;;  %v1829_v45 = vmul.f32 %v10746_v57, %v1752_v41 }
 0x235   : > { %v1754_v14 = vmax.f32 %v1690_v58, 0.0  ;;  %v10868_v3 = vadd.f32 %v10759_v31, %v1821_v46  ;;  %v10871_v15 = vadd.f32 %v10762_v59, %v1822_v63  ;;  %v1830_v22 = vmul.f32 %v10754_v37, %v1753_v47 }
 0x236   : > { %v1755_v50 = vmax.f32 %v1691_v32, 0.0  ;;  %v10875_v8 = vadd.f32 %v10759_v31, %v1823_v4  ;;  %v10878_v5 = vadd.f32 %v10762_v59, %v1824_v48  ;;  %v10881_v9 = vadd.f32 %v10759_v31, %v1825_v11 }
 0x237   : > { %v1756_v53 = vmax.f32 %v1692_v30, 0.0  ;;  %v10884_v56 = vadd.f32 %v10762_v59, %v1826_v39  ;;  %v10887_v34 = vadd.f32 %v10759_v31, %v1827_v54  ;;  %v10890_v41 = vadd.f32 %v10762_v59, %v1828_v60 }
 0x238   : > { %v1757_v58 = vmax.f32 %v1693_v42, 0.0  ;;  %v10893_v46 = vadd.f32 %v10759_v31, %v1829_v45  ;;  %v1831_v63 = vmul.f32 %v10746_v57, %v1754_v14  ;;  %v1694_v47 = vadd.f32 %v10597_v16, %v10723_v26 }
 0x239   : > { %v1695_v32 = vadd.f32 %v10600_v19, %v10726_v10  ;;  %v10901_v4 = vadd.f32 %v10762_v59, %v1830_v22  ;;  %v1832_v48 = vmul.f32 %v10754_v37, %v1755_v50  ;;  %v1696_v11 = vadd.f32 %v10603_v36, %v10723_v26 }
 0x23a   : > { %v1697_v30 = vadd.f32 %v10606_v55, %v10726_v10  ;;  %v1833_v39 = vmul.f32 %v10746_v57, %v1756_v53  ;;  %v1698_v54 = vadd.f32 %v10611_v33, %v10723_v26  ;;  %v1699_v16 = vadd.f32 %v10614_v28, %v10726_v10 }
 0x23b   : > { %v1700_v19 = vadd.f32 %v10617_v29, %v10723_v26  ;;  %v1834_v60 = vmul.f32 %v10754_v37, %v1757_v58  ;;  %v1701_v42 = vadd.f32 %v10620_v18, %v10726_v10  ;;  %v1702_v36 = vadd.f32 %v10625_v38, %v10723_v26 }
 0x23c   : > { %v1703_v55 = vadd.f32 %v10628_v7, %v10726_v10  ;;  %v10923_v45 = vadd.f32 %v10759_v31, %v1831_v63  ;;  %v1758_v33 = vmax.f32 %v1694_v47, 0.0  ;;  %v1759_v14 = vmax.f32 %v1695_v32, 0.0 }
 0x23d   : > { %v1704_v28 = vadd.f32 %v10631_v25, %v10723_v26  ;;  %v10928_v29 = vadd.f32 %v10762_v59, %v1832_v48  ;;  %v1760_v22 = vmax.f32 %v1696_v11, 0.0  ;;  %v1761_v50 = vmax.f32 %v1697_v30, 0.0 }
 0x23e   : > { %v1705_v18 = vadd.f32 %v10634_v43, %v10726_v10  ;;  %v10933_v38 = vadd.f32 %v10759_v31, %v1833_v39  ;;  %v1762_v7 = vmax.f32 %v1698_v54, 0.0  ;;  %v1763_v53 = vmax.f32 %v1699_v16, 0.0 }
 0x23f   : > { %v1764_v58 = vmax.f32 %v1700_v19, 0.0  ;;  %v10936_v63 = vadd.f32 %v10762_v59, %v1834_v60  ;;  %v1765_v47 = vmax.f32 %v1701_v42, 0.0  ;;  %v1766_v32 = vmax.f32 %v1702_v36, 0.0 }
 0x240   : > { %v1767_v25 = vmax.f32 %v1703_v55, 0.0  ;;  %v1835_v48 = vmul.f32 %v10746_v57, %v1758_v33  ;;  %v1836_v11 = vmul.f32 %v10754_v37, %v1759_v14  ;;  %v1768_v30 = vmax.f32 %v1704_v28, 0.0 }
 0x241   : > { %v1706_v43 = vadd.f32 %v10639_v13, %v10723_v26  ;;  %v1837_v39 = vmul.f32 %v10746_v57, %v1760_v22  ;;  %v1838_v54 = vmul.f32 %v10754_v37, %v1761_v50  ;;  %v1769_v16 = vmax.f32 %v1705_v18, 0.0 }
 0x242   : > { %v1707_v19 = vadd.f32 %v10642_v52, %v10726_v10  ;;  %v1839_v60 = vmul.f32 %v10746_v57, %v1762_v7  ;;  %v1840_v42 = vmul.f32 %v10754_v37, %v1763_v53  ;;  %v1841_v36 = vmul.f32 %v10746_v57, %v1764_v58 }
 0x243   : > { %v1708_v55 = vadd.f32 %v10645_v12, %v10723_v26  ;;  %v1842_v33 = vmul.f32 %v10754_v37, %v1765_v47  ;;  %v1843_v13 = vmul.f32 %v10746_v57, %v1766_v32  ;;  %v1844_v14 = vmul.f32 %v10754_v37, %v1767_v25 }
 0x244   : > { %v1709_v28 = vadd.f32 %v10648_v23, %v10726_v10  ;;  %v10957_v52 = vadd.f32 %v10759_v31, %v1835_v48  ;;  %v10960_v22 = vadd.f32 %v10762_v59, %v1836_v11  ;;  %v1845_v50 = vmul.f32 %v10746_v57, %v1768_v30 }
 0x245   : > { %v1770_v18 = vmax.f32 %v1706_v43, 0.0  ;;  %v10964_v12 = vadd.f32 %v10759_v31, %v1837_v39  ;;  %v10967_v7 = vadd.f32 %v10762_v59, %v1838_v54  ;;  %v1846_v53 = vmul.f32 %v10754_v37, %v1769_v16 }
 0x246   : > { %v1771_v58 = vmax.f32 %v1707_v19, 0.0  ;;  %v10971_v23 = vadd.f32 %v10759_v31, %v1839_v60  ;;  %v10974_v47 = vadd.f32 %v10762_v59, %v1840_v42  ;;  %v10977_v32 = vadd.f32 %v10759_v31, %v1841_v36 }
 0x247   : > { %v1772_v25 = vmax.f32 %v1708_v55, 0.0  ;;  %v10980_v48 = vadd.f32 %v10762_v59, %v1842_v33  ;;  %v10983_v11 = vadd.f32 %v10759_v31, %v1843_v13  ;;  %v10986_v30 = vadd.f32 %v10762_v59, %v1844_v14 }
 0x248   : > { %v1773_v43 = vmax.f32 %v1709_v28, 0.0  ;;  %v10989_v39 = vadd.f32 %v10759_v31, %v1845_v50  ;;  %v1847_v54 = vmul.f32 %v10746_v57, %v1770_v18  ;;  %v1710_v16 = vadd.f32 %v10653_v24, %v10723_v26  ;;  %v13279_v28 = vld [vmem:[#allocation7_spill] sm:$0xff] }
 0x249   : > { %13275 = vst [vmem:[#allocation18_spill] sm:$0xff] %v10983_v11  ;;  %13276 = vst [vmem:[#allocation19_spill] sm:$0xff] %v10986_v30  ;;  %v1711_v19 = vadd.f32 %v10656_v27, %v10726_v10  ;;  %v10997_v60 = vadd.f32 %v10762_v59, %v1846_v53  ;;  %v1848_v42 = vmul.f32 %v10754_v37, %v1771_v58 }
 0x24a   : > { %13277 = vst [vmem:[#allocation20_spill] sm:$0xff] %v10989_v39  ;;  %v1712_v36 = vadd.f32 %v10659_v61, %v10723_v26  ;;  %v1713_v55 = vadd.f32 %v10662_v17, %v10726_v10  ;;  %v1849_v33 = vmul.f32 %v10746_v57, %v1772_v25  ;;  %v1714_v13 = vadd.f32 %v10667_v21, %v10723_v26  ;;  %v13280_v61 = vld [vmem:[#allocation8_spill] sm:$0xff]  ;;  %v13281_v17 = vld [vmem:[#allocation9_spill] sm:$0xff] }
 0x24b   : > { %13278 = vst [vmem:[#allocation21_spill] sm:$0xff] %v10997_v60  ;;  %v1715_v24 = vadd.f32 %v10670_v62, %v10726_v10  ;;  %v1716_v27 = vadd.f32 %v10673_v20, %v10723_v26  ;;  %v1850_v14 = vmul.f32 %v10754_v37, %v1773_v43  ;;  %v1717_v50 = vadd.f32 %v13279_v28, %v10726_v10  ;;  %v13283_v62 = vld [vmem:[#allocation6_spill] sm:$0xff] }
 0x24c   : > { %v1718_v18 = vadd.f32 %v13280_v61, %v10723_v26  ;;  %v1719_v53 = vadd.f32 %v13281_v17, %v10726_v10  ;;  %v11019_v58 = vadd.f32 %v10759_v31, %v1847_v54  ;;  %v1774_v21 = vmax.f32 %v1710_v16, 0.0  ;;  %v13285_v28 = vld [vmem:[#allocation10_spill] sm:$0xff] }
 0x24d   : > { %v1775_v25 = vmax.f32 %v1711_v19, 0.0  ;;  %v1720_v60 = vadd.f32 %v13283_v62, %v10723_v26  ;;  %v11024_v20 = vadd.f32 %v10762_v59, %v1848_v42  ;;  %v1776_v43 = vmax.f32 %v1712_v36, 0.0 }
 0x24e   : > { %13282 = vst [vmem:[#allocation22_spill] sm:$0xff] %v11019_v58  ;;  %v1777_v39 = vmax.f32 %v1713_v55, 0.0  ;;  %v1721_v30 = vadd.f32 %v13285_v28, %v10726_v10  ;;  %v11029_v61 = vadd.f32 %v10759_v31, %v1849_v33  ;;  %v1778_v17 = vmax.f32 %v1714_v13, 0.0 }
 0x24f   : > { %13284 = vst [vmem:[#allocation23_spill] sm:$0xff] %v11024_v20  ;;  %v1779_v11 = vmax.f32 %v1715_v24, 0.0  ;;  %v1780_v54 = vmax.f32 %v1716_v27, 0.0  ;;  %v11032_v16 = vadd.f32 %v10762_v59, %v1850_v14  ;;  %v1781_v19 = vmax.f32 %v1717_v50, 0.0  ;;  %v13286_v20 = vld [vmem:[#allocation11_spill] sm:$0xff]  ;;  %v13287_v27 = vld [vmem:[#allocation12_spill] sm:$0xff] }
 0x250   : > { %v1782_v58 = vmax.f32 %v1718_v18, 0.0  ;;  %v1783_v62 = vmax.f32 %v1719_v53, 0.0  ;;  %v1851_v42 = vmul.f32 %v10746_v57, %v1774_v21  ;;  %v1852_v36 = vmul.f32 %v10754_v37, %v1775_v25  ;;  %v13288_v21 = vld [vmem:[#allocation25_spill] sm:$0xff] }
 0x251   : > { %v1784_v55 = vmax.f32 %v1720_v60, 0.0  ;;  %v1722_v28 = vadd.f32 %v13286_v20, %v10723_v26  ;;  %v1853_v33 = vmul.f32 %v10746_v57, %v1776_v43  ;;  %v1854_v13 = vmul.f32 %v10754_v37, %v1777_v39 }
 0x252   : > { %v1785_v24 = vmax.f32 %v1721_v30, 0.0  ;;  %v1723_v14 = vadd.f32 %v13287_v27, %v10726_v10  ;;  %v1855_v50 = vmul.f32 %v10746_v57, %v1778_v17  ;;  %v1856_v18 = vmul.f32 %v10754_v37, %v1779_v11  ;;  %v13289_v30 = vld [vmem:[#allocation26_spill] sm:$0xff] }
 0x253   : > { %v1857_v53 = vmul.f32 %v10746_v57, %v1780_v54  ;;  %v1724_v60 = vadd.f32 %v13288_v21, %v10723_v26  ;;  %v1858_v25 = vmul.f32 %v10754_v37, %v1781_v19  ;;  %v1859_v20 = vmul.f32 %v10746_v57, %v1782_v58 }
 0x254   : > { %v1860_v43 = vmul.f32 %v10754_v37, %v1783_v62  ;;  %v1725_v39 = vadd.f32 %v13289_v30, %v10726_v10  ;;  %v11053_v27 = vadd.f32 %v10759_v31, %v1851_v42  ;;  %v11056_v17 = vadd.f32 %v10762_v59, %v1852_v36 }
 0x255   : > { %v1861_v11 = vmul.f32 %v10746_v57, %v1784_v55  ;;  %v1786_v54 = vmax.f32 %v1722_v28, 0.0  ;;  %v11060_v21 = vadd.f32 %v10759_v31, %v1853_v33  ;;  %v11063_v19 = vadd.f32 %v10762_v59, %v1854_v13 }
 0x256   : > { %13290 = vst [vmem:[#allocation24_spill] sm:$0xff] %v11053_v27  ;;  %13291 = vst [vmem:[#allocation7_spill] sm:$0xff] %v11056_v17  ;;  %v1862_v58 = vmul.f32 %v10754_v37, %v1785_v24  ;;  %v1787_v62 = vmax.f32 %v1723_v14, 0.0  ;;  %v11067_v30 = vadd.f32 %v10759_v31, %v1855_v50  ;;  %v11070_v42 = vadd.f32 %v10762_v59, %v1856_v18 }
 0x257   : > { %13292 = vst [vmem:[#allocation8_spill] sm:$0xff] %v11060_v21  ;;  %13293 = vst [vmem:[#allocation9_spill] sm:$0xff] %v11063_v19  ;;  %v11073_v36 = vadd.f32 %v10759_v31, %v1857_v53  ;;  %v1788_v55 = vmax.f32 %v1724_v60, 0.0  ;;  %v11076_v28 = vadd.f32 %v10762_v59, %v1858_v25  ;;  %v11079_v33 = vadd.f32 %v10759_v31, %v1859_v20  ;;  %v13301_v53 = vld [vmem:[#allocation27_spill] sm:$0xff] }
 0x258   : > { %13294 = vst [vmem:[#allocation6_spill] sm:$0xff] %v11067_v30  ;;  %13295 = vst [vmem:[#allocation10_spill] sm:$0xff] %v11070_v42  ;;  %v11082_v13 = vadd.f32 %v10762_v59, %v1860_v43  ;;  %v1789_v24 = vmax.f32 %v1725_v39, 0.0  ;;  %v11085_v50 = vadd.f32 %v10759_v31, %v1861_v11  ;;  %v1863_v18 = vmul.f32 %v10746_v57, %v1786_v54  ;;  %v13303_v43 = vld [vmem:[#allocation28_spill] sm:$0xff]  ;;  %v13304_v54 = vld [vmem:[#allocation31_spill] sm:$0xff] }
 0x259   : > { %13296 = vst [vmem:[#allocation11_spill] sm:$0xff] %v11073_v36  ;;  %13297 = vst [vmem:[#allocation12_spill] sm:$0xff] %v11076_v28  ;;  %v1726_v36 = vadd.f32 %v13301_v53, %v10723_v26  ;;  %v11092_v28 = vadd.f32 %v10762_v59, %v1862_v58  ;;  %v1864_v20 = vmul.f32 %v10754_v37, %v1787_v62 }
 0x25a   : > { %13298 = vst [vmem:[#allocation25_spill] sm:$0xff] %v11079_v33  ;;  %13299 = vst [vmem:[#allocation26_spill] sm:$0xff] %v11082_v13  ;;  %v1727_v39 = vadd.f32 %v13303_v43, %v10726_v10  ;;  %v1728_v33 = vadd.f32 %v13304_v54, %v10723_v26  ;;  %v1866_v58 = vmul.f32 %v10754_v37, %v1789_v24 }
 0x25b   : > { %13300 = vst [vmem:[#allocation33_spill] sm:$0xff] %v11085_v50  ;;  %13302 = vst [vmem:[#allocation27_spill] sm:$0xff] %v11092_v28  ;;  %v1865_v50 = vmul.f32 %v10746_v57, %v1788_v55  ;;  %v13305_v28 = vld [vmem:[#allocation32_spill] sm:$0xff]  ;;  %v1790_v19 = vmax.f32 %v1726_v36, 0.0 }
 0x25c   : > { %v1729_v62 = vadd.f32 %v13305_v28, %v10726_v10  ;;  %v1792_v28 = vmax.f32 %v1728_v33, 0.0  ;;  %v11120_v36 = vadd.f32 %v10762_v59, %v1866_v58 }
 0x25d   : > { %v11115_v17 = vadd.f32 %v10759_v31, %v1865_v50 }
 0x25e   : > { %13309 = vst [vmem:[#allocation34_spill] sm:$0xff] %v11120_v36 }
 0x25f   : > { %13308 = vst [vmem:[#allocation32_spill] sm:$0xff] %v11115_v17 }
 0x262   : > { %v2658_v14 = vpop.f32.mrb[48].mxu1 }
 0x263   : > { %v2881_v60 = vadd.f32 %v2658_v14, %v10723_v26  ;;  %v2660_v25 = vpop.f32.mrb[49].mxu1 }
 0x264   : > { %v2882_v13 = vadd.f32 %v2660_v25, %v10726_v10  ;;  %v2662_v11 = vpop.f32.mrb[50].mxu1  ;;  %v11107_v25 = vadd.f32 %v10759_v31, %v1863_v18  ;;  %v1793_v18 = vmax.f32 %v1729_v62, 0.0 }
 0x265   : > { %v2945_v53 = vmax.f32 %v2881_v60, 0.0  ;;  %v2883_v14 = vadd.f32 %v2662_v11, %v10723_v26  ;;  %v2664_v42 = vpop.f32.mrb[51].mxu1  ;;  %v11111_v60 = vadd.f32 %v10762_v59, %v1864_v20  ;;  %v1791_v11 = vmax.f32 %v1727_v39, 0.0 }
 0x266   : > { %v2946_v30 = vmax.f32 %v2882_v13, 0.0  ;;  %v2884_v43 = vadd.f32 %v2664_v42, %v10726_v10  ;;  %13306 = vst [vmem:[#allocation28_spill] sm:$0xff] %v11107_v25 }
 0x267   : > { %v3009_v55 = vmul.f32 %v2945_v53, %v10746_v57  ;;  %v2947_v21 = vmax.f32 %v2883_v14, 0.0  ;;  %13307 = vst [vmem:[#allocation31_spill] sm:$0xff] %v11111_v60 }
 0x268   : > { %v3010_v54 = vmul.f32 %v2946_v30, %v10754_v37  ;;  %v2948_v24 = vmax.f32 %v2884_v43, 0.0  ;;  %v1867_v30 = vmul.f32 %v10746_v57, %v1790_v19 }
 0x269   : > { %v3073_v42 = vadd.f32 %v3009_v55, %v10759_v31  ;;  %v3011_v13 = vmul.f32 %v2947_v21, %v10746_v57  ;;  %v1868_v21 = vmul.f32 %v10754_v37, %v1791_v11 }
 0x26a   : > { %v3074_v53 = vadd.f32 %v3010_v54, %v10762_v59  ;;  %v3012_v20 = vmul.f32 %v2948_v24, %v10754_v37  ;;  %v2668_v39 = vpop.f32.mrb[52].mxu1  ;;  %v1869_v24 = vmul.f32 %v10746_v57, %v1792_v28 }
 0x26b   : > { %v3137_v14 = vmax.f32 %v10779_v6, %v3073_v42  ;;  %v3075_v50 = vadd.f32 %v3011_v13, %v10759_v31  ;;  %v2885_v33 = vadd.f32 %v2668_v39, %v10723_v26  ;;  %v2670_v43 = vpop.f32.mrb[53].mxu1  ;;  %v1870_v13 = vmul.f32 %v10754_v37, %v1793_v18 }
 0x26c   : > { %v3138_v58 = vmax.f32 %v10782_v51, %v3074_v53  ;;  %v3076_v62 = vadd.f32 %v3012_v20, %v10762_v59  ;;  %v2886_v55 = vadd.f32 %v2670_v43, %v10726_v10  ;;  %v2672_v54 = vpop.f32.mrb[54].mxu1  ;;  %v11139_v53 = vadd.f32 %v10759_v31, %v1867_v30 }
 0x26d   : > { %v3139_v19 = vmax.f32 %v10785_v2, %v3075_v50  ;;  %v2949_v36 = vmax.f32 %v2885_v33, 0.0  ;;  %v2887_v6 = vadd.f32 %v2672_v54, %v10723_v26  ;;  %v2674_v42 = vpop.f32.mrb[55].mxu1  ;;  %v11145_v2 = vadd.f32 %v10762_v59, %v1868_v21 }
 0x26e   : > { %v3140_v39 = vmax.f32 %v10788_v35, %v3076_v62  ;;  %v2950_v11 = vmax.f32 %v2886_v55, 0.0  ;;  %v2888_v51 = vadd.f32 %v2674_v42, %v10726_v10  ;;  %13310 = vst [vmem:[#allocation35_spill] sm:$0xff] %v11139_v53  ;;  %v11151_v35 = vadd.f32 %v10759_v31, %v1869_v24 }
 0x26f   : > { %v11141_v20 = vpack.c.bf16 %v3139_v19, %v3137_v14  ;;  %v3013_v28 = vmul.f32 %v2949_v36, %v10746_v57  ;;  %v2951_v43 = vmax.f32 %v2887_v6, 0.0  ;;  %13311 = vst [vmem:[#allocation36_spill] sm:$0xff] %v11145_v2  ;;  %v11157_v36 = vadd.f32 %v10762_v59, %v1870_v13  ;;  %v13314_v19 = vld [vmem:[#allocation13_spill] sm:$0xff] }
 0x270   : > { %v11147_v50 = vpack.c.bf16 %v3140_v39, %v3138_v58  ;;  %v3014_v18 = vmul.f32 %v2950_v11, %v10754_v37  ;;  %v2952_v33 = vmax.f32 %v2888_v51, 0.0  ;;  %13312 = vst [vmem:[#allocation37_spill] sm:$0xff] %v11151_v35  ;;  %v13315_v51 = vld [vmem:[#allocation14_spill] sm:$0xff] }
 0x271   : > { %v3077_v62 = vadd.f32 %v3013_v28, %v10759_v31  ;;  %v3015_v30 = vmul.f32 %v2951_v43, %v10746_v57  ;;  %v3302_v14 = vshll.u32 %v11141_v20, 16  ;;  %13313 = vst [vmem:[#allocation38_spill] sm:$0xff] %v11157_v36 }
 0x272   : > { %v3078_v21 = vadd.f32 %v3014_v18, %v10762_v59  ;;  %v3016_v58 = vmul.f32 %v2952_v33, %v10754_v37  ;;  %v2678_v55 = vpop.f32.mrb[56].mxu1  ;;  %v3314_v54 = vshll.u32 %v11147_v50, 16  ;;  %v13316_v33 = vld [vmem:[#allocation15_spill] sm:$0xff] }
 0x273   : > { %v3141_v6 = vmax.f32 %v13314_v19, %v3077_v62  ;;  %v3079_v24 = vadd.f32 %v3015_v30, %v10759_v31  ;;  %v2889_v42 = vadd.f32 %v2678_v55, %v10723_v26  ;;  %v2680_v39 = vpop.f32.mrb[57].mxu1  ;;  %v3304_v11 = vrot.slane %v3302_v14, 1  ;;  %v13317_v19 = vld [vmem:[#allocation16_spill] sm:$0xff] }
 0x274   : > { %v3142_v28 = vmax.f32 %v13315_v51, %v3078_v21  ;;  %v3080_v13 = vadd.f32 %v3016_v58, %v10762_v59  ;;  %v2890_v43 = vadd.f32 %v2680_v39, %v10726_v10  ;;  %v2682_v18 = vpop.f32.mrb[58].mxu1  ;;  %v3316_v36 = vrot.slane %v3314_v54, 1 }
 0x275   : > { %v3143_v35 = vmax.f32 %v13316_v33, %v3079_v24  ;;  %v2953_v2 = vmax.f32 %v2889_v42, 0.0  ;;  %v2891_v53 = vadd.f32 %v2682_v18, %v10723_v26  ;;  %v2684_v62 = vpop.f32.mrb[59].mxu1  ;;  %v3300_v30 = vshrl.u32 %v11141_v20, 16 }
 0x276   : > { %v3144_v55 = vmax.f32 %v13317_v19, %v3080_v13  ;;  %v2954_v17 = vmax.f32 %v2890_v43, 0.0  ;;  %v2892_v14 = vadd.f32 %v2684_v62, %v10726_v10  ;;  %v3312_v21 = vshrl.u32 %v11147_v50, 16 }
 0x277   : > { %v11174_v58 = vpack.c.bf16 %v3143_v35, %v3141_v6  ;;  %v3017_v39 = vmul.f32 %v2953_v2, %v10746_v57  ;;  %v2955_v54 = vmax.f32 %v2891_v53, 0.0  ;;  %v3305_v51 = vor.u32 %v3304_v11, %v3300_v30 }
 0x278   : > { %v11177_v24 = vpack.c.bf16 %v3144_v55, %v3142_v28  ;;  %v3018_v42 = vmul.f32 %v2954_v17, %v10754_v37  ;;  %v2956_v18 = vmax.f32 %v2892_v14, 0.0  ;;  %v3317_v33 = vor.u32 %v3316_v36, %v3312_v21  ;;  %v13318_v17 = vld [vmem:[#allocation17_spill] sm:$0xff] }
 0x279   : > { %v3081_v60 = vadd.f32 %v3017_v39, %v10759_v31  ;;  %v3019_v13 = vmul.f32 %v2955_v54, %v10746_v57  ;;  %v3307_v43 = vshll.u32 %v11174_v58, 16  ;;  %v3323_v62 = vshrl.u32 %v11174_v58, 16 }
 0x27a   : > { %v3082_v35 = vadd.f32 %v3018_v42, %v10762_v59  ;;  %v3020_v2 = vmul.f32 %v2956_v18, %v10754_v37  ;;  %v2688_v53 = vpop.f32.mrb[60].mxu1  ;;  %v3319_v6 = vshll.u32 %v11177_v24, 16  ;;  %v3331_v11 = vshrl.u32 %v11177_v24, 16 }
 0x27b   : > { %v3145_v28 = vmax.f32 %v13318_v17, %v3081_v60  ;;  %v3083_v36 = vadd.f32 %v3019_v13, %v10759_v31  ;;  %v2893_v30 = vadd.f32 %v2688_v53, %v10723_v26  ;;  %v2690_v19 = vpop.f32.mrb[61].mxu1  ;;  %v3309_v55 = vrot.slane %v3307_v43, 1 }
 0x27c   : > { %v3146_v14 = vmax.f32 %v10832_v1, %v3082_v35  ;;  %v3084_v21 = vadd.f32 %v3020_v2, %v10762_v59  ;;  %v2894_v39 = vadd.f32 %v2690_v19, %v10726_v10  ;;  %v2692_v54 = vpop.f32.mrb[62].mxu1  ;;  %v3321_v42 = vrot.slane %v3319_v6, 1 }
 0x27d   : > { %v3147_v18 = vmax.f32 %v10837_v49, %v3083_v36  ;;  %v2957_v25 = vmax.f32 %v2893_v30, 0.0  ;;  %v2895_v27 = vadd.f32 %v2692_v54, %v10723_v26  ;;  %v2694_v60 = vpop.f32.mrb[63].mxu1  ;;  %v3310_v13 = vsel %vm539_vm0, %v3305_v51, %v3309_v55 }
 0x27e   : > { %v3148_v53 = vmax.f32 %v10840_v40, %v3084_v21  ;;  %v2958_v17 = vmax.f32 %v2894_v39, 0.0  ;;  %v2896_v43 = vadd.f32 %v2694_v60, %v10726_v10  ;;  %v3322_v1 = vsel %vm539_vm0, %v3317_v33, %v3321_v42 }
 0x27f   : > { %v11200_v35 = vpack.c.bf16 %v3147_v18, %v3145_v28  ;;  %v3021_v2 = vmul.f32 %v2957_v25, %v10746_v57  ;;  %v2959_v6 = vmax.f32 %v2895_v27, 0.0  ;;  %v3586_v49 = vmax.bf16 %v3322_v1, %v11147_v50 }
 0x280   : > { %v11204_v36 = vpack.c.bf16 %v3148_v53, %v3146_v14  ;;  %v3022_v30 = vmul.f32 %v2958_v17, %v10754_v37  ;;  %v2960_v19 = vmax.f32 %v2896_v43, 0.0  ;;  %v3585_v51 = vmax.bf16 %v3310_v13, %v11141_v20 }
 0x281   : > { %v3085_v40 = vadd.f32 %v3021_v2, %v10759_v31  ;;  %v3023_v21 = vmul.f32 %v2959_v6, %v10746_v57  ;;  %3740 = vmatprep.subr.bf16.mxu0 %v3586_v49  ;;  %v3333_v33 = vor.u32 %v3331_v11, %v3321_v42  ;;  %v3325_v28 = vor.u32 %v3323_v62, %v3309_v55 }
 0x282   : > { %v3086_v39 = vadd.f32 %v3022_v30, %v10762_v59  ;;  %v3024_v27 = vmul.f32 %v2960_v19, %v10754_v37  ;;  %v2698_v25 = vpop.f32.mrb[64].mxu1  ;;  %3741 = vmatpush1.bf16.msra.mxu0 %v3585_v51  ;;  %v3335_v50 = vshll.u32 %v11204_v36, 16  ;;  %v3327_v14 = vshll.u32 %v11200_v35, 16 }
 0x283   : > { %v3149_v54 = vmax.f32 %v10861_v0, %v3085_v40  ;;  %v3087_v20 = vadd.f32 %v3023_v21, %v10759_v31  ;;  %v2897_v18 = vadd.f32 %v2698_v25, %v10723_v26  ;;  %v2700_v60 = vpop.f32.mrb[65].mxu1  ;;  %v3347_v11 = vshrl.u32 %v11204_v36, 16 }
 0x284   : > { %v3150_v62 = vmax.f32 %v10864_v44, %v3086_v39  ;;  %v3088_v55 = vadd.f32 %v3024_v27, %v10762_v59  ;;  %v2898_v42 = vadd.f32 %v2700_v60, %v10726_v10  ;;  %v2702_v13 = vpop.f32.mrb[66].mxu1  ;;  %v3337_v53 = vrot.slane %v3335_v50, 1 }
 0x285   : > { %v3151_v17 = vmax.f32 %v10868_v3, %v3087_v20  ;;  %v2961_v43 = vmax.f32 %v2897_v18, 0.0  ;;  %v2899_v0 = vadd.f32 %v2702_v13, %v10723_v26  ;;  %v2704_v1 = vpop.f32.mrb[67].mxu1  ;;  %v3329_v2 = vrot.slane %v3327_v14, 1 }
 0x286   : > { %v3152_v6 = vmax.f32 %v10871_v15, %v3088_v55  ;;  %v2962_v49 = vmax.f32 %v2898_v42, 0.0  ;;  %v2900_v30 = vadd.f32 %v2704_v1, %v10726_v10  ;;  %v3338_v44 = vsel %vm539_vm0, %v3333_v33, %v3337_v53 }
 0x287   : > { %v11226_v19 = vpack.c.bf16 %v3151_v17, %v3149_v54  ;;  %v3025_v51 = vmul.f32 %v2961_v43, %v10746_v57  ;;  %v2963_v40 = vmax.f32 %v2899_v0, 0.0  ;;  %v3588_v21 = vmax.bf16 %v3338_v44, %v11177_v24 }
 0x288   : > { %v11230_v3 = vpack.c.bf16 %v3152_v6, %v3150_v62  ;;  %v3026_v39 = vmul.f32 %v2962_v49, %v10754_v37  ;;  %v2964_v27 = vmax.f32 %v2900_v30, 0.0  ;;  %v3330_v25 = vsel %vm539_vm0, %v3325_v28, %v3329_v2 }
 0x289   : > { %v3089_v15 = vadd.f32 %v3025_v51, %v10759_v31  ;;  %v3027_v50 = vmul.f32 %v2963_v40, %v10746_v57  ;;  %3742 = vmatprep.subr.bf16.mxu0 %v3588_v21  ;;  %v3587_v33 = vmax.bf16 %v3330_v25, %v11174_v58  ;;  %v3349_v14 = vor.u32 %v3347_v11, %v3337_v53 }
 0x28a   : > { %v3090_v54 = vadd.f32 %v3026_v39, %v10762_v59  ;;  %v3028_v20 = vmul.f32 %v2964_v27, %v10754_v37  ;;  %v2708_v24 = vpop.f32.mrb[68].mxu1  ;;  %v3351_v18 = vshll.u32 %v11230_v3, 16  ;;  %v3339_v60 = vshrl.u32 %v11200_v35, 16 }
 0x28b   : > { %v3153_v62 = vmax.f32 %v10875_v8, %v3089_v15  ;;  %v3091_v28 = vadd.f32 %v3027_v50, %v10759_v31  ;;  %v2901_v55 = vadd.f32 %v2708_v24, %v10723_v26  ;;  %v2710_v42 = vpop.f32.mrb[69].mxu1  ;;  %3743 = vmatpush1.bf16.msra.mxu0 %v3587_v33  ;;  %v3343_v58 = vshll.u32 %v11226_v19, 16 }
 0x28c   : > { %v3154_v11 = vmax.f32 %v10878_v5, %v3090_v54  ;;  %v3092_v13 = vadd.f32 %v3028_v20, %v10762_v59  ;;  %v2902_v53 = vadd.f32 %v2710_v42, %v10726_v10  ;;  %v2712_v17 = vpop.f32.mrb[70].mxu1  ;;  %v3353_v43 = vrot.slane %v3351_v18, 1 }
 0x28d   : > { %v3155_v0 = vmax.f32 %v10881_v9, %v3091_v28  ;;  %v2965_v1 = vmax.f32 %v2901_v55, 0.0  ;;  %v2903_v8 = vadd.f32 %v2712_v17, %v10723_v26  ;;  %v2714_v6 = vpop.f32.mrb[71].mxu1  ;;  %v3341_v49 = vor.u32 %v3339_v60, %v3329_v2 }
 0x28e   : > { %v3156_v30 = vmax.f32 %v10884_v56, %v3092_v13  ;;  %v2966_v44 = vmax.f32 %v2902_v53, 0.0  ;;  %v2904_v51 = vadd.f32 %v2714_v6, %v10726_v10  ;;  %v3354_v5 = vsel %vm539_vm0, %v3349_v14, %v3353_v43 }
 0x28f   : > { %v11253_v40 = vpack.c.bf16 %v3155_v0, %v3153_v62  ;;  %v3029_v21 = vmul.f32 %v2965_v1, %v10746_v57  ;;  %v2967_v39 = vmax.f32 %v2903_v8, 0.0  ;;  %v3590_v27 = vmax.bf16 %v3354_v5, %v11204_v36 }
 0x290   : > { %v11257_v9 = vpack.c.bf16 %v3156_v30, %v3154_v11  ;;  %v3030_v25 = vmul.f32 %v2966_v44, %v10754_v37  ;;  %v2968_v15 = vmax.f32 %v2904_v51, 0.0  ;;  %v3345_v2 = vrot.slane %v3343_v58, 1 }
 0x291   : > { %v3093_v56 = vadd.f32 %v3029_v21, %v10759_v31  ;;  %v3031_v50 = vmul.f32 %v2967_v39, %v10746_v57  ;;  %3744 = vmatprep.subr.bf16.mxu0 %v3590_v27  ;;  %v3363_v33 = vshrl.u32 %v11230_v3, 16  ;;  %v3355_v14 = vshrl.u32 %v11226_v19, 16 }
 0x292   : > { %v3094_v54 = vadd.f32 %v3030_v25, %v10762_v59  ;;  %v3032_v20 = vmul.f32 %v2968_v15, %v10754_v37  ;;  %v2718_v36 = vpop.f32.mrb[72].mxu1  ;;  %v3346_v24 = vsel %vm539_vm0, %v3341_v49, %v3345_v2  ;;  %v3367_v18 = vshll.u32 %v11257_v9, 16 }
 0x293   : > { %v3157_v60 = vmax.f32 %v10887_v34, %v3093_v56  ;;  %v3095_v62 = vadd.f32 %v3031_v50, %v10759_v31  ;;  %v2905_v28 = vadd.f32 %v2718_v36, %v10723_v26  ;;  %v2720_v55 = vpop.f32.mrb[73].mxu1  ;;  %v3589_v42 = vmax.bf16 %v3346_v24, %v11200_v35 }
 0x294   : > { %v3158_v58 = vmax.f32 %v10890_v41, %v3094_v54  ;;  %v3096_v11 = vadd.f32 %v3032_v20, %v10762_v59  ;;  %v2906_v13 = vadd.f32 %v2720_v55, %v10726_v10  ;;  %v2722_v53 = vpop.f32.mrb[74].mxu1  ;;  %v3365_v17 = vor.u32 %v3363_v33, %v3353_v43 }
 0x295   : > { %v3159_v0 = vmax.f32 %v10893_v46, %v3095_v62  ;;  %v2969_v1 = vmax.f32 %v2905_v28, 0.0  ;;  %v2907_v34 = vadd.f32 %v2722_v53, %v10723_v26  ;;  %v2724_v8 = vpop.f32.mrb[75].mxu1  ;;  %3745 = vmatpush1.bf16.msra.mxu0 %v3589_v42  ;;  %v3369_v6 = vrot.slane %v3367_v18, 1 }
 0x296   : > { %v3160_v49 = vmax.f32 %v10901_v4, %v3096_v11  ;;  %v2970_v30 = vmax.f32 %v2906_v13, 0.0  ;;  %v2908_v35 = vadd.f32 %v2724_v8, %v10726_v10  ;;  %v3357_v41 = vor.u32 %v3355_v14, %v3345_v2 }
 0x297   : > { %v11279_v44 = vpack.c.bf16 %v3159_v0, %v3157_v60  ;;  %v3033_v51 = vmul.f32 %v2969_v1, %v10746_v57  ;;  %v2971_v5 = vmax.f32 %v2907_v34, 0.0  ;;  %v3370_v43 = vsel %vm539_vm0, %v3365_v17, %v3369_v6 }
 0x298   : > { %v11283_v46 = vpack.c.bf16 %v3160_v49, %v3158_v58  ;;  %v3034_v21 = vmul.f32 %v2970_v30, %v10754_v37  ;;  %v2972_v39 = vmax.f32 %v2908_v35, 0.0  ;;  %v3592_v27 = vmax.bf16 %v3370_v43, %v11230_v3 }
 0x299   : > { %v3097_v4 = vadd.f32 %v3033_v51, %v10759_v31  ;;  %v3035_v25 = vmul.f32 %v2971_v5, %v10746_v57  ;;  %v3359_v15 = vshll.u32 %v11253_v40, 16  ;;  %v3379_v2 = vshrl.u32 %v11257_v9, 16 }
 0x29a   : > { %v3098_v56 = vadd.f32 %v3034_v21, %v10762_v59  ;;  %v3036_v50 = vmul.f32 %v2972_v39, %v10754_v37  ;;  %v2728_v33 = vpop.f32.mrb[76].mxu1  ;;  %3746 = vmatprep.subr.bf16.mxu0 %v3592_v27  ;;  %v3383_v14 = vshll.u32 %v11283_v46, 16  ;;  %v3371_v54 = vshrl.u32 %v11253_v40, 16 }
 0x29b   : > { %v3161_v3 = vmax.f32 %v10923_v45, %v3097_v4  ;;  %v3099_v20 = vadd.f32 %v3035_v25, %v10759_v31  ;;  %v2909_v36 = vadd.f32 %v2728_v33, %v10723_v26  ;;  %v2730_v24 = vpop.f32.mrb[77].mxu1  ;;  %v3361_v18 = vrot.slane %v3359_v15, 1 }
 0x29c   : > { %v3162_v60 = vmax.f32 %v10928_v29, %v3098_v56  ;;  %v3100_v62 = vadd.f32 %v3036_v50, %v10762_v59  ;;  %v2910_v28 = vadd.f32 %v2730_v24, %v10726_v10  ;;  %v2732_v55 = vpop.f32.mrb[78].mxu1  ;;  %v3381_v42 = vor.u32 %v3379_v2, %v3369_v6 }
 0x29d   : > { %v3163_v58 = vmax.f32 %v10933_v38, %v3099_v20  ;;  %v2973_v11 = vmax.f32 %v2909_v36, 0.0  ;;  %v2911_v13 = vadd.f32 %v2732_v55, %v10723_v26  ;;  %v2734_v45 = vpop.f32.mrb[79].mxu1  ;;  %v3362_v53 = vsel %vm539_vm0, %v3357_v41, %v3361_v18 }
 0x29e   : > { %v3164_v17 = vmax.f32 %v10936_v63, %v3100_v62  ;;  %v2974_v0 = vmax.f32 %v2910_v28, 0.0  ;;  %v2912_v1 = vadd.f32 %v2734_v45, %v10726_v10  ;;  %v3591_v29 = vmax.bf16 %v3362_v53, %v11226_v19 }
 0x29f   : > { %v11307_v34 = vpack.c.bf16 %v3163_v58, %v3161_v3  ;;  %v3037_v8 = vmul.f32 %v2973_v11, %v10746_v57  ;;  %v2975_v6 = vmax.f32 %v2911_v13, 0.0  ;;  %v3385_v49 = vrot.slane %v3383_v14, 1 }
 0x2a0   : > { %v11310_v38 = vpack.c.bf16 %v3164_v17, %v3162_v60  ;;  %v3038_v30 = vmul.f32 %v2974_v0, %v10754_v37  ;;  %v2976_v35 = vmax.f32 %v2912_v1, 0.0  ;;  %3747 = vmatpush1.bf16.msra.mxu0 %v3591_v29  ;;  %v3373_v41 = vor.u32 %v3371_v54, %v3361_v18 }
 0x2a1   : > { %v3101_v63 = vadd.f32 %v3037_v8, %v10759_v31  ;;  %v3039_v51 = vmul.f32 %v2975_v6, %v10746_v57  ;;  %v3386_v5 = vsel %vm539_vm0, %v3381_v42, %v3385_v49  ;;  %v3375_v19 = vshll.u32 %v11279_v44, 16 }
 0x2a2   : > { %v3102_v43 = vadd.f32 %v3038_v30, %v10762_v59  ;;  %v3040_v21 = vmul.f32 %v2976_v35, %v10754_v37  ;;  %v2738_v39 = vpop.f32.mrb[80].mxu1  ;;  %v3594_v27 = vmax.bf16 %v3386_v5, %v11257_v9  ;;  %v3395_v4 = vshrl.u32 %v11283_v46, 16 }
 0x2a3   : > { %v3165_v25 = vmax.f32 %v10957_v52, %v3101_v63  ;;  %v3103_v15 = vadd.f32 %v3039_v51, %v10759_v31  ;;  %v2913_v2 = vadd.f32 %v2738_v39, %v10723_v26  ;;  %v2740_v56 = vpop.f32.mrb[81].mxu1  ;;  %v3377_v50 = vrot.slane %v3375_v19, 1 }
 0x2a4   : > { %v3166_v33 = vmax.f32 %v10960_v22, %v3102_v43  ;;  %v3104_v14 = vadd.f32 %v3040_v21, %v10762_v59  ;;  %v2914_v54 = vadd.f32 %v2740_v56, %v10726_v10  ;;  %v2742_v3 = vpop.f32.mrb[82].mxu1  ;;  %3748 = vmatprep.subr.bf16.mxu0 %v3594_v27  ;;  %v3397_v20 = vor.u32 %v3395_v4, %v3385_v49 }
 0x2a5   : > { %v3167_v9 = vmax.f32 %v10964_v12, %v3103_v15  ;;  %v2977_v36 = vmax.f32 %v2913_v2, 0.0  ;;  %v2915_v52 = vadd.f32 %v2742_v3, %v10723_v26  ;;  %v2744_v24 = vpop.f32.mrb[83].mxu1  ;;  %v3378_v18 = vsel %vm539_vm0, %v3373_v41, %v3377_v50 }
 0x2a6   : > { %v3168_v60 = vmax.f32 %v10967_v7, %v3104_v14  ;;  %v2978_v62 = vmax.f32 %v2914_v54, 0.0  ;;  %v2916_v22 = vadd.f32 %v2744_v24, %v10726_v10  ;;  %v3593_v28 = vmax.bf16 %v3378_v18, %v11253_v40 }
 0x2a7   : > { %v11333_v55 = vpack.c.bf16 %v3167_v9, %v3165_v25  ;;  %v3041_v42 = vmul.f32 %v2977_v36, %v10746_v57  ;;  %v2979_v58 = vmax.f32 %v2915_v52, 0.0  ;;  %v3399_v12 = vshll.u32 %v11310_v38, 16 }
 0x2a8   : > { %v11337_v11 = vpack.c.bf16 %v3168_v60, %v3166_v33  ;;  %v3042_v13 = vmul.f32 %v2978_v62, %v10754_v37  ;;  %v2980_v45 = vmax.f32 %v2916_v22, 0.0  ;;  %3749 = vmatpush1.bf16.msra.mxu0 %v3593_v28  ;;  %v3387_v7 = vshrl.u32 %v11279_v44, 16 }
 0x2a9   : > { %v3105_v53 = vadd.f32 %v3041_v42, %v10759_v31  ;;  %v3043_v17 = vmul.f32 %v2979_v58, %v10746_v57  ;;  %v3401_v40 = vrot.slane %v3399_v12, 1  ;;  %v3391_v0 = vshll.u32 %v11307_v34, 16  ;;  %v13319_v42 = vld [vmem:[#allocation18_spill] sm:$0xff] }
 0x2aa   : > { %v3106_v1 = vadd.f32 %v3042_v13, %v10762_v59  ;;  %v3044_v29 = vmul.f32 %v2980_v45, %v10754_v37  ;;  %v2748_v8 = vpop.f32.mrb[84].mxu1  ;;  %v3389_v6 = vor.u32 %v3387_v7, %v3377_v50  ;;  %v3411_v49 = vshrl.u32 %v11310_v38, 16  ;;  %v13320_v7 = vld [vmem:[#allocation19_spill] sm:$0xff] }
 0x2ab   : > { %v3169_v30 = vmax.f32 %v10971_v23, %v3105_v53  ;;  %v3107_v35 = vadd.f32 %v3043_v17, %v10759_v31  ;;  %v2917_v41 = vadd.f32 %v2748_v8, %v10723_v26  ;;  %v2750_v63 = vpop.f32.mrb[85].mxu1  ;;  %v3402_v51 = vsel %vm539_vm0, %v3397_v20, %v3401_v40 }
 0x2ac   : > { %v3170_v5 = vmax.f32 %v10974_v47, %v3106_v1  ;;  %v3108_v19 = vadd.f32 %v3044_v29, %v10762_v59  ;;  %v2918_v43 = vadd.f32 %v2750_v63, %v10726_v10  ;;  %v2752_v21 = vpop.f32.mrb[86].mxu1  ;;  %v3596_v39 = vmax.bf16 %v3402_v51, %v11283_v46  ;;  %v13321_v29 = vld [vmem:[#allocation20_spill] sm:$0xff] }
 0x2ad   : > { %v3171_v27 = vmax.f32 %v10977_v32, %v3107_v35  ;;  %v2981_v4 = vmax.f32 %v2917_v41, 0.0  ;;  %v2919_v23 = vadd.f32 %v2752_v21, %v10723_v26  ;;  %v2754_v25 = vpop.f32.mrb[87].mxu1  ;;  %v3393_v15 = vrot.slane %v3391_v0, 1  ;;  %v13322_v41 = vld [vmem:[#allocation21_spill] sm:$0xff] }
 0x2ae   : > { %v3172_v2 = vmax.f32 %v10980_v48, %v3108_v19  ;;  %v2982_v56 = vmax.f32 %v2918_v43, 0.0  ;;  %v2920_v50 = vadd.f32 %v2754_v25, %v10726_v10  ;;  %3750 = vmatprep.subr.bf16.mxu0 %v3596_v39  ;;  %v3413_v47 = vor.u32 %v3411_v49, %v3401_v40 }
 0x2af   : > { %v11359_v33 = vpack.c.bf16 %v3171_v27, %v3169_v30  ;;  %v3045_v14 = vmul.f32 %v2981_v4, %v10746_v57  ;;  %v2983_v54 = vmax.f32 %v2919_v23, 0.0  ;;  %v3394_v46 = vsel %vm539_vm0, %v3389_v6, %v3393_v15 }
 0x2b0   : > { %v11363_v32 = vpack.c.bf16 %v3172_v2, %v3170_v5  ;;  %v3046_v3 = vmul.f32 %v2982_v56, %v10754_v37  ;;  %v2984_v20 = vmax.f32 %v2920_v50, 0.0  ;;  %v3595_v9 = vmax.bf16 %v3394_v46, %v11279_v44 }
 0x2b1   : > { %v3109_v48 = vadd.f32 %v3045_v14, %v10759_v31  ;;  %v3047_v36 = vmul.f32 %v2983_v54, %v10746_v57  ;;  %v3415_v52 = vshll.u32 %v11337_v11, 16  ;;  %v3403_v24 = vshrl.u32 %v11307_v34, 16  ;;  %v9173_v14 = vld [vmem:[%s13202_s5 + $0x104] ss:$8 sps:$4 sm:$0xff]  }
 0x2b2   : > { %v3110_v18 = vadd.f32 %v3046_v3, %v10762_v59  ;;  %v3048_v60 = vmul.f32 %v2984_v20, %v10754_v37  ;;  %v2758_v62 = vpop.f32.mrb[88].mxu1  ;;  %3751 = vmatpush1.bf16.msra.mxu0 %v3595_v9  ;;  %v3407_v22 = vshll.u32 %v11333_v55, 16  ;;  %v3427_v28 = vshrl.u32 %v11337_v11, 16  ;;  %4270 = vmatprep.subr.bf16.mxu1 %v9173_v14 }
 0x2b3   : > { %v3173_v44 = vmax.f32 %v13319_v42, %v3109_v48  ;;  %v3111_v58 = vadd.f32 %v3047_v36, %v10759_v31  ;;  %v2921_v12 = vadd.f32 %v2758_v62, %v10723_v26  ;;  %v2760_v13 = vpop.f32.mrb[89].mxu1  ;;  %v3417_v45 = vrot.slane %v3415_v52, 1  ;;  %v9176_v48 = vld [vmem:[%s13202_s5 + $0x114] ss:$8 sps:$4 sm:$0xff]   ;;  %v13323_v36 = vld [vmem:[#allocation22_spill] sm:$0xff] }
 0x2b4   : > { %v3174_v53 = vmax.f32 %v13320_v7, %v3110_v18  ;;  %v3112_v17 = vadd.f32 %v3048_v60, %v10762_v59  ;;  %v2922_v40 = vadd.f32 %v2760_v13, %v10726_v10  ;;  %v2762_v0 = vpop.f32.mrb[90].mxu1  ;;  %v3405_v1 = vor.u32 %v3403_v24, %v3393_v15 }
 0x2b5   : > { %v3175_v8 = vmax.f32 %v13321_v29, %v3111_v58  ;;  %v2985_v6 = vmax.f32 %v2921_v12, 0.0  ;;  %v2923_v49 = vadd.f32 %v2762_v0, %v10723_v26  ;;  %v2764_v30 = vpop.f32.mrb[91].mxu1  ;;  %v3418_v35 = vsel %vm539_vm0, %v3413_v47, %v3417_v45  ;;  %v9171_v47 = vld [vmem:[%s13202_s5 + $0x100] ss:$8 sps:$4 sm:$0xff]  }
 0x2b6   : > { %v3176_v63 = vmax.f32 %v13322_v41, %v3112_v17  ;;  %v2986_v51 = vmax.f32 %v2922_v40, 0.0  ;;  %v2924_v5 = vadd.f32 %v2764_v30, %v10726_v10  ;;  %v3598_v19 = vmax.bf16 %v3418_v35, %v11310_v38  ;;  %4271 = vmatpush1.bf16.msra.mxu1 %v9171_v47  ;;  %v9174_v17 = vld [vmem:[%s13202_s5 + $0x110] ss:$8 sps:$4 sm:$0xff]  }
 0x2b7   : > { %v11387_v43 = vpack.c.bf16 %v3175_v8, %v3173_v44  ;;  %v3049_v21 = vmul.f32 %v2985_v6, %v10746_v57  ;;  %v2987_v39 = vmax.f32 %v2923_v49, 0.0  ;;  %v3409_v27 = vrot.slane %v3407_v22, 1  ;;  %v13324_v22 = vld [vmem:[#allocation23_spill] sm:$0xff]  ;;  %4272 = vmatprep.subr.bf16.mxu1 %v9176_v48 }
 0x2b8   : > { %v11390_v4 = vpack.c.bf16 %v3176_v63, %v3174_v53  ;;  %v3050_v23 = vmul.f32 %v2986_v51, %v10754_v37  ;;  %v2988_v25 = vmax.f32 %v2924_v5, 0.0  ;;  %3752 = vmatprep.subr.bf16.mxu0 %v3598_v19  ;;  %v3429_v15 = vor.u32 %v3427_v28, %v3417_v45 }
 0x2b9   : > { %v3113_v2 = vadd.f32 %v3049_v21, %v10759_v31  ;;  %v3051_v56 = vmul.f32 %v2987_v39, %v10746_v57  ;;  %v3410_v50 = vsel %vm539_vm0, %v3405_v1, %v3409_v27  ;;  %v3431_v38 = vshll.u32 %v11363_v32, 16  ;;  %v9177_v21 = vld [vmem:[%s13202_s5 + $0x120] ss:$8 sps:$4 sm:$0xff]  }
 0x2ba   : > { %v3114_v54 = vadd.f32 %v3050_v23, %v10762_v59  ;;  %v3052_v46 = vmul.f32 %v2988_v25, %v10754_v37  ;;  %v2768_v3 = vpop.f32.mrb[92].mxu1  ;;  %v3597_v20 = vmax.bf16 %v3410_v50, %v11307_v34  ;;  %v3419_v9 = vshrl.u32 %v11333_v55, 16  ;;  %4273 = vmatpush1.bf16.msra.mxu1 %v9174_v17 }
 0x2bb   : > { %v3177_v52 = vmax.f32 %v13323_v36, %v3113_v2  ;;  %v3115_v24 = vadd.f32 %v3051_v56, %v10759_v31  ;;  %v2925_v18 = vadd.f32 %v2768_v3, %v10723_v26  ;;  %v2770_v60 = vpop.f32.mrb[93].mxu1  ;;  %v3433_v62 = vrot.slane %v3431_v38, 1  ;;  %v9182_v2 = vld [vmem:[%s13202_s5 + $0x134] ss:$8 sps:$4 sm:$0xff]  }
 0x2bc   : > { %v3178_v28 = vmax.f32 %v13324_v22, %v3114_v54  ;;  %v3116_v42 = vadd.f32 %v3052_v46, %v10762_v59  ;;  %3753 = vmatpush1.bf16.msra.mxu0 %v3597_v20  ;;  %v2926_v34 = vadd.f32 %v2770_v60, %v10726_v10  ;;  %v2772_v44 = vpop.f32.mrb[94].mxu1  ;;  %v3421_v58 = vor.u32 %v3419_v9, %v3409_v27  ;;  %v13325_v56 = vld [vmem:[#allocation24_spill] sm:$0xff]  ;;  %v13326_v46 = vld [vmem:[#allocation7_spill] sm:$0xff] }
 0x2bd   : > { %v3179_v12 = vmax.f32 %v11029_v61, %v3115_v24  ;;  %v2989_v13 = vmax.f32 %v2925_v18, 0.0  ;;  %v2927_v45 = vadd.f32 %v2772_v44, %v10723_v26  ;;  %v2774_v7 = vpop.f32.mrb[95].mxu1  ;;  %v3434_v53 = vsel %vm539_vm0, %v3429_v15, %v3433_v62  ;;  %v9179_v61 = vld [vmem:[%s13202_s5 + $0x124] ss:$8 sps:$4 sm:$0xff]  }
 0x2be   : > { %v3180_v40 = vmax.f32 %v11032_v16, %v3116_v42  ;;  %v2990_v0 = vmax.f32 %v2926_v34, 0.0  ;;  %v2928_v1 = vadd.f32 %v2774_v7, %v10726_v10  ;;  %v3600_v29 = vmax.bf16 %v3434_v53, %v11337_v11  ;;  %4274 = vmatprep.subr.bf16.mxu1 %v9179_v61  ;;  %v13328_v42 = vld [vmem:[#allocation9_spill] sm:$0xff] }
 0x2bf   : > { %v11428_v8 = vpack.c.bf16 %v3179_v12, %v3177_v52  ;;  %v3053_v6 = vmul.f32 %v2989_v13, %v10746_v57  ;;  %v2991_v49 = vmax.f32 %v2927_v45, 0.0  ;;  %v3423_v30 = vshll.u32 %v11359_v33, 16  ;;  %v13327_v52 = vld [vmem:[#allocation8_spill] sm:$0xff]  ;;  %4275 = vmatpush1.bf16.msra.mxu1 %v9177_v21  ;;  %v9185_v12 = vld [vmem:[%s13202_s5 + $0x144] ss:$8 sps:$4 sm:$0xff]  }
 0x2c0   : > { %v11432_v35 = vpack.c.bf16 %v3180_v40, %v3178_v28  ;;  %v3054_v16 = vmul.f32 %v2990_v0, %v10754_v37  ;;  %v2992_v41 = vmax.f32 %v2928_v1, 0.0  ;;  %3754 = vmatprep.subr.bf16.mxu0 %v3600_v29  ;;  %v3443_v11 = vshrl.u32 %v11363_v32, 16  ;;  %v9180_v28 = vld [vmem:[%s13202_s5 + $0x130] ss:$8 sps:$4 sm:$0xff]   ;;  %4276 = vmatprep.subr.bf16.mxu1 %v9182_v2 }
 0x2c1   : > { %v3117_v63 = vadd.f32 %v3053_v6, %v10759_v31  ;;  %v3055_v51 = vmul.f32 %v2991_v49, %v10746_v57  ;;  %v3425_v5 = vrot.slane %v3423_v30, 1  ;;  %v3447_v19 = vshll.u32 %v11390_v4, 16  ;;  %v9183_v30 = vld [vmem:[%s13202_s5 + $0x140] ss:$8 sps:$4 sm:$0xff]  }
 0x2c2   : > { %v3118_v39 = vadd.f32 %v3054_v16, %v10762_v59  ;;  %v3056_v27 = vmul.f32 %v2992_v41, %v10754_v37  ;;  %v2778_v23 = vpop.f32.mrb[96].mxu1  ;;  %v3445_v25 = vor.u32 %v3443_v11, %v3433_v62  ;;  %v3435_v15 = vshrl.u32 %v11359_v33, 16 }
 0x2c3   : > { %v3181_v50 = vmax.f32 %v13325_v56, %v3117_v63  ;;  %v3119_v38 = vadd.f32 %v3055_v51, %v10759_v31  ;;  %v2929_v47 = vadd.f32 %v2778_v23, %v10723_v26  ;;  %v3426_v14 = vsel %vm539_vm0, %v3421_v58, %v3425_v5  ;;  %v2780_v54 = vpop.f32.mrb[97].mxu1  ;;  %4277 = vmatpush1.bf16.msra.mxu1 %v9180_v28  ;;  %v9188_v51 = vld [vmem:[%s13202_s5 + $0x154] ss:$8 sps:$4 sm:$0xff]  }
 0x2c4   : > { %v3182_v3 = vmax.f32 %v13326_v46, %v3118_v39  ;;  %v3120_v20 = vadd.f32 %v3056_v27, %v10762_v59  ;;  %v3599_v9 = vmax.bf16 %v3426_v14, %v11333_v55  ;;  %v2930_v48 = vadd.f32 %v2780_v54, %v10726_v10  ;;  %v2782_v36 = vpop.f32.mrb[98].mxu1  ;;  %4278 = vmatprep.subr.bf16.mxu1 %v9185_v12 }
 0x2c5   : > { %v3183_v24 = vmax.f32 %v13327_v52, %v3119_v38  ;;  %v2993_v18 = vmax.f32 %v2929_v47, 0.0  ;;  %v2931_v60 = vadd.f32 %v2782_v36, %v10723_v26  ;;  %v2784_v62 = vpop.f32.mrb[99].mxu1  ;;  %v3449_v22 = vrot.slane %v3447_v19, 1  ;;  %v13331_v47 = vld [vmem:[#allocation11_spill] sm:$0xff] }
 0x2c6   : > { %v3184_v34 = vmax.f32 %v13328_v42, %v3120_v20  ;;  %3755 = vmatpush1.bf16.msra.mxu0 %v3599_v9  ;;  %v2994_v44 = vmax.f32 %v2930_v48, 0.0  ;;  %v2932_v55 = vadd.f32 %v2784_v62, %v10726_v10  ;;  %v3437_v58 = vor.u32 %v3435_v15, %v3425_v5  ;;  %v13329_v5 = vld [vmem:[#allocation6_spill] sm:$0xff]  ;;  %v9186_v9 = vld [vmem:[%s13202_s5 + $0x150] ss:$8 sps:$4 sm:$0xff]  }
 0x2c7   : > { %v11466_v13 = vpack.c.bf16 %v3183_v24, %v3181_v50  ;;  %v3057_v45 = vmul.f32 %v2993_v18, %v10746_v57  ;;  %v2995_v7 = vmax.f32 %v2931_v60, 0.0  ;;  %v3450_v53 = vsel %vm539_vm0, %v3445_v25, %v3449_v22  ;;  %v13330_v25 = vld [vmem:[#allocation10_spill] sm:$0xff]  ;;  %4279 = vmatpush1.bf16.msra.mxu1 %v9183_v30  ;;  %v13332_v48 = vld [vmem:[#allocation12_spill] sm:$0xff] }
 0x2c8   : > { %v11470_v17 = vpack.c.bf16 %v3184_v34, %v3182_v3  ;;  %v3058_v40 = vmul.f32 %v2994_v44, %v10754_v37  ;;  %v2996_v0 = vmax.f32 %v2932_v55, 0.0  ;;  %v3602_v1 = vmax.bf16 %v3450_v53, %v11363_v32  ;;  %4280 = vmatprep.subr.bf16.mxu1 %v9188_v51  ;;  %v9191_v60 = vld [vmem:[%s13202_s5 + $0x164] ss:$8 sps:$4 sm:$0xff]   ;;  %v9189_v53 = vld [vmem:[%s13202_s5 + $0x160] ss:$8 sps:$4 sm:$0xff]  }
 0x2c9   : > { %v3121_v29 = vadd.f32 %v3057_v45, %v10759_v31  ;;  %v3059_v61 = vmul.f32 %v2995_v7, %v10746_v57  ;;  %v3439_v6 = vshll.u32 %v11387_v43, 16  ;;  %v3459_v49 = vshrl.u32 %v11390_v4, 16 }
 0x2ca   : > { %v3122_v16 = vadd.f32 %v3058_v40, %v10762_v59  ;;  %v3060_v41 = vmul.f32 %v2996_v0, %v10754_v37  ;;  %3756 = vmatprep.subr.bf16.mxu0 %v3602_v1  ;;  %v2788_v11 = vpop.f32.mrb[100].mxu1  ;;  %v3463_v32 = vshll.u32 %v11432_v35, 16  ;;  %v3451_v63 = vshrl.u32 %v11387_v43, 16 }
 0x2cb   : > { %v3185_v19 = vmax.f32 %v13329_v5, %v3121_v29  ;;  %v3123_v21 = vadd.f32 %v3059_v61, %v10759_v31  ;;  %v2933_v39 = vadd.f32 %v2788_v11, %v10723_v26  ;;  %v3441_v27 = vrot.slane %v3439_v6, 1  ;;  %v2790_v23 = vpop.f32.mrb[101].mxu1  ;;  %4281 = vmatpush1.bf16.msra.mxu1 %v9186_v9  ;;  %v9194_v6 = vld [vmem:[%s13202_s5 + $0x174] ss:$8 sps:$4 sm:$0xff]  }
 0x2cc   : > { %v3186_v15 = vmax.f32 %v13330_v25, %v3122_v16  ;;  %v3124_v2 = vadd.f32 %v3060_v41, %v10762_v59  ;;  %v2934_v56 = vadd.f32 %v2790_v23, %v10726_v10  ;;  %v2792_v50 = vpop.f32.mrb[102].mxu1  ;;  %v3461_v38 = vor.u32 %v3459_v49, %v3449_v22  ;;  %4282 = vmatprep.subr.bf16.mxu1 %v9191_v60  ;;  %v13333_v49 = vld [vmem:[#allocation25_spill] sm:$0xff] }
 0x2cd   : > { %v3187_v14 = vmax.f32 %v13331_v47, %v3123_v21  ;;  %v2997_v54 = vmax.f32 %v2933_v39, 0.0  ;;  %v3442_v46 = vsel %vm539_vm0, %v3437_v58, %v3441_v27  ;;  %v2935_v3 = vadd.f32 %v2792_v50, %v10723_v26  ;;  %v2794_v20 = vpop.f32.mrb[103].mxu1  ;;  %v13335_v39 = vld [vmem:[#allocation33_spill] sm:$0xff]  ;;  %v13336_v50 = vld [vmem:[#allocation27_spill] sm:$0xff] }
 0x2ce   : > { %v3188_v36 = vmax.f32 %v13332_v48, %v3124_v2  ;;  %v3601_v52 = vmax.bf16 %v3442_v46, %v11359_v33  ;;  %v2998_v24 = vmax.f32 %v2934_v56, 0.0  ;;  %v2936_v18 = vadd.f32 %v2794_v20, %v10726_v10  ;;  %v9192_v56 = vld [vmem:[%s13202_s5 + $0x170] ss:$8 sps:$4 sm:$0xff]   ;;  %v9203_v46 = vld [vmem:[%s13202_s5 + $0x184] ss:$8 sps:$4 sm:$0xff]  }
 0x2cf   : > { %v11506_v62 = vpack.c.bf16 %v3187_v14, %v3185_v19  ;;  %v3061_v22 = vmul.f32 %v2997_v54, %v10746_v57  ;;  %v2999_v28 = vmax.f32 %v2935_v3, 0.0  ;;  %v3465_v42 = vrot.slane %v3463_v32, 1  ;;  %4283 = vmatpush1.bf16.msra.mxu1 %v9189_v53 }
 0x2d0   : > { %v11509_v34 = vpack.c.bf16 %v3188_v36, %v3186_v15  ;;  %3757 = vmatpush1.bf16.msra.mxu0 %v3601_v52  ;;  %v3062_v44 = vmul.f32 %v2998_v24, %v10754_v37  ;;  %v3000_v33 = vmax.f32 %v2936_v18, 0.0  ;;  %v3453_v55 = vor.u32 %v3451_v63, %v3441_v27  ;;  %v13334_v63 = vld [vmem:[#allocation26_spill] sm:$0xff]  ;;  %4284 = vmatprep.subr.bf16.mxu1 %v9194_v6 }
 0x2d1   : > { %v3125_v58 = vadd.f32 %v3061_v22, %v10759_v31  ;;  %v3063_v12 = vmul.f32 %v2999_v28, %v10746_v57  ;;  %v3466_v45 = vsel %vm539_vm0, %v3461_v38, %v3465_v42  ;;  %v3455_v7 = vshll.u32 %v11428_v8, 16 }
 0x2d2   : > { %v3126_v40 = vadd.f32 %v3062_v44, %v10762_v59  ;;  %v3064_v0 = vmul.f32 %v3000_v33, %v10754_v37  ;;  %v3604_v1 = vmax.bf16 %v3466_v45, %v11390_v4  ;;  %v2798_v29 = vpop.f32.mrb[104].mxu1  ;;  %v3475_v61 = vshrl.u32 %v11432_v35, 16  ;;  %v13337_v45 = vld [vmem:[#allocation28_spill] sm:$0xff] }
 0x2d3   : > { %v3189_v30 = vmax.f32 %v13333_v49, %v3125_v58  ;;  %v3127_v16 = vadd.f32 %v3063_v12, %v10759_v31  ;;  %v2937_v41 = vadd.f32 %v2798_v29, %v10723_v26  ;;  %v3457_v11 = vrot.slane %v3455_v7, 1  ;;  %v2800_v32 = vpop.f32.mrb[105].mxu1  ;;  %4285 = vmatpush1.bf16.msra.mxu1 %v9192_v56  ;;  %v9212_v29 = vld [vmem:[%s13202_s5 + $0x194] ss:$8 sps:$4 sm:$0xff]  }
 0x2d4   : > { %v3190_v51 = vmax.f32 %v13334_v63, %v3126_v40  ;;  %v3128_v4 = vadd.f32 %v3064_v0, %v10762_v59  ;;  %3758 = vmatprep.subr.bf16.mxu0 %v3604_v1  ;;  %v2938_v5 = vadd.f32 %v2800_v32, %v10726_v10  ;;  %v2802_v19 = vpop.f32.mrb[106].mxu1  ;;  %v3477_v21 = vor.u32 %v3475_v61, %v3465_v42  ;;  %v9201_v42 = vld [vmem:[%s13202_s5 + $0x180] ss:$8 sps:$4 sm:$0xff]  }
 0x2d5   : > { %v3191_v27 = vmax.f32 %v13335_v39, %v3127_v16  ;;  %v3001_v23 = vmax.f32 %v2937_v41, 0.0  ;;  %v3458_v25 = vsel %vm539_vm0, %v3453_v55, %v3457_v11  ;;  %v2939_v15 = vadd.f32 %v2802_v19, %v10723_v26  ;;  %v2804_v2 = vpop.f32.mrb[107].mxu1  ;;  %4286 = vmatprep.subr.bf16.mxu1 %v9203_v46  ;;  %v13338_v61 = vld [vmem:[#allocation31_spill] sm:$0xff]  ;;  %v9210_v19 = vld [vmem:[%s13202_s5 + $0x190] ss:$8 sps:$4 sm:$0xff]  }
 0x2d6   : > { %v3192_v38 = vmax.f32 %v13336_v50, %v3128_v4  ;;  %v3603_v47 = vmax.bf16 %v3458_v25, %v11387_v43  ;;  %v3002_v14 = vmax.f32 %v2938_v5, 0.0  ;;  %v2940_v54 = vadd.f32 %v2804_v2, %v10726_v10  ;;  %v9221_v25 = vld [vmem:[%s13202_s5 + $0x1a4] ss:$8 sps:$4 sm:$0xff]  }
 0x2d7   : > { %v11544_v3 = vpack.c.bf16 %v3191_v27, %v3189_v30  ;;  %v3065_v20 = vmul.f32 %v3001_v23, %v10746_v57  ;;  %v3003_v9 = vmax.f32 %v2939_v15, 0.0  ;;  %v3479_v48 = vshll.u32 %v11470_v17, 16  ;;  %4287 = vmatpush1.bf16.msra.mxu1 %v9201_v42 }
 0x2d8   : > { %v11548_v36 = vpack.c.bf16 %v3192_v38, %v3190_v51  ;;  %3759 = vmatpush1.bf16.msra.mxu0 %v3603_v47  ;;  %v3066_v43 = vmul.f32 %v3002_v14, %v10754_v37  ;;  %v3004_v52 = vmax.f32 %v2940_v54, 0.0  ;;  %v3467_v24 = vshrl.u32 %v11428_v8, 16  ;;  %4288 = vmatprep.subr.bf16.mxu1 %v9212_v29 }
 0x2d9   : > { %v3129_v18 = vadd.f32 %v3065_v20, %v10759_v31  ;;  %v3067_v60 = vmul.f32 %v3003_v9, %v10746_v57  ;;  %v3481_v22 = vrot.slane %v3479_v48, 1  ;;  %v3471_v28 = vshll.u32 %v11466_v13, 16 }
 0x2da   : > { %v3130_v44 = vadd.f32 %v3066_v43, %v10762_v59  ;;  %v3068_v33 = vmul.f32 %v3004_v52, %v10754_v37  ;;  %v2808_v55 = vpop.f32.mrb[108].mxu1  ;;  %v3469_v58 = vor.u32 %v3467_v24, %v3457_v11  ;;  %v3491_v12 = vshrl.u32 %v11470_v17, 16  ;;  %v13339_v11 = vld [vmem:[#allocation32_spill] sm:$0xff] }
 0x2db   : > { %v3193_v7 = vmax.f32 %v13337_v45, %v3129_v18  ;;  %v3131_v53 = vadd.f32 %v3067_v60, %v10759_v31  ;;  %v3482_v40 = vsel %vm539_vm0, %v3477_v21, %v3481_v22  ;;  %v2941_v0 = vadd.f32 %v2808_v55, %v10723_v26  ;;  %v2810_v1 = vpop.f32.mrb[109].mxu1  ;;  %v13340_v21 = vld [vmem:[#allocation34_spill] sm:$0xff]  ;;  %4289 = vmatpush1.bf16.msra.mxu1 %v9210_v19  ;;  %v9230_v24 = vld [vmem:[%s13202_s5 + $0x1b4] ss:$8 sps:$4 sm:$0xff]   ;;  %v13341_v18 = vld [vmem:[#allocation35_spill] sm:$0xff] }
 0x2dc   : > { %v3194_v6 = vmax.f32 %v13338_v61, %v3130_v44  ;;  %v3132_v49 = vadd.f32 %v3068_v33, %v10762_v59  ;;  %v3606_v30 = vmax.bf16 %v3482_v40, %v11432_v35  ;;  %v3473_v16 = vrot.slane %v3471_v28, 1  ;;  %v2812_v41 = vpop.f32.mrb[110].mxu1  ;;  %4290 = vmatprep.subr.bf16.mxu1 %v9221_v25  ;;  %v13342_v55 = vld [vmem:[#allocation36_spill] sm:$0xff]  ;;  %v13343_v40 = vld [vmem:[#allocation37_spill] sm:$0xff]  ;;  %v9149_v19 = vld [vmem:[%s13201_s4 + $0x4] ss:$8 sps:$4 sm:$0xff]  }
 0x2dd   : > { %v3195_v32 = vmax.f32 %v13339_v11, %v3131_v53  ;;  %v3005_v63 = vmax.f32 %v2941_v0, 0.0  ;;  %v2942_v51 = vadd.f32 %v2810_v1, %v10726_v10  ;;  %v2943_v4 = vadd.f32 %v2812_v41, %v10723_v26  ;;  %v2814_v5 = vpop.f32.mrb[111].mxu1  ;;  %v9228_v53 = vld [vmem:[%s13202_s5 + $0x1b0] ss:$8 sps:$4 sm:$0xff]   ;;  %v13344_v0 = vld [vmem:[#allocation38_spill] sm:$0xff]  ;;  %8024 = vmatprep.mubr.msk.bf16.mxu0 %vm3705_vm2, %v9149_v19 }
 0x2de   : > { %v3196_v39 = vmax.f32 %v13340_v21, %v3132_v49  ;;  %3760 = vmatprep.subr.bf16.mxu0 %v3606_v30  ;;  %v3474_v35 = vsel %vm539_vm0, %v3469_v58, %v3473_v16  ;;  %v2944_v27 = vadd.f32 %v2814_v5, %v10726_v10  ;;  %v3493_v23 = vor.u32 %v3491_v12, %v3481_v22  ;;  %v9167_v19 = vld [vmem:[%s13201_s4 + $0x60] ss:$8 sps:$4 sm:$0xff]  }
 0x2df   : > { %v11583_v15 = vpack.c.bf16 %v3195_v32, %v3193_v7  ;;  %v3069_v26 = vmul.f32 %v3005_v63, %v10746_v57  ;;  %v3605_v2 = vmax.bf16 %v3474_v35, %v11428_v8  ;;  %v3006_v56 = vmax.f32 %v2942_v51, 0.0  ;;  %v9219_v8 = vld [vmem:[%s13202_s5 + $0x1a0] ss:$8 sps:$4 sm:$0xff]  }
 0x2e0   : > { %v11587_v50 = vpack.c.bf16 %v3196_v39, %v3194_v6  ;;  %v3007_v38 = vmax.f32 %v2943_v4, 0.0  ;;  %v3008_v47 = vmax.f32 %v2944_v27, 0.0  ;;  %v3495_v14 = vshll.u32 %v11509_v34, 16  ;;  %4291 = vmatpush1.bf16.msra.mxu1 %v9219_v8 }
 0x2e1   : > { %v3133_v10 = vadd.f32 %v3069_v26, %v10759_v31  ;;  %3761 = vmatpush1.bf16.msra.mxu0 %v3605_v2  ;;  %v3070_v54 = vmul.f32 %v3006_v56, %v10754_v37  ;;  %v3483_v46 = vshrl.u32 %v11466_v13, 16  ;;  %v3487_v20 = vshll.u32 %v11506_v62, 16  ;;  %4292 = vmatprep.subr.bf16.mxu1 %v9230_v24 }
 0x2e2   : > { %v3071_v9 = vmul.f32 %v3007_v38, %v10746_v57  ;;  %v3072_v48 = vmul.f32 %v3008_v47, %v10754_v37  ;;  %v3497_v43 = vrot.slane %v3495_v14, 1  ;;  %v3507_v52 = vshrl.u32 %v11509_v34, 16 }
 0x2e3   : > { %v3197_v60 = vmax.f32 %v13341_v18, %v3133_v10  ;;  %v3134_v22 = vadd.f32 %v3070_v54, %v10762_v59  ;;  %v3485_v28 = vor.u32 %v3483_v46, %v3473_v16  ;;  %v3489_v42 = vrot.slane %v3487_v20, 1 }
 0x2e4   : > { %v3135_v44 = vadd.f32 %v3071_v9, %v10759_v31  ;;  %v3136_v57 = vadd.f32 %v3072_v48, %v10762_v59  ;;  %v3498_v37 = vsel %vm539_vm0, %v3493_v23, %v3497_v43  ;;  %v3509_v33 = vor.u32 %v3507_v52, %v3497_v43  ;;  %4293 = vmatpush1.bf16.msra.mxu1 %v9228_v53  ;;  %v9204_v53 = vld [vmem:[%s13203_s6 + $0x120] ss:$8 sps:$4 sm:$0xff]  }
 0x2e5   : > { %v3198_v58 = vmax.f32 %v13342_v55, %v3134_v22  ;;  %v3608_v12 = vmax.bf16 %v3498_v37, %v11470_v17  ;;  %v3490_v45 = vsel %vm539_vm0, %v3485_v28, %v3489_v42  ;;  %v3511_v7 = vshll.u32 %v11548_v36, 16  ;;  %v9200_v55 = vld [vmem:[%s13203_s6 + $0x114] ss:$8 sps:$4 sm:$0xff]  }
 0x2e6   : > { %v3199_v31 = vmax.f32 %v13343_v40, %v3135_v44  ;;  %v3200_v59 = vmax.f32 %v13344_v0, %v3136_v57  ;;  %v3607_v1 = vmax.bf16 %v3490_v45, %v11466_v13  ;;  %v3499_v29 = vshrl.u32 %v11506_v62, 16  ;;  %v9197_v57 = vld [vmem:[%s13203_s6 + $0x104] ss:$8 sps:$4 sm:$0xff]   ;;  %v9152_v45 = vld [vmem:[%s13201_s4 + $0x10] ss:$8 sps:$4 sm:$0xff]  }
 0x2e7   : > { %3762 = vmatprep.subr.bf16.mxu0 %v3608_v12  ;;  %v3513_v17 = vrot.slane %v3511_v7, 1  ;;  %v3503_v61 = vshll.u32 %v11544_v3, 16  ;;  %v3523_v6 = vshrl.u32 %v11548_v36, 16  ;;  %v3527_v49 = vshll.u32 %v11587_v50, 16  ;;  %v9206_v12 = vld [vmem:[%s13203_s6 + $0x124] ss:$8 sps:$4 sm:$0xff]  }
 0x2e8   : > { %v3231_v30 = vpack.c.bf16 %v3199_v31, %v3197_v60  ;;  %v3232_v16 = vpack.c.bf16 %v3200_v59, %v3198_v58  ;;  %3763 = vmatpush1.bf16.msra.mxu0 %v3607_v1  ;;  %v3501_v41 = vor.u32 %v3499_v29, %v3489_v42  ;;  %v3515_v4 = vshrl.u32 %v11544_v3, 16  ;;  %v9198_v58 = vld [vmem:[%s13203_s6 + $0x110] ss:$8 sps:$4 sm:$0xff]   ;;  %v9153_v7 = vld [vmem:[%s13201_s4 + $0x24] ss:$8 sps:$4 sm:$0xff]  }
 0x2e9   : > { %v3514_v11 = vsel %vm539_vm0, %v3509_v33, %v3513_v17  ;;  %v3505_v32 = vrot.slane %v3503_v61, 1  ;;  %v3525_v63 = vor.u32 %v3523_v6, %v3513_v17  ;;  %v3529_v13 = vrot.slane %v3527_v49, 1  ;;  %v9195_v33 = vld [vmem:[%s13203_s6 + $0x100] ss:$8 sps:$4 sm:$0xff]   ;;  %v9209_v40 = vld [vmem:[%s13203_s6 + $0x134] ss:$8 sps:$4 sm:$0xff]  }
 0x2ea   : > { %3263 = vst [vmem:[#allocation2 + $0xf0] sm:$0x7f] %v3231_v30  ;;  %3264 = vst [vmem:[#allocation2 + $0xf8] sm:$0x7f] %v3232_v16  ;;  %v3610_v51 = vmax.bf16 %v3514_v11, %v11509_v34  ;;  %v3519_v5 = vshll.u32 %v11583_v15, 16  ;;  %v3539_v56 = vshrl.u32 %v11587_v50, 16 }
 0x2eb   : > { %v3506_v21 = vsel %vm539_vm0, %v3501_v41, %v3505_v32  ;;  %v3530_v39 = vsel %vm539_vm0, %v3525_v63, %v3529_v13  ;;  %v3517_v23 = vor.u32 %v3515_v4, %v3505_v32  ;;  %v3531_v47 = vshrl.u32 %v11583_v15, 16  ;;  %v9207_v31 = vld [vmem:[%s13203_s6 + $0x130] ss:$8 sps:$4 sm:$0xff]   ;;  %v9215_v0 = vld [vmem:[%s13203_s6 + $0x144] ss:$8 sps:$4 sm:$0xff]  }
 0x2ec   : > { %3764 = vmatprep.subr.bf16.mxu0 %v3610_v51  ;;  %v3609_v35 = vmax.bf16 %v3506_v21, %v11506_v62  ;;  %v3612_v27 = vmax.bf16 %v3530_v39, %v11548_v36  ;;  %v3521_v25 = vrot.slane %v3519_v5, 1  ;;  %v3541_v14 = vor.u32 %v3539_v56, %v3529_v13  ;;  %v9155_v59 = vld [vmem:[%s13201_s4 + $0x20] ss:$8 sps:$4 sm:$0xff]   ;;  %v9156_v1 = vld [vmem:[%s13201_s4 + $0x34] ss:$8 sps:$4 sm:$0xff]  }
 0x2ed   : > { %v9630_v54 = vmov 65535   ;;  %v9213_v29 = vld [vmem:[%s13203_s6 + $0x140] ss:$8 sps:$4 sm:$0xff]   ;;  %v9218_v17 = vld [vmem:[%s13203_s6 + $0x154] ss:$8 sps:$4 sm:$0xff]  }
 0x2ee   : > { %3765 = vmatpush1.bf16.msra.mxu0 %v3609_v35  ;;  %v3522_v34 = vsel %vm539_vm0, %v3517_v23, %v3521_v25  ;;  %v3533_v10 = vor.u32 %v3531_v47, %v3521_v25  ;;  %v3732_v46 = vsel %vm1269_vm1, 4294967295, %v9630_v54  ;;  %v9216_v61 = vld [vmem:[%s13203_s6 + $0x150] ss:$8 sps:$4 sm:$0xff]   ;;  %v9224_v6 = vld [vmem:[%s13203_s6 + $0x164] ss:$8 sps:$4 sm:$0xff]  }
 0x2ef   : > { %3766 = vmatprep.subr.bf16.mxu0 %v3612_v27  ;;  %v3611_v26 = vmax.bf16 %v3522_v34, %v11544_v3  ;;  %v11642_v60 = vsel %vm3731_vm3, %v3732_v46, 0  ;;  %v9158_v49 = vld [vmem:[%s13201_s4 + $0x30] ss:$8 sps:$4 sm:$0xff]   ;;  %v9159_v30 = vld [vmem:[%s13201_s4 + $0x44] ss:$8 sps:$4 sm:$0xff]  }
 0x2f0   : > { %v9222_v16 = vld [vmem:[%s13203_s6 + $0x160] ss:$8 sps:$4 sm:$0xff]   ;;  %v9227_v41 = vld [vmem:[%s13203_s6 + $0x174] ss:$8 sps:$4 sm:$0xff]   ;;  %v9225_v11 = vld [vmem:[%s13203_s6 + $0x170] ss:$8 sps:$4 sm:$0xff]  }
 0x2f1   : > { %v3298_v2 = vld [vmem:[#allocation2 + $0xf8] sm:$0xff]  ;;  %v3297_v38 = vld [vmem:[#allocation2 + $0xf0] sm:$0xff]  ;;  %v9233_v32 = vld [vmem:[%s13203_s6 + $0x184] ss:$8 sps:$4 sm:$0xff]  }
 0x2f2   : > { %3767 = vmatpush1.bf16.msra.mxu0 %v3611_v26  ;;  %v3543_v62 = vshll.u32 %v3298_v2, 16  ;;  %v3535_v36 = vshll.u32 %v3297_v38, 16  ;;  %v3550_v9 = vshrl.u32 %v3298_v2, 16  ;;  %v3547_v48 = vshrl.u32 %v3297_v38, 16  ;;  %v9161_v63 = vld [vmem:[%s13201_s4 + $0x40] ss:$8 sps:$4 sm:$0xff]  }
 0x2f3   : > { %v9162_v13 = vld [vmem:[%s13201_s4 + $0x54] ss:$8 sps:$4 sm:$0xff]   ;;  %v9231_v51 = vld [vmem:[%s13203_s6 + $0x180] ss:$8 sps:$4 sm:$0xff]   ;;  %v9164_v4 = vld [vmem:[%s13201_s4 + $0x50] ss:$8 sps:$4 sm:$0xff]  }
 0x2f4   : > { %v3545_v20 = vrot.slane %v3543_v62, 1  ;;  %v3537_v8 = vrot.slane %v3535_v36, 1  ;;  %v9165_v5 = vld [vmem:[%s13201_s4 + $0x64] ss:$8 sps:$4 sm:$0xff]   ;;  %v9168_v21 = vld [vmem:[%s13201_s4 + $0x74] ss:$8 sps:$4 sm:$0xff]  }
 0x2f5   : > { %v9170_v39 = vld [vmem:[%s13201_s4 + $0x70] ss:$8 sps:$4 sm:$0xff]   ;;  %v9236_v27 = vld [vmem:[%s13203_s6 + $0x194] ss:$8 sps:$4 sm:$0xff]   ;;  %v9237_v23 = vld [vmem:[%s13202_s5 + $0x1c0] ss:$8 sps:$4 sm:$0xff]  }
 0x2f6   : > { %v3546_v3 = vsel %vm539_vm0, %v3541_v14, %v3545_v20  ;;  %v3538_v43 = vsel %vm539_vm0, %v3533_v10, %v3537_v8  ;;  %v3552_v52 = vor.u32 %v3550_v9, %v3545_v20  ;;  %v3549_v24 = vor.u32 %v3547_v48, %v3537_v8  ;;  %v9234_v35 = vld [vmem:[%s13203_s6 + $0x190] ss:$8 sps:$4 sm:$0xff]   ;;  %v9239_v25 = vld [vmem:[%s13202_s5 + $0x1c4] ss:$8 sps:$4 sm:$0xff]   ;;  %v9240_v34 = vld [vmem:[%s13203_s6 + $0x1a0] ss:$8 sps:$4 sm:$0xff]  }
 0x2f7   : > { %v3614_v18 = vmax.bf16 %v3546_v3, %v11587_v50  ;;  %v3613_v22 = vmax.bf16 %v3538_v43, %v11583_v15  ;;  %v9147_v50 = vld [vmem:[%s13201_s4] ss:$8 sps:$4 sm:$0xff]   ;;  %v9150_v15 = vld [vmem:[%s13201_s4 + $0x14] ss:$8 sps:$4 sm:$0xff]   ;;  %v9242_v26 = vld [vmem:[%s13203_s6 + $0x1a4] ss:$8 sps:$4 sm:$0xff]   ;;  %4294 = vmatprep.subr.bf16.mxu1 %v9239_v25 }
 0x2f8   : > { %v3616_v28 = vmax.bf16 %v3552_v52, %v3298_v2  ;;  %v3615_v42 = vmax.bf16 %v3549_v24, %v3297_v38  ;;  %v9245_v2 = vld [vmem:[%s13203_s6 + $0x1b4] ss:$8 sps:$4 sm:$0xff]   ;;  %4295 = vmatpush1.bf16.msra.mxu1 %v9237_v23  ;;  %v9243_v56 = vld [vmem:[%s13203_s6 + $0x1b0] ss:$8 sps:$4 sm:$0xff]   ;;  %v9249_v62 = vld [vmem:[%s13203_s6 + $0x1c0] ss:$8 sps:$4 sm:$0xff]  }
 0x2f9   : > { %3768 = vmatprep.subr.bf16.mxu0 %v3614_v18  ;;  %v9246_v38 = vld [vmem:[%s13202_s5 + $0x1d0] ss:$8 sps:$4 sm:$0xff]   ;;  %v9248_v47 = vld [vmem:[%s13202_s5 + $0x1d4] ss:$8 sps:$4 sm:$0xff]   ;;  %v9251_v36 = vld [vmem:[%s13203_s6 + $0x1c4] ss:$8 sps:$4 sm:$0xff]  }
 0x2fa   : > { %3769 = vmatpush1.bf16.msra.mxu0 %v3613_v22  ;;  %v3738_v44 = vand.u32 %v11642_v60, %v3616_v28  ;;  %v3735_v37 = vand.u32 %v11642_v60, %v3615_v42  ;;  %4296 = vmatprep.subr.bf16.mxu1 %v9248_v47  ;;  %v9254_v14 = vld [vmem:[%s13203_s6 + $0x1d4] ss:$8 sps:$4 sm:$0xff]   ;;  %v9252_v10 = vld [vmem:[%s13203_s6 + $0x1d0] ss:$8 sps:$4 sm:$0xff]   ;;  %v9255_v54 = vld [vmem:[%s13202_s5 + $0x1e0] ss:$8 sps:$4 sm:$0xff]  }
 0x2fb   : > { %v9257_v46 = vld [vmem:[%s13202_s5 + $0x1e4] ss:$8 sps:$4 sm:$0xff]   ;;  %v9258_v20 = vld [vmem:[%s13203_s6 + $0x1e0] ss:$8 sps:$4 sm:$0xff]   ;;  %v9263_v9 = vld [vmem:[%s13202_s5 + $0x1f4] ss:$8 sps:$4 sm:$0xff]  }
 0x2fc   : > { %3770 = vmatprep.subr.bf16.mxu0 %v3738_v44  ;;  %4297 = vmatpush1.bf16.msra.mxu1 %v9246_v38  ;;  %v9260_v8 = vld [vmem:[%s13203_s6 + $0x1e4] ss:$8 sps:$4 sm:$0xff]   ;;  %v9261_v48 = vld [vmem:[%s13202_s5 + $0x1f0] ss:$8 sps:$4 sm:$0xff]   ;;  %v9266_v3 = vld [vmem:[%s13203_s6 + $0x1f4] ss:$8 sps:$4 sm:$0xff]  }
 0x2fd   : > { %4298 = vmatprep.subr.bf16.mxu1 %v9257_v46  ;;  %v9264_v43 = vld [vmem:[%s13203_s6 + $0x1f0] ss:$8 sps:$4 sm:$0xff]   ;;  %v9269_v52 = vld [vmem:[%s13202_s5 + $0x4] ss:$8 sps:$4 sm:$0xff]   ;;  %v9287_v46 = vld [vmem:[%s13202_s5 + $0x34] ss:$8 sps:$4 sm:$0xff]  }
 0x2fe   : > { %3771 = vmatpush1.bf16.msra.mxu0 %v3735_v37  ;;  %v9272_v24 = vld [vmem:[%s13203_s6 + $0x4] ss:$8 sps:$4 sm:$0xff]  }
 0x2ff   : > { %5449 = vmatprep.subr.bf16.mxu0 %v9197_v57  ;;  %v9281_v23 = vld [vmem:[%s13202_s5 + $0x24] ss:$8 sps:$4 sm:$0xff]  }
 0x300   : > { %4299 = vmatpush1.bf16.msra.mxu1 %v9255_v54  ;;  %v9284_v25 = vld [vmem:[%s13203_s6 + $0x24] ss:$8 sps:$4 sm:$0xff]  }
 0x301   : > { %3773 = vmatmul.mubr.bf16.vlgmr.msra.gmra.mrb[64].mxu0 %v9147_v50  ;;  %4300 = vmatprep.subr.bf16.mxu1 %v9263_v9 }
 0x302   : > { %8025 = vmatprep.mubr.msk.bf16.mxu0 %vm3705_vm2, %v9150_v15  ;;  %5450 = vmatpush1.bf16.msra.mxu0 %v9195_v33 }
 0x303   : > { %5451 = vmatprep.subr.bf16.mxu0 %v9200_v55 }
 0x304   : > { %4301 = vmatpush1.bf16.msra.mxu1 %v9261_v48 }
 0x305   : > { %4543 = vmatprep.subr.bf16.mxu1 %v9269_v52  ;;  %v9288_v52 = vld [vmem:[%s13203_s6 + $0x30] ss:$8 sps:$4 sm:$0xff]  }
 0x306   : > { %5452 = vmatpush1.bf16.msra.mxu0 %v9198_v58 }
 0x307   : > { %5453 = vmatprep.subr.bf16.mxu0 %v9206_v12 }
 0x309   : > { %3783 = vmatmul.mubr.bf16.gmra.mrb[68].mxu0 %v9152_v45 }
 0x30a   : > { %8026 = vmatprep.mubr.msk.bf16.mxu0 %vm3705_vm2, %v9153_v7  ;;  %5454 = vmatpush1.bf16.msra.mxu0 %v9204_v53 }
 0x30b   : > { %5455 = vmatprep.subr.bf16.mxu0 %v9209_v40 }
 0x30e   : > { %5456 = vmatpush1.bf16.msra.mxu0 %v9207_v31 }
 0x30f   : > { %5457 = vmatprep.subr.bf16.mxu0 %v9215_v0 }
 0x311   : > { %3793 = vmatmul.mubr.bf16.gmra.mrb[72].mxu0 %v9155_v59 }
 0x312   : > { %8027 = vmatprep.mubr.msk.bf16.mxu0 %vm3705_vm2, %v9156_v1  ;;  %5458 = vmatpush1.bf16.msra.mxu0 %v9213_v29 }
 0x313   : > { %5459 = vmatprep.subr.bf16.mxu0 %v9218_v17 }
 0x316   : > { %5460 = vmatpush1.bf16.msra.mxu0 %v9216_v61 }
 0x317   : > { %5461 = vmatprep.subr.bf16.mxu0 %v9224_v6 }
 0x319   : > { %3803 = vmatmul.mubr.bf16.gmra.mrb[76].mxu0 %v9158_v49 }
 0x31a   : > { %8028 = vmatprep.mubr.msk.bf16.mxu0 %vm3705_vm2, %v9159_v30  ;;  %5462 = vmatpush1.bf16.msra.mxu0 %v9222_v16  ;;  %v9267_v30 = vld [vmem:[%s13202_s5] ss:$8 sps:$4 sm:$0xff]  }
 0x31b   : > { %5463 = vmatprep.subr.bf16.mxu0 %v9227_v41  ;;  %v9270_v16 = vld [vmem:[%s13203_s6] ss:$8 sps:$4 sm:$0xff]  }
 0x31e   : > { %5464 = vmatpush1.bf16.msra.mxu0 %v9225_v11 }
 0x31f   : > { %5465 = vmatprep.subr.bf16.mxu0 %v9233_v32  ;;  %v9275_v32 = vld [vmem:[%s13202_s5 + $0x14] ss:$8 sps:$4 sm:$0xff]  }
 0x321   : > { %3813 = vmatmul.mubr.bf16.gmra.mrb[80].mxu0 %v9161_v63  ;;  %v9278_v63 = vld [vmem:[%s13203_s6 + $0x14] ss:$8 sps:$4 sm:$0xff]  }
 0x322   : > { %8029 = vmatprep.mubr.msk.bf16.mxu0 %vm3705_vm2, %v9162_v13  ;;  %5466 = vmatpush1.bf16.msra.mxu0 %v9231_v51 }
 0x323   : > { %5467 = vmatprep.subr.bf16.mxu0 %v9236_v27 }
 0x326   : > { %5468 = vmatpush1.bf16.msra.mxu0 %v9234_v35 }
 0x327   : > { %5469 = vmatprep.subr.bf16.mxu0 %v9242_v26 }
 0x329   : > { %3823 = vmatmul.mubr.bf16.gmra.mrb[84].mxu0 %v9164_v4 }
 0x32a   : > { %8030 = vmatprep.mubr.msk.bf16.mxu0 %vm3705_vm2, %v9165_v5  ;;  %5470 = vmatpush1.bf16.msra.mxu0 %v9240_v34 }
 0x32b   : > { %5471 = vmatprep.subr.bf16.mxu0 %v9245_v2 }
 0x32e   : > { %5472 = vmatpush1.bf16.msra.mxu0 %v9243_v56 }
 0x32f   : > { %5473 = vmatprep.subr.bf16.mxu0 %v9251_v36  ;;  %v9279_v36 = vld [vmem:[%s13202_s5 + $0x20] ss:$8 sps:$4 sm:$0xff]  }
 0x331   : > { %3833 = vmatmul.mubr.bf16.gmra.mrb[88].mxu0 %v9167_v19  ;;  %v9273_v19 = vld [vmem:[%s13202_s5 + $0x10] ss:$8 sps:$4 sm:$0xff]  }
 0x332   : > { %8031 = vmatprep.mubr.msk.bf16.mxu0 %vm3705_vm2, %v9168_v21  ;;  %5474 = vmatpush1.bf16.msra.mxu0 %v9249_v62  ;;  %v9276_v21 = vld [vmem:[%s13203_s6 + $0x10] ss:$8 sps:$4 sm:$0xff]  }
 0x333   : > { %5475 = vmatprep.subr.bf16.mxu0 %v9254_v14  ;;  %v9282_v14 = vld [vmem:[%s13203_s6 + $0x20] ss:$8 sps:$4 sm:$0xff]  }
 0x336   : > { %5476 = vmatpush1.bf16.msra.mxu0 %v9252_v10 }
 0x337   : > { %5477 = vmatprep.subr.bf16.mxu0 %v9260_v8 }
 0x339   : > { %3843 = vmatmul.mubr.bf16.gmra.mrb[92].mxu0 %v9170_v39 }
 0x33a   : > { %5478 = vmatpush1.bf16.msra.mxu0 %v9258_v20  ;;  %v9290_v20 = vld [vmem:[%s13203_s6 + $0x34] ss:$8 sps:$4 sm:$0xff]  }
 0x33b   : > { %5479 = vmatprep.subr.bf16.mxu0 %v9266_v3 }
 0x33e   : > { %5480 = vmatpush1.bf16.msra.mxu0 %v9264_v43  ;;  %v9285_v43 = vld [vmem:[%s13202_s5 + $0x30] ss:$8 sps:$4 sm:$0xff]  }
 0x33f   : > { %5722 = vmatprep.subr.bf16.mxu0 %v9272_v24 }
 0x3d4   : > { %v3774_v18 = vpop.f32.mrb[64].mxu0 }
 0x3d5   : > { %v3776_v22 = vpop.f32.mrb[65].mxu0 }
 0x3d6   : > { %v3778_v28 = vpop.f32.mrb[66].mxu0 }
 0x3d7   : > { %v11825_v42 = vpack.c.bf16 %v3778_v28, %v3774_v18  ;;  %v3780_v44 = vpop.f32.mrb[67].mxu0  ;;  %v9293_v28 = vld [vmem:[%s13202_s5 + $0x44] ss:$8 sps:$4 sm:$0xff]  }
 0x3d8   : > { %v11827_v57 = vpack.c.bf16 %v3780_v44, %v3776_v22  ;;  %v9296_v44 = vld [vmem:[%s13203_s6 + $0x44] ss:$8 sps:$4 sm:$0xff]  }
 0x3d9   : > { %3869 = vst [vmem:[#allocation3] sm:$0xff] %v11825_v42  ;;  %v3971_v33 = vshll.u32 %v11825_v42, 16  ;;  %v3969_v59 = vshrl.u32 %v11825_v42, 16 }
 0x3da   : > { %3870 = vst [vmem:[#allocation3 + $0x8] sm:$0xff] %v11827_v57  ;;  %v3983_v50 = vshll.u32 %v11827_v57, 16  ;;  %v3981_v31 = vshrl.u32 %v11827_v57, 16 }
 0x3db   : > { %v3973_v53 = vrot.slane %v3971_v33, 1 }
 0x3dc   : > { %v3784_v37 = vpop.f32.mrb[68].mxu0  ;;  %v3985_v7 = vrot.slane %v3983_v50, 1 }
 0x3dd   : > { %v3786_v15 = vpop.f32.mrb[69].mxu0  ;;  %v3974_v49 = vor.u32 %v3973_v53, %v3969_v59  ;;  %v9291_v53 = vld [vmem:[%s13202_s5 + $0x40] ss:$8 sps:$4 sm:$0xff]   ;;  %v9299_v59 = vld [vmem:[%s13202_s5 + $0x54] ss:$8 sps:$4 sm:$0xff]  }
 0x3de   : > { %v3788_v55 = vpop.f32.mrb[70].mxu0  ;;  %v3986_v17 = vor.u32 %v3985_v7, %v3981_v31 }
 0x3df   : > { %v11833_v58 = vpack.c.bf16 %v3788_v55, %v3784_v37  ;;  %v3790_v12 = vpop.f32.mrb[71].mxu0 }
 0x3e0   : > { %v11835_v45 = vpack.c.bf16 %v3790_v12, %v3786_v15 }
 0x3e1   : > { %v3976_v40 = vshll.u32 %v11833_v58, 16  ;;  %v3992_v34 = vshrl.u32 %v11833_v58, 16 }
 0x3e2   : > { %v3988_v0 = vshll.u32 %v11835_v45, 16  ;;  %v4000_v35 = vshrl.u32 %v11835_v45, 16 }
 0x3e3   : > { %v3978_v1 = vrot.slane %v3976_v40, 1  ;;  %v9294_v40 = vld [vmem:[%s13203_s6 + $0x40] ss:$8 sps:$4 sm:$0xff]  }
 0x3e4   : > { %v3794_v29 = vpop.f32.mrb[72].mxu0  ;;  %v3990_v61 = vrot.slane %v3988_v0, 1 }
 0x3e5   : > { %v3796_v6 = vpop.f32.mrb[73].mxu0  ;;  %v3979_v4 = vsel %vm539_vm0, %v3974_v49, %v3978_v1  ;;  %v3994_v62 = vor.u32 %v3992_v34, %v3978_v1  ;;  %v9302_v1 = vld [vmem:[%s13203_s6 + $0x54] ss:$8 sps:$4 sm:$0xff]   ;;  %v9297_v49 = vld [vmem:[%s13202_s5 + $0x50] ss:$8 sps:$4 sm:$0xff]  }
 0x3e6   : > { %v3798_v41 = vpop.f32.mrb[74].mxu0  ;;  %v3991_v11 = vsel %vm539_vm0, %v3986_v17, %v3990_v61  ;;  %v4002_v56 = vor.u32 %v4000_v35, %v3990_v61 }
 0x3e7   : > { %v11854_v13 = vpack.c.bf16 %v3798_v41, %v3794_v29  ;;  %v3800_v51 = vpop.f32.mrb[75].mxu0  ;;  %4302 = vmatprep.mubr.bf16.mxu1 %v3991_v11  ;;  %5481 = vmatprep.mubr.bf16.mxu0 %v3991_v11 }
 0x3e8   : > { %v11857_v5 = vpack.c.bf16 %v3800_v51, %v3796_v6  ;;  %4303 = vmatmul.mubr.bf16.vlgmr.msra.gmra.mrb[112].mxu1 %v3979_v4  ;;  %5482 = vmatmul.mubr.bf16.vlgmr.msra.gmra.mrb[96].mxu0 %v3979_v4 }
 0x3e9   : > { %4544 = vmatpush1.bf16.msra.mxu1 %v9267_v30  ;;  %5723 = vmatpush1.bf16.msra.mxu0 %v9270_v16  ;;  %v3996_v39 = vshll.u32 %v11854_v13, 16  ;;  %v4008_v37 = vshrl.u32 %v11854_v13, 16  ;;  %v9300_v30 = vld [vmem:[%s13203_s6 + $0x50] ss:$8 sps:$4 sm:$0xff]  }
 0x3ea   : > { %4545 = vmatprep.subr.bf16.mxu1 %v9275_v32  ;;  %5724 = vmatprep.subr.bf16.mxu0 %v9278_v63  ;;  %v4004_v27 = vshll.u32 %v11857_v5, 16  ;;  %v4016_v18 = vshrl.u32 %v11857_v5, 16  ;;  %v9305_v32 = vld [vmem:[%s13202_s5 + $0x64] ss:$8 sps:$4 sm:$0xff]  }
 0x3eb   : > { %v3998_v26 = vrot.slane %v3996_v39, 1  ;;  %v9308_v63 = vld [vmem:[%s13203_s6 + $0x64] ss:$8 sps:$4 sm:$0xff]  }
 0x3ec   : > { %v3804_v2 = vpop.f32.mrb[76].mxu0  ;;  %v4006_v38 = vrot.slane %v4004_v27, 1 }
 0x3ed   : > { %v3806_v47 = vpop.f32.mrb[77].mxu0  ;;  %4546 = vmatpush1.bf16.msra.mxu1 %v9273_v19  ;;  %5725 = vmatpush1.bf16.msra.mxu0 %v9276_v21  ;;  %v3999_v48 = vsel %vm539_vm0, %v3994_v62, %v3998_v26  ;;  %v4010_v7 = vor.u32 %v4008_v37, %v3998_v26  ;;  %v9315_v37 = vld [vmem:[%s13202_s5 + $0x80] ss:$8 sps:$4 sm:$0xff]  }
 0x3ee   : > { %v3808_v10 = vpop.f32.mrb[78].mxu0  ;;  %v4007_v54 = vsel %vm539_vm0, %v4002_v56, %v4006_v38  ;;  %4547 = vmatprep.subr.bf16.mxu1 %v9281_v23  ;;  %5726 = vmatprep.subr.bf16.mxu0 %v9284_v25  ;;  %v4018_v33 = vor.u32 %v4016_v18, %v4006_v38  ;;  %v9303_v23 = vld [vmem:[%s13202_s5 + $0x60] ss:$8 sps:$4 sm:$0xff]   ;;  %v9314_v56 = vld [vmem:[%s13203_s6 + $0x74] ss:$8 sps:$4 sm:$0xff]  }
 0x3ef   : > { %v11888_v8 = vpack.c.bf16 %v3808_v10, %v3804_v2  ;;  %v3810_v9 = vpop.f32.mrb[79].mxu0  ;;  %4312 = vmatprep.mubr.bf16.mxu1 %v4007_v54  ;;  %5491 = vmatprep.mubr.bf16.mxu0 %v4007_v54  ;;  %v9306_v25 = vld [vmem:[%s13203_s6 + $0x60] ss:$8 sps:$4 sm:$0xff]   ;;  %v9311_v2 = vld [vmem:[%s13202_s5 + $0x74] ss:$8 sps:$4 sm:$0xff]  }
 0x3f0   : > { %v11891_v3 = vpack.c.bf16 %v3810_v9, %v3806_v47  ;;  %4313 = vmatmul.mubr.bf16.gmra.mrb[116].mxu1 %v3999_v48  ;;  %5492 = vmatmul.mubr.bf16.gmra.mrb[100].mxu0 %v3999_v48  ;;  %v9312_v10 = vld [vmem:[%s13203_s6 + $0x70] ss:$8 sps:$4 sm:$0xff]   ;;  %v9317_v9 = vld [vmem:[%s13202_s5 + $0x84] ss:$8 sps:$4 sm:$0xff]  }
 0x3f1   : > { %4548 = vmatpush1.bf16.msra.mxu1 %v9279_v36  ;;  %5727 = vmatpush1.bf16.msra.mxu0 %v9282_v14  ;;  %v4012_v24 = vshll.u32 %v11888_v8, 16  ;;  %v4024_v51 = vshrl.u32 %v11888_v8, 16  ;;  %v9309_v14 = vld [vmem:[%s13202_s5 + $0x70] ss:$8 sps:$4 sm:$0xff]   ;;  %v9320_v48 = vld [vmem:[%s13203_s6 + $0x84] ss:$8 sps:$4 sm:$0xff]  }
 0x3f2   : > { %4549 = vmatprep.subr.bf16.mxu1 %v9287_v46  ;;  %5728 = vmatprep.subr.bf16.mxu0 %v9290_v20  ;;  %v4020_v22 = vshll.u32 %v11891_v3, 16  ;;  %v4032_v41 = vshrl.u32 %v11891_v3, 16 }
 0x3f3   : > { %v4014_v50 = vrot.slane %v4012_v24, 1 }
 0x3f4   : > { %v3814_v15 = vpop.f32.mrb[80].mxu0  ;;  %v4022_v55 = vrot.slane %v4020_v22, 1 }
 0x3f5   : > { %v3816_v12 = vpop.f32.mrb[81].mxu0  ;;  %4550 = vmatpush1.bf16.msra.mxu1 %v9285_v43  ;;  %5729 = vmatpush1.bf16.msra.mxu0 %v9288_v52  ;;  %v4015_v61 = vsel %vm539_vm0, %v4010_v7, %v4014_v50  ;;  %v4026_v27 = vor.u32 %v4024_v51, %v4014_v50  ;;  %v9318_v50 = vld [vmem:[%s13203_s6 + $0x80] ss:$8 sps:$4 sm:$0xff]  }
 0x3f6   : > { %v3818_v31 = vpop.f32.mrb[82].mxu0  ;;  %v4023_v0 = vsel %vm539_vm0, %v4018_v33, %v4022_v55  ;;  %4551 = vmatprep.subr.bf16.mxu1 %v9293_v28  ;;  %5730 = vmatprep.subr.bf16.mxu0 %v9296_v44  ;;  %v4034_v21 = vor.u32 %v4032_v41, %v4022_v55  ;;  %v9323_v55 = vld [vmem:[%s13202_s5 + $0x94] ss:$8 sps:$4 sm:$0xff]  }
 0x3f7   : > { %v11922_v29 = vpack.c.bf16 %v3818_v31, %v3814_v15  ;;  %v3820_v17 = vpop.f32.mrb[83].mxu0  ;;  %4322 = vmatprep.mubr.bf16.mxu1 %v4023_v0  ;;  %5501 = vmatprep.mubr.bf16.mxu0 %v4023_v0  ;;  %v9321_v0 = vld [vmem:[%s13202_s5 + $0x90] ss:$8 sps:$4 sm:$0xff]  }
 0x3f8   : > { %v11925_v6 = vpack.c.bf16 %v3820_v17, %v3816_v12  ;;  %4323 = vmatmul.mubr.bf16.gmra.mrb[120].mxu1 %v4015_v61  ;;  %5502 = vmatmul.mubr.bf16.gmra.mrb[104].mxu0 %v4015_v61  ;;  %v9326_v12 = vld [vmem:[%s13203_s6 + $0x94] ss:$8 sps:$4 sm:$0xff]  }
 0x3f9   : > { %4552 = vmatpush1.bf16.msra.mxu1 %v9291_v53  ;;  %5731 = vmatpush1.bf16.msra.mxu0 %v9294_v40  ;;  %v4028_v16 = vshll.u32 %v11922_v29, 16  ;;  %v4040_v43 = vshrl.u32 %v11922_v29, 16 }
 0x3fa   : > { %4553 = vmatprep.subr.bf16.mxu1 %v9299_v59  ;;  %5732 = vmatprep.subr.bf16.mxu0 %v9302_v1  ;;  %v4036_v11 = vshll.u32 %v11925_v6, 16  ;;  %v4048_v46 = vshrl.u32 %v11925_v6, 16  ;;  %v9324_v59 = vld [vmem:[%s13203_s6 + $0x90] ss:$8 sps:$4 sm:$0xff]  }
 0x3fb   : > { %v4030_v4 = vrot.slane %v4028_v16, 1 }
 0x3fc   : > { %v3824_v19 = vpop.f32.mrb[84].mxu0  ;;  %v4038_v39 = vrot.slane %v4036_v11, 1 }
 0x3fd   : > { %v3826_v35 = vpop.f32.mrb[85].mxu0  ;;  %4554 = vmatpush1.bf16.msra.mxu1 %v9297_v49  ;;  %5733 = vmatpush1.bf16.msra.mxu0 %v9300_v30  ;;  %v4031_v62 = vsel %vm539_vm0, %v4026_v27, %v4030_v4  ;;  %v4042_v44 = vor.u32 %v4040_v43, %v4030_v4  ;;  %v9329_v49 = vld [vmem:[%s13202_s5 + $0xa4] ss:$8 sps:$4 sm:$0xff]   ;;  %v9335_v27 = vld [vmem:[%s13202_s5 + $0xb4] ss:$8 sps:$4 sm:$0xff]  }
 0x3fe   : > { %v3828_v34 = vpop.f32.mrb[86].mxu0  ;;  %v4039_v26 = vsel %vm539_vm0, %v4034_v21, %v4038_v39  ;;  %4555 = vmatprep.subr.bf16.mxu1 %v9305_v32  ;;  %5734 = vmatprep.subr.bf16.mxu0 %v9308_v63  ;;  %v4050_v18 = vor.u32 %v4048_v46, %v4038_v39  ;;  %v9332_v30 = vld [vmem:[%s13203_s6 + $0xa4] ss:$8 sps:$4 sm:$0xff]   ;;  %v9330_v21 = vld [vmem:[%s13203_s6 + $0xa0] ss:$8 sps:$4 sm:$0xff]  }
 0x3ff   : > { %v11956_v38 = vpack.c.bf16 %v3828_v34, %v3824_v19  ;;  %v3830_v47 = vpop.f32.mrb[87].mxu0  ;;  %4332 = vmatprep.mubr.bf16.mxu1 %v4039_v26  ;;  %5511 = vmatprep.mubr.bf16.mxu0 %v4039_v26  ;;  %v9327_v19 = vld [vmem:[%s13202_s5 + $0xa0] ss:$8 sps:$4 sm:$0xff]   ;;  %v9344_v46 = vld [vmem:[%s13203_s6 + $0xc4] ss:$8 sps:$4 sm:$0xff]  }
 0x400   : > { %v11959_v36 = vpack.c.bf16 %v3830_v47, %v3826_v35  ;;  %4333 = vmatmul.mubr.bf16.gmra.mrb[124].mxu1 %v4031_v62  ;;  %5512 = vmatmul.mubr.bf16.gmra.mrb[108].mxu0 %v4031_v62  ;;  %v9336_v47 = vld [vmem:[%s13203_s6 + $0xb0] ss:$8 sps:$4 sm:$0xff]  }
 0x401   : > { %4556 = vmatpush1.bf16.msra.mxu1 %v9303_v23  ;;  %5735 = vmatpush1.bf16.msra.mxu0 %v9306_v25  ;;  %v4044_v54 = vshll.u32 %v11956_v38, 16  ;;  %v4056_v16 = vshrl.u32 %v11956_v38, 16  ;;  %v9338_v23 = vld [vmem:[%s13203_s6 + $0xb4] ss:$8 sps:$4 sm:$0xff]  }
 0x402   : > { %4557 = vmatprep.subr.bf16.mxu1 %v9311_v2  ;;  %5736 = vmatprep.subr.bf16.mxu0 %v9314_v56  ;;  %v4052_v20 = vshll.u32 %v11959_v36, 16  ;;  %v4064_v17 = vshrl.u32 %v11959_v36, 16  ;;  %v9333_v56 = vld [vmem:[%s13202_s5 + $0xb0] ss:$8 sps:$4 sm:$0xff]  }
 0x403   : > { %v4046_v52 = vrot.slane %v4044_v54, 1  ;;  %v9341_v54 = vld [vmem:[%s13202_s5 + $0xc4] ss:$8 sps:$4 sm:$0xff]  }
 0x404   : > { %v3834_v24 = vpop.f32.mrb[88].mxu0  ;;  %v4054_v22 = vrot.slane %v4052_v20, 1 }
 0x405   : > { %v3836_v28 = vpop.f32.mrb[89].mxu0  ;;  %4558 = vmatpush1.bf16.msra.mxu1 %v9309_v14  ;;  %5737 = vmatpush1.bf16.msra.mxu0 %v9312_v10  ;;  %v4047_v40 = vsel %vm539_vm0, %v4042_v44, %v4046_v52  ;;  %v4058_v4 = vor.u32 %v4056_v16, %v4046_v52  ;;  %v9365_v16 = vld [vmem:[%s13202_s5 + $0x204] ss:$8 sps:$4 sm:$0xff]  }
 0x406   : > { %v3838_v15 = vpop.f32.mrb[90].mxu0  ;;  %v4055_v33 = vsel %vm539_vm0, %v4050_v18, %v4054_v22  ;;  %4559 = vmatprep.subr.bf16.mxu1 %v9317_v9  ;;  %5738 = vmatprep.subr.bf16.mxu0 %v9320_v48  ;;  %v4066_v32 = vor.u32 %v4064_v17, %v4054_v22  ;;  %v9339_v18 = vld [vmem:[%s13202_s5 + $0xc0] ss:$8 sps:$4 sm:$0xff]   ;;  %v9359_v17 = vld [vmem:[%s13202_s5 + $0xf4] ss:$8 sps:$4 sm:$0xff]  }
 0x407   : > { %v11990_v7 = vpack.c.bf16 %v3838_v15, %v3834_v24  ;;  %v3840_v53 = vpop.f32.mrb[91].mxu0  ;;  %4342 = vmatprep.mubr.bf16.mxu1 %v4055_v33  ;;  %5521 = vmatprep.mubr.bf16.mxu0 %v4055_v33  ;;  %v9350_v15 = vld [vmem:[%s13203_s6 + $0xd4] ss:$8 sps:$4 sm:$0xff]   ;;  %v9345_v33 = vld [vmem:[%s13202_s5 + $0xd0] ss:$8 sps:$4 sm:$0xff]  }
 0x408   : > { %v11993_v31 = vpack.c.bf16 %v3840_v53, %v3836_v28  ;;  %4343 = vmatmul.mubr.bf16.gmra.mrb[128].mxu1 %v4047_v40  ;;  %5522 = vmatmul.mubr.bf16.gmra.mrb[112].mxu0 %v4047_v40  ;;  %v9342_v28 = vld [vmem:[%s13203_s6 + $0xc0] ss:$8 sps:$4 sm:$0xff]   ;;  %v9356_v53 = vld [vmem:[%s13203_s6 + $0xe4] ss:$8 sps:$4 sm:$0xff]  }
 0x409   : > { %4560 = vmatpush1.bf16.msra.mxu1 %v9315_v37  ;;  %5739 = vmatpush1.bf16.msra.mxu0 %v9318_v50  ;;  %v4060_v1 = vshll.u32 %v11990_v7, 16  ;;  %v4072_v20 = vshrl.u32 %v11990_v7, 16  ;;  %v9347_v50 = vld [vmem:[%s13202_s5 + $0xd4] ss:$8 sps:$4 sm:$0xff]  }
 0x40a   : > { %4561 = vmatprep.subr.bf16.mxu1 %v9323_v55  ;;  %5740 = vmatprep.subr.bf16.mxu0 %v9326_v12  ;;  %v4068_v61 = vshll.u32 %v11993_v31, 16  ;;  %v4080_v14 = vshrl.u32 %v11993_v31, 16  ;;  %v9348_v55 = vld [vmem:[%s13203_s6 + $0xd0] ss:$8 sps:$4 sm:$0xff]   ;;  %v9353_v12 = vld [vmem:[%s13202_s5 + $0xe4] ss:$8 sps:$4 sm:$0xff]  }
 0x40b   : > { %v4062_v41 = vrot.slane %v4060_v1, 1  ;;  %v9354_v1 = vld [vmem:[%s13203_s6 + $0xe0] ss:$8 sps:$4 sm:$0xff]  }
 0x40c   : > { %v3844_v11 = vpop.f32.mrb[92].mxu0  ;;  %v4070_v63 = vrot.slane %v4068_v61, 1  ;;  %v9362_v61 = vld [vmem:[%s13203_s6 + $0xf4] ss:$8 sps:$4 sm:$0xff]  }
 0x40d   : > { %v3846_v51 = vpop.f32.mrb[93].mxu0  ;;  %4562 = vmatpush1.bf16.msra.mxu1 %v9321_v0  ;;  %5741 = vmatpush1.bf16.msra.mxu0 %v9324_v59  ;;  %v4063_v26 = vsel %vm539_vm0, %v4058_v4, %v4062_v41  ;;  %v4074_v24 = vor.u32 %v4072_v20, %v4062_v41  ;;  %v9351_v0 = vld [vmem:[%s13202_s5 + $0xe0] ss:$8 sps:$4 sm:$0xff]   ;;  %v9368_v41 = vld [vmem:[%s13203_s6 + $0x204] ss:$8 sps:$4 sm:$0xff]  }
 0x40e   : > { %v3848_v39 = vpop.f32.mrb[94].mxu0  ;;  %v4071_v35 = vsel %vm539_vm0, %v4066_v32, %v4070_v63  ;;  %4563 = vmatprep.subr.bf16.mxu1 %v9329_v49  ;;  %5742 = vmatprep.subr.bf16.mxu0 %v9332_v30  ;;  %v4082_v48 = vor.u32 %v4080_v14, %v4070_v63  ;;  %v9357_v49 = vld [vmem:[%s13202_s5 + $0xf0] ss:$8 sps:$4 sm:$0xff]   ;;  %v9371_v32 = vld [vmem:[%s13202_s5 + $0x214] ss:$8 sps:$4 sm:$0xff]  }
 0x40f   : > { %v12024_v25 = vpack.c.bf16 %v3848_v39, %v3844_v11  ;;  %v3850_v34 = vpop.f32.mrb[95].mxu0  ;;  %4352 = vmatprep.mubr.bf16.mxu1 %v4071_v35  ;;  %5531 = vmatprep.mubr.bf16.mxu0 %v4071_v35  ;;  %v9360_v30 = vld [vmem:[%s13203_s6 + $0xf0] ss:$8 sps:$4 sm:$0xff]   ;;  %v9366_v11 = vld [vmem:[%s13203_s6 + $0x200] ss:$8 sps:$4 sm:$0xff]  }
 0x410   : > { %v12027_v2 = vpack.c.bf16 %v3850_v34, %v3846_v51  ;;  %4353 = vmatmul.mubr.bf16.gmra.mrb[132].mxu1 %v4063_v26  ;;  %5532 = vmatmul.mubr.bf16.gmra.mrb[116].mxu0 %v4063_v26  ;;  %v9374_v63 = vld [vmem:[%s13203_s6 + $0x214] ss:$8 sps:$4 sm:$0xff]   ;;  %v9369_v51 = vld [vmem:[%s13202_s5 + $0x210] ss:$8 sps:$4 sm:$0xff]   ;;  %v9378_v39 = vld [vmem:[%s13203_s6 + $0x220] ss:$8 sps:$4 sm:$0xff]  }
 0x411   : > { %3883 = vst [vmem:[#allocation3 + $0x70] sm:$0xff] %v12024_v25  ;;  %4564 = vmatpush1.bf16.msra.mxu1 %v9327_v19  ;;  %5743 = vmatpush1.bf16.msra.mxu0 %v9330_v21  ;;  %v4076_v62 = vshll.u32 %v12024_v25, 16  ;;  %v4088_v40 = vshrl.u32 %v12024_v25, 16  ;;  %v9372_v4 = vld [vmem:[%s13203_s6 + $0x210] ss:$8 sps:$4 sm:$0xff]  }
 0x412   : > { %3884 = vst [vmem:[#allocation3 + $0x78] sm:$0xff] %v12027_v2  ;;  %4565 = vmatprep.subr.bf16.mxu1 %v9335_v27  ;;  %5744 = vmatprep.subr.bf16.mxu0 %v9338_v23  ;;  %v4084_v10 = vshll.u32 %v12027_v2, 16  ;;  %v4091_v52 = vshrl.u32 %v12027_v2, 16  ;;  %v9377_v19 = vld [vmem:[%s13202_s5 + $0x224] ss:$8 sps:$4 sm:$0xff]  }
 0x413   : > { %v4078_v9 = vrot.slane %v4076_v62, 1  ;;  %v9375_v21 = vld [vmem:[%s13202_s5 + $0x220] ss:$8 sps:$4 sm:$0xff]   ;;  %v9383_v35 = vld [vmem:[%s13202_s5 + $0x234] ss:$8 sps:$4 sm:$0xff]  }
 0x414   : > { %v4086_v43 = vrot.slane %v4084_v10, 1  ;;  %v9386_v27 = vld [vmem:[%s13203_s6 + $0x234] ss:$8 sps:$4 sm:$0xff]   ;;  %v9381_v23 = vld [vmem:[%s13202_s5 + $0x230] ss:$8 sps:$4 sm:$0xff]  }
 0x415   : > { %4566 = vmatpush1.bf16.msra.mxu1 %v9333_v56  ;;  %5745 = vmatpush1.bf16.msra.mxu0 %v9336_v47  ;;  %v4079_v37 = vsel %vm539_vm0, %v4074_v24, %v4078_v9  ;;  %v4090_v59 = vor.u32 %v4088_v40, %v4078_v9  ;;  %v9384_v34 = vld [vmem:[%s13203_s6 + $0x230] ss:$8 sps:$4 sm:$0xff]   ;;  %v9389_v26 = vld [vmem:[%s13202_s5 + $0x244] ss:$8 sps:$4 sm:$0xff]   ;;  %v9387_v47 = vld [vmem:[%s13202_s5 + $0x240] ss:$8 sps:$4 sm:$0xff]  }
 0x416   : > { %v4087_v22 = vsel %vm539_vm0, %v4082_v48, %v4086_v43  ;;  %4567 = vmatprep.subr.bf16.mxu1 %v9341_v54  ;;  %5746 = vmatprep.subr.bf16.mxu0 %v9344_v46  ;;  %v4093_v44 = vor.u32 %v4091_v52, %v4086_v43  ;;  %v9392_v56 = vld [vmem:[%s13203_s6 + $0x244] ss:$8 sps:$4 sm:$0xff]   ;;  %v9390_v62 = vld [vmem:[%s13203_s6 + $0x240] ss:$8 sps:$4 sm:$0xff]   ;;  %v9395_v14 = vld [vmem:[%s13202_s5 + $0x254] ss:$8 sps:$4 sm:$0xff]  }
 0x417   : > { %4362 = vmatprep.mubr.bf16.mxu1 %v4087_v22  ;;  %5541 = vmatprep.mubr.bf16.mxu0 %v4087_v22  ;;  %v9398_v10 = vld [vmem:[%s13203_s6 + $0x254] ss:$8 sps:$4 sm:$0xff]   ;;  %v9393_v54 = vld [vmem:[%s13202_s5 + $0x250] ss:$8 sps:$4 sm:$0xff]   ;;  %v9401_v20 = vld [vmem:[%s13202_s5 + $0x264] ss:$8 sps:$4 sm:$0xff]  }
 0x418   : > { %4363 = vmatmul.mubr.bf16.gmra.mrb[136].mxu1 %v4079_v37  ;;  %5542 = vmatmul.mubr.bf16.gmra.mrb[120].mxu0 %v4079_v37  ;;  %v9396_v46 = vld [vmem:[%s13203_s6 + $0x250] ss:$8 sps:$4 sm:$0xff]   ;;  %v9404_v9 = vld [vmem:[%s13203_s6 + $0x264] ss:$8 sps:$4 sm:$0xff]   ;;  %v9399_v48 = vld [vmem:[%s13202_s5 + $0x260] ss:$8 sps:$4 sm:$0xff]  }
 0x419   : > { %4372 = vmatprep.mubr.bf16.mxu1 %v4093_v44  ;;  %4568 = vmatpush1.bf16.msra.mxu1 %v9339_v18  ;;  %v9402_v43 = vld [vmem:[%s13203_s6 + $0x260] ss:$8 sps:$4 sm:$0xff]   ;;  %v9407_v52 = vld [vmem:[%s13202_s5 + $0x274] ss:$8 sps:$4 sm:$0xff]   ;;  %v9405_v18 = vld [vmem:[%s13202_s5 + $0x270] ss:$8 sps:$4 sm:$0xff]  }
 0x41a   : > { %5551 = vmatprep.mubr.bf16.mxu0 %v4093_v44  ;;  %5747 = vmatpush1.bf16.msra.mxu0 %v9342_v28  ;;  %v9410_v24 = vld [vmem:[%s13203_s6 + $0x274] ss:$8 sps:$4 sm:$0xff]   ;;  %v9408_v22 = vld [vmem:[%s13203_s6 + $0x270] ss:$8 sps:$4 sm:$0xff]   ;;  %v9413_v28 = vld [vmem:[%s13202_s5 + $0x284] ss:$8 sps:$4 sm:$0xff]  }
 0x41b   : > { %4569 = vmatprep.subr.bf16.mxu1 %v9347_v50  ;;  %5748 = vmatprep.subr.bf16.mxu0 %v9350_v15  ;;  %v9416_v44 = vld [vmem:[%s13203_s6 + $0x284] ss:$8 sps:$4 sm:$0xff]   ;;  %v9411_v37 = vld [vmem:[%s13202_s5 + $0x280] ss:$8 sps:$4 sm:$0xff]   ;;  %v9419_v15 = vld [vmem:[%s13202_s5 + $0x294] ss:$8 sps:$4 sm:$0xff]  }
 0x41c   : > { %v9414_v50 = vld [vmem:[%s13203_s6 + $0x280] ss:$8 sps:$4 sm:$0xff]   ;;  %v9428_v40 = vld [vmem:[%s13203_s6 + $0x2a4] ss:$8 sps:$4 sm:$0xff]  }
 0x41d   : > { %4570 = vmatpush1.bf16.msra.mxu1 %v9345_v33  ;;  %v9422_v33 = vld [vmem:[%s13203_s6 + $0x294] ss:$8 sps:$4 sm:$0xff]  }
 0x41e   : > { %5749 = vmatpush1.bf16.msra.mxu0 %v9348_v55  ;;  %4571 = vmatprep.subr.bf16.mxu1 %v9353_v12  ;;  %v9417_v55 = vld [vmem:[%s13202_s5 + $0x290] ss:$8 sps:$4 sm:$0xff]  }
 0x41f   : > { %5750 = vmatprep.subr.bf16.mxu0 %v9356_v53  ;;  %v9420_v12 = vld [vmem:[%s13203_s6 + $0x290] ss:$8 sps:$4 sm:$0xff]   ;;  %v9425_v53 = vld [vmem:[%s13202_s5 + $0x2a4] ss:$8 sps:$4 sm:$0xff]  }
 0x420   : > { %4373 = vmatmul.mubr.bf16.gmra.mrb[140].mxu1 %v4090_v59  ;;  %5552 = vmatmul.mubr.bf16.gmra.mrb[124].mxu0 %v4090_v59  ;;  %v9426_v59 = vld [vmem:[%s13203_s6 + $0x2a0] ss:$8 sps:$4 sm:$0xff]  }
 0x421   : > { %4572 = vmatpush1.bf16.msra.mxu1 %v9351_v0  ;;  %4575 = vmatprep.mubr.bf16.mxu1 %v11827_v57  ;;  %v9423_v0 = vld [vmem:[%s13202_s5 + $0x2a0] ss:$8 sps:$4 sm:$0xff]  }
 0x422   : > { %5751 = vmatpush1.bf16.msra.mxu0 %v9354_v1  ;;  %5754 = vmatprep.mubr.bf16.mxu0 %v11827_v57  ;;  %v9363_v57 = vld [vmem:[%s13202_s5 + $0x200] ss:$8 sps:$4 sm:$0xff]   ;;  %v9431_v1 = vld [vmem:[%s13202_s5 + $0x2b4] ss:$8 sps:$4 sm:$0xff]  }
 0x423   : > { %4573 = vmatprep.subr.bf16.mxu1 %v9359_v17  ;;  %5752 = vmatprep.subr.bf16.mxu0 %v9362_v61  ;;  %v9434_v17 = vld [vmem:[%s13203_s6 + $0x2b4] ss:$8 sps:$4 sm:$0xff]   ;;  %v9429_v61 = vld [vmem:[%s13202_s5 + $0x2b0] ss:$8 sps:$4 sm:$0xff]  }
 0x425   : > { %4574 = vmatpush1.bf16.msra.mxu1 %v9357_v49  ;;  %v9432_v49 = vld [vmem:[%s13203_s6 + $0x2b0] ss:$8 sps:$4 sm:$0xff]  }
 0x426   : > { %5753 = vmatpush1.bf16.msra.mxu0 %v9360_v30  ;;  %4913 = vmatprep.subr.bf16.mxu1 %v9365_v16  ;;  %v9437_v30 = vld [vmem:[%s13202_s5 + $0x2c4] ss:$8 sps:$4 sm:$0xff]  }
 0x427   : > { %6028 = vmatprep.subr.bf16.mxu0 %v9368_v41  ;;  %v9440_v16 = vld [vmem:[%s13203_s6 + $0x2c4] ss:$8 sps:$4 sm:$0xff]   ;;  %v9435_v41 = vld [vmem:[%s13202_s5 + $0x2c0] ss:$8 sps:$4 sm:$0xff]  }
 0x428   : > { %4576 = vmatmul.mubr.bf16.vlgmr.msra.gmra.mrb[112].mxu1 %v11825_v42 }
 0x429   : > { %5755 = vmatmul.mubr.bf16.vlgmr.msra.gmra.mrb[96].mxu0 %v11825_v42  ;;  %4585 = vmatprep.mubr.bf16.mxu1 %v11835_v45  ;;  %v9380_v42 = vld [vmem:[%s13203_s6 + $0x224] ss:$8 sps:$4 sm:$0xff]  }
 0x42a   : > { %4914 = vmatpush1.bf16.msra.mxu1 %v9363_v57  ;;  %5764 = vmatprep.mubr.bf16.mxu0 %v11835_v45  ;;  %v9438_v57 = vld [vmem:[%s13203_s6 + $0x2c0] ss:$8 sps:$4 sm:$0xff]  }
 0x42b   : > { %6029 = vmatpush1.bf16.msra.mxu0 %v9366_v11  ;;  %4915 = vmatprep.subr.bf16.mxu1 %v9371_v32  ;;  %v9443_v11 = vld [vmem:[%s13202_s5 + $0x2d4] ss:$8 sps:$4 sm:$0xff]  }
 0x42c   : > { %6030 = vmatprep.subr.bf16.mxu0 %v9374_v63  ;;  %v3900_v32 = vld [vmem:[#allocation3 + $0x78] sm:$0x7f] }
 0x42d   : > { %v9446_v63 = vld [vmem:[%s13203_s6 + $0x2d4] ss:$8 sps:$4 sm:$0xff]  }
 0x42e   : > { %4916 = vmatpush1.bf16.msra.mxu1 %v9369_v51  ;;  %v4657_v51 = vld [vmem:[#allocation3 + $0x8] sm:$0xfe] }
 0x42f   : > { %6031 = vmatpush1.bf16.msra.mxu0 %v9372_v4  ;;  %4917 = vmatprep.subr.bf16.mxu1 %v9377_v19  ;;  %v9441_v4 = vld [vmem:[%s13202_s5 + $0x2d0] ss:$8 sps:$4 sm:$0xff]  }
 0x430   : > { %4586 = vmatmul.mubr.bf16.gmra.mrb[116].mxu1 %v11833_v58  ;;  %6032 = vmatprep.subr.bf16.mxu0 %v9380_v42  ;;  %v9444_v19 = vld [vmem:[%s13203_s6 + $0x2d0] ss:$8 sps:$4 sm:$0xff]   ;;  %v9449_v42 = vld [vmem:[%s13202_s5 + $0x2e4] ss:$8 sps:$4 sm:$0xff]  }
 0x431   : > { %5765 = vmatmul.mubr.bf16.gmra.mrb[100].mxu0 %v11833_v58  ;;  %4595 = vmatprep.mubr.bf16.mxu1 %v11857_v5 }
 0x432   : > { %4918 = vmatpush1.bf16.msra.mxu1 %v9375_v21  ;;  %5774 = vmatprep.mubr.bf16.mxu0 %v11857_v5  ;;  %v9452_v21 = vld [vmem:[%s13203_s6 + $0x2e4] ss:$8 sps:$4 sm:$0xff]  }
 0x433   : > { %6033 = vmatpush1.bf16.msra.mxu0 %v9378_v39  ;;  %4919 = vmatprep.subr.bf16.mxu1 %v9383_v35  ;;  %v4710_v39 = vrot.slane %v4657_v51, 1  ;;  %v4711_v35 = vrot.slane %v11835_v45, 1 }
 0x434   : > { %6034 = vmatprep.subr.bf16.mxu0 %v9386_v27  ;;  %v9447_v27 = vld [vmem:[%s13202_s5 + $0x2e0] ss:$8 sps:$4 sm:$0xff]  }
 0x435   : > { %v4712_v45 = vsel %vm1269_vm1, %v4710_v39, %v4711_v35 }
 0x436   : > { %4920 = vmatpush1.bf16.msra.mxu1 %v9381_v23  ;;  %v3899_v23 = vld [vmem:[#allocation3 + $0x70] sm:$0x7f] }
 0x437   : > { %6035 = vmatpush1.bf16.msra.mxu0 %v9384_v34  ;;  %4921 = vmatprep.subr.bf16.mxu1 %v9389_v26  ;;  %v9450_v34 = vld [vmem:[%s13203_s6 + $0x2e0] ss:$8 sps:$4 sm:$0xff]   ;;  %v9455_v26 = vld [vmem:[%s13202_s5 + $0x2f4] ss:$8 sps:$4 sm:$0xff]  }
 0x438   : > { %4596 = vmatmul.mubr.bf16.gmra.mrb[120].mxu1 %v11854_v13  ;;  %6036 = vmatprep.subr.bf16.mxu0 %v9392_v56  ;;  %v9458_v56 = vld [vmem:[%s13203_s6 + $0x2f4] ss:$8 sps:$4 sm:$0xff]  }
 0x439   : > { %5775 = vmatmul.mubr.bf16.gmra.mrb[104].mxu0 %v11854_v13  ;;  %4605 = vmatprep.mubr.bf16.mxu1 %v11891_v3 }
 0x43a   : > { %4922 = vmatpush1.bf16.msra.mxu1 %v9387_v47  ;;  %5784 = vmatprep.mubr.bf16.mxu0 %v11891_v3  ;;  %v4656_v47 = vld [vmem:[#allocation3] sm:$0xfe] }
 0x43b   : > { %6037 = vmatpush1.bf16.msra.mxu0 %v9390_v62  ;;  %4923 = vmatprep.subr.bf16.mxu1 %v9395_v14  ;;  %v9453_v62 = vld [vmem:[%s13202_s5 + $0x2f0] ss:$8 sps:$4 sm:$0xff]  }
 0x43c   : > { %6038 = vmatprep.subr.bf16.mxu0 %v9398_v10  ;;  %v9456_v14 = vld [vmem:[%s13203_s6 + $0x2f0] ss:$8 sps:$4 sm:$0xff]   ;;  %v4707_v10 = vrot.slane %v4656_v47, 1 }
 0x43e   : > { %4924 = vmatpush1.bf16.msra.mxu1 %v9393_v54  ;;  %v4708_v54 = vrot.slane %v11833_v58, 1 }
 0x43f   : > { %6039 = vmatpush1.bf16.msra.mxu0 %v9396_v46  ;;  %4925 = vmatprep.subr.bf16.mxu1 %v9401_v20  ;;  %v4715_v46 = vrot.slane %v11857_v5, 1  ;;  %v4717_v5 = vrot.slane %v11888_v8, 1 }
 0x440   : > { %4606 = vmatmul.mubr.bf16.gmra.mrb[124].mxu1 %v11888_v8  ;;  %6040 = vmatprep.subr.bf16.mxu0 %v9404_v9  ;;  %v4709_v20 = vsel %vm1269_vm1, %v4707_v10, %v4708_v54 }
 0x441   : > { %5785 = vmatmul.mubr.bf16.gmra.mrb[108].mxu0 %v11888_v8  ;;  %4615 = vmatprep.mubr.bf16.mxu1 %v11925_v6  ;;  %v4716_v9 = vsel %vm1269_vm1, %v4711_v35, %v4715_v46  ;;  %v4725_v8 = vrot.slane %v11956_v38, 1 }
 0x442   : > { %4926 = vmatpush1.bf16.msra.mxu1 %v9399_v48  ;;  %5794 = vmatprep.mubr.bf16.mxu0 %v11925_v6  ;;  %v4713_v48 = vrot.slane %v11854_v13, 1  ;;  %v4721_v13 = vrot.slane %v11922_v29, 1 }
 0x443   : > { %6041 = vmatpush1.bf16.msra.mxu0 %v9402_v43  ;;  %4927 = vmatprep.subr.bf16.mxu1 %v9407_v52  ;;  %v4719_v43 = vrot.slane %v11891_v3, 1  ;;  %v4727_v3 = vrot.slane %v11959_v36, 1 }
 0x444   : > { %6042 = vmatprep.subr.bf16.mxu0 %v9410_v24  ;;  %v4714_v52 = vsel %vm1269_vm1, %v4708_v54, %v4713_v48  ;;  %v4723_v24 = vrot.slane %v11925_v6, 1  ;;  %v4731_v6 = vrot.slane %v11993_v31, 1 }
 0x445   : > { %v4720_v58 = vsel %vm1269_vm1, %v4715_v46, %v4719_v43 }
 0x446   : > { %4928 = vmatpush1.bf16.msra.mxu1 %v9405_v18  ;;  %v4718_v18 = vsel %vm1269_vm1, %v4713_v48, %v4717_v5 }
 0x447   : > { %6043 = vmatpush1.bf16.msra.mxu0 %v9408_v22  ;;  %4929 = vmatprep.subr.bf16.mxu1 %v9413_v28  ;;  %v4724_v22 = vsel %vm1269_vm1, %v4719_v43, %v4723_v24  ;;  %v4722_v28 = vsel %vm1269_vm1, %v4717_v5, %v4721_v13 }
 0x448   : > { %4616 = vmatmul.mubr.bf16.gmra.mrb[128].mxu1 %v11922_v29  ;;  %6044 = vmatprep.subr.bf16.mxu0 %v9416_v44  ;;  %v4728_v44 = vsel %vm1269_vm1, %v4723_v24, %v4727_v3 }
 0x449   : > { %5795 = vmatmul.mubr.bf16.gmra.mrb[112].mxu0 %v11922_v29  ;;  %4625 = vmatprep.mubr.bf16.mxu1 %v11959_v36  ;;  %v4729_v29 = vrot.slane %v11990_v7, 1 }
 0x44a   : > { %4930 = vmatpush1.bf16.msra.mxu1 %v9411_v37  ;;  %5804 = vmatprep.mubr.bf16.mxu0 %v11959_v36  ;;  %v4726_v37 = vsel %vm1269_vm1, %v4721_v13, %v4725_v8  ;;  %v4735_v36 = vrot.slane %v12027_v2, 1  ;;  %v5058_v2 = vld [vmem:[%s13204_s7] ss:$4 sm:$0x3] }
 0x44b   : > { %6045 = vmatpush1.bf16.msra.mxu0 %v9414_v50  ;;  %4931 = vmatprep.subr.bf16.mxu1 %v9419_v15  ;;  %v4732_v50 = vsel %vm1269_vm1, %v4727_v3, %v4731_v6  ;;  %v4730_v15 = vsel %vm1269_vm1, %v4725_v8, %v4729_v29 }
 0x44c   : > { %6046 = vmatprep.subr.bf16.mxu0 %v9422_v33  ;;  %v4736_v33 = vsel %vm1269_vm1, %v4731_v6, %v4735_v36 }
 0x44e   : > { %4932 = vmatpush1.bf16.msra.mxu1 %v9417_v55  ;;  %v13346_v55 = vld [vmem:[#allocation29_spill] sm:$0xff] }
 0x44f   : > { %6047 = vmatpush1.bf16.msra.mxu0 %v9420_v12  ;;  %4933 = vmatprep.subr.bf16.mxu1 %v9425_v53  ;;  %v12346_v12 = vrot.slane %v5058_v2, %v13346_v55  ;;  %v13347_v53 = vld [vmem:[#allocation30_spill] sm:$0xff] }
 0x450   : > { %4626 = vmatmul.mubr.bf16.gmra.mrb[132].mxu1 %v11956_v38  ;;  %6048 = vmatprep.subr.bf16.mxu0 %v9428_v40  ;;  %v12352_v40 = vrot.slane %v5058_v2, %v13347_v53 }
 0x451   : > { %5805 = vmatmul.mubr.bf16.gmra.mrb[116].mxu0 %v11956_v38  ;;  %4635 = vmatprep.mubr.bf16.mxu1 %v11993_v31  ;;  %v4733_v38 = vrot.slane %v12024_v25, 1  ;;  %v8192_v25 = vld [vmem:[%s13204_s7 + $0x1] ss:$4 sm:$0x3] }
 0x452   : > { %4934 = vmatpush1.bf16.msra.mxu1 %v9423_v0  ;;  %5814 = vmatprep.mubr.bf16.mxu0 %v11993_v31  ;;  %v8193_v0 = vld [vmem:[%s13204_s7 + $0x2] ss:$4 sm:$0x3] }
 0x453   : > { %6049 = vmatpush1.bf16.msra.mxu0 %v9426_v59  ;;  %4935 = vmatprep.subr.bf16.mxu1 %v9431_v1  ;;  %v4734_v31 = vsel %vm1269_vm1, %v4729_v29, %v4733_v38  ;;  %v12370_v51 = vrot.slane %v8193_v0, %v13347_v53 }
 0x454   : > { %6050 = vmatprep.subr.bf16.mxu0 %v9434_v17  ;;  %v12359_v17 = vrot.slane %v8192_v25, %v13346_v55 }
 0x456   : > { %4936 = vmatpush1.bf16.msra.mxu1 %v9429_v61 }
 0x457   : > { %6051 = vmatpush1.bf16.msra.mxu0 %v9432_v49  ;;  %4937 = vmatprep.subr.bf16.mxu1 %v9437_v30  ;;  %v12362_v30 = vrot.slane %v8193_v0, %v13346_v55 }
 0x458   : > { %4636 = vmatmul.mubr.bf16.gmra.mrb[136].mxu1 %v11990_v7  ;;  %6052 = vmatprep.subr.bf16.mxu0 %v9440_v16 }
 0x459   : > { %5815 = vmatmul.mubr.bf16.gmra.mrb[120].mxu0 %v11990_v7  ;;  %4645 = vmatprep.mubr.bf16.mxu1 %v3900_v32  ;;  %v13345_v7 = vmov 0  }
 0x45a   : > { %4938 = vmatpush1.bf16.msra.mxu1 %v9435_v41  ;;  %5824 = vmatprep.mubr.bf16.mxu0 %v3900_v32  ;;  %7759 = vst [vmem:[%s13107_s25 + $0x38] sm:$0x88] %v13345_v7 }
 0x45b   : > { %6053 = vmatpush1.bf16.msra.mxu0 %v9438_v57  ;;  %4939 = vmatprep.subr.bf16.mxu1 %v9443_v11  ;;  %v12367_v57 = vrot.slane %v8192_v25, %v13347_v53 }
 0x45c   : > { %6054 = vmatprep.subr.bf16.mxu0 %v9446_v63 }
 0x45e   : > { %4940 = vmatpush1.bf16.msra.mxu1 %v9441_v4 }
 0x45f   : > { %6055 = vmatpush1.bf16.msra.mxu0 %v9444_v19  ;;  %4941 = vmatprep.subr.bf16.mxu1 %v9449_v42 }
 0x460   : > { %4646 = vmatmul.mubr.bf16.gmra.mrb[140].mxu1 %v3899_v23  ;;  %6056 = vmatprep.subr.bf16.mxu0 %v9452_v21 }
 0x461   : > { %5825 = vmatmul.mubr.bf16.gmra.mrb[124].mxu0 %v3899_v23  ;;  %4945 = vmatprep.mubr.bf16.mxu1 %v4712_v45 }
 0x462   : > { %4942 = vmatpush1.bf16.msra.mxu1 %v9447_v27  ;;  %6060 = vmatprep.mubr.bf16.mxu0 %v4712_v45 }
 0x463   : > { %6057 = vmatpush1.bf16.msra.mxu0 %v9450_v34  ;;  %4943 = vmatprep.subr.bf16.mxu1 %v9455_v26 }
 0x464   : > { %6058 = vmatprep.subr.bf16.mxu0 %v9458_v56 }
 0x466   : > { %4944 = vmatpush1.bf16.msra.mxu1 %v9453_v62 }
 0x467   : > { %6059 = vmatpush1.bf16.msra.mxu0 %v9456_v14 }
 0x469   : > { %4946 = vmatmul.mubr.bf16.vlgmr.msra.gmra.mrb[112].mxu1 %v4709_v20 }
 0x46a   : > { %6061 = vmatmul.mubr.bf16.vlgmr.msra.gmra.mrb[96].mxu0 %v4709_v20  ;;  %4955 = vmatprep.mubr.bf16.mxu1 %v4716_v9 }
 0x46b   : > { %6070 = vmatprep.mubr.bf16.mxu0 %v4716_v9 }
 0x471   : > { %4956 = vmatmul.mubr.bf16.gmra.mrb[116].mxu1 %v4714_v52 }
 0x472   : > { %6071 = vmatmul.mubr.bf16.gmra.mrb[100].mxu0 %v4714_v52  ;;  %4965 = vmatprep.mubr.bf16.mxu1 %v4720_v58 }
 0x473   : > { %6080 = vmatprep.mubr.bf16.mxu0 %v4720_v58 }
 0x479   : > { %4966 = vmatmul.mubr.bf16.gmra.mrb[120].mxu1 %v4718_v18 }
 0x47a   : > { %6081 = vmatmul.mubr.bf16.gmra.mrb[104].mxu0 %v4718_v18  ;;  %4975 = vmatprep.mubr.bf16.mxu1 %v4724_v22 }
 0x47b   : > { %6090 = vmatprep.mubr.bf16.mxu0 %v4724_v22 }
 0x481   : > { %4976 = vmatmul.mubr.bf16.gmra.mrb[124].mxu1 %v4722_v28 }
 0x482   : > { %6091 = vmatmul.mubr.bf16.gmra.mrb[108].mxu0 %v4722_v28  ;;  %4985 = vmatprep.mubr.bf16.mxu1 %v4728_v44 }
 0x483   : > { %6100 = vmatprep.mubr.bf16.mxu0 %v4728_v44 }
 0x489   : > { %4986 = vmatmul.mubr.bf16.gmra.mrb[128].mxu1 %v4726_v37 }
 0x48a   : > { %6101 = vmatmul.mubr.bf16.gmra.mrb[112].mxu0 %v4726_v37  ;;  %4995 = vmatprep.mubr.bf16.mxu1 %v4732_v50 }
 0x48b   : > { %6110 = vmatprep.mubr.bf16.mxu0 %v4732_v50 }
 0x491   : > { %4996 = vmatmul.mubr.bf16.gmra.mrb[132].mxu1 %v4730_v15 }
 0x492   : > { %6111 = vmatmul.mubr.bf16.gmra.mrb[116].mxu0 %v4730_v15  ;;  %5005 = vmatprep.mubr.bf16.mxu1 %v4736_v33 }
 0x493   : > { %6120 = vmatprep.mubr.bf16.mxu0 %v4736_v33 }
 0x499   : > { %5006 = vmatmul.mubr.bf16.gmra.mrb[136].mxu1 %v4734_v31 }
 0x49a   : > { %6121 = vmatmul.mubr.bf16.gmra.mrb[120].mxu0 %v4734_v31  ;;  %5015 = vmatprep.mubr.bf16.mxu1 %v4735_v36 }
 0x49b   : > { %6130 = vmatprep.mubr.bf16.mxu0 %v4735_v36 }
 0x4a1   : > { %5016 = vmatmul.mubr.bf16.gmra.mrb[140].mxu1 %v4733_v38 }
 0x4a2   : > { %6131 = vmatmul.mubr.bf16.gmra.mrb[124].mxu0 %v4733_v38  ;;  %6619 = vmatprep.mubr.bf16.mxu1 %v13345_v7 }
 0x53c   : > { %v4947_v59 = vpop.f32.mrb[112].mxu1 }
 0x53d   : > { %v5070_v1 = vadd.f32 %v12346_v12, %v4947_v59  ;;  %v6062_v61 = vpop.f32.mrb[96].mxu0  ;;  %v4949_v49 = vpop.f32.mrb[113].mxu1 }
 0x53e   : > { %v6173_v16 = vadd.f32 %v6062_v61, %v12346_v12  ;;  %v5071_v41 = vadd.f32 %v12352_v40, %v4949_v49  ;;  %v6064_v11 = vpop.f32.mrb[97].mxu0  ;;  %v4951_v32 = vpop.f32.mrb[114].mxu1 }
 0x53f   : > { %v5102_v63 = vmax.f32 %v5070_v1, 0.0  ;;  %v6174_v4 = vadd.f32 %v6064_v11, %v12352_v40  ;;  %v5072_v19 = vadd.f32 %v12346_v12, %v4951_v32  ;;  %v6066_v42 = vpop.f32.mrb[98].mxu0  ;;  %v4953_v21 = vpop.f32.mrb[115].mxu1 }
 0x540   : > { %v6205_v39 = vmax.f32 %v6173_v16, 0.0  ;;  %v5103_v35 = vmax.f32 %v5071_v41, 0.0  ;;  %v6175_v27 = vadd.f32 %v6066_v42, %v12346_v12  ;;  %v5073_v23 = vadd.f32 %v12352_v40, %v4953_v21  ;;  %v6068_v34 = vpop.f32.mrb[99].mxu0  ;;  %v9463_v21 = vld [vmem:[%s13206_s9 + $0x100] ss:$8 sps:$4 sm:$0xff]  }
 0x541   : > { %v5147_v26 = vmul.f32 %v12359_v17, %v5102_v63  ;;  %v6206_v45 = vmax.f32 %v6174_v4, 0.0  ;;  %v5104_v56 = vmax.f32 %v5072_v19, 0.0  ;;  %v6176_v47 = vadd.f32 %v6068_v34, %v12352_v40 }
 0x542   : > { %v6237_v62 = vmul.f32 %v6205_v39, %v12359_v17  ;;  %v5148_v14 = vmul.f32 %v12367_v57, %v5103_v35  ;;  %v6207_v10 = vmax.f32 %v6175_v27, 0.0  ;;  %v5105_v54 = vmax.f32 %v5073_v23, 0.0  ;;  %v9465_v39 = vld [vmem:[%s13206_s9 + $0x104] ss:$8 sps:$4 sm:$0xff]  }
 0x543   : > { %v5192_v46 = vadd.f32 %v12362_v30, %v5147_v26  ;;  %v6238_v20 = vmul.f32 %v6206_v45, %v12367_v57  ;;  %v5149_v9 = vmul.f32 %v12359_v17, %v5104_v56  ;;  %v6208_v48 = vmax.f32 %v6176_v47, 0.0  ;;  %v9468_v26 = vld [vmem:[%s13206_s9 + $0x114] ss:$8 sps:$4 sm:$0xff]   ;;  %6981 = vmatprep.subr.bf16.mxu0 %v9465_v39 }
 0x544   : > { %v6269_v43 = vadd.f32 %v6237_v62, %v12362_v30  ;;  %v5193_v52 = vadd.f32 %v12370_v51, %v5148_v14  ;;  %v6239_v58 = vmul.f32 %v6207_v10, %v12359_v17  ;;  %v5150_v5 = vmul.f32 %v12367_v57, %v5105_v54  ;;  %v4957_v24 = vpop.f32.mrb[116].mxu1  ;;  %6982 = vmatpush1.bf16.msra.mxu0 %v9463_v21 }
 0x545   : > { %v6270_v18 = vadd.f32 %v6238_v20, %v12370_v51  ;;  %v5194_v22 = vadd.f32 %v12362_v30, %v5149_v9  ;;  %v6240_v13 = vmul.f32 %v6208_v48, %v12367_v57  ;;  %v5074_v3 = vadd.f32 %v12346_v12, %v4957_v24  ;;  %v6072_v28 = vpop.f32.mrb[100].mxu0  ;;  %v4959_v44 = vpop.f32.mrb[117].mxu1  ;;  %6983 = vmatprep.subr.bf16.mxu0 %v9468_v26 }
 0x546   : > { %v6301_v8 = vmax.f32 %v5192_v46, %v6269_v43  ;;  %v6271_v6 = vadd.f32 %v6239_v58, %v12362_v30  ;;  %v5195_v37 = vadd.f32 %v12370_v51, %v5150_v5  ;;  %v6177_v50 = vadd.f32 %v6072_v28, %v12346_v12  ;;  %v6074_v29 = vpop.f32.mrb[101].mxu0  ;;  %v4961_v36 = vpop.f32.mrb[118].mxu1  ;;  %v9466_v43 = vld [vmem:[%s13206_s9 + $0x110] ss:$8 sps:$4 sm:$0xff]  }
 0x547   : > { %v6302_v15 = vmax.f32 %v5193_v52, %v6270_v18  ;;  %v6272_v33 = vadd.f32 %v6240_v13, %v12370_v51  ;;  %v5106_v38 = vmax.f32 %v5074_v3, 0.0  ;;  %v5075_v31 = vadd.f32 %v12352_v40, %v4959_v44  ;;  %v6076_v2 = vpop.f32.mrb[102].mxu0  ;;  %v4963_v25 = vpop.f32.mrb[119].mxu1  ;;  %v9471_v13 = vld [vmem:[%s13206_s9 + $0x124] ss:$8 sps:$4 sm:$0xff]  }
 0x548   : > { %v6303_v0 = vmax.f32 %v5194_v22, %v6271_v6  ;;  %v6209_v59 = vmax.f32 %v6177_v50, 0.0  ;;  %v6178_v1 = vadd.f32 %v6074_v29, %v12352_v40  ;;  %v5076_v61 = vadd.f32 %v12346_v12, %v4961_v36  ;;  %v6078_v49 = vpop.f32.mrb[103].mxu0  ;;  %6984 = vmatpush1.bf16.msra.mxu0 %v9466_v43 }
 0x549   : > { %v6304_v16 = vmax.f32 %v5195_v37, %v6272_v33  ;;  %v5151_v41 = vmul.f32 %v12359_v17, %v5106_v38  ;;  %v5107_v11 = vmax.f32 %v5075_v31, 0.0  ;;  %v6179_v32 = vadd.f32 %v6076_v2, %v12346_v12  ;;  %6985 = vmatprep.subr.bf16.mxu0 %v9471_v13 }
 0x54a   : > { %v12400_v63 = vpack.c.bf16 %v6303_v0, %v6301_v8  ;;  %v6241_v4 = vmul.f32 %v6209_v59, %v12359_v17  ;;  %v6210_v19 = vmax.f32 %v6178_v1, 0.0  ;;  %v5108_v42 = vmax.f32 %v5076_v61, 0.0  ;;  %v9469_v0 = vld [vmem:[%s13206_s9 + $0x120] ss:$8 sps:$4 sm:$0xff]  }
 0x54b   : > { %v12409_v35 = vpack.c.bf16 %v6304_v16, %v6302_v15  ;;  %v5196_v27 = vadd.f32 %v12362_v30, %v5151_v41  ;;  %v5152_v23 = vmul.f32 %v12367_v57, %v5107_v11  ;;  %v6211_v34 = vmax.f32 %v6179_v32, 0.0  ;;  %v9474_v16 = vld [vmem:[%s13206_s9 + $0x134] ss:$8 sps:$4 sm:$0xff]  }
 0x54c   : > { %v6273_v45 = vadd.f32 %v6241_v4, %v12362_v30  ;;  %v6242_v56 = vmul.f32 %v6210_v19, %v12367_v57  ;;  %v5153_v47 = vmul.f32 %v12359_v17, %v5108_v42  ;;  %v5077_v62 = vadd.f32 %v12352_v40, %v4963_v25  ;;  %v4967_v14 = vpop.f32.mrb[120].mxu1  ;;  %6986 = vmatpush1.bf16.msra.mxu0 %v9469_v0 }
 0x54d   : > { %v12421_v10 = vadd.f32 %v12370_v51, %v5152_v23  ;;  %v6243_v54 = vmul.f32 %v6211_v34, %v12359_v17  ;;  %v6180_v46 = vadd.f32 %v6078_v49, %v12352_v40  ;;  %v5078_v20 = vadd.f32 %v12346_v12, %v4967_v14  ;;  %v6082_v9 = vpop.f32.mrb[104].mxu0  ;;  %v4969_v48 = vpop.f32.mrb[121].mxu1  ;;  %6987 = vmatprep.subr.bf16.mxu0 %v9474_v16 }
 0x54e   : > { %v6305_v52 = vmax.f32 %v5196_v27, %v6273_v45  ;;  %v6274_v58 = vadd.f32 %v6242_v56, %v12370_v51  ;;  %v5198_v5 = vadd.f32 %v12362_v30, %v5153_v47  ;;  %v5109_v24 = vmax.f32 %v5077_v62, 0.0  ;;  %v6084_v18 = vpop.f32.mrb[105].mxu0  ;;  %v4971_v22 = vpop.f32.mrb[122].mxu1  ;;  %v9472_v62 = vld [vmem:[%s13206_s9 + $0x130] ss:$8 sps:$4 sm:$0xff]  }
 0x54f   : > { %v6275_v3 = vadd.f32 %v6243_v54, %v12362_v30  ;;  %v6212_v28 = vmax.f32 %v6180_v46, 0.0  ;;  %v5110_v44 = vmax.f32 %v5078_v20, 0.0  ;;  %v6181_v8 = vadd.f32 %v6082_v9, %v12346_v12  ;;  %v6086_v6 = vpop.f32.mrb[106].mxu0  ;;  %v4973_v37 = vpop.f32.mrb[123].mxu1 }
 0x550   : > { %v6306_v50 = vmax.f32 %v12421_v10, %v6274_v58  ;;  %v5154_v29 = vmul.f32 %v12367_v57, %v5109_v24  ;;  %v5079_v36 = vadd.f32 %v12352_v40, %v4969_v48  ;;  %v6182_v15 = vadd.f32 %v6084_v18, %v12352_v40  ;;  %v6088_v33 = vpop.f32.mrb[107].mxu0  ;;  %v9477_v48 = vld [vmem:[%s13206_s9 + $0x144] ss:$8 sps:$4 sm:$0xff]   ;;  %6988 = vmatpush1.bf16.msra.mxu0 %v9472_v62 }
 0x551   : > { %v6307_v38 = vmax.f32 %v5198_v5, %v6275_v3  ;;  %v6244_v31 = vmul.f32 %v6212_v28, %v12367_v57  ;;  %v5155_v2 = vmul.f32 %v12359_v17, %v5110_v44  ;;  %v6213_v25 = vmax.f32 %v6181_v8, 0.0  ;;  %6989 = vmatprep.subr.bf16.mxu0 %v9477_v48  ;;  %v9483_v62 = vld [vmem:[%s13206_s9 + $0x164] ss:$8 sps:$4 sm:$0xff]  }
 0x552   : > { %v5199_v59 = vadd.f32 %v12370_v51, %v5154_v29  ;;  %v5111_v1 = vmax.f32 %v5079_v36, 0.0  ;;  %v6214_v61 = vmax.f32 %v6182_v15, 0.0  ;;  %v5080_v49 = vadd.f32 %v12346_v12, %v4971_v22  ;;  %v9475_v29 = vld [vmem:[%s13206_s9 + $0x140] ss:$8 sps:$4 sm:$0xff]  }
 0x553   : > { %v12450_v41 = vpack.c.bf16 %v6307_v38, %v6305_v52  ;;  %v6276_v11 = vadd.f32 %v6244_v31, %v12370_v51  ;;  %v12454_v32 = vadd.f32 %v12362_v30, %v5155_v2  ;;  %v6245_v4 = vmul.f32 %v6213_v25, %v12359_v17  ;;  %v9480_v31 = vld [vmem:[%s13206_s9 + $0x154] ss:$8 sps:$4 sm:$0xff]  }
 0x554   : > { %v5156_v19 = vmul.f32 %v12367_v57, %v5111_v1  ;;  %v6246_v42 = vmul.f32 %v6214_v61, %v12367_v57  ;;  %v5112_v21 = vmax.f32 %v5080_v49, 0.0  ;;  %v6183_v39 = vadd.f32 %v6086_v6, %v12346_v12  ;;  %v4977_v27 = vpop.f32.mrb[124].mxu1  ;;  %6990 = vmatpush1.bf16.msra.mxu0 %v9475_v29 }
 0x555   : > { %v6308_v23 = vmax.f32 %v5199_v59, %v6276_v11  ;;  %v6277_v34 = vadd.f32 %v6245_v4, %v12362_v30  ;;  %v5081_v26 = vadd.f32 %v12352_v40, %v4973_v37  ;;  %v6184_v45 = vadd.f32 %v6088_v33, %v12352_v40  ;;  %v6092_v56 = vpop.f32.mrb[108].mxu0  ;;  %v4979_v47 = vpop.f32.mrb[125].mxu1  ;;  %6991 = vmatprep.subr.bf16.mxu0 %v9480_v31 }
 0x556   : > { %v5201_v14 = vadd.f32 %v12370_v51, %v5156_v19  ;;  %v6278_v10 = vadd.f32 %v6246_v42, %v12370_v51  ;;  %v5157_v54 = vmul.f32 %v12359_v17, %v5112_v21  ;;  %v6215_v46 = vmax.f32 %v6183_v39, 0.0  ;;  %v6094_v20 = vpop.f32.mrb[109].mxu0  ;;  %v4981_v9 = vpop.f32.mrb[126].mxu1 }
 0x557   : > { %v12472_v43 = vpack.c.bf16 %v6308_v23, %v6306_v50  ;;  %v6309_v52 = vmax.f32 %v12454_v32, %v6277_v34  ;;  %v5113_v58 = vmax.f32 %v5081_v26, 0.0  ;;  %v6216_v5 = vmax.f32 %v6184_v45, 0.0  ;;  %v6096_v24 = vpop.f32.mrb[110].mxu0  ;;  %v4983_v18 = vpop.f32.mrb[127].mxu1 }
 0x558   : > { %v6310_v22 = vmax.f32 %v5201_v14, %v6278_v10  ;;  %v5202_v13 = vadd.f32 %v12362_v30, %v5157_v54  ;;  %v6247_v3 = vmul.f32 %v6215_v46, %v12359_v17  ;;  %v5082_v28 = vadd.f32 %v12346_v12, %v4977_v27  ;;  %v6098_v44 = vpop.f32.mrb[111].mxu0  ;;  %v9478_v27 = vld [vmem:[%s13206_s9 + $0x150] ss:$8 sps:$4 sm:$0xff]  }
 0x559   : > { %v5158_v8 = vmul.f32 %v12367_v57, %v5113_v58  ;;  %v6248_v6 = vmul.f32 %v6216_v5, %v12367_v57  ;;  %v6185_v37 = vadd.f32 %v6092_v56, %v12346_v12  ;;  %v5083_v50 = vadd.f32 %v12352_v40, %v4979_v47  ;;  %6992 = vmatpush1.bf16.msra.mxu0 %v9478_v27 }
 0x55a   : > { %v6279_v36 = vadd.f32 %v6247_v3, %v12362_v30  ;;  %v5114_v15 = vmax.f32 %v5082_v28, 0.0  ;;  %v6186_v33 = vadd.f32 %v6094_v20, %v12352_v40  ;;  %v5084_v38 = vadd.f32 %v12346_v12, %v4981_v9  ;;  %6993 = vmatprep.subr.bf16.mxu0 %v9483_v62 }
 0x55b   : > { %v5203_v2 = vadd.f32 %v12370_v51, %v5158_v8  ;;  %v6280_v25 = vadd.f32 %v6248_v6, %v12370_v51  ;;  %v6217_v0 = vmax.f32 %v6185_v37, 0.0  ;;  %v5115_v59 = vmax.f32 %v5083_v50, 0.0  ;;  %v9481_v8 = vld [vmem:[%s13206_s9 + $0x160] ss:$8 sps:$4 sm:$0xff]  }
 0x55c   : > { %v6311_v1 = vmax.f32 %v5202_v13, %v6279_v36  ;;  %v5159_v61 = vmul.f32 %v12359_v17, %v5114_v15  ;;  %v6218_v49 = vmax.f32 %v6186_v33, 0.0  ;;  %v5116_v16 = vmax.f32 %v5084_v38, 0.0  ;;  %v4987_v11 = vpop.f32.mrb[128].mxu1 }
 0x55d   : > { %v6312_v32 = vmax.f32 %v5203_v2, %v6280_v25  ;;  %v6249_v4 = vmul.f32 %v6217_v0, %v12359_v17  ;;  %v5160_v19 = vmul.f32 %v12367_v57, %v5115_v59  ;;  %v6187_v42 = vadd.f32 %v6096_v24, %v12346_v12  ;;  %v6102_v21 = vpop.f32.mrb[112].mxu0  ;;  %v4989_v39 = vpop.f32.mrb[129].mxu1  ;;  %6994 = vmatpush1.bf16.msra.mxu0 %v9481_v8 }
 0x55e   : > { %v12500_v23 = vpack.c.bf16 %v6311_v1, %v6309_v52  ;;  %v5204_v34 = vadd.f32 %v12362_v30, %v5159_v61  ;;  %v6250_v26 = vmul.f32 %v6218_v49, %v12367_v57  ;;  %v5161_v45 = vmul.f32 %v12359_v17, %v5116_v16  ;;  %v6104_v56 = vpop.f32.mrb[113].mxu0  ;;  %v4991_v47 = vpop.f32.mrb[130].mxu1 }
 0x55f   : > { %v12508_v14 = vpack.c.bf16 %v6312_v32, %v6310_v22  ;;  %v6281_v10 = vadd.f32 %v6249_v4, %v12362_v30  ;;  %v12512_v54 = vadd.f32 %v12370_v51, %v5160_v19  ;;  %v6219_v46 = vmax.f32 %v6187_v42, 0.0  ;;  %v6106_v20 = vpop.f32.mrb[114].mxu0  ;;  %v4993_v9 = vpop.f32.mrb[131].mxu1  ;;  %v9484_v32 = vld [vmem:[%s13206_s9 + $0x170] ss:$8 sps:$4 sm:$0xff]  }
 0x560   : > { %v6282_v48 = vadd.f32 %v6250_v26, %v12370_v51  ;;  %v5206_v52 = vadd.f32 %v12362_v30, %v5161_v45  ;;  %v5085_v58 = vadd.f32 %v12352_v40, %v4983_v18  ;;  %v6188_v5 = vadd.f32 %v6098_v44, %v12352_v40  ;;  %v6108_v24 = vpop.f32.mrb[115].mxu0  ;;  %v9486_v44 = vld [vmem:[%s13206_s9 + $0x174] ss:$8 sps:$4 sm:$0xff]  }
 0x561   : > { %v6313_v13 = vmax.f32 %v5204_v34, %v6281_v10  ;;  %v6251_v22 = vmul.f32 %v6219_v46, %v12359_v17  ;;  %v5086_v3 = vadd.f32 %v12346_v12, %v4987_v11  ;;  %v6189_v28 = vadd.f32 %v6102_v21, %v12346_v12  ;;  %6995 = vmatprep.subr.bf16.mxu0 %v9486_v44  ;;  %v9489_v34 = vld [vmem:[%s13206_s9 + $0x184] ss:$8 sps:$4 sm:$0xff]  }
 0x562   : > { %v6314_v6 = vmax.f32 %v12512_v54, %v6282_v48  ;;  %v5117_v37 = vmax.f32 %v5085_v58, 0.0  ;;  %v6220_v50 = vmax.f32 %v6188_v5, 0.0  ;;  %v5087_v18 = vadd.f32 %v12352_v40, %v4989_v39  ;;  %6996 = vmatpush1.bf16.msra.mxu0 %v9484_v32 }
 0x563   : > { %v6283_v29 = vadd.f32 %v6251_v22, %v12362_v30  ;;  %v5118_v36 = vmax.f32 %v5086_v3, 0.0  ;;  %v6221_v15 = vmax.f32 %v6189_v28, 0.0  ;;  %v6190_v33 = vadd.f32 %v6104_v56, %v12352_v40  ;;  %v9487_v28 = vld [vmem:[%s13206_s9 + $0x180] ss:$8 sps:$4 sm:$0xff]   ;;  %6997 = vmatprep.subr.bf16.mxu0 %v9489_v34 }
 0x564   : > { %v5162_v38 = vmul.f32 %v12367_v57, %v5117_v37  ;;  %v6252_v31 = vmul.f32 %v6220_v50, %v12367_v57  ;;  %v5119_v2 = vmax.f32 %v5087_v18, 0.0  ;;  %v5088_v25 = vadd.f32 %v12346_v12, %v4991_v47  ;;  %v4997_v0 = vpop.f32.mrb[132].mxu1  ;;  %v9492_v18 = vld [vmem:[%s13206_s9 + $0x194] ss:$8 sps:$4 sm:$0xff]  }
 0x565   : > { %v6315_v59 = vmax.f32 %v5206_v52, %v6283_v29  ;;  %v5163_v1 = vmul.f32 %v12359_v17, %v5118_v36  ;;  %v6253_v61 = vmul.f32 %v6221_v15, %v12359_v17  ;;  %v6222_v49 = vmax.f32 %v6190_v33, 0.0  ;;  %v6112_v16 = vpop.f32.mrb[116].mxu0  ;;  %v12536_v11 = vpop.f32.mrb[133].mxu1 }
 0x566   : > { %v5207_v4 = vadd.f32 %v12370_v51, %v5162_v38  ;;  %v6284_v19 = vadd.f32 %v6252_v31, %v12370_v51  ;;  %v5164_v42 = vmul.f32 %v12367_v57, %v5119_v2  ;;  %v5120_v21 = vmax.f32 %v5088_v25, 0.0  ;;  %v12544_v39 = vpop.f32.mrb[117].mxu0  ;;  %v12546_v27 = vpop.f32.mrb[134].mxu1  ;;  %v9490_v31 = vld [vmem:[%s13206_s9 + $0x190] ss:$8 sps:$4 sm:$0xff]   ;;  %6998 = vmatpush1.bf16.msra.mxu0 %v9487_v28 }
 0x567   : > { %v12551_v26 = vpack.c.bf16 %v6315_v59, %v6313_v13  ;;  %v12554_v45 = vadd.f32 %v12362_v30, %v5163_v1  ;;  %v12557_v56 = vadd.f32 %v6253_v61, %v12362_v30  ;;  %v6254_v47 = vmul.f32 %v6222_v49, %v12367_v57  ;;  %v12560_v62 = vpop.f32.mrb[118].mxu0  ;;  %v12562_v10 = vpop.f32.mrb[135].mxu1  ;;  %6999 = vmatprep.subr.bf16.mxu0 %v9492_v18 }
 0x568   : > { %v6316_v54 = vmax.f32 %v5207_v4, %v6284_v19  ;;  %v12565_v46 = vadd.f32 %v12370_v51, %v5164_v42  ;;  %v5165_v48 = vmul.f32 %v12359_v17, %v5120_v21  ;;  %v6191_v52 = vadd.f32 %v6106_v20, %v12346_v12  ;;  %v12569_v58 = vpop.f32.mrb[119].mxu0 }
 0x569   : > { %v6317_v5 = vmax.f32 %v12554_v45, %v12557_v56  ;;  %v6286_v13 = vadd.f32 %v6254_v47, %v12370_v51  ;;  %v5089_v22 = vadd.f32 %v12352_v40, %v4993_v9  ;;  %v6192_v3 = vadd.f32 %v6108_v24, %v12352_v40 }
 0x56a   : > { %v12579_v8 = vpack.c.bf16 %v6316_v54, %v6314_v6  ;;  %v5210_v20 = vadd.f32 %v12362_v30, %v5165_v48  ;;  %v6223_v37 = vmax.f32 %v6191_v52, 0.0  ;;  %v6396_v50 = vshrl.u32 %v12409_v35, 16  ;;  %7000 = vmatpush1.bf16.msra.mxu0 %v9490_v31 }
 0x56b   : > { %v6318_v9 = vmax.f32 %v12565_v46, %v6286_v13  ;;  %v5121_v24 = vmax.f32 %v5089_v22, 0.0  ;;  %v6224_v44 = vmax.f32 %v6192_v3, 0.0  ;;  %v6398_v29 = vshll.u32 %v12409_v35, 16 }
 0x56c   : > { %v6255_v36 = vmul.f32 %v6223_v37, %v12359_v17  ;;  %v6403_v6 = vshll.u32 %v12472_v43, 16  ;;  %v5090_v15 = vadd.f32 %v12346_v12, %v4997_v0  ;;  %v6193_v33 = vadd.f32 %v6112_v16, %v12346_v12  ;;  %v12592_v38 = vpop.f32.mrb[136].mxu1  ;;  %v9495_v0 = vld [vmem:[%s13206_s9 + $0x1a4] ss:$8 sps:$4 sm:$0xff]  }
 0x56d   : > { %v5166_v2 = vmul.f32 %v12367_v57, %v5121_v24  ;;  %v6256_v25 = vmul.f32 %v6224_v44, %v12367_v57  ;;  %v6400_v59 = vrot.slane %v6398_v29, 1  ;;  %v6384_v1 = vshrl.u32 %v12400_v63, 16  ;;  %v12600_v61 = vpop.f32.mrb[120].mxu0  ;;  %v12602_v49 = vpop.f32.mrb[137].mxu1  ;;  %7001 = vmatprep.subr.bf16.mxu0 %v9495_v0 }
 0x56e   : > { %v6287_v16 = vadd.f32 %v6255_v36, %v12362_v30  ;;  %v12608_v32 = vrot.slane %v6403_v6, 1  ;;  %v5122_v4 = vmax.f32 %v5090_v15, 0.0  ;;  %v6225_v19 = vmax.f32 %v6193_v33, 0.0  ;;  %v12610_v42 = vpop.f32.mrb[121].mxu0  ;;  %v12612_v21 = vpop.f32.mrb[138].mxu1 }
 0x56f   : > { %v5211_v34 = vadd.f32 %v12370_v51, %v5166_v2  ;;  %v6288_v45 = vadd.f32 %v6256_v25, %v12370_v51  ;;  %v6401_v56 = vor.u32 %v6400_v59, %v6396_v50  ;;  %v6386_v47 = vshll.u32 %v12400_v63, 16  ;;  %v12617_v54 = vpop.f32.mrb[122].mxu0  ;;  %v12619_v46 = vpop.f32.mrb[139].mxu1 }
 0x570   : > { %v6319_v48 = vmax.f32 %v5210_v20, %v6287_v16  ;;  %v5167_v52 = vmul.f32 %v12359_v17, %v5122_v4  ;;  %v6257_v13 = vmul.f32 %v6225_v19, %v12359_v17  ;;  %v6391_v22 = vshll.u32 %v12450_v41, 16  ;;  %v12624_v3 = vpop.f32.mrb[123].mxu0  ;;  %v9493_v20 = vld [vmem:[%s13206_s9 + $0x1a0] ss:$8 sps:$4 sm:$0xff]  }
 0x571   : > { %v6320_v28 = vmax.f32 %v5211_v34, %v6288_v45  ;;  %v6406_v37 = vsel %vm539_vm0, %v6401_v56, %v12608_v32  ;;  %v6388_v50 = vrot.slane %v6386_v47, 1  ;;  %v5091_v18 = vadd.f32 %v12352_v40, %v12536_v11  ;;  %7002 = vmatpush1.bf16.msra.mxu0 %v9493_v20 }
 0x572   : > { %v12633_v24 = vpack.c.bf16 %v6319_v48, %v6317_v5  ;;  %v6526_v44 = vmax.bf16 %v6406_v37, %v12409_v35  ;;  %v5212_v29 = vadd.f32 %v12362_v30, %v5167_v52  ;;  %v6289_v36 = vadd.f32 %v6257_v13, %v12362_v30 }
 0x573   : > { %v12638_v6 = vpack.c.bf16 %v6320_v28, %v6318_v9  ;;  %v6389_v15 = vor.u32 %v6388_v50, %v6384_v1  ;;  %v6393_v33 = vrot.slane %v6391_v22, 1  ;;  %v5123_v2 = vmax.f32 %v5091_v18, 0.0 }
 0x574   : > { %6587 = vmatprep.subr.bf16.mxu1 %v6526_v44  ;;  %v6321_v11 = vmax.f32 %v5212_v29, %v6289_v36  ;;  %v6194_v31 = vadd.f32 %v12544_v39, %v12352_v40  ;;  %v5092_v5 = vadd.f32 %v12346_v12, %v12546_v27  ;;  %v6195_v35 = vadd.f32 %v12560_v62, %v12346_v12  ;;  %v12646_v25 = vpop.f32.mrb[140].mxu1 }
 0x575   : > { %v6394_v59 = vsel %vm539_vm0, %v6389_v15, %v6393_v33  ;;  %v5168_v9 = vmul.f32 %v12367_v57, %v5123_v2  ;;  %v5093_v1 = vadd.f32 %v12352_v40, %v12562_v10  ;;  %v6196_v0 = vadd.f32 %v12569_v58, %v12352_v40  ;;  %v12654_v16 = vpop.f32.mrb[124].mxu0  ;;  %v12656_v39 = vpop.f32.mrb[141].mxu1 }
 0x576   : > { %v6525_v27 = vmax.bf16 %v6394_v59, %v12400_v63  ;;  %v6226_v62 = vmax.f32 %v6194_v31, 0.0  ;;  %v5124_v4 = vmax.f32 %v5092_v5, 0.0  ;;  %v6227_v19 = vmax.f32 %v6195_v35, 0.0  ;;  %v12659_v34 = vpop.f32.mrb[125].mxu0  ;;  %v12661_v45 = vpop.f32.mrb[142].mxu1 }
 0x577   : > { %v5213_v56 = vadd.f32 %v12370_v51, %v5168_v9  ;;  %v5125_v10 = vmax.f32 %v5093_v1, 0.0  ;;  %v6228_v47 = vmax.f32 %v6196_v0, 0.0  ;;  %v6415_v58 = vshrl.u32 %v12472_v43, 16  ;;  %v12665_v48 = vpop.f32.mrb[126].mxu0  ;;  %v12667_v52 = vpop.f32.mrb[143].mxu1 }
 0x578   : > { %6588 = vmatpush1.bf16.msra.mxu1 %v6525_v27  ;;  %v6258_v63 = vmul.f32 %v6226_v62, %v12367_v57  ;;  %v5169_v13 = vmul.f32 %v12359_v17, %v5124_v4  ;;  %v6259_v22 = vmul.f32 %v6227_v19, %v12359_v17  ;;  %v6419_v28 = vshll.u32 %v12508_v14, 16  ;;  %v12673_v37 = vpop.f32.mrb[127].mxu0 }
 0x579   : > { %v5170_v50 = vmul.f32 %v12367_v57, %v5125_v10  ;;  %v6260_v18 = vmul.f32 %v6228_v47, %v12367_v57  ;;  %v6417_v20 = vor.u32 %v6415_v58, %v12608_v32  ;;  %v5094_v44 = vadd.f32 %v12346_v12, %v12592_v38 }
 0x57a   : > { %v6290_v29 = vadd.f32 %v6258_v63, %v12370_v51  ;;  %v5214_v36 = vadd.f32 %v12362_v30, %v5169_v13  ;;  %v6291_v15 = vadd.f32 %v6259_v22, %v12362_v30  ;;  %v6421_v2 = vrot.slane %v6419_v28, 1 }
 0x57b   : > { %v5215_v31 = vadd.f32 %v12370_v51, %v5170_v50  ;;  %v6292_v5 = vadd.f32 %v6260_v18, %v12370_v51  ;;  %v5126_v35 = vmax.f32 %v5094_v44, 0.0  ;;  %v6197_v59 = vadd.f32 %v12600_v61, %v12346_v12 }
 0x57c   : > { %v6322_v9 = vmax.f32 %v5213_v56, %v6290_v29  ;;  %v6323_v32 = vmax.f32 %v5214_v36, %v6291_v15  ;;  %v6422_v1 = vsel %vm539_vm0, %v6417_v20, %v6421_v2  ;;  %v6407_v38 = vshrl.u32 %v12450_v41, 16 }
 0x57d   : > { %v6324_v0 = vmax.f32 %v5215_v31, %v6292_v5  ;;  %v6528_v27 = vmax.bf16 %v6422_v1, %v12472_v43  ;;  %v5171_v62 = vmul.f32 %v12359_v17, %v5126_v35  ;;  %v6229_v4 = vmax.f32 %v6197_v59, 0.0 }
 0x57e   : > { %v12691_v19 = vpack.c.bf16 %v6323_v32, %v6321_v11  ;;  %v6409_v10 = vor.u32 %v6407_v38, %v6393_v33  ;;  %v6411_v47 = vshll.u32 %v12500_v23, 16  ;;  %v5095_v61 = vadd.f32 %v12352_v40, %v12602_v49 }
 0x57f   : > { %v12696_v56 = vpack.c.bf16 %v6324_v0, %v6322_v9  ;;  %6589 = vmatprep.subr.bf16.mxu1 %v6528_v27  ;;  %v5216_v58 = vadd.f32 %v12362_v30, %v5171_v62  ;;  %v6261_v63 = vmul.f32 %v6229_v4, %v12359_v17  ;;  %v6198_v43 = vadd.f32 %v12610_v42, %v12352_v40 }
 0x580   : > { %v6413_v13 = vrot.slane %v6411_v47, 1  ;;  %v5127_v22 = vmax.f32 %v5095_v61, 0.0  ;;  %v5096_v33 = vadd.f32 %v12346_v12, %v12612_v21  ;;  %v6199_v11 = vadd.f32 %v12617_v54, %v12346_v12 }
 0x581   : > { %v6293_v49 = vadd.f32 %v6261_v63, %v12362_v30  ;;  %v6230_v28 = vmax.f32 %v6198_v43, 0.0  ;;  %v5097_v50 = vadd.f32 %v12352_v40, %v12619_v46  ;;  %v6200_v18 = vadd.f32 %v12624_v3, %v12352_v40 }
 0x582   : > { %v6414_v20 = vsel %vm539_vm0, %v6409_v10, %v6413_v13  ;;  %v5172_v42 = vmul.f32 %v12367_v57, %v5127_v22  ;;  %v5128_v44 = vmax.f32 %v5096_v33, 0.0  ;;  %v6231_v29 = vmax.f32 %v6199_v11, 0.0 }
 0x583   : > { %v6325_v36 = vmax.f32 %v5216_v58, %v6293_v49  ;;  %v6527_v21 = vmax.bf16 %v6414_v20, %v12450_v41  ;;  %v6262_v54 = vmul.f32 %v6230_v28, %v12367_v57  ;;  %v5129_v15 = vmax.f32 %v5097_v50, 0.0 }
 0x584   : > { %v5217_v31 = vadd.f32 %v12370_v51, %v5172_v42  ;;  %v5173_v5 = vmul.f32 %v12359_v17, %v5128_v44  ;;  %v6263_v46 = vmul.f32 %v6231_v29, %v12359_v17  ;;  %v6232_v35 = vmax.f32 %v6200_v18, 0.0 }
 0x585   : > { %6590 = vmatpush1.bf16.msra.mxu1 %v6527_v21  ;;  %v6294_v3 = vadd.f32 %v6262_v54, %v12370_v51  ;;  %v5174_v59 = vmul.f32 %v12367_v57, %v5129_v15  ;;  %v6431_v9 = vshrl.u32 %v12508_v14, 16  ;;  %v6435_v32 = vshll.u32 %v12579_v8, 16 }
 0x586   : > { %v5218_v41 = vadd.f32 %v12362_v30, %v5173_v5  ;;  %v6295_v1 = vadd.f32 %v6263_v46, %v12362_v30  ;;  %v6264_v38 = vmul.f32 %v6232_v35, %v12367_v57  ;;  %v5098_v0 = vadd.f32 %v12346_v12, %v12646_v25 }
 0x587   : > { %v6326_v27 = vmax.f32 %v5217_v31, %v6294_v3  ;;  %v5219_v62 = vadd.f32 %v12370_v51, %v5174_v59  ;;  %v6433_v4 = vor.u32 %v6431_v9, %v6421_v2  ;;  %v6437_v10 = vrot.slane %v6435_v32, 1 }
 0x588   : > { %v6327_v47 = vmax.f32 %v5218_v41, %v6295_v1  ;;  %v6296_v61 = vadd.f32 %v6264_v38, %v12370_v51  ;;  %v5130_v58 = vmax.f32 %v5098_v0, 0.0  ;;  %v6201_v63 = vadd.f32 %v12654_v16, %v12346_v12 }
 0x589   : > { %v6438_v43 = vsel %vm539_vm0, %v6433_v4, %v6437_v10  ;;  %v6423_v22 = vshrl.u32 %v12500_v23, 16  ;;  %v6427_v33 = vshll.u32 %v12551_v26, 16  ;;  %v5099_v25 = vadd.f32 %v12352_v40, %v12656_v39 }
 0x58a   : > { %v12736_v11 = vpack.c.bf16 %v6327_v47, %v6325_v36  ;;  %v6328_v2 = vmax.f32 %v5219_v62, %v6296_v61  ;;  %v6530_v49 = vmax.bf16 %v6438_v43, %v12508_v14  ;;  %v5175_v28 = vmul.f32 %v12359_v17, %v5130_v58 }
 0x58b   : > { %v6233_v50 = vmax.f32 %v6201_v63, 0.0  ;;  %v6425_v18 = vor.u32 %v6423_v22, %v6413_v13  ;;  %v6429_v20 = vrot.slane %v6427_v33, 1  ;;  %v5131_v16 = vmax.f32 %v5099_v25, 0.0 }
 0x58c   : > { %v12740_v42 = vpack.c.bf16 %v6328_v2, %v6326_v27  ;;  %6591 = vmatprep.subr.bf16.mxu1 %v6530_v49  ;;  %v5220_v44 = vadd.f32 %v12362_v30, %v5175_v28  ;;  %v6202_v29 = vadd.f32 %v12659_v34, %v12352_v40  ;;  %v5100_v39 = vadd.f32 %v12346_v12, %v12661_v45 }
 0x58d   : > { %v6265_v36 = vmul.f32 %v6233_v50, %v12359_v17  ;;  %v6430_v14 = vsel %vm539_vm0, %v6425_v18, %v6429_v20  ;;  %v5176_v21 = vmul.f32 %v12367_v57, %v5131_v16  ;;  %v6203_v13 = vadd.f32 %v12665_v48, %v12346_v12 }
 0x58e   : > { %v6529_v54 = vmax.bf16 %v6430_v14, %v12500_v23  ;;  %v6234_v15 = vmax.f32 %v6202_v29, 0.0  ;;  %v5132_v31 = vmax.f32 %v5100_v39, 0.0  ;;  %v5101_v5 = vadd.f32 %v12352_v40, %v12667_v52 }
 0x58f   : > { %v6297_v34 = vadd.f32 %v6265_v36, %v12362_v30  ;;  %v5221_v45 = vadd.f32 %v12370_v51, %v5176_v21  ;;  %v6235_v46 = vmax.f32 %v6203_v13, 0.0  ;;  %v6204_v35 = vadd.f32 %v12673_v37, %v12352_v40 }
 0x590   : > { %6592 = vmatpush1.bf16.msra.mxu1 %v6529_v54  ;;  %v6266_v3 = vmul.f32 %v6234_v15, %v12367_v57  ;;  %v5177_v12 = vmul.f32 %v12359_v17, %v5132_v31  ;;  %v5133_v48 = vmax.f32 %v5101_v5, 0.0  ;;  %v6447_v23 = vshrl.u32 %v12579_v8, 16 }
 0x591   : > { %v6329_v59 = vmax.f32 %v5220_v44, %v6297_v34  ;;  %v6267_v9 = vmul.f32 %v6235_v46, %v12359_v17  ;;  %v6236_v52 = vmax.f32 %v6204_v35, 0.0  ;;  %v6451_v32 = vshll.u32 %v12638_v6, 16 }
 0x592   : > { %v6298_v41 = vadd.f32 %v6266_v3, %v12370_v51  ;;  %v5222_v1 = vadd.f32 %v12362_v30, %v5177_v12  ;;  %v5178_v40 = vmul.f32 %v12367_v57, %v5133_v48  ;;  %v6449_v37 = vor.u32 %v6447_v23, %v6437_v10 }
 0x593   : > { %v6299_v38 = vadd.f32 %v6267_v9, %v12362_v30  ;;  %v6268_v0 = vmul.f32 %v6236_v52, %v12367_v57  ;;  %v6453_v27 = vrot.slane %v6451_v32, 1  ;;  %v6439_v62 = vshrl.u32 %v12551_v26, 16 }
 0x594   : > { %v6330_v4 = vmax.f32 %v5221_v45, %v6298_v41  ;;  %v5223_v17 = vadd.f32 %v12370_v51, %v5178_v40  ;;  %v6443_v47 = vshll.u32 %v12633_v24, 16  ;;  %v6463_v61 = vshrl.u32 %v12638_v6, 16 }
 0x595   : > { %v6331_v58 = vmax.f32 %v5222_v1, %v6299_v38  ;;  %v6300_v63 = vadd.f32 %v6268_v0, %v12370_v51  ;;  %v6454_v43 = vsel %vm539_vm0, %v6449_v37, %v6453_v27  ;;  %v6441_v10 = vor.u32 %v6439_v62, %v6429_v20 }
 0x596   : > { %v6532_v30 = vmax.bf16 %v6454_v43, %v12579_v8  ;;  %v6445_v22 = vrot.slane %v6443_v47, 1  ;;  %v6465_v57 = vor.u32 %v6463_v61, %v6453_v27  ;;  %v6467_v33 = vshll.u32 %v12696_v56, 16  ;;  %v9459_v47 = vld [vmem:[%s13205_s8] sm:$0xff]   ;;  %v9496_v61 = vld [vmem:[%s13206_s9 + $0x1b0] ss:$8 sps:$4 sm:$0xff]  }
 0x597   : > { %v6347_v25 = vpack.c.bf16 %v6331_v58, %v6329_v59  ;;  %v6332_v2 = vmax.f32 %v5223_v17, %v6300_v63  ;;  %v6455_v49 = vshrl.u32 %v12633_v24, 16  ;;  %v6459_v28 = vshll.u32 %v12691_v19, 16  ;;  %v9498_v58 = vld [vmem:[%s13206_s9 + $0x1b4] ss:$8 sps:$4 sm:$0xff]   ;;  %v9499_v63 = vld [vmem:[%s13206_s9 + $0x1c0] ss:$8 sps:$4 sm:$0xff]  }
 0x598   : > { %6593 = vmatprep.subr.bf16.mxu1 %v6532_v30  ;;  %v6446_v50 = vsel %vm539_vm0, %v6441_v10, %v6445_v22  ;;  %v6469_v18 = vrot.slane %v6467_v33, 1  ;;  %v6479_v51 = vshrl.u32 %v12696_v56, 16  ;;  %v6483_v20 = vshll.u32 %v12740_v42, 16  ;;  %7003 = vmatprep.subr.bf16.mxu0 %v9498_v58  ;;  %v9501_v43 = vld [vmem:[%s13206_s9 + $0x1c4] ss:$8 sps:$4 sm:$0xff]  }
 0x599   : > { %6363 = vst [vmem:[#allocation4 + $0x70] sm:$0x7f] %v6347_v25  ;;  %v6348_v8 = vpack.c.bf16 %v6332_v2, %v6330_v4  ;;  %v6531_v16 = vmax.bf16 %v6446_v50, %v12551_v26  ;;  %v6457_v44 = vor.u32 %v6455_v49, %v6445_v22  ;;  %v6461_v29 = vrot.slane %v6459_v28, 1  ;;  %7004 = vmatpush1.bf16.msra.mxu0 %v9496_v61  ;;  %v9504_v10 = vld [vmem:[%s13206_s9 + $0x1d4] ss:$8 sps:$4 sm:$0xff]  }
 0x59a   : > { %v6470_v39 = vsel %vm539_vm0, %v6465_v57, %v6469_v18  ;;  %v6481_v36 = vor.u32 %v6479_v51, %v6469_v18  ;;  %v6485_v14 = vrot.slane %v6483_v20, 1  ;;  %v6471_v54 = vshrl.u32 %v12691_v19, 16  ;;  %7005 = vmatprep.subr.bf16.mxu0 %v9501_v43  ;;  %v9502_v30 = vld [vmem:[%s13206_s9 + $0x1d0] ss:$8 sps:$4 sm:$0xff]   ;;  %v9505_v22 = vld [vmem:[%s13206_s9 + $0x1e0] ss:$8 sps:$4 sm:$0xff]  }
 0x59b   : > { %6364 = vst [vmem:[#allocation4 + $0x78] sm:$0x7f] %v6348_v8  ;;  %6594 = vmatpush1.bf16.msra.mxu1 %v6531_v16  ;;  %v6534_v21 = vmax.bf16 %v6470_v39, %v12638_v6  ;;  %v6462_v13 = vsel %vm539_vm0, %v6457_v44, %v6461_v29  ;;  %v6475_v15 = vshll.u32 %v12736_v11, 16  ;;  %v6487_v48 = vshrl.u32 %v12736_v11, 16  ;;  %v9507_v57 = vld [vmem:[%s13206_s9 + $0x1e4] ss:$8 sps:$4 sm:$0xff]  }
 0x59c   : > { %v6533_v31 = vmax.bf16 %v6462_v13, %v12633_v24  ;;  %v6486_v26 = vsel %vm539_vm0, %v6481_v36, %v6485_v14  ;;  %v6473_v34 = vor.u32 %v6471_v54, %v6461_v29  ;;  %v6495_v24 = vshrl.u32 %v12740_v42, 16  ;;  %v9510_v33 = vld [vmem:[%s13206_s9 + $0x1f4] ss:$8 sps:$4 sm:$0xff]   ;;  %v9508_v25 = vld [vmem:[%s13206_s9 + $0x1f0] ss:$8 sps:$4 sm:$0xff]  }
 0x59d   : > { %6595 = vmatprep.subr.bf16.mxu1 %v6534_v21  ;;  %v6536_v5 = vmax.bf16 %v6486_v26, %v12696_v56  ;;  %v6477_v45 = vrot.slane %v6475_v15, 1  ;;  %7006 = vmatpush1.bf16.msra.mxu0 %v9499_v63  ;;  %v9513_v2 = vld [vmem:[%s13206_s9 + $0x4] ss:$8 sps:$4 sm:$0xff]   ;;  %v9522_v61 = vld [vmem:[%s13206_s9 + $0x34] ss:$8 sps:$4 sm:$0xff]  }
 0x59e   : > { %v6497_v52 = vor.u32 %v6495_v24, %v6485_v14  ;;  %7007 = vmatprep.subr.bf16.mxu0 %v9504_v10 }
 0x59f   : > { %6596 = vmatpush1.bf16.msra.mxu1 %v6533_v31  ;;  %v6478_v46 = vsel %vm539_vm0, %v6473_v34, %v6477_v45  ;;  %v6489_v56 = vor.u32 %v6487_v48, %v6477_v45 }
 0x5a0   : > { %6597 = vmatprep.subr.bf16.mxu1 %v6536_v5  ;;  %v6535_v6 = vmax.bf16 %v6478_v46, %v12691_v19  ;;  %v6381_v35 = vld [vmem:[#allocation4 + $0x70] sm:$0xff] }
 0x5a1   : > { %v6491_v3 = vshll.u32 %v6381_v35, 16  ;;  %v6503_v9 = vshrl.u32 %v6381_v35, 16  ;;  %7008 = vmatpush1.bf16.msra.mxu0 %v9502_v30 }
 0x5a2   : > { %v6382_v12 = vld [vmem:[#allocation4 + $0x78] sm:$0xff]  ;;  %7009 = vmatprep.subr.bf16.mxu0 %v9507_v57 }
 0x5a3   : > { %6598 = vmatpush1.bf16.msra.mxu1 %v6535_v6  ;;  %v6499_v23 = vshll.u32 %v6382_v12, 16  ;;  %v6493_v59 = vrot.slane %v6491_v3, 1  ;;  %v6506_v41 = vshrl.u32 %v6382_v12, 16  ;;  %v9511_v3 = vld [vmem:[%s13206_s9] ss:$8 sps:$4 sm:$0xff]  }
 0x5a5   : > { %v6501_v32 = vrot.slane %v6499_v23, 1  ;;  %v6505_v1 = vor.u32 %v6503_v9, %v6493_v59  ;;  %v6494_v40 = vsel %vm539_vm0, %v6489_v56, %v6493_v59  ;;  %7010 = vmatpush1.bf16.msra.mxu0 %v9505_v22  ;;  %v9516_v23 = vld [vmem:[%s13206_s9 + $0x14] ss:$8 sps:$4 sm:$0xff]   ;;  %v9520_v22 = vld [vmem:[%s13206_s9 + $0x30] ss:$8 sps:$4 sm:$0xff]  }
 0x5a6   : > { %v6537_v0 = vmax.bf16 %v6494_v40, %v12736_v11  ;;  %v9460_v11 = vld [vmem:[%s13205_s8 + $0x8] sm:$0xff]   ;;  %7011 = vmatprep.subr.bf16.mxu0 %v9510_v33 }
 0x5a7   : > { %v6502_v19 = vsel %vm539_vm0, %v6497_v52, %v6501_v32  ;;  %v6508_v37 = vor.u32 %v6506_v41, %v6501_v32  ;;  %v6539_v62 = vmax.bf16 %v6505_v1, %v6381_v35  ;;  %v9514_v32 = vld [vmem:[%s13206_s9 + $0x10] ss:$8 sps:$4 sm:$0xff]  }
 0x5a8   : > { %v6538_v38 = vmax.bf16 %v6502_v19, %v12740_v42  ;;  %v9462_v42 = vld [vmem:[%s13205_s8 + $0x18] sm:$0xff]   ;;  %v9519_v19 = vld [vmem:[%s13206_s9 + $0x24] ss:$8 sps:$4 sm:$0xff]  }
 0x5a9   : > { %v6540_v27 = vmax.bf16 %v6508_v37, %v6382_v12  ;;  %v6582_v17 = vand.u32 %v6539_v62, %v11642_v60  ;;  %7012 = vmatpush1.bf16.msra.mxu0 %v9508_v25 }
 0x5aa   : > { %6599 = vmatprep.subr.bf16.mxu1 %v6538_v38  ;;  %7214 = vmatprep.subr.bf16.mxu0 %v9513_v2 }
 0x5ab   : > { %6600 = vmatpush1.bf16.msra.mxu1 %v6537_v0  ;;  %v6585_v4 = vand.u32 %v6540_v27, %v11642_v60  ;;  %v9461_v60 = vld [vmem:[%s13205_s8 + $0x10] sm:$0xff]  }
 0x5ad   : > { %6601 = vmatprep.subr.bf16.mxu1 %v6585_v4 }
 0x5af   : > { %6602 = vmatpush1.bf16.msra.mxu1 %v6582_v17  ;;  %v9517_v17 = vld [vmem:[%s13206_s9 + $0x20] ss:$8 sps:$4 sm:$0xff]  }
 0x5b2   : > { %8358 = vmatmul.mubr.msk.bf16.vlgmr.msra.gmra.mrb[144].mxu1 %vm3705_vm2, %v9459_v47 }
 0x5b3   : > { %6629 = vmatprep.mubr.bf16.mxu1 %v13345_v7 }
 0x5ba   : > { %8359 = vmatmul.mubr.msk.bf16.gmra.mrb[148].mxu1 %vm3705_vm2, %v9460_v11 }
 0x5bb   : > { %6639 = vmatprep.mubr.bf16.mxu1 %v13345_v7 }
 0x5c2   : > { %8360 = vmatmul.mubr.msk.bf16.gmra.mrb[152].mxu1 %vm3705_vm2, %v9461_v60 }
 0x5c3   : > { %6649 = vmatprep.mubr.bf16.mxu1 %v13345_v7 }
 0x5ca   : > { %8361 = vmatmul.mubr.msk.bf16.gmra.mrb[156].mxu1 %vm3705_vm2, %v9462_v42 }
 0x685   : > { %v6621_v49 = vpop.f32.mrb[144].mxu1 }
 0x686   : > { %v6623_v28 = vpop.f32.mrb[145].mxu1 }
 0x687   : > { %v6625_v50 = vpop.f32.mrb[146].mxu1 }
 0x688   : > { %v12853_v18 = vpack.c.bf16 %v6625_v50, %v6621_v49  ;;  %v6627_v51 = vpop.f32.mrb[147].mxu1  ;;  %v9525_v49 = vld [vmem:[%s13206_s9 + $0x44] ss:$8 sps:$4 sm:$0xff]  }
 0x689   : > { %v12855_v20 = vpack.c.bf16 %v6627_v51, %v6623_v28 }
 0x68a   : > { %6668 = vst [vmem:[#allocation5] sm:$0xff] %v12853_v18  ;;  %v6754_v29 = vshll.u32 %v12853_v18, 16  ;;  %v6752_v5 = vshrl.u32 %v12853_v18, 16 }
 0x68b   : > { %6669 = vst [vmem:[#allocation5 + $0x8] sm:$0xff] %v12855_v20  ;;  %v6766_v16 = vshll.u32 %v12855_v20, 16  ;;  %v6764_v31 = vshrl.u32 %v12855_v20, 16 }
 0x68c   : > { %v6756_v54 = vrot.slane %v6754_v29, 1  ;;  %v9528_v29 = vld [vmem:[%s13206_s9 + $0x54] ss:$8 sps:$4 sm:$0xff]  }
 0x68d   : > { %v6631_v8 = vpop.f32.mrb[148].mxu1  ;;  %v6768_v13 = vrot.slane %v6766_v16, 1 }
 0x68e   : > { %v6633_v44 = vpop.f32.mrb[149].mxu1  ;;  %v6757_v12 = vor.u32 %v6756_v54, %v6752_v5  ;;  %v9531_v54 = vld [vmem:[%s13206_s9 + $0x64] ss:$8 sps:$4 sm:$0xff]   ;;  %v9532_v5 = vld [vmem:[%s13206_s9 + $0x70] ss:$8 sps:$4 sm:$0xff]  }
 0x68f   : > { %v6635_v39 = vpop.f32.mrb[150].mxu1  ;;  %v6769_v46 = vor.u32 %v6768_v13, %v6764_v31  ;;  %v9526_v13 = vld [vmem:[%s13206_s9 + $0x50] ss:$8 sps:$4 sm:$0xff]   ;;  %v9529_v31 = vld [vmem:[%s13206_s9 + $0x60] ss:$8 sps:$4 sm:$0xff]  }
 0x690   : > { %v12861_v36 = vpack.c.bf16 %v6635_v39, %v6631_v8  ;;  %v6637_v14 = vpop.f32.mrb[151].mxu1  ;;  %v9523_v8 = vld [vmem:[%s13206_s9 + $0x40] ss:$8 sps:$4 sm:$0xff]  }
 0x691   : > { %v12863_v21 = vpack.c.bf16 %v6637_v14, %v6633_v44 }
 0x692   : > { %v6759_v15 = vshll.u32 %v12861_v36, 16  ;;  %v6775_v37 = vshrl.u32 %v12861_v36, 16 }
 0x693   : > { %v6771_v26 = vshll.u32 %v12863_v21, 16  ;;  %v6783_v1 = vshrl.u32 %v12863_v21, 16 }
 0x694   : > { %v6761_v34 = vrot.slane %v6759_v15, 1 }
 0x695   : > { %v6641_v45 = vpop.f32.mrb[152].mxu1  ;;  %v6773_v6 = vrot.slane %v6771_v26, 1  ;;  %v9534_v26 = vld [vmem:[%s13206_s9 + $0x74] ss:$8 sps:$4 sm:$0xff]  }
 0x696   : > { %v6643_v35 = vpop.f32.mrb[153].mxu1  ;;  %v6762_v56 = vsel %vm539_vm0, %v6757_v12, %v6761_v34  ;;  %v6777_v47 = vor.u32 %v6775_v37, %v6761_v34  ;;  %v9537_v34 = vld [vmem:[%s13206_s9 + $0x84] ss:$8 sps:$4 sm:$0xff]   ;;  %v9544_v12 = vld [vmem:[%s13206_s9 + $0xb0] ss:$8 sps:$4 sm:$0xff]  }
 0x697   : > { %v6645_v48 = vpop.f32.mrb[154].mxu1  ;;  %v6774_v24 = vsel %vm539_vm0, %v6769_v46, %v6773_v6  ;;  %v6785_v27 = vor.u32 %v6783_v1, %v6773_v6  ;;  %v9540_v46 = vld [vmem:[%s13206_s9 + $0x94] ss:$8 sps:$4 sm:$0xff]   ;;  %v9543_v6 = vld [vmem:[%s13206_s9 + $0xa4] ss:$8 sps:$4 sm:$0xff]  }
 0x698   : > { %v12876_v59 = vpack.c.bf16 %v6645_v48, %v6641_v45  ;;  %v6647_v9 = vpop.f32.mrb[155].mxu1  ;;  %7013 = vmatprep.mubr.bf16.mxu0 %v6774_v24  ;;  %v9535_v45 = vld [vmem:[%s13206_s9 + $0x80] ss:$8 sps:$4 sm:$0xff]   ;;  %v9549_v48 = vld [vmem:[%s13206_s9 + $0xc4] ss:$8 sps:$4 sm:$0xff]  }
 0x699   : > { %v12879_v52 = vpack.c.bf16 %v6647_v9, %v6643_v35  ;;  %7014 = vmatmul.mubr.bf16.vlgmr.msra.gmra.mrb[128].mxu0 %v6762_v56  ;;  %v9541_v35 = vld [vmem:[%s13206_s9 + $0xa0] ss:$8 sps:$4 sm:$0xff]   ;;  %v9550_v9 = vld [vmem:[%s13206_s9 + $0xd0] ss:$8 sps:$4 sm:$0xff]   ;;  %v9555_v56 = vld [vmem:[%s13206_s9 + $0xe4] ss:$8 sps:$4 sm:$0xff]  }
 0x69a   : > { %7215 = vmatpush1.bf16.msra.mxu0 %v9511_v3  ;;  %v6779_v41 = vshll.u32 %v12876_v59, 16  ;;  %v6791_v11 = vshrl.u32 %v12876_v59, 16  ;;  %v9546_v3 = vld [vmem:[%s13206_s9 + $0xb4] ss:$8 sps:$4 sm:$0xff]   ;;  %v9547_v24 = vld [vmem:[%s13206_s9 + $0xc0] ss:$8 sps:$4 sm:$0xff]  }
 0x69b   : > { %7216 = vmatprep.subr.bf16.mxu0 %v9516_v23  ;;  %v6787_v40 = vshll.u32 %v12879_v52, 16  ;;  %v6799_v58 = vshrl.u32 %v12879_v52, 16  ;;  %v9552_v23 = vld [vmem:[%s13206_s9 + $0xd4] ss:$8 sps:$4 sm:$0xff]   ;;  %v9556_v1 = vld [vmem:[%s13206_s9 + $0xf0] ss:$8 sps:$4 sm:$0xff]  }
 0x69c   : > { %v6781_v38 = vrot.slane %v6779_v41, 1  ;;  %v9558_v41 = vld [vmem:[%s13206_s9 + $0xf4] ss:$8 sps:$4 sm:$0xff]  }
 0x69d   : > { %v6651_v0 = vpop.f32.mrb[156].mxu1  ;;  %v6789_v62 = vrot.slane %v6787_v40, 1  ;;  %v9561_v40 = vld [vmem:[%s13206_s9 + $0x204] ss:$8 sps:$4 sm:$0xff]   ;;  %v9564_v37 = vld [vmem:[%s13206_s9 + $0x214] ss:$8 sps:$4 sm:$0xff]  }
 0x69e   : > { %v6653_v4 = vpop.f32.mrb[157].mxu1  ;;  %7217 = vmatpush1.bf16.msra.mxu0 %v9514_v32  ;;  %v6782_v10 = vsel %vm539_vm0, %v6777_v47, %v6781_v38  ;;  %v6793_v57 = vor.u32 %v6791_v11, %v6781_v38  ;;  %v9553_v32 = vld [vmem:[%s13206_s9 + $0xe0] ss:$8 sps:$4 sm:$0xff]   ;;  %v9562_v38 = vld [vmem:[%s13206_s9 + $0x210] ss:$8 sps:$4 sm:$0xff]  }
 0x69f   : > { %v6655_v60 = vpop.f32.mrb[158].mxu1  ;;  %v6790_v42 = vsel %vm539_vm0, %v6785_v27, %v6789_v62  ;;  %7218 = vmatprep.subr.bf16.mxu0 %v9519_v19  ;;  %v6801_v25 = vor.u32 %v6799_v58, %v6789_v62  ;;  %v9559_v19 = vld [vmem:[%s13206_s9 + $0x200] ss:$8 sps:$4 sm:$0xff]   ;;  %v9568_v62 = vld [vmem:[%s13206_s9 + $0x230] ss:$8 sps:$4 sm:$0xff]  }
 0x6a0   : > { %v12900_v63 = vpack.c.bf16 %v6655_v60, %v6651_v0  ;;  %v6657_v43 = vpop.f32.mrb[159].mxu1  ;;  %7023 = vmatprep.mubr.bf16.mxu0 %v6790_v42  ;;  %v9567_v0 = vld [vmem:[%s13206_s9 + $0x224] ss:$8 sps:$4 sm:$0xff]   ;;  %v9565_v27 = vld [vmem:[%s13206_s9 + $0x220] ss:$8 sps:$4 sm:$0xff]  }
 0x6a1   : > { %v12903_v30 = vpack.c.bf16 %v6657_v43, %v6653_v4  ;;  %7024 = vmatmul.mubr.bf16.gmra.mrb[132].mxu0 %v6782_v10  ;;  %v9573_v4 = vld [vmem:[%s13206_s9 + $0x244] ss:$8 sps:$4 sm:$0xff]   ;;  %v9576_v47 = vld [vmem:[%s13206_s9 + $0x254] ss:$8 sps:$4 sm:$0xff]   ;;  %v9574_v60 = vld [vmem:[%s13206_s9 + $0x250] ss:$8 sps:$4 sm:$0xff]  }
 0x6a2   : > { %6674 = vst [vmem:[#allocation5 + $0x30] sm:$0xff] %v12900_v63  ;;  %7219 = vmatpush1.bf16.msra.mxu0 %v9517_v17  ;;  %v6795_v33 = vshll.u32 %v12900_v63, 16  ;;  %v6807_v14 = vshrl.u32 %v12900_v63, 16  ;;  %v9571_v17 = vld [vmem:[%s13206_s9 + $0x240] ss:$8 sps:$4 sm:$0xff]   ;;  %v7334_v43 = vrot.slane %v12863_v21, 1 }
 0x6a3   : > { %6675 = vst [vmem:[#allocation5 + $0x38] sm:$0xff] %v12903_v30  ;;  %7220 = vmatprep.subr.bf16.mxu0 %v9522_v61  ;;  %v6803_v2 = vshll.u32 %v12903_v30, 16  ;;  %v6810_v28 = vshrl.u32 %v12903_v30, 16  ;;  %v7288_v42 = vld [vmem:[#allocation5 + $0x8] sm:$0xfe] }
 0x6a4   : > { %v6797_v50 = vrot.slane %v6795_v33, 1  ;;  %v9579_v61 = vld [vmem:[%s13206_s9 + $0x264] ss:$8 sps:$4 sm:$0xff]   ;;  %v7333_v58 = vrot.slane %v7288_v42, 1  ;;  %v9577_v10 = vld [vmem:[%s13206_s9 + $0x260] ss:$8 sps:$4 sm:$0xff]  }
 0x6a5   : > { %v6805_v51 = vrot.slane %v6803_v2, 1  ;;  %v9583_v2 = vld [vmem:[%s13206_s9 + $0x280] ss:$8 sps:$4 sm:$0xff]  }
 0x6a6   : > { %7221 = vmatpush1.bf16.msra.mxu0 %v9520_v22  ;;  %v6798_v16 = vsel %vm539_vm0, %v6793_v57, %v6797_v50  ;;  %v6809_v15 = vor.u32 %v6807_v14, %v6797_v50  ;;  %v9582_v22 = vld [vmem:[%s13206_s9 + $0x274] ss:$8 sps:$4 sm:$0xff]   ;;  %v7335_v33 = vsel %vm1269_vm1, %v7333_v58, %v7334_v43  ;;  %v9591_v50 = vld [vmem:[%s13206_s9 + $0x2a4] ss:$8 sps:$4 sm:$0xff]   ;;  %v9598_v14 = vld [vmem:[%s13206_s9 + $0x2d0] ss:$8 sps:$4 sm:$0xff]  }
 0x6a7   : > { %v6806_v44 = vsel %vm539_vm0, %v6801_v25, %v6805_v51  ;;  %7222 = vmatprep.subr.bf16.mxu0 %v9525_v49  ;;  %v6812_v39 = vor.u32 %v6810_v28, %v6805_v51  ;;  %v9585_v25 = vld [vmem:[%s13206_s9 + $0x284] ss:$8 sps:$4 sm:$0xff]   ;;  %v9588_v49 = vld [vmem:[%s13206_s9 + $0x294] ss:$8 sps:$4 sm:$0xff]   ;;  %v9586_v28 = vld [vmem:[%s13206_s9 + $0x290] ss:$8 sps:$4 sm:$0xff]  }
 0x6a8   : > { %7033 = vmatprep.mubr.bf16.mxu0 %v6806_v44  ;;  %v9589_v51 = vld [vmem:[%s13206_s9 + $0x2a0] ss:$8 sps:$4 sm:$0xff]   ;;  %v9597_v44 = vld [vmem:[%s13206_s9 + $0x2c4] ss:$8 sps:$4 sm:$0xff]  }
 0x6a9   : > { %7034 = vmatmul.mubr.bf16.gmra.mrb[136].mxu0 %v6798_v16  ;;  %v6682_v57 = vld [vmem:[#allocation5 + $0x30] sm:$0x7f] }
 0x6aa   : > { %7223 = vmatpush1.bf16.msra.mxu0 %v9523_v8  ;;  %7043 = vmatprep.mubr.bf16.mxu0 %v6812_v39  ;;  %v6683_v11 = vld [vmem:[#allocation5 + $0x38] sm:$0x7f] }
 0x6ab   : > { %7224 = vmatprep.subr.bf16.mxu0 %v9528_v29  ;;  %v9594_v8 = vld [vmem:[%s13206_s9 + $0x2b4] ss:$8 sps:$4 sm:$0xff]   ;;  %v9592_v16 = vld [vmem:[%s13206_s9 + $0x2b0] ss:$8 sps:$4 sm:$0xff]   ;;  %v9595_v29 = vld [vmem:[%s13206_s9 + $0x2c0] ss:$8 sps:$4 sm:$0xff]  }
 0x6ac   : > { %v9600_v39 = vld [vmem:[%s13206_s9 + $0x2d4] ss:$8 sps:$4 sm:$0xff]  }
 0x6ae   : > { %7225 = vmatpush1.bf16.msra.mxu0 %v9526_v13  ;;  %v9603_v13 = vld [vmem:[%s13206_s9 + $0x2e4] ss:$8 sps:$4 sm:$0xff]  }
 0x6af   : > { %7226 = vmatprep.subr.bf16.mxu0 %v9531_v54  ;;  %v9601_v54 = vld [vmem:[%s13206_s9 + $0x2e0] ss:$8 sps:$4 sm:$0xff]  }
 0x6b1   : > { %7044 = vmatmul.mubr.bf16.gmra.mrb[140].mxu0 %v6809_v15  ;;  %v9606_v15 = vld [vmem:[%s13206_s9 + $0x2f4] ss:$8 sps:$4 sm:$0xff]  }
 0x6b2   : > { %7227 = vmatpush1.bf16.msra.mxu0 %v9529_v31  ;;  %7246 = vmatprep.mubr.bf16.mxu0 %v12855_v20  ;;  %v9538_v20 = vld [vmem:[%s13206_s9 + $0x90] ss:$8 sps:$4 sm:$0xff]   ;;  %v7287_v31 = vld [vmem:[#allocation5] sm:$0xfe] }
 0x6b3   : > { %7228 = vmatprep.subr.bf16.mxu0 %v9534_v26  ;;  %v9604_v26 = vld [vmem:[%s13206_s9 + $0x2f0] ss:$8 sps:$4 sm:$0xff]  }
 0x6b6   : > { %7229 = vmatpush1.bf16.msra.mxu0 %v9532_v5  ;;  %v7330_v5 = vrot.slane %v7287_v31, 1 }
 0x6b7   : > { %7230 = vmatprep.subr.bf16.mxu0 %v9537_v34  ;;  %v7331_v34 = vrot.slane %v12861_v36, 1 }
 0x6ba   : > { %7231 = vmatpush1.bf16.msra.mxu0 %v9535_v45  ;;  %v7338_v45 = vrot.slane %v12879_v52, 1 }
 0x6bb   : > { %7232 = vmatprep.subr.bf16.mxu0 %v9540_v46  ;;  %v7332_v46 = vsel %vm1269_vm1, %v7330_v5, %v7331_v34 }
 0x6be   : > { %7233 = vmatpush1.bf16.msra.mxu0 %v9538_v20  ;;  %v7339_v20 = vsel %vm1269_vm1, %v7334_v43, %v7338_v45 }
 0x6bf   : > { %7234 = vmatprep.subr.bf16.mxu0 %v9543_v6  ;;  %v7336_v6 = vrot.slane %v12876_v59, 1 }
 0x6c2   : > { %7235 = vmatpush1.bf16.msra.mxu0 %v9541_v35  ;;  %v7342_v35 = vrot.slane %v12903_v30, 1  ;;  %v8522_v30 = vld [vmem:[%s13207_s10 + $0x1] ss:$4 sm:$0x3] }
 0x6c3   : > { %7236 = vmatprep.subr.bf16.mxu0 %v9546_v3  ;;  %v7337_v3 = vsel %vm1269_vm1, %v7331_v34, %v7336_v6 }
 0x6c6   : > { %7237 = vmatpush1.bf16.msra.mxu0 %v9544_v12  ;;  %v7343_v12 = vsel %vm1269_vm1, %v7338_v45, %v7342_v35 }
 0x6c7   : > { %7238 = vmatprep.subr.bf16.mxu0 %v9549_v48 }
 0x6ca   : > { %7239 = vmatpush1.bf16.msra.mxu0 %v9547_v24 }
 0x6cb   : > { %7240 = vmatprep.subr.bf16.mxu0 %v9552_v23  ;;  %v8523_v23 = vld [vmem:[%s13207_s10 + $0x2] ss:$4 sm:$0x3] }
 0x6ce   : > { %7241 = vmatpush1.bf16.msra.mxu0 %v9550_v9  ;;  %v13128_v9 = vrot.slane %v8522_v30, %v13346_v55 }
 0x6cf   : > { %7242 = vmatprep.subr.bf16.mxu0 %v9555_v56 }
 0x6d2   : > { %7243 = vmatpush1.bf16.msra.mxu0 %v9553_v32 }
 0x6d3   : > { %7244 = vmatprep.subr.bf16.mxu0 %v9558_v41  ;;  %v13132_v41 = vrot.slane %v8522_v30, %v13347_v53 }
 0x6d6   : > { %7245 = vmatpush1.bf16.msra.mxu0 %v9556_v1 }
 0x6d7   : > { %7512 = vmatprep.subr.bf16.mxu0 %v9561_v40 }
 0x6d9   : > { %7247 = vmatmul.mubr.bf16.vlgmr.msra.gmra.mrb[128].mxu0 %v12853_v18  ;;  %v9570_v18 = vld [vmem:[%s13206_s9 + $0x234] ss:$8 sps:$4 sm:$0xff]  }
 0x6da   : > { %7256 = vmatprep.mubr.bf16.mxu0 %v12863_v21  ;;  %7513 = vmatpush1.bf16.msra.mxu0 %v9559_v19  ;;  %v9580_v21 = vld [vmem:[%s13206_s9 + $0x270] ss:$8 sps:$4 sm:$0xff]   ;;  %v13135_v19 = vrot.slane %v8523_v23, %v13346_v55 }
 0x6db   : > { %7514 = vmatprep.subr.bf16.mxu0 %v9564_v37 }
 0x6de   : > { %7515 = vmatpush1.bf16.msra.mxu0 %v9562_v38 }
 0x6df   : > { %7516 = vmatprep.subr.bf16.mxu0 %v9567_v0 }
 0x6e1   : > { %7257 = vmatmul.mubr.bf16.gmra.mrb[132].mxu0 %v12861_v36  ;;  %v7340_v36 = vrot.slane %v12900_v63, 1 }
 0x6e2   : > { %7266 = vmatprep.mubr.bf16.mxu0 %v12879_v52  ;;  %7517 = vmatpush1.bf16.msra.mxu0 %v9565_v27  ;;  %v13139_v27 = vrot.slane %v8523_v23, %v13347_v53 }
 0x6e3   : > { %7518 = vmatprep.subr.bf16.mxu0 %v9570_v18  ;;  %v7341_v52 = vsel %vm1269_vm1, %v7336_v6, %v7340_v36 }
 0x6e6   : > { %7519 = vmatpush1.bf16.msra.mxu0 %v9568_v62 }
 0x6e7   : > { %7520 = vmatprep.subr.bf16.mxu0 %v9573_v4 }
 0x6e9   : > { %7267 = vmatmul.mubr.bf16.gmra.mrb[136].mxu0 %v12876_v59  ;;  %v7601_v59 = vld [vmem:[%s13207_s10] ss:$4 sm:$0x3] }
 0x6ea   : > { %7276 = vmatprep.mubr.bf16.mxu0 %v6683_v11  ;;  %7521 = vmatpush1.bf16.msra.mxu0 %v9571_v17  ;;  %v13115_v63 = vrot.slane %v7601_v59, %v13346_v55  ;;  %v13121_v48 = vrot.slane %v7601_v59, %v13347_v53 }
 0x6eb   : > { %7522 = vmatprep.subr.bf16.mxu0 %v9576_v47 }
 0x6ee   : > { %7523 = vmatpush1.bf16.msra.mxu0 %v9574_v60 }
 0x6ef   : > { %7524 = vmatprep.subr.bf16.mxu0 %v9579_v61 }
 0x6f1   : > { %7277 = vmatmul.mubr.bf16.gmra.mrb[140].mxu0 %v6682_v57 }
 0x6f2   : > { %7525 = vmatpush1.bf16.msra.mxu0 %v9577_v10  ;;  %7544 = vmatprep.mubr.bf16.mxu0 %v7335_v33 }
 0x6f3   : > { %7526 = vmatprep.subr.bf16.mxu0 %v9582_v22 }
 0x6f6   : > { %7527 = vmatpush1.bf16.msra.mxu0 %v9580_v21 }
 0x6f7   : > { %7528 = vmatprep.subr.bf16.mxu0 %v9585_v25 }
 0x6fa   : > { %7529 = vmatpush1.bf16.msra.mxu0 %v9583_v2 }
 0x6fb   : > { %7530 = vmatprep.subr.bf16.mxu0 %v9588_v49 }
 0x6fe   : > { %7531 = vmatpush1.bf16.msra.mxu0 %v9586_v28 }
 0x6ff   : > { %7532 = vmatprep.subr.bf16.mxu0 %v9591_v50 }
 0x702   : > { %7533 = vmatpush1.bf16.msra.mxu0 %v9589_v51 }
 0x703   : > { %7534 = vmatprep.subr.bf16.mxu0 %v9594_v8 }
 0x706   : > { %7535 = vmatpush1.bf16.msra.mxu0 %v9592_v16 }
 0x707   : > { %7536 = vmatprep.subr.bf16.mxu0 %v9597_v44 }
 0x70a   : > { %7537 = vmatpush1.bf16.msra.mxu0 %v9595_v29 }
 0x70b   : > { %7538 = vmatprep.subr.bf16.mxu0 %v9600_v39 }
 0x70e   : > { %7539 = vmatpush1.bf16.msra.mxu0 %v9598_v14 }
 0x70f   : > { %7540 = vmatprep.subr.bf16.mxu0 %v9603_v13 }
 0x712   : > { %7541 = vmatpush1.bf16.msra.mxu0 %v9601_v54 }
 0x713   : > { %7542 = vmatprep.subr.bf16.mxu0 %v9606_v15 }
 0x716   : > { %7543 = vmatpush1.bf16.msra.mxu0 %v9604_v26 }
 0x719   : > { %7545 = vmatmul.mubr.bf16.vlgmr.msra.gmra.mrb[128].mxu0 %v7332_v46 }
 0x71a   : > { %7554 = vmatprep.mubr.bf16.mxu0 %v7339_v20 }
 0x721   : > { %7555 = vmatmul.mubr.bf16.gmra.mrb[132].mxu0 %v7337_v3 }
 0x722   : > { %7564 = vmatprep.mubr.bf16.mxu0 %v7343_v12 }
 0x729   : > { %7565 = vmatmul.mubr.bf16.gmra.mrb[136].mxu0 %v7341_v52 }
 0x72a   : > { %7574 = vmatprep.mubr.bf16.mxu0 %v7342_v35 }
 0x731   : > { %7575 = vmatmul.mubr.bf16.gmra.mrb[140].mxu0 %v7340_v36 }
 0x7ec   : > { %v7546_v24 = vpop.f32.mrb[128].mxu0 }
 0x7ed   : > { %v7613_v7 = vadd.f32 %v13115_v63, %v7546_v24  ;;  %v7548_v56 = vpop.f32.mrb[129].mxu0 }
 0x7ee   : > { %v7614_v32 = vadd.f32 %v13121_v48, %v7548_v56  ;;  %v7550_v1 = vpop.f32.mrb[130].mxu0 }
 0x7ef   : > { %v7629_v40 = vmax.f32 %v7613_v7, 0.0  ;;  %v7615_v37 = vadd.f32 %v13115_v63, %v7550_v1  ;;  %v7552_v38 = vpop.f32.mrb[131].mxu0 }
 0x7f0   : > { %v7630_v0 = vmax.f32 %v7614_v32, 0.0  ;;  %v7616_v18 = vadd.f32 %v13121_v48, %v7552_v38 }
 0x7f1   : > { %v7658_v62 = vmul.f32 %v13128_v9, %v7629_v40  ;;  %v7631_v4 = vmax.f32 %v7615_v37, 0.0 }
 0x7f2   : > { %v7659_v17 = vmul.f32 %v13132_v41, %v7630_v0  ;;  %v7632_v47 = vmax.f32 %v7616_v18, 0.0 }
 0x7f3   : > { %v7687_v11 = vadd.f32 %v13135_v19, %v7658_v62  ;;  %v7660_v55 = vmul.f32 %v13128_v9, %v7631_v4 }
 0x7f4   : > { %v7688_v60 = vadd.f32 %v13139_v27, %v7659_v17  ;;  %v7661_v42 = vmul.f32 %v13132_v41, %v7632_v47  ;;  %v7556_v61 = vpop.f32.mrb[132].mxu0 }
 0x7f5   : > { %v7689_v53 = vadd.f32 %v13135_v19, %v7660_v55  ;;  %v7617_v58 = vadd.f32 %v13115_v63, %v7556_v61  ;;  %v7558_v43 = vpop.f32.mrb[133].mxu0 }
 0x7f6   : > { %v8535_v10 = vpack.c.bf16 %v7688_v60, %v7687_v11  ;;  %v7690_v22 = vadd.f32 %v13139_v27, %v7661_v42  ;;  %v7618_v57 = vadd.f32 %v13121_v48, %v7558_v43  ;;  %v7560_v33 = vpop.f32.mrb[134].mxu0 }
 0x7f7   : > { %v7633_v21 = vmax.f32 %v7617_v58, 0.0  ;;  %v7619_v25 = vadd.f32 %v13115_v63, %v7560_v33  ;;  %v7562_v2 = vpop.f32.mrb[135].mxu0 }
 0x7f8   : > { %7751 = vst [vmem:[%s13107_s25] sm:$0xff] %v8535_v10  ;;  %v8536_v49 = vpack.c.bf16 %v7690_v22, %v7689_v53  ;;  %v7634_v28 = vmax.f32 %v7618_v57, 0.0  ;;  %v7620_v50 = vadd.f32 %v13121_v48, %v7562_v2 }
 0x7f9   : > { %v7662_v51 = vmul.f32 %v13128_v9, %v7633_v21  ;;  %v7635_v8 = vmax.f32 %v7619_v25, 0.0 }
 0x7fa   : > { %7752 = vst [vmem:[%s13107_s25 + $0x8] sm:$0xff] %v8536_v49  ;;  %v7663_v16 = vmul.f32 %v13132_v41, %v7634_v28  ;;  %v7636_v44 = vmax.f32 %v7620_v50, 0.0 }
 0x7fb   : > { %v7691_v29 = vadd.f32 %v13135_v19, %v7662_v51  ;;  %v7664_v39 = vmul.f32 %v13128_v9, %v7635_v8 }
 0x7fc   : > { %v7692_v14 = vadd.f32 %v13139_v27, %v7663_v16  ;;  %v7665_v13 = vmul.f32 %v13132_v41, %v7636_v44  ;;  %v7566_v54 = vpop.f32.mrb[136].mxu0 }
 0x7fd   : > { %v7693_v15 = vadd.f32 %v13135_v19, %v7664_v39  ;;  %v7621_v31 = vadd.f32 %v13115_v63, %v7566_v54  ;;  %v7568_v26 = vpop.f32.mrb[137].mxu0 }
 0x7fe   : > { %v8537_v5 = vpack.c.bf16 %v7692_v14, %v7691_v29  ;;  %v7694_v34 = vadd.f32 %v13139_v27, %v7665_v13  ;;  %v7622_v45 = vadd.f32 %v13121_v48, %v7568_v26  ;;  %v7570_v46 = vpop.f32.mrb[138].mxu0 }
 0x7ff   : > { %v7637_v20 = vmax.f32 %v7621_v31, 0.0  ;;  %v7623_v6 = vadd.f32 %v13115_v63, %v7570_v46  ;;  %v7572_v35 = vpop.f32.mrb[139].mxu0 }
 0x800   : > { %7753 = vst [vmem:[%s13107_s25 + $0x10] sm:$0xff] %v8537_v5  ;;  %v8538_v3 = vpack.c.bf16 %v7694_v34, %v7693_v15  ;;  %v7638_v12 = vmax.f32 %v7622_v45, 0.0  ;;  %v7624_v36 = vadd.f32 %v13121_v48, %v7572_v35 }
 0x801   : > { %v7666_v52 = vmul.f32 %v13128_v9, %v7637_v20  ;;  %v7639_v59 = vmax.f32 %v7623_v6, 0.0 }
 0x802   : > { %7754 = vst [vmem:[%s13107_s25 + $0x18] sm:$0xff] %v8538_v3  ;;  %v7667_v30 = vmul.f32 %v13132_v41, %v7638_v12  ;;  %v7640_v24 = vmax.f32 %v7624_v36, 0.0 }
 0x803   : > { %v7695_v23 = vadd.f32 %v13135_v19, %v7666_v52  ;;  %v7668_v7 = vmul.f32 %v13128_v9, %v7639_v59 }
 0x804   : > { %v7696_v56 = vadd.f32 %v13139_v27, %v7667_v30  ;;  %v7669_v32 = vmul.f32 %v13132_v41, %v7640_v24  ;;  %v7576_v1 = vpop.f32.mrb[140].mxu0 }
 0x805   : > { %v7697_v40 = vadd.f32 %v13135_v19, %v7668_v7  ;;  %v7625_v37 = vadd.f32 %v13115_v63, %v7576_v1  ;;  %v7578_v38 = vpop.f32.mrb[141].mxu0 }
 0x806   : > { %v8539_v0 = vpack.c.bf16 %v7696_v56, %v7695_v23  ;;  %v7698_v18 = vadd.f32 %v13139_v27, %v7669_v32  ;;  %v7626_v62 = vadd.f32 %v13121_v48, %v7578_v38  ;;  %v7580_v4 = vpop.f32.mrb[142].mxu0 }
 0x807   : > { %v7641_v17 = vmax.f32 %v7625_v37, 0.0  ;;  %v7627_v47 = vadd.f32 %v13115_v63, %v7580_v4  ;;  %v7582_v11 = vpop.f32.mrb[143].mxu0 }
 0x808   : > { %7755 = vst [vmem:[%s13107_s25 + $0x20] sm:$0xff] %v8539_v0  ;;  %v8540_v55 = vpack.c.bf16 %v7698_v18, %v7697_v40  ;;  %v7642_v60 = vmax.f32 %v7626_v62, 0.0  ;;  %v7628_v42 = vadd.f32 %v13121_v48, %v7582_v11 }
 0x809   : > { %v7670_v61 = vmul.f32 %v13128_v9, %v7641_v17  ;;  %v7643_v53 = vmax.f32 %v7627_v47, 0.0 }
 0x80a   : > { %7756 = vst [vmem:[%s13107_s25 + $0x28] sm:$0xff] %v8540_v55  ;;  %v7671_v58 = vmul.f32 %v13132_v41, %v7642_v60  ;;  %v7644_v43 = vmax.f32 %v7628_v42, 0.0 }
 0x80b   : > { %v7699_v10 = vadd.f32 %v13135_v19, %v7670_v61  ;;  %v7672_v22 = vmul.f32 %v13128_v9, %v7643_v53 }
 0x80c   : > { %v7700_v63 = vadd.f32 %v13139_v27, %v7671_v58  ;;  %v7673_v57 = vmul.f32 %v13132_v41, %v7644_v43 }
 0x80d   : > { %v7701_v33 = vadd.f32 %v13135_v19, %v7672_v22 }
 0x80e   : > { %v8541_v21 = vpack.c.bf16 %v7700_v63, %v7699_v10  ;;  %v7702_v48 = vadd.f32 %v13139_v27, %v7673_v57 }
 0x810   : > { %7757 = vst [vmem:[%s13107_s25 + $0x30] sm:$0xff] %v8541_v21  ;;  %v8542_v25 = vpack.c.bf16 %v7702_v48, %v7701_v33 }
 0x812   : > { %7758 = vst [vmem:[%s13107_s25 + $0x38] sm:$0x77] %v8542_v25 }
 0x813 PF: > { %s21_s17 = sadd.s32 1, %s9627_s17  }
 0x814   : > { %p18_p5 = scmp.ge.s32.totalorder %s21_s17, 4  }
 0x816   :  { %20 = sbr.rel (!%p18_p5) target bundleno = 1 (0x1), region = 110 }

</bundles_post_ra>
